<compile_context>
chip_gen: v6e
topology: v6e:2x2x1
jax: 0.10.0
libtpu: 0.0.40
codegen_flags: <defaults>
</compile_context>

<pallas_src>
import functools

import jax
import jax.numpy as jnp
from jax.experimental import pallas as pl
from jax.experimental.pallas import tpu as pltpu


_MASK_VALUE = -1e9  # additive mask; exp underflows to exactly 0.0 below ~-103 in f32


# ----------------------------------------------------------------------------
# Kernel: fused attention for a block of `block_b` batch elements.
# refs:
#   x_ref    : (M, inp)          f32 input tokens (M = block_b * N rows)
#   wq_ref   : (inp, inner)      bf16 q projection (softmax scale pre-folded)
#   wkt_ref  : (inner, inp)      bf16 k projection, pre-transposed
#   wv_ref   : (inp, inner)      bf16 v projection
#   bm_ref   : (heads, M, M)     f32 relative bias on diagonal batch blocks,
#                                -1e9 on cross-batch entries
#   wout_ref : (inner, oup)      bf16 to_out[0] weight
#   bout_ref : (1, oup)          f32 to_out[0] bias
#   o_ref    : (M, oup)          output rows
# scratch:
#   q_scr    : (M, inner) bf16   Q slab
#   kt_scr   : (inner, M) bf16   K^T slab (d-major)
#   v_scr    : (M, inner) bf16   V slab
#   ctx_scr  : (M, inner) bf16   per-head contexts, lane offset h*dim_head
# ----------------------------------------------------------------------------
def _attention_kernel(x_ref, wq_ref, wkt_ref, wv_ref, bm_ref, wout_ref,
                      bout_ref, o_ref, q_scr, kt_scr, v_scr, ctx_scr,
                      *, heads, dim_head, block_b, n_tokens):
    del block_b, n_tokens  # shapes are static; kept for clarity/signature

    # In-kernel bf16 cast of activations (VPU, effectively free).
    x_f32 = x_ref[...]                               # (M, inp) f32
    x = x_f32.astype(jnp.bfloat16)                   # (M, inp) bf16
    xt = x_f32.T.astype(jnp.bfloat16)                # (inp, M) bf16 (one small transpose)

    # Three lane-aligned projections, staged through VMEM scratch so the full
    # QKV slab is never live in vregs at once.
    q_scr[...] = jnp.dot(x, wq_ref[...],
                         preferred_element_type=jnp.float32).astype(jnp.bfloat16)
    # K is produced directly in d-major (inner, M) layout -> no per-head transposes.
    kt_scr[...] = jnp.dot(wkt_ref[...], xt,
                          preferred_element_type=jnp.float32).astype(jnp.bfloat16)
    v_scr[...] = jnp.dot(x, wv_ref[...],
                         preferred_element_type=jnp.float32).astype(jnp.bfloat16)

    # Static (trace-time unrolled) head loop.  Per head, the block_b batch
    # elements are handled by one full (M, M) score matmul; the precomputed
    # -1e9 off-diagonal mask makes the per-batch softmax exact.
    for h in range(heads):
        base = h * dim_head
        q_h = q_scr[:, base:base + dim_head]          # (M, d)  bf16
        kt_h = kt_scr[base:base + dim_head, :]        # (d, M)  bf16 (sublane slice)
        v_h = v_scr[:, base:base + dim_head]          # (M, d)  bf16

        scores = jnp.dot(q_h, kt_h,
                         preferred_element_type=jnp.float32)          # (M, M) f32
        scores = scores + bm_ref[h]                                   # bias + mask

        # Numerically stable softmax in f32; reciprocal on the EUP slot.
        scores = scores - jnp.max(scores, axis=-1, keepdims=True)
        p = jnp.exp(scores)
        attn = p * pl.reciprocal(jnp.sum(p, axis=-1, keepdims=True), approx=True)

        ctx = jnp.dot(attn.astype(jnp.bfloat16), v_h,
                      preferred_element_type=jnp.float32)              # (M, d) f32
        ctx_scr[:, base:base + dim_head] = ctx.astype(jnp.bfloat16)

    # Output projection (Dropout(p=0.0) is identity at inference).
    out = jnp.dot(ctx_scr[...], wout_ref[...],
                  preferred_element_type=jnp.float32)                  # (M, oup) f32
    o_ref[...] = (out + bout_ref[...]).astype(o_ref.dtype)
    # TODO(synk): nn.Dropout with p > 0 (training mode) is not implemented; p=0 here.


# ----------------------------------------------------------------------------
# Parameter prep (done once, outside the per-forward hot path).
# ----------------------------------------------------------------------------
def compute_relative_bias(table, ih, iw, heads):
    """Replicates the relative_index buffer construction + gather."""
    coords = jnp.stack(jnp.meshgrid(jnp.arange(ih), jnp.arange(iw),
                                    indexing='ij'))               # (2, ih, iw)
    coords = coords.reshape(2, -1)                                # (2, N)
    rel = coords[:, :, None] - coords[:, None, :]                 # (2, N, N)
    rel = rel.at[0].add(ih - 1)
    rel = rel.at[1].add(iw - 1)
    rel = rel.at[0].multiply(2 * iw - 1)
    rel_index = rel.transpose(1, 2, 0).sum(-1).reshape(-1)        # (N*N,)
    bias = table[rel_index]                                       # (N*N, heads)
    n = ih * iw
    return bias.reshape(n, n, heads).transpose(2, 0, 1).astype(jnp.float32)


def prepare_attention_params(params, *, ih, iw, heads, dim_head, block_b):
    """Fold softmax scale into W_q, pre-transpose W_k, cast matmul weights to
    bf16, and materialize the block-diagonal bias+mask slab once."""
    inner = heads * dim_head
    n = ih * iw
    m = block_b * n
    scale = dim_head ** (-0.5)

    w_qkv = params['w_qkv'].astype(jnp.float32)
    w_q = w_qkv[:, :inner] * scale
    w_k = w_qkv[:, inner:2 * inner]
    w_v = w_qkv[:, 2 * inner:]

    bias = compute_relative_bias(params['rel_bias_table'], ih, iw, heads)  # (h,N,N)
    # Batch-block-diagonal bias+mask: bias tiled on diagonal blocks, -1e9 off.
    bidx = jnp.arange(m) // n
    same_batch = bidx[:, None] == bidx[None, :]                           # (M, M)
    tiled = jnp.tile(bias, (1, block_b, block_b))                         # (h, M, M)
    bias_mask = jnp.where(same_batch[None], tiled, _MASK_VALUE).astype(jnp.float32)

    return {
        'w_q': w_q.astype(jnp.bfloat16),
        'w_k_t': w_k.T.astype(jnp.bfloat16),
        'w_v': w_v.astype(jnp.bfloat16),
        'w_out': params['w_out'].astype(jnp.bfloat16),
        'b_out': params['b_out'].astype(jnp.float32).reshape(1, -1),
        'bias_mask': bias_mask,
    }


# ----------------------------------------------------------------------------
# Forward wrapper.
# ----------------------------------------------------------------------------
@functools.partial(jax.jit,
                   static_argnames=('ih', 'iw', 'heads', 'dim_head', 'block_b'))
def attention_forward(x, prepared, *, ih, iw, heads, dim_head, block_b):
    B, N, inp = x.shape
    assert N == ih * iw
    assert B % block_b == 0
    inner = heads * dim_head
    oup = prepared['w_out'].shape[1]
    m = block_b * N
    n_steps = B // block_b

    # Row slab view (free reshape); bf16 cast happens inside the kernel.
    x2d = x.reshape(B * N, inp)

    kernel = functools.partial(_attention_kernel, heads=heads,
                               dim_head=dim_head, block_b=block_b, n_tokens=N)

    out2d = pl.pallas_call(
        kernel,
        out_shape=jax.ShapeDtypeStruct((B * N, oup), x.dtype),
        grid_spec=pltpu.PrefetchScalarGridSpec(
            num_scalar_prefetch=0,
            grid=(n_steps,),
            in_specs=[
                pl.BlockSpec((m, inp), lambda i: (i, 0)),
                pl.BlockSpec((inp, inner), lambda i: (0, 0)),
                pl.BlockSpec((inner, inp), lambda i: (0, 0)),
                pl.BlockSpec((inp, inner), lambda i: (0, 0)),
                pl.BlockSpec((heads, m, m), lambda i: (0, 0, 0)),
                pl.BlockSpec((inner, oup), lambda i: (0, 0)),
                pl.BlockSpec((1, oup), lambda i: (0, 0)),
            ],
            out_specs=pl.BlockSpec((m, oup), lambda i: (i, 0)),
            scratch_shapes=[
                pltpu.VMEM((m, inner), jnp.bfloat16),   # Q
                pltpu.VMEM((inner, m), jnp.bfloat16),   # K^T (d-major)
                pltpu.VMEM((m, inner), jnp.bfloat16),   # V
                pltpu.VMEM((m, inner), jnp.bfloat16),   # per-head contexts
            ],
        ),
        compiler_params=pltpu.CompilerParams(
            dimension_semantics=(("parallel",) if n_steps > 1 else ("arbitrary",))),
    )(x2d, prepared['w_q'], prepared['w_k_t'], prepared['w_v'],
      prepared['bias_mask'], prepared['w_out'], prepared['b_out'])

    return out2d.reshape(B, N, oup)


# ----------------------------------------------------------------------------
# Pure-JAX f32 reference for verification (mirrors the PyTorch module).
# ----------------------------------------------------------------------------
def attention_reference(x, params, *, ih, iw, heads, dim_head):
    B, N, inp = x.shape
    inner = heads * dim_head
    scale = dim_head ** (-0.5)
    qkv = x @ params['w_qkv']                                     # (B, N, 3*inner)
    q, k, v = jnp.split(qkv, 3, axis=-1)

    def split_heads(t):
        return t.reshape(B, N, heads, dim_head).transpose(0, 2, 1, 3)

    q, k, v = map(split_heads, (q, k, v))                         # (B, h, N, d)
    dots = jnp.einsum('bhnd,bhmd->bhnm', q, k,
                      preferred_element_type=jnp.float32) * scale
    bias = compute_relative_bias(params['rel_bias_table'], ih, iw, heads)
    dots = dots + bias[None]
    attn = jax.nn.softmax(dots, axis=-1)
    out = jnp.einsum('bhnm,bhmd->bhnd', attn, v,
                     preferred_element_type=jnp.float32)
    out = out.transpose(0, 2, 1, 3).reshape(B, N, inner)
    return out @ params['w_out'] + params['b_out']


if __name__ == "__main__":
    # Small shapes consistent with the module.
    B = 8
    ih, iw = 4, 4            # image_size -> N = 16 tokens
    inp = 32
    oup = 32
    heads = 8
    dim_head = 32
    N = ih * iw

    key = jax.random.PRNGKey(0)
    kx, kw1, kw2, kb, kt = jax.random.split(key, 5)

    x = jax.random.normal(kx, (B, N, inp), dtype=jnp.float32)

    params = {
        # nn.Linear(inp, inner*3, bias=False) -> stored pre-transposed (in, out)
        'w_qkv': 0.05 * jax.random.normal(kw1, (inp, 3 * heads * dim_head),
                                          jnp.float32),
        # nn.Linear(inner, oup) -> pre-transposed (in, out) + bias
        'w_out': 0.05 * jax.random.normal(kw2, (heads * dim_head, oup),
                                          jnp.float32),
        'b_out': 0.05 * jax.random.normal(kb, (1, oup), jnp.float32),
        # relative_bias_table: nn.Parameter ((2ih-1)*(2iw-1), heads)
        'rel_bias_table': 0.1 * jax.random.normal(
            kt, ((2 * ih - 1) * (2 * iw - 1), heads), jnp.float32),
    }

    # Single grid step: v5e/v6e are single-TC so splitting the batch buys
    # nothing; on v7x benchmark block_b = B // 2 (two parallel steps) vs B.
    block_b = B

    prepared = prepare_attention_params(params, ih=ih, iw=iw, heads=heads,
                                        dim_head=dim_head, block_b=block_b)

    out = attention_forward(x, prepared, ih=ih, iw=iw, heads=heads,
                            dim_head=dim_head, block_b=block_b)
    out = jax.block_until_ready(out)

    ref = attention_reference(x, params, ih=ih, iw=iw, heads=heads,
                              dim_head=dim_head)

    assert out.shape == (B, N, oup), out.shape
    max_err = float(jnp.max(jnp.abs(out.astype(jnp.float32) - ref)))
    # bf16 matmul operands (f32 accumulation) + approx reciprocal => loosened tol.
    assert max_err < 5e-2, max_err

    print("KERNEL_OK")
</pallas_src>

<mosaic_0001>
module attributes {stable_mosaic.version = 11 : i64} {
  func.func @_attention_kernel(%arg0: i32, %arg1: memref<128x32xf32, #tpu.memory_space<vmem>>, %arg2: memref<32x256xbf16, #tpu.memory_space<vmem>>, %arg3: memref<256x32xbf16, #tpu.memory_space<vmem>>, %arg4: memref<32x256xbf16, #tpu.memory_space<vmem>>, %arg5: memref<8x128x128xf32, #tpu.memory_space<vmem>>, %arg6: memref<256x32xbf16, #tpu.memory_space<vmem>>, %arg7: memref<1x32xf32, #tpu.memory_space<vmem>>, %arg8: memref<128x32xf32, #tpu.memory_space<vmem>>, %arg9: memref<128x256xbf16, #tpu.memory_space<vmem>>, %arg10: memref<256x128xbf16, #tpu.memory_space<vmem>>, %arg11: memref<128x256xbf16, #tpu.memory_space<vmem>>, %arg12: memref<128x256xbf16, #tpu.memory_space<vmem>>) attributes {dimension_semantics = [#tpu.dimension_semantics<arbitrary>], iteration_bounds = array<i64: 1>, scalar_prefetch = 0 : i64, scratch_operands = 4 : i64, tpu.core_type = #tpu.core_type<tc>, window_params = [{transform_indices = @transform_0, window_bounds = array<i64: 128, 32>}, {pipeline_mode = #tpu.pipeline_mode<synchronous>, transform_indices = @transform_1, window_bounds = array<i64: 32, 256>}, {pipeline_mode = #tpu.pipeline_mode<synchronous>, transform_indices = @transform_2, window_bounds = array<i64: 256, 32>}, {pipeline_mode = #tpu.pipeline_mode<synchronous>, transform_indices = @transform_3, window_bounds = array<i64: 32, 256>}, {pipeline_mode = #tpu.pipeline_mode<synchronous>, transform_indices = @transform_4, window_bounds = array<i64: 8, 128, 128>}, {pipeline_mode = #tpu.pipeline_mode<synchronous>, transform_indices = @transform_5, window_bounds = array<i64: 256, 32>}, {pipeline_mode = #tpu.pipeline_mode<synchronous>, transform_indices = @transform_6, window_bounds = array<i64: 1, 32>}, {transform_indices = @transform_7, window_bounds = array<i64: 128, 32>}]} {
    %c0 = arith.constant 0 : index
    %c0_0 = arith.constant 0 : index
    %0 = vector.load %arg1[%c0, %c0_0] : memref<128x32xf32, #tpu.memory_space<vmem>>, vector<128x32xf32>
    %1 = arith.truncf %0 : vector<128x32xf32> to vector<128x32xbf16>
    %2 = tpu.transpose %0, [1, 0] : vector<128x32xf32> -> vector<32x128xf32>
    %3 = arith.truncf %2 : vector<32x128xf32> to vector<32x128xbf16>
    %c0_1 = arith.constant 0 : index
    %c0_2 = arith.constant 0 : index
    %4 = vector.load %arg2[%c0_1, %c0_2] : memref<32x256xbf16, #tpu.memory_space<vmem>>, vector<32x256xbf16>
    %cst = arith.constant dense<0.000000e+00> : vector<128x256xf32>
    %5 = tpu.matmul %1, %4, %cst {dimension_numbers = #tpu.dot_dimension_numbers<[1], [0], [0], [1], [0, 0, 1, 1], [], []>} : vector<128x32xbf16>, vector<32x256xbf16>, vector<128x256xf32> -> vector<128x256xf32>
    %6 = arith.truncf %5 : vector<128x256xf32> to vector<128x256xbf16>
    %c0_3 = arith.constant 0 : index
    %c0_4 = arith.constant 0 : index
    %7 = vector.load %arg9[%c0_3, %c0_4] : memref<128x256xbf16, #tpu.memory_space<vmem>>, vector<128x256xbf16>
    tpu.vector_store %arg9[%c0_3, %c0_4], %6 {strides = array<i32>} : memref<128x256xbf16, #tpu.memory_space<vmem>>, vector<128x256xbf16>,
    %c0_5 = arith.constant 0 : index
    %c0_6 = arith.constant 0 : index
    %8 = vector.load %arg3[%c0_5, %c0_6] : memref<256x32xbf16, #tpu.memory_space<vmem>>, vector<256x32xbf16>
    %cst_7 = arith.constant dense<0.000000e+00> : vector<256x128xf32>
    %9 = tpu.matmul %8, %3, %cst_7 {dimension_numbers = #tpu.dot_dimension_numbers<[1], [0], [0], [1], [0, 0, 1, 1], [], []>} : vector<256x32xbf16>, vector<32x128xbf16>, vector<256x128xf32> -> vector<256x128xf32>
    %10 = arith.truncf %9 : vector<256x128xf32> to vector<256x128xbf16>
    %c0_8 = arith.constant 0 : index
    %c0_9 = arith.constant 0 : index
    %11 = vector.load %arg10[%c0_8, %c0_9] : memref<256x128xbf16, #tpu.memory_space<vmem>>, vector<256x128xbf16>
    tpu.vector_store %arg10[%c0_8, %c0_9], %10 {strides = array<i32>} : memref<256x128xbf16, #tpu.memory_space<vmem>>, vector<256x128xbf16>,
    %c0_10 = arith.constant 0 : index
    %c0_11 = arith.constant 0 : index
    %12 = vector.load %arg4[%c0_10, %c0_11] : memref<32x256xbf16, #tpu.memory_space<vmem>>, vector<32x256xbf16>
    %cst_12 = arith.constant dense<0.000000e+00> : vector<128x256xf32>
    %13 = tpu.matmul %1, %12, %cst_12 {dimension_numbers = #tpu.dot_dimension_numbers<[1], [0], [0], [1], [0, 0, 1, 1], [], []>} : vector<128x32xbf16>, vector<32x256xbf16>, vector<128x256xf32> -> vector<128x256xf32>
    %14 = arith.truncf %13 : vector<128x256xf32> to vector<128x256xbf16>
    %c0_13 = arith.constant 0 : index
    %c0_14 = arith.constant 0 : index
    %15 = vector.load %arg11[%c0_13, %c0_14] : memref<128x256xbf16, #tpu.memory_space<vmem>>, vector<128x256xbf16>
    tpu.vector_store %arg11[%c0_13, %c0_14], %14 {strides = array<i32>} : memref<128x256xbf16, #tpu.memory_space<vmem>>, vector<128x256xbf16>,
    %c0_15 = arith.constant 0 : index
    %c0_16 = arith.constant 0 : index
    %16 = vector.load %arg9[%c0_15, %c0_16] : memref<128x256xbf16, #tpu.memory_space<vmem>>, vector<128x32xbf16>
    %c0_17 = arith.constant 0 : index
    %c0_18 = arith.constant 0 : index
    %17 = vector.load %arg10[%c0_17, %c0_18] : memref<256x128xbf16, #tpu.memory_space<vmem>>, vector<32x128xbf16>
    %c0_19 = arith.constant 0 : index
    %c0_20 = arith.constant 0 : index
    %18 = vector.load %arg11[%c0_19, %c0_20] : memref<128x256xbf16, #tpu.memory_space<vmem>>, vector<128x32xbf16>
    %cst_21 = arith.constant dense<0.000000e+00> : vector<128x128xf32>
    %19 = tpu.matmul %16, %17, %cst_21 {dimension_numbers = #tpu.dot_dimension_numbers<[1], [0], [0], [1], [0, 0, 1, 1], [], []>} : vector<128x32xbf16>, vector<32x128xbf16>, vector<128x128xf32> -> vector<128x128xf32>
    %c0_22 = arith.constant 0 : index
    %c0_23 = arith.constant 0 : index
    %c0_24 = arith.constant 0 : index
    %20 = vector.load %arg5[%c0_22, %c0_23, %c0_24] : memref<8x128x128xf32, #tpu.memory_space<vmem>>, vector<1x128x128xf32>
    %21 = vector.shape_cast %20 : vector<1x128x128xf32> to vector<128x128xf32>
    %22 = arith.addf %19, %21 : vector<128x128xf32>
    %cst_25 = arith.constant dense<0xFF800000> : vector<128xf32>
    %23 = vector.multi_reduction <maximumf>, %22, %cst_25 [1] : vector<128x128xf32> to vector<128xf32>
    %24 = vector.shape_cast %23 : vector<128xf32> to vector<128x1xf32>
    %25 = vector.broadcast %24 : vector<128x1xf32> to vector<128x128xf32>
    %26 = arith.subf %22, %25 : vector<128x128xf32>
    %27 = math.exp %26 : vector<128x128xf32>
    %cst_26 = arith.constant dense<0.000000e+00> : vector<128xf32>
    %28 = vector.multi_reduction <add>, %27, %cst_26 [1] : vector<128x128xf32> to vector<128xf32>
    %29 = vector.shape_cast %28 : vector<128xf32> to vector<128x1xf32>
    %30 = tpu.reciprocal %29 {approx = true} : vector<128x1xf32> -> vector<128x1xf32>
    %31 = vector.broadcast %30 : vector<128x1xf32> to vector<128x128xf32>
    %32 = arith.mulf %27, %31 : vector<128x128xf32>
    %33 = arith.truncf %32 : vector<128x128xf32> to vector<128x128xbf16>
    %cst_27 = arith.constant dense<0.000000e+00> : vector<128x32xf32>
    %34 = tpu.matmul %33, %18, %cst_27 {dimension_numbers = #tpu.dot_dimension_numbers<[1], [0], [0], [1], [0, 0, 1, 1], [], []>} : vector<128x128xbf16>, vector<128x32xbf16>, vector<128x32xf32> -> vector<128x32xf32>
    %35 = arith.truncf %34 : vector<128x32xf32> to vector<128x32xbf16>
    %c0_28 = arith.constant 0 : index
    %c0_29 = arith.constant 0 : index
    %36 = vector.load %arg12[%c0_28, %c0_29] : memref<128x256xbf16, #tpu.memory_space<vmem>>, vector<128x32xbf16>
    tpu.vector_store %arg12[%c0_28, %c0_29], %35 {strides = array<i32>} : memref<128x256xbf16, #tpu.memory_space<vmem>>, vector<128x32xbf16>,
    %c0_30 = arith.constant 0 : index
    %c32 = arith.constant 32 : index
    %37 = vector.load %arg9[%c0_30, %c32] : memref<128x256xbf16, #tpu.memory_space<vmem>>, vector<128x32xbf16>
    %c32_31 = arith.constant 32 : index
    %c0_32 = arith.constant 0 : index
    %38 = vector.load %arg10[%c32_31, %c0_32] : memref<256x128xbf16, #tpu.memory_space<vmem>>, vector<32x128xbf16>
    %c0_33 = arith.constant 0 : index
    %c32_34 = arith.constant 32 : index
    %39 = vector.load %arg11[%c0_33, %c32_34] : memref<128x256xbf16, #tpu.memory_space<vmem>>, vector<128x32xbf16>
    %cst_35 = arith.constant dense<0.000000e+00> : vector<128x128xf32>
    %40 = tpu.matmul %37, %38, %cst_35 {dimension_numbers = #tpu.dot_dimension_numbers<[1], [0], [0], [1], [0, 0, 1, 1], [], []>} : vector<128x32xbf16>, vector<32x128xbf16>, vector<128x128xf32> -> vector<128x128xf32>
    %c1 = arith.constant 1 : index
    %c0_36 = arith.constant 0 : index
    %c0_37 = arith.constant 0 : index
    %41 = vector.load %arg5[%c1, %c0_36, %c0_37] : memref<8x128x128xf32, #tpu.memory_space<vmem>>, vector<1x128x128xf32>
    %42 = vector.shape_cast %41 : vector<1x128x128xf32> to vector<128x128xf32>
    %43 = arith.addf %40, %42 : vector<128x128xf32>
    %cst_38 = arith.constant dense<0xFF800000> : vector<128xf32>
    %44 = vector.multi_reduction <maximumf>, %43, %cst_38 [1] : vector<128x128xf32> to vector<128xf32>
    %45 = vector.shape_cast %44 : vector<128xf32> to vector<128x1xf32>
    %46 = vector.broadcast %45 : vector<128x1xf32> to vector<128x128xf32>
    %47 = arith.subf %43, %46 : vector<128x128xf32>
    %48 = math.exp %47 : vector<128x128xf32>
    %cst_39 = arith.constant dense<0.000000e+00> : vector<128xf32>
    %49 = vector.multi_reduction <add>, %48, %cst_39 [1] : vector<128x128xf32> to vector<128xf32>
    %50 = vector.shape_cast %49 : vector<128xf32> to vector<128x1xf32>
    %51 = tpu.reciprocal %50 {approx = true} : vector<128x1xf32> -> vector<128x1xf32>
    %52 = vector.broadcast %51 : vector<128x1xf32> to vector<128x128xf32>
    %53 = arith.mulf %48, %52 : vector<128x128xf32>
    %54 = arith.truncf %53 : vector<128x128xf32> to vector<128x128xbf16>
    %cst_40 = arith.constant dense<0.000000e+00> : vector<128x32xf32>
    %55 = tpu.matmul %54, %39, %cst_40 {dimension_numbers = #tpu.dot_dimension_numbers<[1], [0], [0], [1], [0, 0, 1, 1], [], []>} : vector<128x128xbf16>, vector<128x32xbf16>, vector<128x32xf32> -> vector<128x32xf32>
    %56 = arith.truncf %55 : vector<128x32xf32> to vector<128x32xbf16>
    %c0_41 = arith.constant 0 : index
    %c32_42 = arith.constant 32 : index
    %57 = vector.load %arg12[%c0_41, %c32_42] : memref<128x256xbf16, #tpu.memory_space<vmem>>, vector<128x32xbf16>
    tpu.vector_store %arg12[%c0_41, %c32_42], %56 {strides = array<i32>} : memref<128x256xbf16, #tpu.memory_space<vmem>>, vector<128x32xbf16>,
    %c0_43 = arith.constant 0 : index
    %c64 = arith.constant 64 : index
    %58 = vector.load %arg9[%c0_43, %c64] : memref<128x256xbf16, #tpu.memory_space<vmem>>, vector<128x32xbf16>
    %c64_44 = arith.constant 64 : index
    %c0_45 = arith.constant 0 : index
    %59 = vector.load %arg10[%c64_44, %c0_45] : memref<256x128xbf16, #tpu.memory_space<vmem>>, vector<32x128xbf16>
    %c0_46 = arith.constant 0 : index
    %c64_47 = arith.constant 64 : index
    %60 = vector.load %arg11[%c0_46, %c64_47] : memref<128x256xbf16, #tpu.memory_space<vmem>>, vector<128x32xbf16>
    %cst_48 = arith.constant dense<0.000000e+00> : vector<128x128xf32>
    %61 = tpu.matmul %58, %59, %cst_48 {dimension_numbers = #tpu.dot_dimension_numbers<[1], [0], [0], [1], [0, 0, 1, 1], [], []>} : vector<128x32xbf16>, vector<32x128xbf16>, vector<128x128xf32> -> vector<128x128xf32>
    %c2 = arith.constant 2 : index
    %c0_49 = arith.constant 0 : index
    %c0_50 = arith.constant 0 : index
    %62 = vector.load %arg5[%c2, %c0_49, %c0_50] : memref<8x128x128xf32, #tpu.memory_space<vmem>>, vector<1x128x128xf32>
    %63 = vector.shape_cast %62 : vector<1x128x128xf32> to vector<128x128xf32>
    %64 = arith.addf %61, %63 : vector<128x128xf32>
    %cst_51 = arith.constant dense<0xFF800000> : vector<128xf32>
    %65 = vector.multi_reduction <maximumf>, %64, %cst_51 [1] : vector<128x128xf32> to vector<128xf32>
    %66 = vector.shape_cast %65 : vector<128xf32> to vector<128x1xf32>
    %67 = vector.broadcast %66 : vector<128x1xf32> to vector<128x128xf32>
    %68 = arith.subf %64, %67 : vector<128x128xf32>
    %69 = math.exp %68 : vector<128x128xf32>
    %cst_52 = arith.constant dense<0.000000e+00> : vector<128xf32>
    %70 = vector.multi_reduction <add>, %69, %cst_52 [1] : vector<128x128xf32> to vector<128xf32>
    %71 = vector.shape_cast %70 : vector<128xf32> to vector<128x1xf32>
    %72 = tpu.reciprocal %71 {approx = true} : vector<128x1xf32> -> vector<128x1xf32>
    %73 = vector.broadcast %72 : vector<128x1xf32> to vector<128x128xf32>
    %74 = arith.mulf %69, %73 : vector<128x128xf32>
    %75 = arith.truncf %74 : vector<128x128xf32> to vector<128x128xbf16>
    %cst_53 = arith.constant dense<0.000000e+00> : vector<128x32xf32>
    %76 = tpu.matmul %75, %60, %cst_53 {dimension_numbers = #tpu.dot_dimension_numbers<[1], [0], [0], [1], [0, 0, 1, 1], [], []>} : vector<128x128xbf16>, vector<128x32xbf16>, vector<128x32xf32> -> vector<128x32xf32>
    %77 = arith.truncf %76 : vector<128x32xf32> to vector<128x32xbf16>
    %c0_54 = arith.constant 0 : index
    %c64_55 = arith.constant 64 : index
    %78 = vector.load %arg12[%c0_54, %c64_55] : memref<128x256xbf16, #tpu.memory_space<vmem>>, vector<128x32xbf16>
    tpu.vector_store %arg12[%c0_54, %c64_55], %77 {strides = array<i32>} : memref<128x256xbf16, #tpu.memory_space<vmem>>, vector<128x32xbf16>,
    %c0_56 = arith.constant 0 : index
    %c96 = arith.constant 96 : index
    %79 = vector.load %arg9[%c0_56, %c96] : memref<128x256xbf16, #tpu.memory_space<vmem>>, vector<128x32xbf16>
    %c96_57 = arith.constant 96 : index
    %c0_58 = arith.constant 0 : index
    %80 = vector.load %arg10[%c96_57, %c0_58] : memref<256x128xbf16, #tpu.memory_space<vmem>>, vector<32x128xbf16>
    %c0_59 = arith.constant 0 : index
    %c96_60 = arith.constant 96 : index
    %81 = vector.load %arg11[%c0_59, %c96_60] : memref<128x256xbf16, #tpu.memory_space<vmem>>, vector<128x32xbf16>
    %cst_61 = arith.constant dense<0.000000e+00> : vector<128x128xf32>
    %82 = tpu.matmul %79, %80, %cst_61 {dimension_numbers = #tpu.dot_dimension_numbers<[1], [0], [0], [1], [0, 0, 1, 1], [], []>} : vector<128x32xbf16>, vector<32x128xbf16>, vector<128x128xf32> -> vector<128x128xf32>
    %c3 = arith.constant 3 : index
    %c0_62 = arith.constant 0 : index
    %c0_63 = arith.constant 0 : index
    %83 = vector.load %arg5[%c3, %c0_62, %c0_63] : memref<8x128x128xf32, #tpu.memory_space<vmem>>, vector<1x128x128xf32>
    %84 = vector.shape_cast %83 : vector<1x128x128xf32> to vector<128x128xf32>
    %85 = arith.addf %82, %84 : vector<128x128xf32>
    %cst_64 = arith.constant dense<0xFF800000> : vector<128xf32>
    %86 = vector.multi_reduction <maximumf>, %85, %cst_64 [1] : vector<128x128xf32> to vector<128xf32>
    %87 = vector.shape_cast %86 : vector<128xf32> to vector<128x1xf32>
    %88 = vector.broadcast %87 : vector<128x1xf32> to vector<128x128xf32>
    %89 = arith.subf %85, %88 : vector<128x128xf32>
    %90 = math.exp %89 : vector<128x128xf32>
    %cst_65 = arith.constant dense<0.000000e+00> : vector<128xf32>
    %91 = vector.multi_reduction <add>, %90, %cst_65 [1] : vector<128x128xf32> to vector<128xf32>
    %92 = vector.shape_cast %91 : vector<128xf32> to vector<128x1xf32>
    %93 = tpu.reciprocal %92 {approx = true} : vector<128x1xf32> -> vector<128x1xf32>
    %94 = vector.broadcast %93 : vector<128x1xf32> to vector<128x128xf32>
    %95 = arith.mulf %90, %94 : vector<128x128xf32>
    %96 = arith.truncf %95 : vector<128x128xf32> to vector<128x128xbf16>
    %cst_66 = arith.constant dense<0.000000e+00> : vector<128x32xf32>
    %97 = tpu.matmul %96, %81, %cst_66 {dimension_numbers = #tpu.dot_dimension_numbers<[1], [0], [0], [1], [0, 0, 1, 1], [], []>} : vector<128x128xbf16>, vector<128x32xbf16>, vector<128x32xf32> -> vector<128x32xf32>
    %98 = arith.truncf %97 : vector<128x32xf32> to vector<128x32xbf16>
    %c0_67 = arith.constant 0 : index
    %c96_68 = arith.constant 96 : index
    %99 = vector.load %arg12[%c0_67, %c96_68] : memref<128x256xbf16, #tpu.memory_space<vmem>>, vector<128x32xbf16>
    tpu.vector_store %arg12[%c0_67, %c96_68], %98 {strides = array<i32>} : memref<128x256xbf16, #tpu.memory_space<vmem>>, vector<128x32xbf16>,
    %c0_69 = arith.constant 0 : index
    %c128 = arith.constant 128 : index
    %100 = vector.load %arg9[%c0_69, %c128] : memref<128x256xbf16, #tpu.memory_space<vmem>>, vector<128x32xbf16>
    %c128_70 = arith.constant 128 : index
    %c0_71 = arith.constant 0 : index
    %101 = vector.load %arg10[%c128_70, %c0_71] : memref<256x128xbf16, #tpu.memory_space<vmem>>, vector<32x128xbf16>
    %c0_72 = arith.constant 0 : index
    %c128_73 = arith.constant 128 : index
    %102 = vector.load %arg11[%c0_72, %c128_73] : memref<128x256xbf16, #tpu.memory_space<vmem>>, vector<128x32xbf16>
    %cst_74 = arith.constant dense<0.000000e+00> : vector<128x128xf32>
    %103 = tpu.matmul %100, %101, %cst_74 {dimension_numbers = #tpu.dot_dimension_numbers<[1], [0], [0], [1], [0, 0, 1, 1], [], []>} : vector<128x32xbf16>, vector<32x128xbf16>, vector<128x128xf32> -> vector<128x128xf32>
    %c4 = arith.constant 4 : index
    %c0_75 = arith.constant 0 : index
    %c0_76 = arith.constant 0 : index
    %104 = vector.load %arg5[%c4, %c0_75, %c0_76] : memref<8x128x128xf32, #tpu.memory_space<vmem>>, vector<1x128x128xf32>
    %105 = vector.shape_cast %104 : vector<1x128x128xf32> to vector<128x128xf32>
    %106 = arith.addf %103, %105 : vector<128x128xf32>
    %cst_77 = arith.constant dense<0xFF800000> : vector<128xf32>
    %107 = vector.multi_reduction <maximumf>, %106, %cst_77 [1] : vector<128x128xf32> to vector<128xf32>
    %108 = vector.shape_cast %107 : vector<128xf32> to vector<128x1xf32>
    %109 = vector.broadcast %108 : vector<128x1xf32> to vector<128x128xf32>
    %110 = arith.subf %106, %109 : vector<128x128xf32>
    %111 = math.exp %110 : vector<128x128xf32>
    %cst_78 = arith.constant dense<0.000000e+00> : vector<128xf32>
    %112 = vector.multi_reduction <add>, %111, %cst_78 [1] : vector<128x128xf32> to vector<128xf32>
    %113 = vector.shape_cast %112 : vector<128xf32> to vector<128x1xf32>
    %114 = tpu.reciprocal %113 {approx = true} : vector<128x1xf32> -> vector<128x1xf32>
    %115 = vector.broadcast %114 : vector<128x1xf32> to vector<128x128xf32>
    %116 = arith.mulf %111, %115 : vector<128x128xf32>
    %117 = arith.truncf %116 : vector<128x128xf32> to vector<128x128xbf16>
    %cst_79 = arith.constant dense<0.000000e+00> : vector<128x32xf32>
    %118 = tpu.matmul %117, %102, %cst_79 {dimension_numbers = #tpu.dot_dimension_numbers<[1], [0], [0], [1], [0, 0, 1, 1], [], []>} : vector<128x128xbf16>, vector<128x32xbf16>, vector<128x32xf32> -> vector<128x32xf32>
    %119 = arith.truncf %118 : vector<128x32xf32> to vector<128x32xbf16>
    %c0_80 = arith.constant 0 : index
    %c128_81 = arith.constant 128 : index
    %120 = vector.load %arg12[%c0_80, %c128_81] : memref<128x256xbf16, #tpu.memory_space<vmem>>, vector<128x32xbf16>
    tpu.vector_store %arg12[%c0_80, %c128_81], %119 {strides = array<i32>} : memref<128x256xbf16, #tpu.memory_space<vmem>>, vector<128x32xbf16>,
    %c0_82 = arith.constant 0 : index
    %c160 = arith.constant 160 : index
    %121 = vector.load %arg9[%c0_82, %c160] : memref<128x256xbf16, #tpu.memory_space<vmem>>, vector<128x32xbf16>
    %c160_83 = arith.constant 160 : index
    %c0_84 = arith.constant 0 : index
    %122 = vector.load %arg10[%c160_83, %c0_84] : memref<256x128xbf16, #tpu.memory_space<vmem>>, vector<32x128xbf16>
    %c0_85 = arith.constant 0 : index
    %c160_86 = arith.constant 160 : index
    %123 = vector.load %arg11[%c0_85, %c160_86] : memref<128x256xbf16, #tpu.memory_space<vmem>>, vector<128x32xbf16>
    %cst_87 = arith.constant dense<0.000000e+00> : vector<128x128xf32>
    %124 = tpu.matmul %121, %122, %cst_87 {dimension_numbers = #tpu.dot_dimension_numbers<[1], [0], [0], [1], [0, 0, 1, 1], [], []>} : vector<128x32xbf16>, vector<32x128xbf16>, vector<128x128xf32> -> vector<128x128xf32>
    %c5 = arith.constant 5 : index
    %c0_88 = arith.constant 0 : index
    %c0_89 = arith.constant 0 : index
    %125 = vector.load %arg5[%c5, %c0_88, %c0_89] : memref<8x128x128xf32, #tpu.memory_space<vmem>>, vector<1x128x128xf32>
    %126 = vector.shape_cast %125 : vector<1x128x128xf32> to vector<128x128xf32>
    %127 = arith.addf %124, %126 : vector<128x128xf32>
    %cst_90 = arith.constant dense<0xFF800000> : vector<128xf32>
    %128 = vector.multi_reduction <maximumf>, %127, %cst_90 [1] : vector<128x128xf32> to vector<128xf32>
    %129 = vector.shape_cast %128 : vector<128xf32> to vector<128x1xf32>
    %130 = vector.broadcast %129 : vector<128x1xf32> to vector<128x128xf32>
    %131 = arith.subf %127, %130 : vector<128x128xf32>
    %132 = math.exp %131 : vector<128x128xf32>
    %cst_91 = arith.constant dense<0.000000e+00> : vector<128xf32>
    %133 = vector.multi_reduction <add>, %132, %cst_91 [1] : vector<128x128xf32> to vector<128xf32>
    %134 = vector.shape_cast %133 : vector<128xf32> to vector<128x1xf32>
    %135 = tpu.reciprocal %134 {approx = true} : vector<128x1xf32> -> vector<128x1xf32>
    %136 = vector.broadcast %135 : vector<128x1xf32> to vector<128x128xf32>
    %137 = arith.mulf %132, %136 : vector<128x128xf32>
    %138 = arith.truncf %137 : vector<128x128xf32> to vector<128x128xbf16>
    %cst_92 = arith.constant dense<0.000000e+00> : vector<128x32xf32>
    %139 = tpu.matmul %138, %123, %cst_92 {dimension_numbers = #tpu.dot_dimension_numbers<[1], [0], [0], [1], [0, 0, 1, 1], [], []>} : vector<128x128xbf16>, vector<128x32xbf16>, vector<128x32xf32> -> vector<128x32xf32>
    %140 = arith.truncf %139 : vector<128x32xf32> to vector<128x32xbf16>
    %c0_93 = arith.constant 0 : index
    %c160_94 = arith.constant 160 : index
    %141 = vector.load %arg12[%c0_93, %c160_94] : memref<128x256xbf16, #tpu.memory_space<vmem>>, vector<128x32xbf16>
    tpu.vector_store %arg12[%c0_93, %c160_94], %140 {strides = array<i32>} : memref<128x256xbf16, #tpu.memory_space<vmem>>, vector<128x32xbf16>,
    %c0_95 = arith.constant 0 : index
    %c192 = arith.constant 192 : index
    %142 = vector.load %arg9[%c0_95, %c192] : memref<128x256xbf16, #tpu.memory_space<vmem>>, vector<128x32xbf16>
    %c192_96 = arith.constant 192 : index
    %c0_97 = arith.constant 0 : index
    %143 = vector.load %arg10[%c192_96, %c0_97] : memref<256x128xbf16, #tpu.memory_space<vmem>>, vector<32x128xbf16>
    %c0_98 = arith.constant 0 : index
    %c192_99 = arith.constant 192 : index
    %144 = vector.load %arg11[%c0_98, %c192_99] : memref<128x256xbf16, #tpu.memory_space<vmem>>, vector<128x32xbf16>
    %cst_100 = arith.constant dense<0.000000e+00> : vector<128x128xf32>
    %145 = tpu.matmul %142, %143, %cst_100 {dimension_numbers = #tpu.dot_dimension_numbers<[1], [0], [0], [1], [0, 0, 1, 1], [], []>} : vector<128x32xbf16>, vector<32x128xbf16>, vector<128x128xf32> -> vector<128x128xf32>
    %c6 = arith.constant 6 : index
    %c0_101 = arith.constant 0 : index
    %c0_102 = arith.constant 0 : index
    %146 = vector.load %arg5[%c6, %c0_101, %c0_102] : memref<8x128x128xf32, #tpu.memory_space<vmem>>, vector<1x128x128xf32>
    %147 = vector.shape_cast %146 : vector<1x128x128xf32> to vector<128x128xf32>
    %148 = arith.addf %145, %147 : vector<128x128xf32>
    %cst_103 = arith.constant dense<0xFF800000> : vector<128xf32>
    %149 = vector.multi_reduction <maximumf>, %148, %cst_103 [1] : vector<128x128xf32> to vector<128xf32>
    %150 = vector.shape_cast %149 : vector<128xf32> to vector<128x1xf32>
    %151 = vector.broadcast %150 : vector<128x1xf32> to vector<128x128xf32>
    %152 = arith.subf %148, %151 : vector<128x128xf32>
    %153 = math.exp %152 : vector<128x128xf32>
    %cst_104 = arith.constant dense<0.000000e+00> : vector<128xf32>
    %154 = vector.multi_reduction <add>, %153, %cst_104 [1] : vector<128x128xf32> to vector<128xf32>
    %155 = vector.shape_cast %154 : vector<128xf32> to vector<128x1xf32>
    %156 = tpu.reciprocal %155 {approx = true} : vector<128x1xf32> -> vector<128x1xf32>
    %157 = vector.broadcast %156 : vector<128x1xf32> to vector<128x128xf32>
    %158 = arith.mulf %153, %157 : vector<128x128xf32>
    %159 = arith.truncf %158 : vector<128x128xf32> to vector<128x128xbf16>
    %cst_105 = arith.constant dense<0.000000e+00> : vector<128x32xf32>
    %160 = tpu.matmul %159, %144, %cst_105 {dimension_numbers = #tpu.dot_dimension_numbers<[1], [0], [0], [1], [0, 0, 1, 1], [], []>} : vector<128x128xbf16>, vector<128x32xbf16>, vector<128x32xf32> -> vector<128x32xf32>
    %161 = arith.truncf %160 : vector<128x32xf32> to vector<128x32xbf16>
    %c0_106 = arith.constant 0 : index
    %c192_107 = arith.constant 192 : index
    %162 = vector.load %arg12[%c0_106, %c192_107] : memref<128x256xbf16, #tpu.memory_space<vmem>>, vector<128x32xbf16>
    tpu.vector_store %arg12[%c0_106, %c192_107], %161 {strides = array<i32>} : memref<128x256xbf16, #tpu.memory_space<vmem>>, vector<128x32xbf16>,
    %c0_108 = arith.constant 0 : index
    %c224 = arith.constant 224 : index
    %163 = vector.load %arg9[%c0_108, %c224] : memref<128x256xbf16, #tpu.memory_space<vmem>>, vector<128x32xbf16>
    %c224_109 = arith.constant 224 : index
    %c0_110 = arith.constant 0 : index
    %164 = vector.load %arg10[%c224_109, %c0_110] : memref<256x128xbf16, #tpu.memory_space<vmem>>, vector<32x128xbf16>
    %c0_111 = arith.constant 0 : index
    %c224_112 = arith.constant 224 : index
    %165 = vector.load %arg11[%c0_111, %c224_112] : memref<128x256xbf16, #tpu.memory_space<vmem>>, vector<128x32xbf16>
    %cst_113 = arith.constant dense<0.000000e+00> : vector<128x128xf32>
    %166 = tpu.matmul %163, %164, %cst_113 {dimension_numbers = #tpu.dot_dimension_numbers<[1], [0], [0], [1], [0, 0, 1, 1], [], []>} : vector<128x32xbf16>, vector<32x128xbf16>, vector<128x128xf32> -> vector<128x128xf32>
    %c7 = arith.constant 7 : index
    %c0_114 = arith.constant 0 : index
    %c0_115 = arith.constant 0 : index
    %167 = vector.load %arg5[%c7, %c0_114, %c0_115] : memref<8x128x128xf32, #tpu.memory_space<vmem>>, vector<1x128x128xf32>
    %168 = vector.shape_cast %167 : vector<1x128x128xf32> to vector<128x128xf32>
    %169 = arith.addf %166, %168 : vector<128x128xf32>
    %cst_116 = arith.constant dense<0xFF800000> : vector<128xf32>
    %170 = vector.multi_reduction <maximumf>, %169, %cst_116 [1] : vector<128x128xf32> to vector<128xf32>
    %171 = vector.shape_cast %170 : vector<128xf32> to vector<128x1xf32>
    %172 = vector.broadcast %171 : vector<128x1xf32> to vector<128x128xf32>
    %173 = arith.subf %169, %172 : vector<128x128xf32>
    %174 = math.exp %173 : vector<128x128xf32>
    %cst_117 = arith.constant dense<0.000000e+00> : vector<128xf32>
    %175 = vector.multi_reduction <add>, %174, %cst_117 [1] : vector<128x128xf32> to vector<128xf32>
    %176 = vector.shape_cast %175 : vector<128xf32> to vector<128x1xf32>
    %177 = tpu.reciprocal %176 {approx = true} : vector<128x1xf32> -> vector<128x1xf32>
    %178 = vector.broadcast %177 : vector<128x1xf32> to vector<128x128xf32>
    %179 = arith.mulf %174, %178 : vector<128x128xf32>
    %180 = arith.truncf %179 : vector<128x128xf32> to vector<128x128xbf16>
    %cst_118 = arith.constant dense<0.000000e+00> : vector<128x32xf32>
    %181 = tpu.matmul %180, %165, %cst_118 {dimension_numbers = #tpu.dot_dimension_numbers<[1], [0], [0], [1], [0, 0, 1, 1], [], []>} : vector<128x128xbf16>, vector<128x32xbf16>, vector<128x32xf32> -> vector<128x32xf32>
    %182 = arith.truncf %181 : vector<128x32xf32> to vector<128x32xbf16>
    %c0_119 = arith.constant 0 : index
    %c224_120 = arith.constant 224 : index
    %183 = vector.load %arg12[%c0_119, %c224_120] : memref<128x256xbf16, #tpu.memory_space<vmem>>, vector<128x32xbf16>
    tpu.vector_store %arg12[%c0_119, %c224_120], %182 {strides = array<i32>} : memref<128x256xbf16, #tpu.memory_space<vmem>>, vector<128x32xbf16>,
    %c0_121 = arith.constant 0 : index
    %c0_122 = arith.constant 0 : index
    %184 = vector.load %arg12[%c0_121, %c0_122] : memref<128x256xbf16, #tpu.memory_space<vmem>>, vector<128x256xbf16>
    %c0_123 = arith.constant 0 : index
    %c0_124 = arith.constant 0 : index
    %185 = vector.load %arg6[%c0_123, %c0_124] : memref<256x32xbf16, #tpu.memory_space<vmem>>, vector<256x32xbf16>
    %cst_125 = arith.constant dense<0.000000e+00> : vector<128x32xf32>
    %186 = tpu.matmul %184, %185, %cst_125 {dimension_numbers = #tpu.dot_dimension_numbers<[1], [0], [0], [1], [0, 0, 1, 1], [], []>} : vector<128x256xbf16>, vector<256x32xbf16>, vector<128x32xf32> -> vector<128x32xf32>
    %c0_126 = arith.constant 0 : index
    %c0_127 = arith.constant 0 : index
    %187 = vector.load %arg7[%c0_126, %c0_127] : memref<1x32xf32, #tpu.memory_space<vmem>>, vector<1x32xf32>
    %188 = vector.broadcast %187 : vector<1x32xf32> to vector<128x32xf32>
    %189 = arith.addf %186, %188 : vector<128x32xf32>
    %c0_128 = arith.constant 0 : index
    %c0_129 = arith.constant 0 : index
    %190 = vector.load %arg8[%c0_128, %c0_129] : memref<128x32xf32, #tpu.memory_space<vmem>>, vector<128x32xf32>
    tpu.vector_store %arg8[%c0_128, %c0_129], %189 {strides = array<i32>} : memref<128x32xf32, #tpu.memory_space<vmem>>, vector<128x32xf32>,
    return
  }
  func.func @transform_0(%arg0: i32) -> (i32, i32) {
    %c0_i32 = arith.constant 0 : i32
    %c0_i32_0 = arith.constant 0 : i32
    return %arg0, %c0_i32 : i32, i32
  }
  func.func @transform_1(%arg0: i32) -> (i32, i32) {
    %c0_i32 = arith.constant 0 : i32
    %c0_i32_0 = arith.constant 0 : i32
    %c0_i32_1 = arith.constant 0 : i32
    return %c0_i32, %c0_i32_0 : i32, i32
  }
  func.func @transform_2(%arg0: i32) -> (i32, i32) {
    %c0_i32 = arith.constant 0 : i32
    %c0_i32_0 = arith.constant 0 : i32
    %c0_i32_1 = arith.constant 0 : i32
    return %c0_i32, %c0_i32_0 : i32, i32
  }
  func.func @transform_3(%arg0: i32) -> (i32, i32) {
    %c0_i32 = arith.constant 0 : i32
    %c0_i32_0 = arith.constant 0 : i32
    %c0_i32_1 = arith.constant 0 : i32
    return %c0_i32, %c0_i32_0 : i32, i32
  }
  func.func @transform_4(%arg0: i32) -> (i32, i32, i32) {
    %c0_i32 = arith.constant 0 : i32
    %c0_i32_0 = arith.constant 0 : i32
    %c0_i32_1 = arith.constant 0 : i32
    %c0_i32_2 = arith.constant 0 : i32
    return %c0_i32, %c0_i32_0, %c0_i32_1 : i32, i32, i32
  }
  func.func @transform_5(%arg0: i32) -> (i32, i32) {
    %c0_i32 = arith.constant 0 : i32
    %c0_i32_0 = arith.constant 0 : i32
    %c0_i32_1 = arith.constant 0 : i32
    return %c0_i32, %c0_i32_0 : i32, i32
  }
  func.func @transform_6(%arg0: i32) -> (i32, i32) {
    %c0_i32 = arith.constant 0 : i32
    %c0_i32_0 = arith.constant 0 : i32
    %c0_i32_1 = arith.constant 0 : i32
    return %c0_i32, %c0_i32_0 : i32, i32
  }
  func.func @transform_7(%arg0: i32) -> (i32, i32) {
    %c0_i32 = arith.constant 0 : i32
    %c0_i32_0 = arith.constant 0 : i32
    return %arg0, %c0_i32 : i32, i32
  }
}

</mosaic_0001>

<bundles_post_ra>
// kernel: attention_forward.1
= control target key start
LH: loop header
LB: loop body
LE: loop exit
PB: predicated region body
PF: predicated region fallthrough
CT: control target
= control target key end

     0   :  { %12 = vsyncpa [#allocation7], 0  ;;  %s11559_s0 = inlined_call_operand.vmem [shape: f32[128,32], index: 0, kind: input, shape index: {}]   ;;  %s11560_s1 = inlined_call_operand.vmem [shape: bf16[32,256], index: 1, kind: input, shape index: {}]   ;;  %s11561_s2 = inlined_call_operand.vmem [shape: bf16[256,32], index: 2, kind: input, shape index: {}]   ;;  %s11562_s3 = inlined_call_operand.vmem [shape: bf16[32,256], index: 3, kind: input, shape index: {}]   ;;  %s11563_s4 = inlined_call_operand.hbm [shape: f32[8,128,128], index: 4, kind: input, shape index: {}]   ;;  %s11564_s5 = inlined_call_operand.vmem [shape: bf16[256,32], index: 5, kind: input, shape index: {}]   ;;  %s11565_s6 = inlined_call_operand.vmem [shape: f32[1,32], index: 6, kind: input, shape index: {}]   ;;  %s11566_s7 = inlined_call_operand.hbm [shape: f32[128,32], index: 7, kind: output, shape index: {}]  }
   0x1   :  { %13 = vsyncpa [#allocation8], 0  ;;  %s8974_s24 = smov [#allocation6]  }
   0x2   :  { %s27_s25 = sshll.u32 %s8974_s24, 4  ;;  %s28_s25 = int_to_ptr.vmem [resolvable:$true] %s27_s25 }
   0x3   :  { %s8938_s26 = scalar_lea.vmem %s28_s25, 16384  ;;  %p8943_p1 = scmp.lt.s32.totalorder %s28_s25, %s28_s25 }
   0x4   :  { %p8939_p0 = scmp.ne.s32.totalorder %s28_s25, %s8938_s26  ;;  %p8944_p2 = scmp.lt.s32.totalorder %s8938_s26, %s8938_s26 }
   0x6   :  { %p8945_p3 = por %p8944_p2, %p8943_p1 }
   0x8   :  { %p8946_p4 = pnand %p8945_p3, %p8939_p0 }
   0xa   :  { %8949 = shalt.err (!%p8946_p4)
}
   0xb   :  { %s8975_s27 = smov 128   ;;  %s8976_s28 = smov 8  }
   0xc   :  { %33 = dma.hbm_to_vmem [thread:$0]  %s11563_s4, 16384, %s28_s25, [#allocation7], %s8975_s27, %s8975_s27, %s8976_s28  }
   0xd   :  { %8970 = dma.done.wait [#allocation7], 16384  }
   0xe   :  { %8971 = vsyncadd [#allocation7], 4294950912  ;;  %v8977_v0 = vmov 0   ;;  %v42_v1 = vld [vmem:[%s11559_s0] sm:$0xff]  ;;  %v8206_v2 = vld [vmem:[%s11560_s1 + $0x14] ss:$8 sps:$4 sm:$0xff]  }
   0xf   :  { %181 = vmatprep.mubr.bf16.mxu0 %v8977_v0  ;;  %221 = vmatprep.mubr.bf16.mxu1 %v8977_v0  ;;  %v8208_v3 = vld [vmem:[%s11560_s1 + $0x10] ss:$8 sps:$4 sm:$0xff]   ;;  %v43_v4 = vld [vmem:[%s11559_s0 + $0x8] sm:$0xff]  ;;  %v50_v7 = vld [vmem:[%s11559_s0 + $0x40] sm:$0xff]  ;;  %vm124_vm0 = vcmask 261120   ;;  %s8979_s14 = smov 96  }
  0x10   :  { %66 = vxpose.xlu0.b32.start [1/16] (narrow) %v42_v1, 32  ;;  %v8209_v5 = vld [vmem:[%s11560_s1 + $0x4] ss:$8 sps:$4 sm:$0xff]   ;;  %161 = vmatprep.subr.bf16.mxu0 %v8206_v2  ;;  %v8211_v6 = vld [vmem:[%s11560_s1] ss:$8 sps:$4 sm:$0xff]   ;;  %v44_v9 = vld [vmem:[%s11559_s0 + $0x10] sm:$0xff]  ;;  %v58_v10 = vpack.c.bf16 %v43_v4, %v42_v1 }
  0x11   :  { %8194 = vmatprep.subr.bf16.mxu1 %v8206_v2  ;;  %162 = vmatpush1.bf16.msra.mxu0 %v8208_v3  ;;  %v51_v8 = vld [vmem:[%s11559_s0 + $0x48] sm:$0xff]  ;;  %v45_v12 = vld [vmem:[%s11559_s0 + $0x18] sm:$0xff]  ;;  %v52_v13 = vld [vmem:[%s11559_s0 + $0x50] sm:$0xff]  ;;  %s8980_s15 = smov 64   ;;  %vm1690_vm1 = vcmask 257024   ;;  %vm2358_vm2 = vcmask 519424  }
  0x12   :  { %8196 = vmatpush1.bf16.msra.mxu1 %v8208_v3  ;;  %163 = vmatprep.subr.bf16.mxu0 %v8209_v5  ;;  %v9057_v11 = vpack.c.bf16 %v51_v8, %v50_v7  ;;  %v53_v14 = vld [vmem:[%s11559_s0 + $0x58] sm:$0xff]  ;;  %v46_v15 = vld [vmem:[%s11559_s0 + $0x20] sm:$0xff]  ;;  %v59_v16 = vpack.c.bf16 %v45_v12, %v44_v9  ;;  %v47_v18 = vld [vmem:[%s11559_s0 + $0x28] sm:$0xff]  ;;  %vm3026_vm3 = vcmask 781824   ;;  %vm3694_vm4 = vcmask 1044224  }
  0x13   :  { %8195 = vmatprep.subr.bf16.mxu1 %v8209_v5  ;;  %v63_v17 = vpack.c.bf16 %v53_v14, %v52_v13  ;;  %v48_v19 = vld [vmem:[%s11559_s0 + $0x30] sm:$0xff]  ;;  %v54_v20 = vld [vmem:[%s11559_s0 + $0x60] sm:$0xff]  ;;  %v55_v21 = vld [vmem:[%s11559_s0 + $0x68] sm:$0xff]  ;;  %v60_v22 = vpack.c.bf16 %v47_v18, %v46_v15 }
  0x14   :  { %67 = vxpose.xlu0.b32.cont [2/16] (narrow) %v43_v4, 32  ;;  %v64_v23 = vpack.c.bf16 %v55_v21, %v54_v20  ;;  %v49_v24 = vld [vmem:[%s11559_s0 + $0x38] sm:$0xff]  ;;  %v56_v25 = vld [vmem:[%s11559_s0 + $0x70] sm:$0xff]  ;;  %v8212_v27 = vld [vmem:[%s11561_s2] sm:$0xff]  }
  0x15   :  { %164 = vmatpush1.bf16.msra.mxu0 %v8211_v6  ;;  %v57_v26 = vld [vmem:[%s11559_s0 + $0x78] sm:$0xff]  ;;  %v61_v28 = vpack.c.bf16 %v49_v24, %v48_v19  ;;  %v8234_v32 = vld [vmem:[%s11562_s3] ss:$8 sps:$4 sm:$0xff]   ;;  %v8236_v33 = vld [vmem:[%s11562_s3 + $0x4] ss:$8 sps:$4 sm:$0xff]  }
  0x16   :  { %8197 = vmatpush1.bf16.msra.mxu1 %v8211_v6  ;;  %v65_v29 = vpack.c.bf16 %v57_v26, %v56_v25  ;;  %v8228_v30 = vld [vmem:[%s11562_s3 + $0x10] ss:$8 sps:$4 sm:$0xff]   ;;  %v8230_v31 = vld [vmem:[%s11562_s3 + $0x14] ss:$8 sps:$4 sm:$0xff]   ;;  %v8213_v40 = vld [vmem:[%s11561_s2 + $0x8] sm:$0xff]  }
  0x17   :  { %891 = vmatprep.subr.bf16.mxu0 %v8230_v31  ;;  %v8214_v41 = vld [vmem:[%s11561_s2 + $0x10] sm:$0xff]   ;;  %v8215_v42 = vld [vmem:[%s11561_s2 + $0x18] sm:$0xff]   ;;  %v8216_v43 = vld [vmem:[%s11561_s2 + $0x20] sm:$0xff]  }
  0x18   :  { %68 = vxpose.xlu0.b32.cont [3/16] (narrow) %v44_v9, 32  ;;  %6680 = vmatmul.mubr.msk.bf16.vlgmr.msra.gmra.mxu0 %vm124_vm0, %v58_v10  ;;  %v8217_v44 = vld [vmem:[%s11561_s2 + $0x28] sm:$0xff]   ;;  %v8218_v45 = vld [vmem:[%s11561_s2 + $0x30] sm:$0xff]   ;;  %v8219_v46 = vld [vmem:[%s11561_s2 + $0x38] sm:$0xff]  }
  0x19   :  { %6684 = vmatmul.mubr.msk.bf16.vlgmr.msra.gmra.mxu1 %vm124_vm0, %v9057_v11  ;;  %191 = vmatprep.mubr.bf16.mxu0 %v8977_v0  ;;  %v8220_v47 = vld [vmem:[%s11561_s2 + $0x40] sm:$0xff]   ;;  %v8221_v48 = vld [vmem:[%s11561_s2 + $0x48] sm:$0xff]   ;;  %v8222_v49 = vld [vmem:[%s11561_s2 + $0x50] sm:$0xff]  }
  0x1a   :  { %231 = vmatprep.mubr.bf16.mxu1 %v8977_v0  ;;  %892 = vmatpush1.bf16.msra.mxu0 %v8228_v30  ;;  %v8223_v50 = vld [vmem:[%s11561_s2 + $0x58] sm:$0xff]   ;;  %v8224_v51 = vld [vmem:[%s11561_s2 + $0x60] sm:$0xff]   ;;  %v8225_v52 = vld [vmem:[%s11561_s2 + $0x68] sm:$0xff]  }
  0x1b   :  { %893 = vmatprep.subr.bf16.mxu0 %v8236_v33  ;;  %v8226_v53 = vld [vmem:[%s11561_s2 + $0x70] sm:$0xff]   ;;  %v8227_v54 = vld [vmem:[%s11561_s2 + $0x78] sm:$0xff]   ;;  %s8978_s2 = smov 32  }
  0x1c   :  { %69 = vxpose.xlu0.b32.cont [4/16] (narrow) %v45_v12, 32 }
  0x1e   :  { %894 = vmatpush1.bf16.msra.mxu0 %v8234_v32 }
  0x20   :  { %70 = vxpose.xlu0.b32.cont [5/16] (narrow) %v46_v15, 32  ;;  %6681 = vmatmul.mubr.msk.bf16.gmra.mxu0 %vm124_vm0, %v59_v16 }
  0x21   :  { %6685 = vmatmul.mubr.msk.bf16.gmra.mxu1 %vm124_vm0, %v63_v17  ;;  %201 = vmatprep.mubr.bf16.mxu0 %v8977_v0 }
  0x22   :  { %241 = vmatprep.mubr.bf16.mxu1 %v8977_v0 }
  0x24   :  { %71 = vxpose.xlu0.b32.cont [6/16] (narrow) %v47_v18, 32 }
  0x28   :  { %72 = vxpose.xlu0.b32.cont [7/16] (narrow) %v48_v19, 32  ;;  %6682 = vmatmul.mubr.msk.bf16.gmra.mxu0 %vm124_vm0, %v60_v22 }
  0x29   :  { %6686 = vmatmul.mubr.msk.bf16.gmra.mxu1 %vm124_vm0, %v64_v23  ;;  %211 = vmatprep.mubr.bf16.mxu0 %v8977_v0 }
  0x2a   :  { %251 = vmatprep.mubr.bf16.mxu1 %v8977_v0 }
  0x2c   :  { %73 = vxpose.xlu0.b32.cont [8/16] (narrow) %v49_v24, 32 }
  0x30   :  { %74 = vxpose.xlu0.b32.cont [9/16] (narrow) %v50_v7, 32  ;;  %6683 = vmatmul.mubr.msk.bf16.gmra.mxu0 %vm124_vm0, %v61_v28 }
  0x31   :  { %6687 = vmatmul.mubr.msk.bf16.gmra.mxu1 %vm124_vm0, %v65_v29  ;;  %911 = vmatprep.mubr.bf16.mxu0 %v8977_v0 }
  0x32   :  { %7746 = vmatprep.mubr.msk.bf16.mxu1 %vm124_vm0, %v8212_v27 }
  0x34   :  { %75 = vxpose.xlu0.b32.cont [10/16] (narrow) %v51_v8, 32 }
  0x38   :  { %76 = vxpose.xlu0.b32.cont [11/16] (narrow) %v52_v13, 32  ;;  %6772 = vmatmul.mubr.msk.bf16.vlgmr.msra.gmra.mxu0 %vm124_vm0, %v58_v10 }
  0x39   :  { %921 = vmatprep.mubr.bf16.mxu0 %v8977_v0 }
  0x3c   :  { %77 = vxpose.xlu0.b32.cont [12/16] (narrow) %v53_v14, 32 }
  0x40   :  { %78 = vxpose.xlu0.b32.cont [13/16] (narrow) %v54_v20, 32  ;;  %6773 = vmatmul.mubr.msk.bf16.gmra.mxu0 %vm124_vm0, %v59_v16 }
  0x41   :  { %931 = vmatprep.mubr.bf16.mxu0 %v8977_v0 }
  0x44   :  { %79 = vxpose.xlu0.b32.cont [14/16] (narrow) %v55_v21, 32 }
  0x48   :  { %80 = vxpose.xlu0.b32.cont [15/16] (narrow) %v56_v25, 32  ;;  %6774 = vmatmul.mubr.msk.bf16.gmra.mxu0 %vm124_vm0, %v60_v22 }
  0x49   :  { %941 = vmatprep.mubr.bf16.mxu0 %v8977_v0 }
  0x4c   :  { %81 = vxpose.xlu0.b32.end [16/16] (narrow) %v57_v26, 32 }
  0x50   :  { %6775 = vmatmul.mubr.msk.bf16.gmra.mxu0 %vm124_vm0, %v61_v28 }
  0x51   :  { %951 = vmatprep.mubr.bf16.mxu0 %v8977_v0 }
  0x58   :  { %6776 = vmatmul.mubr.msk.bf16.gmra.mxu0 %vm124_vm0, %v9057_v11 }
  0x59   :  { %961 = vmatprep.mubr.bf16.mxu0 %v8977_v0 }
  0x60   :  { %6777 = vmatmul.mubr.msk.bf16.gmra.mxu0 %vm124_vm0, %v63_v17 }
  0x61   :  { %971 = vmatprep.mubr.bf16.mxu0 %v8977_v0 }
  0x68   :  { %6778 = vmatmul.mubr.msk.bf16.gmra.mxu0 %vm124_vm0, %v64_v23 }
  0x69   :  { %981 = vmatprep.mubr.bf16.mxu0 %v8977_v0 }
  0x70   :  { %6779 = vmatmul.mubr.msk.bf16.gmra.mxu0 %vm124_vm0, %v65_v29 }
  0x8c   :  { %v82_v34 = vpop.trf.xlu0 }
  0x90   :  { %v83_v35 = vpop.trf.xlu0 }
  0x91   :  { %v98_v38 = vpack.c.bf16 %v83_v35, %v82_v34 }
  0x94   :  { %v84_v36 = vpop.trf.xlu0 }
  0x98   :  { %v85_v37 = vpop.trf.xlu0 }
  0x99   :  { %v99_v39 = vpack.c.bf16 %v85_v37, %v84_v36 }
  0x9b   :  { %7742 = vmatprep.subr.bf16.mxu1 %v99_v39 }
  0x9c   :  { %7743 = vmatpush3.bf16.msra.mxu1 %v99_v39 }
  0x9d   :  { %7744 = vmatprep.subr.bf16.mxu1 %v98_v38 }
  0xa0   :  { %7745 = vmatpush3.bf16.msra.mxu1 %v98_v38 }
  0xa3   :  { %7747 = vmatmul.mubr.msk.bf16.vlgmr.msra.gmra.mxu1 %vm124_vm0, %v8213_v40 }
  0xa4   :  { %7750 = vmatprep.mubr.msk.bf16.mxu1 %vm124_vm0, %v8214_v41 }
  0xab   :  { %7751 = vmatmul.mubr.msk.bf16.gmra.mxu1 %vm124_vm0, %v8215_v42 }
  0xac   :  { %7754 = vmatprep.mubr.msk.bf16.mxu1 %vm124_vm0, %v8216_v43 }
  0xb3   :  { %7755 = vmatmul.mubr.msk.bf16.gmra.mxu1 %vm124_vm0, %v8217_v44 }
  0xb4   :  { %7758 = vmatprep.mubr.msk.bf16.mxu1 %vm124_vm0, %v8218_v45 }
  0xbb   :  { %7759 = vmatmul.mubr.msk.bf16.gmra.mxu1 %vm124_vm0, %v8219_v46 }
  0xbc   :  { %7762 = vmatprep.mubr.msk.bf16.mxu1 %vm124_vm0, %v8220_v47 }
  0xc3   :  { %7763 = vmatmul.mubr.msk.bf16.gmra.mxu1 %vm124_vm0, %v8221_v48 }
  0xc4   :  { %7766 = vmatprep.mubr.msk.bf16.mxu1 %vm124_vm0, %v8222_v49 }
  0xcb   :  { %7767 = vmatmul.mubr.msk.bf16.gmra.mxu1 %vm124_vm0, %v8223_v50 }
  0xcc   :  { %7770 = vmatprep.mubr.msk.bf16.mxu1 %vm124_vm0, %v8224_v51 }
  0xd3   :  { %7771 = vmatmul.mubr.msk.bf16.gmra.mxu1 %vm124_vm0, %v8225_v52 }
  0xd4   :  { %7774 = vmatprep.mubr.msk.bf16.mxu1 %vm124_vm0, %v8226_v53 }
  0xd8   :  { %v183_v55 = vpop.f32.mrf.mxu0 }
  0xd9   :  { %v223_v56 = vpop.f32.mrf.mxu1 }
  0xda   :  { %v185_v57 = vpop.f32.mrf.mxu0 }
  0xdb   :  { %7775 = vmatmul.mubr.msk.bf16.gmra.mxu1 %vm124_vm0, %v8227_v54  ;;  %v225_v58 = vpop.f32.mrf.mxu1  ;;  %v7165_v59 = vpack.c.bf16 %v185_v57, %v183_v55 }
  0xdc   :  { %v7173_v60 = vpack.c.bf16 %v225_v58, %v223_v56  ;;  %v187_v61 = vpop.f32.mrf.mxu0 }
  0xdd   :  { %v227_v62 = vpop.f32.mrf.mxu1  ;;  %358 = vst [vmem:[#allocation2] sm:$0xff] %v7165_v59 }
  0xde   :  { %366 = vst [vmem:[#allocation2 + $0x40] sm:$0xff] %v7173_v60  ;;  %v189_v63 = vpop.f32.mrf.mxu0 }
  0xdf   :  { %v229_v0 = vpop.f32.mrf.mxu1  ;;  %v7166_v1 = vpack.c.bf16 %v189_v63, %v187_v61 }
  0xe0   :  { %v7174_v2 = vpack.c.bf16 %v229_v0, %v227_v62  ;;  %v193_v4 = vpop.f32.mrf.mxu0 }
  0xe1   :  { %v233_v3 = vpop.f32.mrf.mxu1  ;;  %359 = vst [vmem:[#allocation2 + $0x8] sm:$0xff] %v7166_v1 }
  0xe2   :  { %367 = vst [vmem:[#allocation2 + $0x48] sm:$0xff] %v7174_v2  ;;  %v195_v5 = vpop.f32.mrf.mxu0 }
  0xe3   :  { %v235_v6 = vpop.f32.mrf.mxu1  ;;  %v7167_v7 = vpack.c.bf16 %v195_v5, %v193_v4 }
  0xe4   :  { %v7175_v8 = vpack.c.bf16 %v235_v6, %v233_v3  ;;  %v197_v10 = vpop.f32.mrf.mxu0 }
  0xe5   :  { %v237_v9 = vpop.f32.mrf.mxu1  ;;  %360 = vst [vmem:[#allocation2 + $0x10] sm:$0xff] %v7167_v7 }
  0xe6   :  { %368 = vst [vmem:[#allocation2 + $0x50] sm:$0xff] %v7175_v8  ;;  %v199_v11 = vpop.f32.mrf.mxu0 }
  0xe7   :  { %v239_v12 = vpop.f32.mrf.mxu1  ;;  %v7168_v13 = vpack.c.bf16 %v199_v11, %v197_v10 }
  0xe8   :  { %v7176_v14 = vpack.c.bf16 %v239_v12, %v237_v9  ;;  %v8231_v15 = vld [vmem:[#allocation2] ss:$8 sps:$4 sm:$0xff]   ;;  %v203_v16 = vpop.f32.mrf.mxu0  ;;  %v8243_v51 = vld [vmem:[#allocation2 + $0x4] ss:$8 sps:$4 sm:$0xff]  }
  0xe9   :  { %v243_v17 = vpop.f32.mrf.mxu1  ;;  %v8232_v18 = vld [vmem:[#allocation2] ss:$8 sps:$4 sm:$0xff]   ;;  %361 = vst [vmem:[#allocation2 + $0x18] sm:$0xff] %v7168_v13  ;;  %3136 = vrot.lane.b32.xlu0 %v8231_v15, %s8978_s2  ;;  %v8237_v24 = vld [vmem:[#allocation2 + $0x44] ss:$8 sps:$4 sm:$0xff]  }
  0xea   :  { %v8233_v19 = vld [vmem:[#allocation2] ss:$8 sps:$4 sm:$0xff]   ;;  %369 = vst [vmem:[#allocation2 + $0x58] sm:$0xff] %v7176_v14  ;;  %v205_v20 = vpop.f32.mrf.mxu0  ;;  %1800 = vrot.lane.b32.xlu1 %v8232_v18, %s8979_s14  ;;  %v8239_v32 = vld [vmem:[#allocation2 + $0x44] ss:$8 sps:$4 sm:$0xff]  }
  0xeb   :  { %v245_v21 = vpop.f32.mrf.mxu1  ;;  %7782 = vmatprep.mubr.msk.bf16.mxu1 %vm124_vm0, %v8233_v19  ;;  %v7169_v22 = vpack.c.bf16 %v205_v20, %v203_v16  ;;  %v8238_v27 = vld [vmem:[#allocation2 + $0x40] ss:$8 sps:$4 sm:$0xff]   ;;  %v8244_v53 = vld [vmem:[#allocation2 + $0x4] ss:$8 sps:$4 sm:$0xff]  }
  0xec   :  { %v7177_v23 = vpack.c.bf16 %v245_v21, %v243_v17  ;;  %v207_v25 = vpop.f32.mrf.mxu0  ;;  %v8240_v35 = vld [vmem:[#allocation2] ss:$8 sps:$4 sm:$0xff]   ;;  %v8245_v54 = vld [vmem:[#allocation2 + $0x44] ss:$8 sps:$4 sm:$0xff]  }
  0xed   :  { %v247_v26 = vpop.f32.mrf.mxu1  ;;  %362 = vst [vmem:[#allocation2 + $0x20] sm:$0xff] %v7169_v22  ;;  %4415 = vrot.lane.b32.xlu0 %v8237_v24, %s8979_s14  ;;  %v8241_v43 = vld [vmem:[#allocation2 + $0x40] ss:$8 sps:$4 sm:$0xff]   ;;  %v8247_v56 = vld [vmem:[#allocation2 + $0x4] ss:$8 sps:$4 sm:$0xff]  }
  0xee   :  { %370 = vst [vmem:[#allocation2 + $0x60] sm:$0xff] %v7177_v23  ;;  %v209_v28 = vpop.f32.mrf.mxu0  ;;  %1808 = vrot.lane.b32.xlu1 %v8238_v27, %s8979_s14  ;;  %v8242_v49 = vld [vmem:[#allocation2 + $0x40] ss:$8 sps:$4 sm:$0xff]  }
  0xef   :  { %v249_v29 = vpop.f32.mrf.mxu1  ;;  %v7170_v30 = vpack.c.bf16 %v209_v28, %v207_v25 }
  0xf0   :  { %v7178_v31 = vpack.c.bf16 %v249_v29, %v247_v26  ;;  %v213_v33 = vpop.f32.mrf.mxu0  ;;  %v8249_v57 = vld [vmem:[#allocation2 + $0x10] ss:$8 sps:$4 sm:$0xff]   ;;  %v8255_v63 = vld [vmem:[#allocation2 + $0x14] ss:$8 sps:$4 sm:$0xff]  }
  0xf1   :  { %v253_v34 = vpop.f32.mrf.mxu1  ;;  %363 = vst [vmem:[#allocation2 + $0x28] sm:$0xff] %v7170_v30  ;;  %5749 = vrot.lane.b32.xlu0 %v8239_v32, %s8978_s2  ;;  %v8246_v36 = vld [vmem:[#allocation2 + $0x54] ss:$8 sps:$4 sm:$0xff]   ;;  %v8250_v58 = vld [vmem:[#allocation2 + $0x50] ss:$8 sps:$4 sm:$0xff]  }
  0xf2   :  { %371 = vst [vmem:[#allocation2 + $0x68] sm:$0xff] %v7178_v31  ;;  %v215_v37 = vpop.f32.mrf.mxu0  ;;  %2468 = vrot.lane.b32.xlu1 %v8240_v35, %s8980_s15  ;;  %v8248_v44 = vld [vmem:[#allocation2 + $0x54] ss:$8 sps:$4 sm:$0xff]   ;;  %v8251_v59 = vld [vmem:[#allocation2 + $0x10] ss:$8 sps:$4 sm:$0xff]  }
  0xf3   :  { %v255_v38 = vpop.f32.mrf.mxu1  ;;  %v7171_v39 = vpack.c.bf16 %v215_v37, %v213_v33  ;;  %v8252_v60 = vld [vmem:[#allocation2 + $0x50] ss:$8 sps:$4 sm:$0xff]   ;;  %v8256_v0 = vld [vmem:[#allocation2 + $0x54] ss:$8 sps:$4 sm:$0xff]  }
  0xf4   :  { %v7179_v40 = vpack.c.bf16 %v255_v38, %v253_v34  ;;  %v217_v41 = vpop.f32.mrf.mxu0  ;;  %v8253_v61 = vld [vmem:[#allocation2 + $0x10] ss:$8 sps:$4 sm:$0xff]   ;;  %v8257_v1 = vld [vmem:[#allocation2 + $0x14] ss:$8 sps:$4 sm:$0xff]  }
  0xf5   :  { %v257_v42 = vpop.f32.mrf.mxu1  ;;  %364 = vst [vmem:[#allocation2 + $0x30] sm:$0xff] %v7171_v39  ;;  %5084 = vrot.lane.b32.xlu0 %v8246_v36, %s8980_s15  ;;  %v8254_v62 = vld [vmem:[#allocation2 + $0x50] ss:$8 sps:$4 sm:$0xff]   ;;  %v8259_v2 = vld [vmem:[#allocation2 + $0x14] ss:$8 sps:$4 sm:$0xff]  }
  0xf6   :  { %372 = vst [vmem:[#allocation2 + $0x70] sm:$0xff] %v7179_v40  ;;  %v219_v45 = vpop.f32.mrf.mxu0  ;;  %2476 = vrot.lane.b32.xlu1 %v8241_v43, %s8980_s15 }
  0xf7   :  { %v259_v46 = vpop.f32.mrf.mxu1  ;;  %v7172_v47 = vpack.c.bf16 %v219_v45, %v217_v41 }
  0xf8   :  { %v7180_v48 = vpack.c.bf16 %v259_v46, %v257_v42  ;;  %v8258_v50 = vld [vmem:[#allocation2 + $0x24] ss:$8 sps:$4 sm:$0xff]   ;;  %v913_v3 = vpop.f32.mrf.mxu0  ;;  %v8261_v4 = vld [vmem:[#allocation2 + $0x20] ss:$8 sps:$4 sm:$0xff]  }
  0xf9   :  { %365 = vst [vmem:[#allocation2 + $0x38] sm:$0xff] %v7172_v47  ;;  %5751 = vrot.lane.b32.xlu0 %v8248_v44, %s8978_s2  ;;  %v8260_v52 = vld [vmem:[#allocation2 + $0x64] ss:$8 sps:$4 sm:$0xff]   ;;  %v8262_v8 = vld [vmem:[#allocation2 + $0x60] ss:$8 sps:$4 sm:$0xff]  }
  0xfa   :  { %373 = vst [vmem:[#allocation2 + $0x78] sm:$0xff] %v7180_v48  ;;  %3144 = vrot.lane.b32.xlu1 %v8242_v49, %s8978_s2  ;;  %v915_v5 = vpop.f32.mrf.mxu0  ;;  %v8263_v12 = vld [vmem:[#allocation2 + $0x20] ss:$8 sps:$4 sm:$0xff]   ;;  %v8267_v28 = vld [vmem:[#allocation2 + $0x24] ss:$8 sps:$4 sm:$0xff]  }
  0xfb   :  { %v7213_v6 = vpack.c.bf16 %v915_v5, %v913_v3  ;;  %v8264_v16 = vld [vmem:[#allocation2 + $0x60] ss:$8 sps:$4 sm:$0xff]   ;;  %v8268_v32 = vld [vmem:[#allocation2 + $0x64] ss:$8 sps:$4 sm:$0xff]  }
  0xfc   :  { %v917_v7 = vpop.f32.mrf.mxu0  ;;  %v8265_v20 = vld [vmem:[#allocation2 + $0x20] ss:$8 sps:$4 sm:$0xff]   ;;  %v8269_v36 = vld [vmem:[#allocation2 + $0x24] ss:$8 sps:$4 sm:$0xff]  }
  0xfd   :  { %5745 = vrot.lane.b32.xlu0 %v8258_v50, %s8978_s2  ;;  %1088 = vst [vmem:[#allocation4] sm:$0xff] %v7213_v6  ;;  %v8266_v24 = vld [vmem:[#allocation2 + $0x60] ss:$8 sps:$4 sm:$0xff]   ;;  %v8271_v40 = vld [vmem:[#allocation2 + $0x64] ss:$8 sps:$4 sm:$0xff]  }
  0xfe   :  { %4407 = vrot.lane.b32.xlu1 %v8243_v51, %s8979_s14  ;;  %v919_v9 = vpop.f32.mrf.mxu0 }
  0xff   :  { %v7214_v10 = vpack.c.bf16 %v919_v9, %v917_v7 }
 0x100   :  { %v8270_v55 = vld [vmem:[#allocation2 + $0x34] ss:$8 sps:$4 sm:$0xff]   ;;  %v923_v11 = vpop.f32.mrf.mxu0  ;;  %v8272_v45 = vld [vmem:[#allocation2 + $0x30] ss:$8 sps:$4 sm:$0xff]  }
 0x101   :  { %5753 = vrot.lane.b32.xlu0 %v8260_v52, %s8978_s2  ;;  %1089 = vst [vmem:[#allocation4 + $0x8] sm:$0xff] %v7214_v10  ;;  %v8273_v47 = vld [vmem:[#allocation2 + $0x70] ss:$8 sps:$4 sm:$0xff]  }
 0x102   :  { %5074 = vrot.lane.b32.xlu1 %v8244_v53, %s8980_s15  ;;  %v925_v13 = vpop.f32.mrf.mxu0  ;;  %v8276_v6 = vld [vmem:[#allocation2 + $0x30] ss:$8 sps:$4 sm:$0xff]  }
 0x103   :  { %v7215_v14 = vpack.c.bf16 %v925_v13, %v923_v11 }
 0x104   :  { %v927_v15 = vpop.f32.mrf.mxu0 }
 0x105   :  { %5747 = vrot.lane.b32.xlu0 %v8270_v55, %s8978_s2  ;;  %1090 = vst [vmem:[#allocation4 + $0x10] sm:$0xff] %v7215_v14 }
 0x106   :  { %5082 = vrot.lane.b32.xlu1 %v8245_v54, %s8980_s15  ;;  %v929_v17 = vpop.f32.mrf.mxu0 }
 0x107   :  { %v7216_v18 = vpack.c.bf16 %v929_v17, %v927_v15  ;;  %v8278_v15 = vld [vmem:[#allocation2 + $0x70] ss:$8 sps:$4 sm:$0xff]  }
 0x108   :  { %v933_v19 = vpop.f32.mrf.mxu0 }
 0x109   :  { %1091 = vst [vmem:[#allocation4 + $0x18] sm:$0xff] %v7216_v18 }
 0x10a   :  { %5741 = vrot.lane.b32.xlu1 %v8247_v56, %s8978_s2  ;;  %v935_v21 = vpop.f32.mrf.mxu0 }
 0x10b   :  { %v7217_v22 = vpack.c.bf16 %v935_v21, %v933_v19 }
 0x10c   :  { %v937_v23 = vpop.f32.mrf.mxu0 }
 0x10d   :  { %1092 = vst [vmem:[#allocation4 + $0x20] sm:$0xff] %v7217_v22 }
 0x10e   :  { %1802 = vrot.lane.b32.xlu1 %v8249_v57, %s8979_s14  ;;  %v939_v25 = vpop.f32.mrf.mxu0 }
 0x10f   :  { %v7218_v26 = vpack.c.bf16 %v939_v25, %v937_v23  ;;  %v8280_v23 = vld [vmem:[#allocation2 + $0x34] ss:$8 sps:$4 sm:$0xff]  }
 0x110   :  { %v943_v27 = vpop.f32.mrf.mxu0 }
 0x111   :  { %1093 = vst [vmem:[#allocation4 + $0x28] sm:$0xff] %v7218_v26 }
 0x112   :  { %1810 = vrot.lane.b32.xlu1 %v8250_v58, %s8979_s14  ;;  %v945_v29 = vpop.f32.mrf.mxu0  ;;  %v8274_v58 = vld [vmem:[#allocation2 + $0x30] ss:$8 sps:$4 sm:$0xff]  }
 0x113   :  { %v7219_v30 = vpack.c.bf16 %v945_v29, %v943_v27  ;;  %v8281_v27 = vld [vmem:[#allocation2 + $0x10] ss:$8 sps:$4 sm:$0xff]   ;;  %v8283_v29 = vld [vmem:[#allocation2 + $0x20] ss:$8 sps:$4 sm:$0xff]  }
 0x114   :  { %v947_v31 = vpop.f32.mrf.mxu0 }
 0x115   :  { %1094 = vst [vmem:[#allocation4 + $0x30] sm:$0xff] %v7219_v30 }
 0x116   :  { %2470 = vrot.lane.b32.xlu1 %v8251_v59, %s8980_s15  ;;  %v949_v33 = vpop.f32.mrf.mxu0 }
 0x117   :  { %v7220_v34 = vpack.c.bf16 %v949_v33, %v947_v31 }
 0x118   :  { %v953_v35 = vpop.f32.mrf.mxu0 }
 0x119   :  { %1095 = vst [vmem:[#allocation4 + $0x38] sm:$0xff] %v7220_v34 }
 0x11a   :  { %2478 = vrot.lane.b32.xlu1 %v8252_v60, %s8980_s15  ;;  %v955_v37 = vpop.f32.mrf.mxu0  ;;  %v8275_v60 = vld [vmem:[#allocation2 + $0x70] ss:$8 sps:$4 sm:$0xff]  }
 0x11b   :  { %v7221_v38 = vpack.c.bf16 %v955_v37, %v953_v35 }
 0x11c   :  { %v957_v39 = vpop.f32.mrf.mxu0 }
 0x11d   :  { %1096 = vst [vmem:[#allocation4 + $0x40] sm:$0xff] %v7221_v38  ;;  %v8286_v38 = vld [vmem:[#allocation2 + $0x34] ss:$8 sps:$4 sm:$0xff]  }
 0x11e   :  { %3138 = vrot.lane.b32.xlu1 %v8253_v61, %s8978_s2  ;;  %v959_v41 = vpop.f32.mrf.mxu0 }
 0x11f   :  { %v7222_v42 = vpack.c.bf16 %v959_v41, %v957_v39 }
 0x120   :  { %v963_v43 = vpop.f32.mrf.mxu0 }
 0x121   :  { %1097 = vst [vmem:[#allocation4 + $0x48] sm:$0xff] %v7222_v42 }
 0x122   :  { %3146 = vrot.lane.b32.xlu1 %v8254_v62, %s8978_s2  ;;  %v965_v46 = vpop.f32.mrf.mxu0 }
 0x123   :  { %v7223_v48 = vpack.c.bf16 %v965_v46, %v963_v43  ;;  %v8287_v43 = vld [vmem:[#allocation2 + $0x30] ss:$8 sps:$4 sm:$0xff]  }
 0x124   :  { %v967_v49 = vpop.f32.mrf.mxu0 }
 0x125   :  { %1098 = vst [vmem:[#allocation4 + $0x50] sm:$0xff] %v7223_v48  ;;  %v8288_v48 = vld [vmem:[#allocation2 + $0x74] ss:$8 sps:$4 sm:$0xff]  }
 0x126   :  { %4409 = vrot.lane.b32.xlu1 %v8255_v63, %s8979_s14  ;;  %v969_v52 = vpop.f32.mrf.mxu0 }
 0x127   :  { %v7224_v54 = vpack.c.bf16 %v969_v52, %v967_v49  ;;  %v8289_v49 = vld [vmem:[#allocation2 + $0x40] ss:$8 sps:$4 sm:$0xff]  }
 0x128   :  { %v973_v55 = vpop.f32.mrf.mxu0 }
 0x129   :  { %1099 = vst [vmem:[#allocation4 + $0x58] sm:$0xff] %v7224_v54 }
 0x12a   :  { %4417 = vrot.lane.b32.xlu1 %v8256_v0, %s8979_s14  ;;  %v975_v61 = vpop.f32.mrf.mxu0 }
 0x12b   :  { %v7225_v63 = vpack.c.bf16 %v975_v61, %v973_v55 }
 0x12d   :  { %1100 = vst [vmem:[#allocation4 + $0x60] sm:$0xff] %v7225_v63 }
 0x12e   :  { %5076 = vrot.lane.b32.xlu1 %v8257_v1, %s8980_s15  ;;  %v977_v1 = vpop.f32.mrf.mxu0 }
 0x132   :  { %5743 = vrot.lane.b32.xlu1 %v8259_v2, %s8978_s2 }
 0x136   :  { %1804 = vrot.lane.b32.xlu1 %v8261_v4, %s8979_s14  ;;  %v979_v4 = vpop.f32.mrf.mxu0 }
 0x137   :  { %v7226_v7 = vpack.c.bf16 %v979_v4, %v977_v1  ;;  %v8304_v1 = vld [vmem:[#allocation4 + $0x40] ss:$8 sps:$4 sm:$0xff]  }
 0x139   :  { %1101 = vst [vmem:[#allocation4 + $0x68] sm:$0xff] %v7226_v7 }
 0x13a   :  { %1812 = vrot.lane.b32.xlu1 %v8262_v8, %s8979_s14  ;;  %v983_v8 = vpop.f32.mrf.mxu0 }
 0x13e   :  { %2472 = vrot.lane.b32.xlu1 %v8263_v12, %s8980_s15  ;;  %v985_v12 = vpop.f32.mrf.mxu0 }
 0x140   :  { %v987_v18 = vpop.f32.mrf.mxu0 }
 0x142   :  { %2480 = vrot.lane.b32.xlu1 %v8264_v16, %s8980_s15  ;;  %v7227_v16 = vpack.c.bf16 %v985_v12, %v983_v8  ;;  %v989_v22 = vpop.f32.mrf.mxu0  ;;  %v8302_v8 = vld [vmem:[#allocation4 + $0x20] ss:$8 sps:$4 sm:$0xff]  }
 0x143   :  { %v7228_v25 = vpack.c.bf16 %v989_v22, %v987_v18  ;;  %v8310_v18 = vld [vmem:[#allocation4 + $0x40] ss:$8 sps:$4 sm:$0xff]  }
 0x144   :  { %1102 = vst [vmem:[#allocation4 + $0x70] sm:$0xff] %v7227_v16  ;;  %v8312_v16 = vld [vmem:[#allocation4 + $0x40] ss:$8 sps:$4 sm:$0xff]  }
 0x145   :  { %1103 = vst [vmem:[#allocation4 + $0x78] sm:$0xff] %v7228_v25  ;;  %v8313_v25 = vld [vmem:[#allocation4 + $0x50] ss:$8 sps:$4 sm:$0xff]  }
 0x146   :  { %3140 = vrot.lane.b32.xlu1 %v8265_v20, %s8978_s2 }
 0x14a   :  { %3148 = vrot.lane.b32.xlu1 %v8266_v24, %s8978_s2 }
 0x14c   :  { %v8298_v41 = vld [vmem:[#allocation4 + $0x70] ss:$8 sps:$4 sm:$0xff]  }
 0x14e   :  { %4411 = vrot.lane.b32.xlu1 %v8267_v28, %s8979_s14 }
 0x152   :  { %4419 = vrot.lane.b32.xlu1 %v8268_v32, %s8979_s14  ;;  %v8284_v32 = vld [vmem:[#allocation2 + $0x74] ss:$8 sps:$4 sm:$0xff]  }
 0x156   :  { %5078 = vrot.lane.b32.xlu1 %v8269_v36, %s8980_s15 }
 0x15a   :  { %5086 = vrot.lane.b32.xlu1 %v8271_v40, %s8980_s15  ;;  %v8299_v40 = vld [vmem:[#allocation4 + $0x60] ss:$8 sps:$4 sm:$0xff]  }
 0x15c   :  { %v1801_v44 = vpop.permute.xlu1 %1800 }
 0x15d   :  { %7834 = vmatprep.mubr.msk.bf16.mxu0 %vm124_vm0, %v1801_v44 }
 0x15e   :  { %1806 = vrot.lane.b32.xlu1 %v8272_v45, %s8979_s14 }
 0x160   :  { %v9240_v51 = vpop.permute.xlu1 %1808 }
 0x162   :  { %1814 = vrot.lane.b32.xlu1 %v8273_v47, %s8979_s14 }
 0x163   :  { %v7748_v50 = vpop.f32.mrf.mxu1 }
 0x164   :  { %v9243_v57 = vpop.permute.xlu1 %2468 }
 0x165   :  { %v568_v53 = vpop.f32.mrf.mxu1 }
 0x166   :  { %2474 = vrot.lane.b32.xlu1 %v8274_v58, %s8980_s15  ;;  %v8305_v58 = vld [vmem:[#allocation4 + $0x10] ss:$8 sps:$4 sm:$0xff]  }
 0x167   :  { %v7749_v56 = vpop.f32.mrf.mxu1  ;;  %2143 = vrot.lane.b32.xlu0 %v8305_v58, %s8979_s14 }
 0x168   :  { %v7365_v59 = vpack.c.bf16 %v7749_v56, %v7748_v50  ;;  %v9246_v3 = vpop.permute.xlu1 %2476  ;;  %v8301_v56 = vld [vmem:[#allocation4 + $0x50] ss:$8 sps:$4 sm:$0xff]  }
 0x169   :  { %v571_v62 = vpop.f32.mrf.mxu1 }
 0x16a   :  { %7437 = vst [vmem:[#allocation3 + $0x8] sm:$0xff] %v7365_v59   ;;  %v7360_v0 = vpack.c.bf16 %v571_v62, %v568_v53  ;;  %2482 = vrot.lane.b32.xlu1 %v8275_v60, %s8980_s15  ;;  %v8290_v60 = vld [vmem:[#allocation2 + $0x74] ss:$8 sps:$4 sm:$0xff]   ;;  %v8291_v62 = vld [vmem:[#allocation2 + $0x50] ss:$8 sps:$4 sm:$0xff]  }
 0x16b   :  { %v7752_v2 = vpop.f32.mrf.mxu1 }
 0x16c   :  { %7361 = vst [vmem:[#allocation3] sm:$0xff] %v7360_v0   ;;  %v9249_v10 = vpop.permute.xlu1 %3144  ;;  %v8300_v0 = vld [vmem:[#allocation4] ss:$8 sps:$4 sm:$0xff]  }
 0x16d   :  { %v584_v5 = vpop.f32.mrf.mxu1 }
 0x16e   :  { %3142 = vrot.lane.b32.xlu1 %v8276_v6, %s8978_s2 }
 0x16f   :  { %v7753_v9 = vpop.f32.mrf.mxu1 }
 0x170   :  { %v7375_v11 = vpack.c.bf16 %v7753_v9, %v7752_v2  ;;  %v9252_v19 = vpop.permute.xlu1 %4407  ;;  %v8308_v9 = vld [vmem:[#allocation4 + $0x30] ss:$8 sps:$4 sm:$0xff]  }
 0x171   :  { %v587_v13 = vpop.f32.mrf.mxu1  ;;  %v8277_v14 = vld [vmem:[#allocation3 + $0x8] sm:$0xff]  }
 0x172   :  { %7439 = vst [vmem:[#allocation3 + $0x18] sm:$0xff] %v7375_v11   ;;  %v7370_v17 = vpack.c.bf16 %v587_v13, %v584_v5  ;;  %7778 = vmatprep.subr.bf16.mxu1 %v8277_v14  ;;  %3150 = vrot.lane.b32.xlu1 %v8278_v15, %s8978_s2  ;;  %v8292_v5 = vld [vmem:[#allocation2 + $0x60] ss:$8 sps:$4 sm:$0xff]   ;;  %v8309_v11 = vld [vmem:[#allocation4 + $0x30] ss:$8 sps:$4 sm:$0xff]  }
 0x173   :  { %v8279_v20 = vld [vmem:[#allocation3] sm:$0xff]   ;;  %v7756_v21 = vpop.f32.mrf.mxu1  ;;  %7779 = vmatpush3.bf16.msra.mxu1 %v8277_v14  ;;  %v8293_v13 = vld [vmem:[#allocation2 + $0x70] ss:$8 sps:$4 sm:$0xff]   ;;  %2815 = vrot.lane.b32.xlu0 %v8309_v11, %s8980_s15 }
 0x174   :  { %7438 = vst [vmem:[#allocation3 + $0x10] sm:$0xff] %v7370_v17   ;;  %7780 = vmatprep.subr.bf16.mxu1 %v8279_v20  ;;  %v9255_v26 = vpop.permute.xlu1 %5074  ;;  %v8307_v14 = vld [vmem:[#allocation4 + $0x30] ss:$8 sps:$4 sm:$0xff]   ;;  %v8311_v15 = vld [vmem:[#allocation4 + $0x20] ss:$8 sps:$4 sm:$0xff]  }
 0x175   :  { %v600_v24 = vpop.f32.mrf.mxu1 }
 0x176   :  { %4413 = vrot.lane.b32.xlu1 %v8280_v23, %s8979_s14  ;;  %v8317_v23 = vld [vmem:[#allocation4] ss:$8 sps:$4 sm:$0xff]  }
 0x177   :  { %v7757_v28 = vpop.f32.mrf.mxu1  ;;  %7781 = vmatpush3.bf16.msra.mxu1 %v8279_v20  ;;  %2149 = vrot.lane.b32.xlu0 %v8312_v16, %s8979_s14  ;;  %v8314_v20 = vld [vmem:[#allocation4 + $0x10] ss:$8 sps:$4 sm:$0xff]  }
 0x178   :  { %v7385_v30 = vpack.c.bf16 %v7757_v28, %v7756_v21  ;;  %v9258_v35 = vpop.permute.xlu1 %5082  ;;  %7798 = vmatprep.subr.bf16.mxu1 %v8298_v41  ;;  %v8315_v21 = vld [vmem:[#allocation4 + $0x50] ss:$8 sps:$4 sm:$0xff]   ;;  %v8316_v28 = vld [vmem:[#allocation4 + $0x60] ss:$8 sps:$4 sm:$0xff]  }
 0x179   :  { %v8282_v31 = vld [vmem:[#allocation3 + $0x18] sm:$0xff]   ;;  %v603_v33 = vpop.f32.mrf.mxu1 }
 0x17a   :  { %7441 = vst [vmem:[#allocation3 + $0x28] sm:$0xff] %v7385_v30   ;;  %v7380_v34 = vpack.c.bf16 %v603_v33, %v600_v24  ;;  %7783 = vmatmul.mubr.msk.bf16.vlgmr.msra.gmra.mxu1 %vm124_vm0, %v8281_v27  ;;  %7830 = vmatprep.subr.bf16.mxu0 %v8282_v31  ;;  %v8318_v24 = vld [vmem:[#allocation4 + $0x70] ss:$8 sps:$4 sm:$0xff]   ;;  %v8319_v33 = vld [vmem:[#allocation4 + $0x60] ss:$8 sps:$4 sm:$0xff]  }
 0x17b   :  { %v8285_v36 = vld [vmem:[#allocation3 + $0x10] sm:$0xff]   ;;  %v7760_v37 = vpop.f32.mrf.mxu1  ;;  %7786 = vmatprep.mubr.msk.bf16.mxu1 %vm124_vm0, %v8283_v29  ;;  %7831 = vmatpush3.bf16.msra.mxu0 %v8282_v31 }
 0x17c   :  { %7440 = vst [vmem:[#allocation3 + $0x20] sm:$0xff] %v7380_v34   ;;  %4421 = vrot.lane.b32.xlu1 %v8284_v32, %s8979_s14  ;;  %7832 = vmatprep.subr.bf16.mxu0 %v8285_v36  ;;  %v9263_v42 = vpop.permute.xlu1 %5741  ;;  %v8320_v30 = vld [vmem:[#allocation4 + $0x70] ss:$8 sps:$4 sm:$0xff]  }
 0x17d   :  { %v616_v39 = vpop.f32.mrf.mxu1  ;;  %7799 = vmatpush3.bf16.msra.mxu1 %v8298_v41  ;;  %2819 = vrot.lane.b32.xlu0 %v8315_v21, %s8980_s15  ;;  %v8323_v21 = vld [vmem:[#allocation2 + $0x24] ss:$8 sps:$4 sm:$0xff]  }
 0x17e   :  { %7800 = vmatprep.subr.bf16.mxu1 %v8299_v40 }
 0x17f   :  { %v7761_v44 = vpop.f32.mrf.mxu1  ;;  %7833 = vmatpush3.bf16.msra.mxu0 %v8285_v36 }
 0x180   :  { %v7395_v45 = vpack.c.bf16 %v7761_v44, %v7760_v37  ;;  %5080 = vrot.lane.b32.xlu1 %v8286_v38, %s8980_s15  ;;  %v1803_v52 = vpop.permute.xlu1 %1802 }
 0x181   :  { %v8294_v46 = vld [vmem:[#allocation3 + $0x28] sm:$0xff]   ;;  %v619_v47 = vpop.f32.mrf.mxu1  ;;  %7801 = vmatpush3.bf16.msra.mxu1 %v8299_v40  ;;  %2155 = vrot.lane.b32.xlu0 %v8318_v24, %s8979_s14 }
 0x182   :  { %7443 = vst [vmem:[#allocation3 + $0x38] sm:$0xff] %v7395_v45   ;;  %v7390_v50 = vpack.c.bf16 %v619_v47, %v616_v39  ;;  %7787 = vmatmul.mubr.msk.bf16.gmra.mxu1 %vm124_vm0, %v8287_v43  ;;  %7882 = vmatprep.subr.bf16.mxu0 %v8294_v46 }
 0x183   :  { %v8295_v53 = vld [vmem:[#allocation3 + $0x20] sm:$0xff]   ;;  %v7764_v54 = vpop.f32.mrf.mxu1  ;;  %7835 = vmatmul.mubr.msk.bf16.vlgmr.msra.gmra.mxu0 %vm124_vm0, %v1803_v52  ;;  %7790 = vmatprep.mubr.msk.bf16.mxu1 %vm124_vm0, %v8289_v49 }
 0x184   :  { %7442 = vst [vmem:[#allocation3 + $0x30] sm:$0xff] %v7390_v50   ;;  %5088 = vrot.lane.b32.xlu1 %v8288_v48, %s8980_s15  ;;  %7883 = vmatpush3.bf16.msra.mxu0 %v8294_v46  ;;  %v9270_v59 = vpop.permute.xlu1 %1810 }
 0x185   :  { %v632_v55 = vpop.f32.mrf.mxu1  ;;  %7884 = vmatprep.subr.bf16.mxu0 %v8295_v53  ;;  %7802 = vmatprep.subr.bf16.mxu1 %v8301_v56 }
 0x186   :  { %7803 = vmatpush3.bf16.msra.mxu1 %v8301_v56  ;;  %2823 = vrot.lane.b32.xlu0 %v8320_v30, %s8980_s15 }
 0x187   :  { %v7765_v61 = vpop.f32.mrf.mxu1  ;;  %7804 = vmatprep.subr.bf16.mxu1 %v8304_v1 }
 0x188   :  { %v7405_v63 = vpack.c.bf16 %v7765_v61, %v7764_v54  ;;  %5755 = vrot.lane.b32.xlu1 %v8290_v60, %s8978_s2  ;;  %7885 = vmatpush3.bf16.msra.mxu0 %v8295_v53  ;;  %v9276_v7 = vpop.permute.xlu1 %2470 }
 0x189   :  { %v9274_v2 = vld [vmem:[#allocation3 + $0x38] sm:$0xff]   ;;  %v635_v4 = vpop.f32.mrf.mxu1 }
 0x18a   :  { %7445 = vst [vmem:[#allocation3 + $0x48] sm:$0xff] %v7405_v63   ;;  %v7400_v6 = vpack.c.bf16 %v635_v4, %v632_v55  ;;  %7791 = vmatmul.mubr.msk.bf16.gmra.mxu1 %vm124_vm0, %v8291_v62  ;;  %7934 = vmatprep.subr.bf16.mxu0 %v9274_v2 }
 0x18b   :  { %7794 = vmatprep.mubr.msk.bf16.mxu1 %vm124_vm0, %v8292_v5  ;;  %7805 = vmatpush3.bf16.msra.mxu1 %v8304_v1  ;;  %v7768_v29 = vpop.f32.mrf.mxu1 }
 0x18c   :  { %7444 = vst [vmem:[#allocation3 + $0x40] sm:$0xff] %v7400_v6   ;;  %2141 = vrot.lane.b32.xlu1 %v8300_v0, %s8979_s14  ;;  %v9282_v12 = vpop.permute.xlu1 %2478  ;;  %7806 = vmatprep.subr.bf16.mxu1 %v8308_v9 }
 0x18d   :  { %v648_v32 = vpop.f32.mrf.mxu1 }
 0x18f   :  { %7807 = vmatpush3.bf16.msra.mxu1 %v8308_v9  ;;  %v7769_v34 = vpop.f32.mrf.mxu1 }
 0x190   :  { %2145 = vrot.lane.b32.xlu1 %v8302_v8, %s8979_s14  ;;  %v9286_v17 = vpop.permute.xlu1 %3138  ;;  %7808 = vmatprep.subr.bf16.mxu1 %v8311_v15  ;;  %v7415_v36 = vpack.c.bf16 %v7769_v34, %v7768_v29  ;;  %v8297_v8 = vld [vmem:[#allocation3 + $0x30] sm:$0xff]  }
 0x191   :  { %v651_v38 = vpop.f32.mrf.mxu1 }
 0x192   :  { %7795 = vmatmul.mubr.msk.bf16.gmra.mxu1 %vm124_vm0, %v8293_v13  ;;  %7447 = vst [vmem:[#allocation3 + $0x58] sm:$0xff] %v7415_v36   ;;  %v7410_v39 = vpack.c.bf16 %v651_v38, %v648_v32  ;;  %v1142_v32 = vld [vmem:[#allocation6 + $0x10] sm:$0xff]  ;;  %v8329_v36 = vld [vmem:[#allocation2 + $0x64] ss:$8 sps:$4 sm:$0xff]  }
 0x193   :  { %7809 = vmatpush3.bf16.msra.mxu1 %v8311_v15  ;;  %v7772_v41 = vpop.f32.mrf.mxu1 }
 0x194   :  { %2147 = vrot.lane.b32.xlu1 %v8307_v14, %s8979_s14  ;;  %v9291_v22 = vpop.permute.xlu1 %3146  ;;  %7810 = vmatprep.subr.bf16.mxu1 %v8314_v20  ;;  %7446 = vst [vmem:[#allocation3 + $0x50] sm:$0xff] %v7410_v39  }
 0x195   :  { %v664_v44 = vpop.f32.mrf.mxu1 }
 0x197   :  { %7811 = vmatpush3.bf16.msra.mxu1 %v8314_v20  ;;  %v7773_v46 = vpop.f32.mrf.mxu1 }
 0x198   :  { %2817 = vrot.lane.b32.xlu1 %v8310_v18, %s8980_s15  ;;  %v9295_v27 = vpop.permute.xlu1 %4409  ;;  %7812 = vmatprep.subr.bf16.mxu1 %v8317_v23  ;;  %v7425_v47 = vpack.c.bf16 %v7773_v46, %v7772_v41 }
 0x199   :  { %v667_v48 = vpop.f32.mrf.mxu1 }
 0x19a   :  { %7449 = vst [vmem:[#allocation3 + $0x68] sm:$0xff] %v7425_v47   ;;  %v7420_v49 = vpack.c.bf16 %v667_v48, %v664_v44  ;;  %v1143_v44 = vld [vmem:[#allocation6 + $0x18] sm:$0xff] }
 0x19b   :  { %7813 = vmatpush3.bf16.msra.mxu1 %v8317_v23  ;;  %v7776_v52 = vpop.f32.mrf.mxu1  ;;  %v8326_v20 = vld [vmem:[#allocation3 + $0x50] sm:$0xff]  }
 0x19c   :  { %2151 = vrot.lane.b32.xlu1 %v8313_v25, %s8979_s14  ;;  %v9299_v31 = vpop.permute.xlu1 %4417  ;;  %7448 = vst [vmem:[#allocation3 + $0x60] sm:$0xff] %v7420_v49   ;;  %v8325_v25 = vld [vmem:[#allocation2 + $0x34] ss:$8 sps:$4 sm:$0xff]  }
 0x19d   :  { %v680_v53 = vpop.f32.mrf.mxu1 }
 0x19f   :  { %v7777_v55 = vpop.f32.mrf.mxu1 }
 0x1a0   :  { %2153 = vrot.lane.b32.xlu1 %v8316_v28, %s8979_s14  ;;  %v9303_v37 = vpop.permute.xlu1 %5076  ;;  %v7435_v56 = vpack.c.bf16 %v7777_v55, %v7776_v52  ;;  %v8327_v28 = vld [vmem:[#allocation2 + $0x44] ss:$8 sps:$4 sm:$0xff]   ;;  %v1746_v52 = vld [vmem:[#allocation6 + $0x90] sm:$0xff] }
 0x1a1   :  { %v683_v58 = vpop.f32.mrf.mxu1 }
 0x1a2   :  { %7451 = vst [vmem:[#allocation3 + $0x78] sm:$0xff] %v7435_v56   ;;  %v7430_v60 = vpack.c.bf16 %v683_v58, %v680_v53  ;;  %v8330_v53 = vld [vmem:[#allocation2 + $0x74] ss:$8 sps:$4 sm:$0xff]  }
 0x1a3   :  { %v1146_v58 = vld [vmem:[#allocation6 + $0x30] sm:$0xff] }
 0x1a4   :  { %2821 = vrot.lane.b32.xlu1 %v8319_v33, %s8980_s15  ;;  %v9306_v40 = vpop.permute.xlu1 %5743  ;;  %7450 = vst [vmem:[#allocation3 + $0x70] sm:$0xff] %v7430_v60   ;;  %v8328_v33 = vld [vmem:[#allocation2 + $0x54] ss:$8 sps:$4 sm:$0xff]  }
 0x1a8   :  { %v1805_v43 = vpop.permute.xlu1 %1804 }
 0x1a9   :  { %7838 = vmatprep.mubr.msk.bf16.mxu0 %vm124_vm0, %v1805_v43  ;;  %v1140_v43 = vld [vmem:[#allocation6] sm:$0xff] }
 0x1ac   :  { %v1813_v45 = vpop.permute.xlu1 %1812 }
 0x1b0   :  { %v2473_v50 = vpop.permute.xlu1 %2472 }
 0x1b4   :  { %v2481_v54 = vpop.permute.xlu1 %2480 }
 0x1b8   :  { %v3141_v61 = vpop.permute.xlu1 %3140 }
 0x1bc   :  { %v3149_v62 = vpop.permute.xlu1 %3148 }
 0x1c0   :  { %v9309_v63 = vpop.permute.xlu1 %4411 }
 0x1c4   :  { %v9311_v0 = vpop.permute.xlu1 %4419 }
 0x1c8   :  { %v9313_v1 = vpop.permute.xlu1 %5078 }
 0x1cc   :  { %v9315_v4 = vpop.permute.xlu1 %5086 }
 0x1d0   :  { %v1807_v5 = vpop.permute.xlu1 %1806 }
 0x1d1   :  { %7839 = vmatmul.mubr.msk.bf16.gmra.mxu0 %vm124_vm0, %v1807_v5  ;;  %v1744_v5 = vld [vmem:[#allocation6 + $0x80] sm:$0xff] }
 0x1d2   :  { %7842 = vmatprep.mubr.msk.bf16.mxu0 %vm124_vm0, %v9240_v51  ;;  %v8303_v51 = vld [vmem:[#allocation3 + $0x48] sm:$0xff]  }
 0x1d4   :  { %v1815_v6 = vpop.permute.xlu1 %1814 }
 0x1d9   :  { %7843 = vmatmul.mubr.msk.bf16.gmra.mxu0 %vm124_vm0, %v9270_v59  ;;  %v2475_v59 = vpop.permute.xlu1 %2474 }
 0x1da   :  { %7846 = vmatprep.mubr.msk.bf16.mxu0 %vm124_vm0, %v1813_v45 }
 0x1e1   :  { %7847 = vmatmul.mubr.msk.bf16.gmra.mxu0 %vm124_vm0, %v1815_v6 }
 0x1e2   :  { %7886 = vmatprep.mubr.msk.bf16.mxu0 %vm124_vm0, %v9243_v57  ;;  %v2483_v57 = vpop.permute.xlu1 %2482 }
 0x1e6   :  { %v3143_v11 = vpop.permute.xlu1 %3142 }
 0x1e9   :  { %7887 = vmatmul.mubr.msk.bf16.vlgmr.msra.gmra.mxu0 %vm124_vm0, %v9276_v7  ;;  %v3137_v7 = vpop.permute.xlu0 %3136 }
 0x1ea   :  { %7935 = vmatpush3.bf16.msra.mxu0 %v9274_v2  ;;  %7890 = vmatprep.mubr.msk.bf16.mxu0 %vm124_vm0, %v2473_v50  ;;  %v8306_v2 = vld [vmem:[#allocation3 + $0x40] sm:$0xff]   ;;  %v3151_v16 = vpop.permute.xlu1 %3150  ;;  %v1141_v50 = vld [vmem:[#allocation6 + $0x8] sm:$0xff] }
 0x1eb   :  { %7936 = vmatprep.subr.bf16.mxu0 %v8297_v8 }
 0x1ed   :  { %v9341_v9 = vpop.permute.xlu0 %4415 }
 0x1ee   :  { %7937 = vmatpush3.bf16.msra.mxu0 %v8297_v8 }
 0x1ef   :  { %7986 = vmatprep.subr.bf16.mxu0 %v8303_v51 }
 0x1f1   :  { %7891 = vmatmul.mubr.msk.bf16.gmra.mxu0 %vm124_vm0, %v2475_v59 }
 0x1f2   :  { %7894 = vmatprep.mubr.msk.bf16.mxu0 %vm124_vm0, %v9246_v3  ;;  %v8324_v3 = vld [vmem:[#allocation3 + $0x58] sm:$0xff]  }
 0x1f9   :  { %7895 = vmatmul.mubr.msk.bf16.gmra.mxu0 %vm124_vm0, %v9282_v12  ;;  %v9343_v12 = vpop.permute.xlu0 %5749 }
 0x1fa   :  { %7898 = vmatprep.mubr.msk.bf16.mxu0 %vm124_vm0, %v2481_v54 }
 0x1fd   :  { %v9348_v13 = vpop.permute.xlu0 %5084 }
 0x201   :  { %7899 = vmatmul.mubr.msk.bf16.gmra.mxu0 %vm124_vm0, %v2483_v57  ;;  %v9353_v14 = vpop.permute.xlu0 %5751 }
 0x202   :  { %7938 = vmatprep.mubr.msk.bf16.mxu0 %vm124_vm0, %v3137_v7  ;;  %v1150_v7 = vld [vmem:[#allocation6 + $0x50] sm:$0xff] }
 0x205   :  { %v9355_v15 = vpop.permute.xlu0 %5745 }
 0x209   :  { %7939 = vmatmul.mubr.msk.bf16.vlgmr.msra.gmra.mxu0 %vm124_vm0, %v9286_v17  ;;  %v8321_v17 = vld [vmem:[#allocation2 + $0x4] ss:$8 sps:$4 sm:$0xff]   ;;  %v9359_v18 = vpop.permute.xlu0 %5753 }
 0x20a   :  { %7987 = vmatpush3.bf16.msra.mxu0 %v8303_v51  ;;  %7942 = vmatprep.mubr.msk.bf16.mxu0 %vm124_vm0, %v3141_v61  ;;  %v1144_v51 = vld [vmem:[#allocation6 + $0x20] sm:$0xff] }
 0x20b   :  { %7988 = vmatprep.subr.bf16.mxu0 %v8306_v2 }
 0x20d   :  { %v9361_v23 = vpop.permute.xlu0 %5747 }
 0x20e   :  { %7989 = vmatpush3.bf16.msra.mxu0 %v8306_v2  ;;  %v8332_v2 = vld [vmem:[#allocation3 + $0x60] sm:$0xff]  }
 0x20f   :  { %8038 = vmatprep.subr.bf16.mxu0 %v8324_v3 }
 0x211   :  { %7943 = vmatmul.mubr.msk.bf16.gmra.mxu0 %vm124_vm0, %v3143_v11  ;;  %v9365_v24 = vpop.permute.xlu0 %2143 }
 0x212   :  { %7946 = vmatprep.mubr.msk.bf16.mxu0 %vm124_vm0, %v9249_v10  ;;  %v8322_v10 = vld [vmem:[#allocation2 + $0x14] ss:$8 sps:$4 sm:$0xff]   ;;  %11680 = vst [vmem:[#allocation12_spill] sm:$0xff] %v9365_v24  ;;  %v2425_v24 = vld [vmem:[#allocation6 + $0x168] sm:$0xff] }
 0x215   :  { %v9368_v29 = vpop.permute.xlu0 %2815 }
 0x216   :  { %11681 = vst [vmem:[#allocation13_spill] sm:$0xff] %v9368_v29  ;;  %v2427_v29 = vld [vmem:[#allocation6 + $0x178] sm:$0xff] }
 0x219   :  { %7947 = vmatmul.mubr.msk.bf16.gmra.mxu0 %vm124_vm0, %v9291_v22  ;;  %v8331_v22 = vld [vmem:[#allocation3 + $0x68] sm:$0xff]   ;;  %v9371_v30 = vpop.permute.xlu0 %2149 }
 0x21a   :  { %7950 = vmatprep.mubr.msk.bf16.mxu0 %vm124_vm0, %v3149_v62  ;;  %11682 = vst [vmem:[#allocation14_spill] sm:$0xff] %v9371_v30  ;;  %v3082_v30 = vld [vmem:[#allocation6 + $0x190] sm:$0xff] }
 0x21d   :  { %v9376_v39 = vpop.permute.xlu0 %2819 }
 0x21e   :  { %11683 = vst [vmem:[#allocation15_spill] sm:$0xff] %v9376_v39 }
 0x221   :  { %7951 = vmatmul.mubr.msk.bf16.gmra.mxu0 %vm124_vm0, %v3151_v16  ;;  %v9384_v48 = vpop.permute.xlu0 %2155  ;;  %v1147_v16 = vld [vmem:[#allocation6 + $0x38] sm:$0xff] }
 0x222   :  { %7990 = vmatprep.mubr.msk.bf16.mxu0 %vm124_vm0, %v8321_v17  ;;  %11684 = vst [vmem:[#allocation16_spill] sm:$0xff] %v9384_v48  ;;  %7850 = vmatprep.subr.bf16.mxu1 %v9384_v48  ;;  %v8333_v17 = vld [vmem:[#allocation3 + $0x78] sm:$0xff]  }
 0x223   :  { %v3083_v48 = vld [vmem:[#allocation6 + $0x198] sm:$0xff] }
 0x229   :  { %7991 = vmatmul.mubr.msk.bf16.vlgmr.msra.gmra.mxu0 %vm124_vm0, %v8322_v10 }
 0x22a   :  { %7994 = vmatprep.mubr.msk.bf16.mxu0 %vm124_vm0, %v8323_v21  ;;  %8039 = vmatpush3.bf16.msra.mxu0 %v8324_v3 }
 0x22b   :  { %8040 = vmatprep.subr.bf16.mxu0 %v8326_v20 }
 0x22e   :  { %8041 = vmatpush3.bf16.msra.mxu0 %v8326_v20  ;;  %v1747_v20 = vld [vmem:[#allocation6 + $0x98] sm:$0xff] }
 0x22f   :  { %8090 = vmatprep.subr.bf16.mxu0 %v8331_v22 }
 0x231   :  { %7995 = vmatmul.mubr.msk.bf16.gmra.mxu0 %vm124_vm0, %v8325_v25 }
 0x232   :  { %7998 = vmatprep.mubr.msk.bf16.mxu0 %vm124_vm0, %v8327_v28 }
 0x239   :  { %7999 = vmatmul.mubr.msk.bf16.gmra.mxu0 %vm124_vm0, %v8328_v33 }
 0x23a   :  { %v7784_v34 = vpop.f32.mrf.mxu1  ;;  %8002 = vmatprep.mubr.msk.bf16.mxu0 %vm124_vm0, %v8329_v36  ;;  %v1148_v36 = vld [vmem:[#allocation6 + $0x40] sm:$0xff] }
 0x23b   :  { %v9373_v38 = vadd.f32 %v7784_v34, %v1142_v32  ;;  %v1745_v32 = vld [vmem:[#allocation6 + $0x88] sm:$0xff] }
 0x23c   :  { %v1266_v41 = vpop.f32.mrf.mxu1 }
 0x23d   :  { %1333 = vmax.xlane.f32.xlu0 %v9373_v38  ;;  %v9380_v46 = vadd.f32 %v1266_v41, %v1140_v43  ;;  %v1151_v41 = vld [vmem:[#allocation6 + $0x58] sm:$0xff] }
 0x23e   :  { %v7785_v45 = vpop.f32.mrf.mxu1 }
 0x23f   :  { %v9382_v47 = vadd.f32 %v7785_v45, %v1143_v44 }
 0x240   :  { %v1269_v49 = vpop.f32.mrf.mxu1 }
 0x241   :  { %1329 = vmax.xlane.f32.xlu0 %v9380_v46  ;;  %1335 = vmax.xlane.f32.xlu1 %v9382_v47  ;;  %v9390_v56 = vadd.f32 %v1269_v49, %v1141_v50  ;;  %v1751_v50 = vld [vmem:[#allocation6 + $0xb8] sm:$0xff] }
 0x242   :  { %v7788_v54 = vpop.f32.mrf.mxu1  ;;  %8003 = vmatmul.mubr.msk.bf16.gmra.mxu0 %vm124_vm0, %v8330_v53 }
 0x243   :  { %v7836_v55 = vpop.f32.mrf.mxu0  ;;  %8042 = vmatprep.mubr.msk.bf16.mxu0 %vm124_vm0, %v9252_v19  ;;  %v9398_v8 = vadd.f32 %v7788_v54, %v1146_v58 }
 0x244   :  { %v9392_v60 = vadd.f32 %v7836_v55, %v1746_v52  ;;  %v1282_v61 = vpop.f32.mrf.mxu1  ;;  %v1749_v55 = vld [vmem:[#allocation6 + $0xa8] sm:$0xff] }
 0x245   :  { %v1886_v62 = vpop.f32.mrf.mxu0  ;;  %1331 = vmax.xlane.f32.xlu1 %v9390_v56  ;;  %v9404_v3 = vadd.f32 %v1282_v61, %v1144_v51 }
 0x246   :  { %1953 = vmax.xlane.f32.xlu0 %v9392_v60  ;;  %v7789_v6 = vpop.f32.mrf.mxu1  ;;  %v9400_v59 = vadd.f32 %v1886_v62, %v1744_v5  ;;  %v1154_v62 = vld [vmem:[#allocation6 + $0x70] sm:$0xff]  ;;  %v1155_v5 = vld [vmem:[#allocation6 + $0x78] sm:$0xff] }
 0x247   :  { %v9414_v10 = vadd.f32 %v7789_v6, %v1147_v16  ;;  %v7837_v21 = vpop.f32.mrf.mxu0 }
 0x248   :  { %v1285_v57 = vpop.f32.mrf.mxu1  ;;  %v9417_v25 = vadd.f32 %v7837_v21, %v1747_v20 }
 0x249   :  { %1341 = vmax.xlane.f32.xlu1 %v9398_v8  ;;  %v1889_v28 = vpop.f32.mrf.mxu0 }
 0x24a   :  { %1949 = vmax.xlane.f32.xlu0 %v9400_v59  ;;  %v7792_v19 = vpop.f32.mrf.mxu1  ;;  %8043 = vmatmul.mubr.msk.bf16.vlgmr.msra.gmra.mxu0 %vm124_vm0, %v9295_v27  ;;  %v4414_v27 = vpop.permute.xlu1 %4413  ;;  %v9426_v33 = vadd.f32 %v1889_v28, %v1745_v32  ;;  %v1153_v28 = vld [vmem:[#allocation6 + $0x68] sm:$0xff] }
 0x24b   :  { %v9406_v11 = vadd.f32 %v7792_v19, %v1150_v7  ;;  %8046 = vmatprep.mubr.msk.bf16.mxu0 %vm124_vm0, %v9309_v63  ;;  %8091 = vmatpush3.bf16.msra.mxu0 %v8331_v22  ;;  %v1145_v63 = vld [vmem:[#allocation6 + $0x28] sm:$0xff]  ;;  %v1755_v19 = vld [vmem:[#allocation6 + $0xd8] sm:$0xff] }
 0x24c   :  { %8092 = vmatprep.subr.bf16.mxu0 %v8332_v2  ;;  %v9423_v22 = vadd.f32 %v1285_v57, %v1145_v63  ;;  %v1298_v34 = vpop.f32.mrf.mxu1 }
 0x24d   :  { %1337 = vmax.xlane.f32.xlu1 %v9404_v3 }
 0x24e   :  { %1349 = vmax.xlane.f32.xlu0 %v9406_v11  ;;  %v7793_v43 = vpop.f32.mrf.mxu1  ;;  %v4422_v44 = vpop.permute.xlu1 %4421 }
 0x24f   :  { %8093 = vmatpush3.bf16.msra.mxu0 %v8332_v2  ;;  %v9436_v45 = vadd.f32 %v7793_v43, %v1151_v41  ;;  %v1752_v43 = vld [vmem:[#allocation6 + $0xc0] sm:$0xff] }
 0x250   :  { %8142 = vmatprep.subr.bf16.mxu0 %v8333_v17 }
 0x251   :  { %1343 = vmax.xlane.f32.xlu1 %v9414_v10 }
 0x252   :  { %8047 = vmatmul.mubr.msk.bf16.gmra.mxu0 %vm124_vm0, %v4414_v27  ;;  %v1152_v27 = vld [vmem:[#allocation6 + $0x60] sm:$0xff] }
 0x253   :  { %8050 = vmatprep.mubr.msk.bf16.mxu0 %vm124_vm0, %v9341_v9  ;;  %v9433_v9 = vadd.f32 %v1298_v34, %v1148_v36 }
 0x255   :  { %1955 = vmax.xlane.f32.xlu1 %v9417_v25 }
 0x259   :  { %1339 = vmax.xlane.f32.xlu1 %v9423_v22 }
 0x25a   :  { %8051 = vmatmul.mubr.msk.bf16.gmra.mxu0 %vm124_vm0, %v9299_v31  ;;  %v8334_v31 = vld [vmem:[#allocation3 + $0x70] sm:$0xff]  }
 0x25b   :  { %8054 = vmatprep.mubr.msk.bf16.mxu0 %vm124_vm0, %v9311_v0  ;;  %v5081_v0 = vpop.permute.xlu1 %5080 }
 0x25d   :  { %1951 = vmax.xlane.f32.xlu1 %v9426_v33 }
 0x261   :  { %1345 = vmax.xlane.f32.xlu1 %v9433_v9 }
 0x262   :  { %8055 = vmatmul.mubr.msk.bf16.gmra.mxu0 %vm124_vm0, %v4422_v44  ;;  %v1753_v44 = vld [vmem:[#allocation6 + $0xc8] sm:$0xff] }
 0x263   :  { %8094 = vmatprep.mubr.msk.bf16.mxu0 %vm124_vm0, %v9255_v26  ;;  %v5089_v26 = vpop.permute.xlu1 %5088 }
 0x265   :  { %1351 = vmax.xlane.f32.xlu1 %v9436_v45 }
 0x26a   :  { %8095 = vmatmul.mubr.msk.bf16.vlgmr.msra.gmra.mxu0 %vm124_vm0, %v9303_v37  ;;  %v1301_v37 = vpop.f32.mrf.mxu1 }
 0x26b   :  { %8098 = vmatprep.mubr.msk.bf16.mxu0 %vm124_vm0, %v9313_v1  ;;  %8143 = vmatpush3.bf16.msra.mxu0 %v8333_v17  ;;  %v5756_v17 = vpop.permute.xlu1 %5755 }
 0x26c   :  { %8144 = vmatprep.subr.bf16.mxu0 %v8334_v31 }
 0x26f   :  { %8145 = vmatpush3.bf16.msra.mxu0 %v8334_v31 }
 0x272   :  { %8099 = vmatmul.mubr.msk.bf16.gmra.mxu0 %vm124_vm0, %v5081_v0 }
 0x273   :  { %8102 = vmatprep.mubr.msk.bf16.mxu0 %vm124_vm0, %v9258_v35  ;;  %v1750_v35 = vld [vmem:[#allocation6 + $0xb0] sm:$0xff] }
 0x27a   :  { %8103 = vmatmul.mubr.msk.bf16.gmra.mxu0 %vm124_vm0, %v9348_v13 }
 0x27b   :  { %8106 = vmatprep.mubr.msk.bf16.mxu0 %vm124_vm0, %v9315_v4  ;;  %v7796_v4 = vpop.f32.mrf.mxu1 }
 0x27c   :  { %v9483_v7 = vadd.f32 %v7796_v4, %v1154_v62  ;;  %v2414_v62 = vld [vmem:[#allocation6 + $0x110] sm:$0xff] }
 0x27d   :  { %v1314_v53 = vpop.f32.mrf.mxu1 }
 0x27e   :  { %v9496_v36 = vadd.f32 %v1314_v53, %v1152_v27  ;;  %v1757_v53 = vld [vmem:[#allocation6 + $0xe8] sm:$0xff] }
 0x27f   :  { %v7797_v6 = vpop.f32.mrf.mxu1 }
 0x280   :  { %v9485_v2 = vadd.f32 %v7797_v6, %v1155_v5  ;;  %v2415_v5 = vld [vmem:[#allocation6 + $0x118] sm:$0xff] }
 0x281   :  { %v1317_v63 = vpop.f32.mrf.mxu1 }
 0x282   :  { %8107 = vmatmul.mubr.msk.bf16.gmra.mxu0 %vm124_vm0, %v5089_v26  ;;  %v9498_v41 = vadd.f32 %v1317_v63, %v1153_v28  ;;  %v2418_v28 = vld [vmem:[#allocation6 + $0x130] sm:$0xff] }
 0x283   :  { %8146 = vmatprep.mubr.msk.bf16.mxu0 %vm124_vm0, %v9263_v42  ;;  %v1748_v42 = vld [vmem:[#allocation6 + $0xa0] sm:$0xff] }
 0x28a   :  { %8147 = vmatmul.mubr.msk.bf16.vlgmr.msra.gmra.mxu0 %vm124_vm0, %v9306_v40 }
 0x28b   :  { %8150 = vmatprep.mubr.msk.bf16.mxu0 %vm124_vm0, %v9355_v15 }
 0x291   :  { %v7840_v1 = vpop.f32.mrf.mxu0 }
 0x292   :  { %8151 = vmatmul.mubr.msk.bf16.gmra.mxu0 %vm124_vm0, %v9361_v23  ;;  %v9462_v13 = vadd.f32 %v7840_v1, %v1750_v35  ;;  %v1149_v23 = vld [vmem:[#allocation6 + $0x48] sm:$0xff]  ;;  %v1758_v35 = vld [vmem:[#allocation6 + $0xf0] sm:$0xff]  ;;  %v1759_v1 = vld [vmem:[#allocation6 + $0xf8] sm:$0xff] }
 0x293   :  { %8154 = vmatprep.mubr.msk.bf16.mxu0 %vm124_vm0, %v9343_v12  ;;  %v1902_v49 = vpop.f32.mrf.mxu0  ;;  %v9479_v61 = vadd.f32 %v1301_v37, %v1149_v23 }
 0x294   :  { %1961 = vmax.xlane.f32.xlu0 %v9462_v13  ;;  %v9467_v52 = vadd.f32 %v1902_v49, %v1748_v42 }
 0x295   :  { %v7841_v40 = vpop.f32.mrf.mxu0 }
 0x296   :  { %v9469_v15 = vadd.f32 %v7841_v40, %v1751_v50  ;;  %v1756_v40 = vld [vmem:[#allocation6 + $0xe0] sm:$0xff] }
 0x297   :  { %v1905_v54 = vpop.f32.mrf.mxu0 }
 0x298   :  { %1957 = vmax.xlane.f32.xlu0 %v9467_v52  ;;  %1963 = vmax.xlane.f32.xlu1 %v9469_v15  ;;  %v9475_v58 = vadd.f32 %v1905_v54, %v1749_v55 }
 0x299   :  { %v7844_v12 = vpop.f32.mrf.mxu0 }
 0x29a   :  { %8155 = vmatmul.mubr.msk.bf16.gmra.mxu0 %vm124_vm0, %v9353_v14  ;;  %v1754_v14 = vld [vmem:[#allocation6 + $0xd0] sm:$0xff] }
 0x29b   :  { %8158 = vmatprep.mubr.msk.bf16.mxu0 %vm124_vm0, %v9359_v18  ;;  %v1918_v51 = vpop.f32.mrf.mxu0  ;;  %v9490_v20 = vadd.f32 %v7844_v12, %v1754_v14 }
 0x29c   :  { %1347 = vmax.xlane.f32.xlu0 %v9479_v61  ;;  %1959 = vmax.xlane.f32.xlu1 %v9475_v58  ;;  %v9502_v26 = vadd.f32 %v1918_v51, %v1752_v43 }
 0x29d   :  { %v7845_v57 = vpop.f32.mrf.mxu0 }
 0x29e   :  { %v9492_v21 = vadd.f32 %v7845_v57, %v1755_v19  ;;  %v2412_v19 = vld [vmem:[#allocation6 + $0x100] sm:$0xff] }
 0x29f   :  { %v1921_v16 = vpop.f32.mrf.mxu0 }
 0x2a0   :  { %1357 = vmax.xlane.f32.xlu0 %v9483_v7  ;;  %1359 = vmax.xlane.f32.xlu1 %v9485_v2  ;;  %v9504_v37 = vadd.f32 %v1921_v16, %v1753_v44  ;;  %v2413_v16 = vld [vmem:[#allocation6 + $0x108] sm:$0xff] }
 0x2a1   :  { %v7848_v18 = vpop.f32.mrf.mxu0 }
 0x2a2   :  { %8159 = vmatmul.mubr.msk.bf16.gmra.mxu0 %vm124_vm0, %v5756_v17  ;;  %v9508_v42 = vadd.f32 %v7848_v18, %v1758_v35  ;;  %v2417_v35 = vld [vmem:[#allocation6 + $0x128] sm:$0xff] }
 0x2a3   :  { %v1934_v32 = vpop.f32.mrf.mxu0 }
 0x2a4   :  { %1969 = vmax.xlane.f32.xlu0 %v9490_v20  ;;  %1971 = vmax.xlane.f32.xlu1 %v9492_v21  ;;  %v9514_v23 = vadd.f32 %v1934_v32, %v1756_v40  ;;  %v2419_v32 = vld [vmem:[#allocation6 + $0x138] sm:$0xff] }
 0x2a5   :  { %v7849_v34 = vpop.f32.mrf.mxu0 }
 0x2a6   :  { %v9510_v50 = vadd.f32 %v7849_v34, %v1759_v1 }
 0x2a7   :  { %v1937_v31 = vpop.f32.mrf.mxu0 }
 0x2a8   :  { %1353 = vmax.xlane.f32.xlu0 %v9496_v36  ;;  %1355 = vmax.xlane.f32.xlu1 %v9498_v41  ;;  %v9516_v12 = vadd.f32 %v1937_v31, %v1757_v53  ;;  %v2422_v53 = vld [vmem:[#allocation6 + $0x150] sm:$0xff] }
 0x2a9   :  { %v7888_v0 = vpop.f32.mrf.mxu0 }
 0x2aa   :  { %v9520_v57 = vadd.f32 %v7888_v0, %v2414_v62  ;;  %v2416_v0 = vld [vmem:[#allocation6 + $0x120] sm:$0xff] }
 0x2ab   :  { %v2554_v4 = vpop.f32.mrf.mxu0 }
 0x2ac   :  { %1965 = vmax.xlane.f32.xlu0 %v9502_v26  ;;  %1967 = vmax.xlane.f32.xlu1 %v9504_v37  ;;  %v9526_v27 = vadd.f32 %v2554_v4, %v2412_v19  ;;  %v2420_v19 = vld [vmem:[#allocation6 + $0x140] sm:$0xff] }
 0x2ad   :  { %v7889_v49 = vpop.f32.mrf.mxu0 }
 0x2ae   :  { %v9522_v14 = vadd.f32 %v7889_v49, %v2415_v5 }
 0x2af   :  { %v2557_v54 = vpop.f32.mrf.mxu0 }
 0x2b0   :  { %1977 = vmax.xlane.f32.xlu0 %v9508_v42  ;;  %1979 = vmax.xlane.f32.xlu1 %v9510_v50  ;;  %v9528_v63 = vadd.f32 %v2557_v54, %v2413_v16  ;;  %v2423_v54 = vld [vmem:[#allocation6 + $0x158] sm:$0xff]  ;;  %v2421_v16 = vld [vmem:[#allocation6 + $0x148] sm:$0xff] }
 0x2b1   :  { %v7892_v55 = vpop.f32.mrf.mxu0 }
 0x2b2   :  { %v9532_v44 = vadd.f32 %v7892_v55, %v2418_v28 }
 0x2b3   :  { %v2570_v6 = vpop.f32.mrf.mxu0 }
 0x2b4   :  { %1973 = vmax.xlane.f32.xlu0 %v9514_v23  ;;  %1975 = vmax.xlane.f32.xlu1 %v9516_v12  ;;  %v9538_v49 = vadd.f32 %v2570_v6, %v2416_v0 }
 0x2b5   :  { %v7893_v51 = vpop.f32.mrf.mxu0 }
 0x2b6   :  { %v9534_v31 = vadd.f32 %v7893_v51, %v2419_v32  ;;  %v9548_v32 = vpop.permute.xlu1 %2141 }
 0x2b7   :  { %v2573_v17 = vpop.f32.mrf.mxu0  ;;  %11689 = vst [vmem:[#allocation21_spill] sm:$0xff] %v9548_v32  ;;  %v2424_v32 = vld [vmem:[#allocation6 + $0x160] sm:$0xff] }
 0x2b8   :  { %2621 = vmax.xlane.f32.xlu0 %v9520_v57  ;;  %2623 = vmax.xlane.f32.xlu1 %v9522_v14  ;;  %11685 = vst [vmem:[#allocation17_spill] sm:$0xff] %v9534_v31  ;;  %v9540_v40 = vadd.f32 %v2573_v17, %v2417_v35  ;;  %v2426_v35 = vld [vmem:[#allocation6 + $0x170] sm:$0xff] }
 0x2b9   :  { %v7896_v18 = vpop.f32.mrf.mxu0 }
 0x2ba   :  { %11686 = vst [vmem:[#allocation18_spill] sm:$0xff] %v9540_v40  ;;  %v9544_v5 = vadd.f32 %v7896_v18, %v2422_v53  ;;  %v9556_v53 = vpop.permute.xlu1 %2145 }
 0x2bb   :  { %v2586_v34 = vpop.f32.mrf.mxu0  ;;  %11692 = vst [vmem:[#allocation24_spill] sm:$0xff] %v9556_v53 }
 0x2bc   :  { %2617 = vmax.xlane.f32.xlu0 %v9526_v27  ;;  %2619 = vmax.xlane.f32.xlu1 %v9528_v63  ;;  %11687 = vst [vmem:[#allocation19_spill] sm:$0xff] %v9544_v5  ;;  %v9552_v17 = vadd.f32 %v2586_v34, %v2420_v19 }
 0x2bd   :  { %v7897_v43 = vpop.f32.mrf.mxu0 }
 0x2be   :  { %v9546_v51 = vadd.f32 %v7897_v43, %v2423_v54  ;;  %11690 = vst [vmem:[#allocation22_spill] sm:$0xff] %v9552_v17  ;;  %v9564_v19 = vpop.permute.xlu1 %2147 }
 0x2bf   :  { %v2589_v1 = vpop.f32.mrf.mxu0  ;;  %11695 = vst [vmem:[#allocation27_spill] sm:$0xff] %v9564_v19 }
 0x2c0   :  { %2629 = vmax.xlane.f32.xlu0 %v9532_v44  ;;  %2631 = vmax.xlane.f32.xlu1 %v9534_v31  ;;  %11688 = vst [vmem:[#allocation20_spill] sm:$0xff] %v9546_v51  ;;  %v9554_v0 = vadd.f32 %v2589_v1, %v2421_v16 }
 0x2c1   :  { %v7900_v4 = vpop.f32.mrf.mxu0 }
 0x2c2   :  { %11691 = vst [vmem:[#allocation23_spill] sm:$0xff] %v9554_v0  ;;  %v9560_v54 = vadd.f32 %v7900_v4, %v2426_v35  ;;  %v9572_v35 = vpop.permute.xlu1 %2817 }
 0x2c3   :  { %v2602_v62 = vpop.f32.mrf.mxu0  ;;  %11698 = vst [vmem:[#allocation30_spill] sm:$0xff] %v9572_v35 }
 0x2c4   :  { %2625 = vmax.xlane.f32.xlu0 %v9538_v49  ;;  %2627 = vmax.xlane.f32.xlu1 %v9540_v40  ;;  %11693 = vst [vmem:[#allocation25_spill] sm:$0xff] %v9560_v54  ;;  %v9568_v16 = vadd.f32 %v2602_v62, %v2424_v32  ;;  %v3758_v40 = vld [vmem:[#allocation6 + $0x250] sm:$0xff] }
 0x2c5   :  { %v7901_v55 = vpop.f32.mrf.mxu0 }
 0x2c6   :  { %v9562_v39 = vadd.f32 %v7901_v55, %v2427_v29  ;;  %11696 = vst [vmem:[#allocation28_spill] sm:$0xff] %v9568_v16  ;;  %v9580_v32 = vpop.permute.xlu1 %2151 }
 0x2c7   :  { %v2605_v28 = vpop.f32.mrf.mxu0  ;;  %11701 = vst [vmem:[#allocation33_spill] sm:$0xff] %v9580_v32  ;;  %v3085_v32 = vld [vmem:[#allocation6 + $0x1a8] sm:$0xff] }
 0x2c8   :  { %2637 = vmax.xlane.f32.xlu0 %v9544_v5  ;;  %2639 = vmax.xlane.f32.xlu1 %v9546_v51  ;;  %11694 = vst [vmem:[#allocation26_spill] sm:$0xff] %v9562_v39  ;;  %v9570_v53 = vadd.f32 %v2605_v28, %v2425_v24 }
 0x2c9   :  { %v7940_v6 = vpop.f32.mrf.mxu0 }
 0x2ca   :  { %11697 = vst [vmem:[#allocation29_spill] sm:$0xff] %v9570_v53  ;;  %v9576_v55 = vadd.f32 %v7940_v6, %v3082_v30  ;;  %v9590_v6 = vpop.permute.xlu1 %2153 }
 0x2cb   :  { %v3222_v18 = vpop.f32.mrf.mxu0  ;;  %11704 = vst [vmem:[#allocation36_spill] sm:$0xff] %v9590_v6 }
 0x2cc   :  { %2633 = vmax.xlane.f32.xlu0 %v9552_v17  ;;  %2635 = vmax.xlane.f32.xlu1 %v9554_v0  ;;  %11699 = vst [vmem:[#allocation31_spill] sm:$0xff] %v9576_v55 }
 0x2cd   :  { %v7941_v43 = vpop.f32.mrf.mxu0 }
 0x2ce   :  { %v9578_v19 = vadd.f32 %v7941_v43, %v3083_v48  ;;  %v9602_v6 = vpop.permute.xlu1 %2821 }
 0x2cf   :  { %v3225_v34 = vpop.f32.mrf.mxu0  ;;  %11709 = vst [vmem:[#allocation41_spill] sm:$0xff] %v9602_v6  ;;  %v3748_v6 = vld [vmem:[#allocation6 + $0x200] sm:$0xff] }
 0x2d0   :  { %2645 = vmax.xlane.f32.xlu0 %v9560_v54  ;;  %2647 = vmax.xlane.f32.xlu1 %v9562_v39  ;;  %11700 = vst [vmem:[#allocation32_spill] sm:$0xff] %v9578_v19  ;;  %v3080_v39 = vld [vmem:[#allocation6 + $0x180] sm:$0xff]  ;;  %v3081_v54 = vld [vmem:[#allocation6 + $0x188] sm:$0xff] }
 0x2d1   :  { %v7944_v1 = vpop.f32.mrf.mxu0  ;;  %v9584_v28 = vadd.f32 %v3222_v18, %v3080_v39  ;;  %v9586_v35 = vadd.f32 %v3225_v34, %v3081_v54 }
 0x2d3   :  { %v3238_v4 = vpop.f32.mrf.mxu0  ;;  %11702 = vst [vmem:[#allocation34_spill] sm:$0xff] %v9584_v28  ;;  %11703 = vst [vmem:[#allocation35_spill] sm:$0xff] %v9586_v35 }
 0x2d4   :  { %2641 = vmax.xlane.f32.xlu0 %v9568_v16  ;;  %2643 = vmax.xlane.f32.xlu1 %v9570_v53  ;;  %v3086_v53 = vld [vmem:[#allocation6 + $0x1b0] sm:$0xff]  ;;  %v3087_v16 = vld [vmem:[#allocation6 + $0x1b8] sm:$0xff] }
 0x2d5   :  { %v7945_v29 = vpop.f32.mrf.mxu0  ;;  %v9592_v43 = vadd.f32 %v7944_v1, %v3086_v53 }
 0x2d7   :  { %v3241_v62 = vpop.f32.mrf.mxu0  ;;  %11705 = vst [vmem:[#allocation37_spill] sm:$0xff] %v9592_v43 }
 0x2d8   :  { %3289 = vmax.xlane.f32.xlu0 %v9576_v55  ;;  %3291 = vmax.xlane.f32.xlu1 %v9578_v19  ;;  %v9594_v55 = vadd.f32 %v7945_v29, %v3087_v16  ;;  %v3084_v19 = vld [vmem:[#allocation6 + $0x1a0] sm:$0xff]  ;;  %v9600_v34 = vadd.f32 %v3241_v62, %v3085_v32 }
 0x2d9   :  { %v7948_v24 = vpop.f32.mrf.mxu0  ;;  %v9598_v54 = vadd.f32 %v3238_v4, %v3084_v19  ;;  %v3088_v29 = vld [vmem:[#allocation6 + $0x1c0] sm:$0xff]  ;;  %v9610_v4 = vpop.xlane.xlu1 %1335 }
 0x2da   :  { %11706 = vst [vmem:[#allocation38_spill] sm:$0xff] %v9594_v55  ;;  %11708 = vst [vmem:[#allocation40_spill] sm:$0xff] %v9600_v34 }
 0x2db   :  { %v3254_v30 = vpop.f32.mrf.mxu0  ;;  %11707 = vst [vmem:[#allocation39_spill] sm:$0xff] %v9598_v54 }
 0x2dc   :  { %3285 = vmax.xlane.f32.xlu0 %v9584_v28  ;;  %3287 = vmax.xlane.f32.xlu1 %v9586_v35  ;;  %v3090_v35 = vld [vmem:[#allocation6 + $0x1d0] sm:$0xff]  ;;  %v3091_v28 = vld [vmem:[#allocation6 + $0x1d8] sm:$0xff]  ;;  %v9614_v32 = vadd.f32 %v3254_v30, %v3088_v29 }
 0x2dd   :  { %v7949_v48 = vpop.f32.mrf.mxu0  ;;  %v9606_v1 = vadd.f32 %v7948_v24, %v3090_v35 }
 0x2de   :  { %v9608_v16 = vadd.f32 %v7949_v48, %v3091_v28  ;;  %11712 = vst [vmem:[#allocation44_spill] sm:$0xff] %v9614_v32  ;;  %v9620_v28 = vpop.xlane.xlu1 %1331 }
 0x2df   :  { %v3257_v39 = vpop.f32.mrf.mxu0  ;;  %11710 = vst [vmem:[#allocation42_spill] sm:$0xff] %v9606_v1 }
 0x2e0   :  { %3297 = vmax.xlane.f32.xlu0 %v9592_v43  ;;  %3299 = vmax.xlane.f32.xlu1 %v9594_v55  ;;  %11711 = vst [vmem:[#allocation43_spill] sm:$0xff] %v9608_v16  ;;  %v3089_v55 = vld [vmem:[#allocation6 + $0x1c8] sm:$0xff] }
 0x2e1   :  { %v7952_v18 = vpop.f32.mrf.mxu0  ;;  %v9616_v43 = vadd.f32 %v3257_v39, %v3089_v55 }
 0x2e2   :  { %v9632_v5 = vpop.xlane.xlu1 %1341 }
 0x2e3   :  { %v3270_v51 = vpop.f32.mrf.mxu0  ;;  %11713 = vst [vmem:[#allocation45_spill] sm:$0xff] %v9616_v43 }
 0x2e4   :  { %3293 = vmax.xlane.f32.xlu0 %v9598_v54  ;;  %3295 = vmax.xlane.f32.xlu1 %v9600_v34  ;;  %v3094_v34 = vld [vmem:[#allocation6 + $0x1f0] sm:$0xff] }
 0x2e5   :  { %v7953_v53 = vpop.f32.mrf.mxu0  ;;  %v3750_v54 = vld [vmem:[#allocation6 + $0x210] sm:$0xff]  ;;  %v9622_v48 = vadd.f32 %v7952_v18, %v3094_v34 }
 0x2e7   :  { %v3273_v19 = vpop.f32.mrf.mxu0  ;;  %11714 = vst [vmem:[#allocation46_spill] sm:$0xff] %v9622_v48 }
 0x2e8   :  { %3305 = vmax.xlane.f32.xlu0 %v9606_v1  ;;  %3307 = vmax.xlane.f32.xlu1 %v9608_v16  ;;  %v3092_v16 = vld [vmem:[#allocation6 + $0x1e0] sm:$0xff] }
 0x2e9   :  { %v7992_v62 = vpop.f32.mrf.mxu0  ;;  %v9628_v39 = vadd.f32 %v3270_v51, %v3092_v16  ;;  %v3093_v51 = vld [vmem:[#allocation6 + $0x1e8] sm:$0xff] }
 0x2ea   :  { %v9624_v1 = vadd.f32 %v7992_v62, %v3750_v54  ;;  %v9640_v62 = vpop.permute.xlu0 %2823  ;;  %v3749_v16 = vld [vmem:[#allocation6 + $0x208] sm:$0xff] }
 0x2eb   :  { %v3874_v35 = vpop.f32.mrf.mxu0  ;;  %11716 = vst [vmem:[#allocation48_spill] sm:$0xff] %v9628_v39  ;;  %11720 = vst [vmem:[#allocation52_spill] sm:$0xff] %v9640_v62 }
 0x2ec   :  { %3301 = vmax.xlane.f32.xlu0 %v9614_v32  ;;  %3303 = vmax.xlane.f32.xlu1 %v9616_v43  ;;  %11715 = vst [vmem:[#allocation47_spill] sm:$0xff] %v9624_v1  ;;  %v9630_v29 = vadd.f32 %v3874_v35, %v3748_v6  ;;  %v3095_v43 = vld [vmem:[#allocation6 + $0x1f8] sm:$0xff] }
 0x2ed   :  { %v7993_v24 = vpop.f32.mrf.mxu0  ;;  %v3751_v32 = vld [vmem:[#allocation6 + $0x218] sm:$0xff]  ;;  %v9636_v54 = vadd.f32 %v7953_v53, %v3095_v43  ;;  %v3754_v43 = vld [vmem:[#allocation6 + $0x230] sm:$0xff]  ;;  %v3752_v53 = vld [vmem:[#allocation6 + $0x220] sm:$0xff] }
 0x2ee   :  { %11717 = vst [vmem:[#allocation49_spill] sm:$0xff] %v9630_v29  ;;  %v9638_v34 = vadd.f32 %v7993_v24, %v3751_v32  ;;  %v1334_v24 = vpop.xlane.xlu0 %1333 }
 0x2ef   :  { %v3877_v30 = vpop.f32.mrf.mxu0  ;;  %11718 = vst [vmem:[#allocation50_spill] sm:$0xff] %v9636_v54 }
 0x2f0   :  { %3941 = vmax.xlane.f32.xlu0 %v9624_v1  ;;  %3313 = vmax.xlane.f32.xlu1 %v9622_v48  ;;  %11719 = vst [vmem:[#allocation51_spill] sm:$0xff] %v9638_v34  ;;  %v9644_v1 = vpop.xlane.xlu1 %1337  ;;  %v9648_v48 = vadd.f32 %v3877_v30, %v3749_v16 }
 0x2f1   :  { %v7996_v55 = vpop.f32.mrf.mxu0 }
 0x2f2   :  { %11722 = vst [vmem:[#allocation54_spill] sm:$0xff] %v9648_v48  ;;  %v9652_v62 = vadd.f32 %v7996_v55, %v3754_v43  ;;  %v3756_v55 = vld [vmem:[#allocation6 + $0x240] sm:$0xff] }
 0x2f3   :  { %v3890_v0 = vpop.f32.mrf.mxu0 }
 0x2f4   :  { %3937 = vmax.xlane.f32.xlu0 %v9630_v29  ;;  %3309 = vmax.xlane.f32.xlu1 %v9628_v39  ;;  %v9646_v29 = vadd.f32 %v3273_v19, %v3093_v51  ;;  %11723 = vst [vmem:[#allocation55_spill] sm:$0xff] %v9652_v62  ;;  %v9656_v19 = vpop.xlane.xlu1 %1343 }
 0x2f5   :  { %v7997_v18 = vpop.f32.mrf.mxu0 }
 0x2f6   :  { %11721 = vst [vmem:[#allocation53_spill] sm:$0xff] %v9646_v29 }
 0x2f7   :  { %v3893_v6 = vpop.f32.mrf.mxu0 }
 0x2f8   :  { %3943 = vmax.xlane.f32.xlu0 %v9638_v34  ;;  %3315 = vmax.xlane.f32.xlu1 %v9636_v54  ;;  %v9654_v34 = vadd.f32 %v3890_v0, %v3752_v53  ;;  %v3755_v54 = vld [vmem:[#allocation6 + $0x238] sm:$0xff]  ;;  %v1364_v0 = vsub.f32 %v9382_v47, %v9610_v4  ;;  %v9668_v53 = vpop.xlane.xlu1 %1955  ;;  %v3757_v4 = vld [vmem:[#allocation6 + $0x248] sm:$0xff] }
 0x2f9   :  { %v8000_v35 = vpop.f32.mrf.mxu0  ;;  %v9660_v51 = vadd.f32 %v7997_v18, %v3755_v54  ;;  %v3759_v18 = vld [vmem:[#allocation6 + $0x258] sm:$0xff] }
 0x2fa   :  { %11724 = vst [vmem:[#allocation56_spill] sm:$0xff] %v9654_v34  ;;  %v9662_v16 = vadd.f32 %v8000_v35, %v3758_v40  ;;  %v3762_v40 = vld [vmem:[#allocation6 + $0x270] sm:$0xff] }
 0x2fb   :  { %v3906_v32 = vpop.f32.mrf.mxu0  ;;  %11725 = vst [vmem:[#allocation57_spill] sm:$0xff] %v9660_v51 }
 0x2fc   :  { %3939 = vmax.xlane.f32.xlu0 %v9648_v48  ;;  %3311 = vmax.xlane.f32.xlu1 %v9646_v29  ;;  %11726 = vst [vmem:[#allocation58_spill] sm:$0xff] %v9662_v16  ;;  %v1330_v48 = vpop.xlane.xlu0 %1329  ;;  %v3753_v29 = vld [vmem:[#allocation6 + $0x228] sm:$0xff] }
 0x2fd   :  { %v8001_v39 = vpop.f32.mrf.mxu0 }
 0x2fe   :  { %v9678_v31 = vadd.f32 %v8001_v39, %v3759_v18  ;;  %v3763_v39 = vld [vmem:[#allocation6 + $0x278] sm:$0xff] }
 0x2ff   :  { %v3909_v17 = vpop.f32.mrf.mxu0 }
 0x300   :  { %3945 = vmax.xlane.f32.xlu0 %v9654_v34  ;;  %3949 = vmax.xlane.f32.xlu1 %v9652_v62  ;;  %v9670_v34 = vadd.f32 %v3893_v6, %v3753_v29  ;;  %v9672_v62 = vadd.f32 %v3906_v32, %v3756_v55  ;;  %v1954_v35 = vpop.xlane.xlu0 %1953  ;;  %11729 = vst [vmem:[#allocation61_spill] sm:$0xff] %v9678_v31  ;;  %v3760_v29 = vld [vmem:[#allocation6 + $0x260] sm:$0xff]  ;;  %v1340_v55 = vpop.xlane.xlu1 %1339 }
 0x301   :  { %v1363_v32 = vsub.f32 %v9373_v38, %v1334_v24  ;;  %v1361_v38 = vsub.f32 %v9380_v46, %v1330_v48  ;;  %v1367_v46 = vsub.f32 %v9398_v8, %v9632_v5  ;;  %v1365_v8 = vsub.f32 %v9404_v3, %v9644_v1 }
 0x302   :  { %v8004_v30 = vpop.f32.mrf.mxu0  ;;  %11727 = vst [vmem:[#allocation59_spill] sm:$0xff] %v9670_v34  ;;  %11728 = vst [vmem:[#allocation60_spill] sm:$0xff] %v9672_v62  ;;  %v1366_v5 = vsub.f32 %v9423_v22, %v1340_v55 }
 0x303   :  { %v9680_v47 = vadd.f32 %v8004_v30, %v3762_v40  ;;  %v4353_v30 = vld [vmem:[#allocation6 + $0x290] sm:$0xff]  ;;  %v1381_v40 = vmul.f32 1.442695, %v1363_v32  ;;  %v4354_v32 = vld [vmem:[#allocation6 + $0x298] sm:$0xff] }
 0x304   :  { %v3922_v43 = vpop.f32.mrf.mxu0  ;;  %3951 = vmax.xlane.f32.xlu0 %v9660_v51  ;;  %3957 = vmax.xlane.f32.xlu1 %v9662_v16  ;;  %v1383_v51 = vmul.f32 1.442695, %v1364_v0  ;;  %v1362_v16 = vsub.f32 %v9390_v56, %v9620_v28  ;;  %v1950_v28 = vpop.xlane.xlu0 %1949  ;;  %v1387_v1 = vmul.f32 1.442695, %v1366_v5 }
 0x305   :  { %11730 = vst [vmem:[#allocation62_spill] sm:$0xff] %v9680_v47  ;;  %v9688_v56 = vadd.f32 %v3922_v43, %v3760_v29  ;;  %v3761_v43 = vld [vmem:[#allocation6 + $0x268] sm:$0xff]  ;;  %v1377_v29 = vmul.f32 1.442695, %v1361_v38  ;;  %v1385_v38 = vmul.f32 1.442695, %v1365_v8 }
 0x306   :  { %v8005_v54 = vpop.f32.mrf.mxu0  ;;  %8418 = vpow2.f32 %v1383_v51  ;;  %v1379_v0 = vmul.f32 1.442695, %v1362_v16  ;;  %v1952_v51 = vpop.xlane.xlu1 %1951 }
 0x307   :  { %11732 = vst [vmem:[#allocation64_spill] sm:$0xff] %v9688_v56  ;;  %v1982_v22 = vsub.f32 %v9426_v33, %v1952_v51 }
 0x308   :  { %3947 = vmax.xlane.f32.xlu0 %v9670_v34  ;;  %3953 = vmax.xlane.f32.xlu1 %v9672_v62  ;;  %v3925_v6 = vpop.f32.mrf.mxu0  ;;  %v1983_v62 = vsub.f32 %v9392_v60, %v1954_v35  ;;  %v9686_v34 = vadd.f32 %v3909_v17, %v3757_v4  ;;  %8420 = vpow2.f32 %v1379_v0  ;;  %v1981_v60 = vsub.f32 %v9400_v59, %v1950_v28  ;;  %v4351_v4 = vld [vmem:[#allocation6 + $0x280] sm:$0xff] }
 0x309   :  { %v9694_v17 = vadd.f32 %v8005_v54, %v3763_v39  ;;  %8422 = vpow2.f32 %v1381_v40  ;;  %v1368_v59 = vsub.f32 %v9414_v10, %v9656_v19  ;;  %v1389_v39 = vmul.f32 1.442695, %v1367_v46  ;;  %v4352_v40 = vld [vmem:[#allocation6 + $0x288] sm:$0xff] }
 0x30a   :  { %11731 = vst [vmem:[#allocation63_spill] sm:$0xff] %v9686_v34  ;;  %v8044_v18 = vpop.f32.mrf.mxu0  ;;  %v2001_v24 = vmul.f32 1.442695, %v1983_v62  ;;  %v1997_v48 = vmul.f32 1.442695, %v1981_v60  ;;  %v9704_v62 = vadd.f32 %v3925_v6, %v3761_v43  ;;  %v9708_v28 = vpop.xlane.xlu1 %1345 }
 0x30b   :  { %11733 = vst [vmem:[#allocation65_spill] sm:$0xff] %v9694_v17  ;;  %v9696_v16 = vadd.f32 %v8044_v18, %v4353_v30  ;;  %v1350_v30 = vpop.xlane.xlu0 %1349  ;;  %v1391_v10 = vmul.f32 1.442695, %v1368_v59  ;;  %v1999_v33 = vmul.f32 1.442695, %v1982_v22 }
 0x30c   :  { %3959 = vmax.xlane.f32.xlu0 %v9678_v31  ;;  %3965 = vmax.xlane.f32.xlu1 %v9680_v47  ;;  %v4493_v35 = vpop.f32.mrf.mxu0  ;;  %8424 = vpow2.f32 %v2001_v24  ;;  %11735 = vst [vmem:[#allocation67_spill] sm:$0xff] %v9704_v62  ;;  %v1984_v24 = vsub.f32 %v9417_v25, %v9668_v53 }
 0x30d   :  { %11734 = vst [vmem:[#allocation66_spill] sm:$0xff] %v9696_v16  ;;  %v9706_v54 = vadd.f32 %v4493_v35, %v4351_v4  ;;  %8426 = vpow2.f32 %v1377_v29  ;;  %v1371_v4 = vsub.f32 %v9406_v11, %v1350_v30 }
 0x30e   :  { %v8045_v0 = vpop.f32.mrf.mxu0  ;;  %8428 = vpow2.f32 %v1997_v48  ;;  %v1352_v55 = vpop.xlane.xlu1 %1351  ;;  %v2003_v25 = vmul.f32 1.442695, %v1984_v24 }
 0x30f   :  { %11736 = vst [vmem:[#allocation68_spill] sm:$0xff] %v9706_v54  ;;  %v9715_v19 = vadd.f32 %v8045_v0, %v4354_v32  ;;  %8430 = vpow2.f32 %v1389_v39  ;;  %v1397_v48 = vmul.f32 1.442695, %v1371_v4  ;;  %v1372_v59 = vsub.f32 %v9436_v45, %v1352_v55 }
 0x310   :  { %3955 = vmax.xlane.f32.xlu0 %v9686_v34  ;;  %3961 = vmax.xlane.f32.xlu1 %v9688_v56  ;;  %v4496_v18 = vpop.f32.mrf.mxu0  ;;  %8432 = vpow2.f32 %v1391_v10 }
 0x311   :  { %11737 = vst [vmem:[#allocation69_spill] sm:$0xff] %v9715_v19  ;;  %v9724_v60 = vadd.f32 %v4496_v18, %v4352_v40  ;;  %8434 = vpow2.f32 %v1385_v38  ;;  %v1399_v10 = vmul.f32 1.442695, %v1372_v59 }
 0x312   :  { %8436 = vpow2.f32 %v1387_v1 }
 0x313   :  { %v9717_v6 = vpop.eup %8418  ;;  %11738 = vst [vmem:[#allocation70_spill] sm:$0xff] %v9724_v60  ;;  %8438 = vpow2.f32 %v2003_v25 }
 0x314   :  { %3967 = vmax.xlane.f32.xlu0 %v9694_v17  ;;  %4560 = vmax.xlane.f32.xlu1 %v9696_v16  ;;  %8440 = vpow2.f32 %v1999_v33 }
 0x315   :  { %v9726_v43 = vpop.eup %8420  ;;  %8442 = vpow2.f32 %v1397_v48 }
 0x316   :  { %v9730_v35 = vpop.eup %8422 }
 0x318   :  { %3963 = vmax.xlane.f32.xlu0 %v9704_v62  ;;  %4556 = vmax.xlane.f32.xlu1 %v9706_v54 }
 0x319   :  { %v9733_v29 = vpop.eup %8424 }
 0x31a   :  { %v9739_v11 = vpop.eup %8426 }
 0x31b   :  { %v9742_v8 = vpop.eup %8428 }
 0x31c   :  { %4562 = vmax.xlane.f32.xlu0 %v9715_v19  ;;  %1415 = vadd.xlane.f32.xlu1 %v9717_v6  ;;  %v9748_v5 = vpop.eup %8430 }
 0x31d   :  { %v1962_v3 = vpop.xlane.xlu0 %1961  ;;  %v9751_v38 = vpop.eup %8432 }
 0x31e   :  { %v1987_v0 = vsub.f32 %v9462_v13, %v1962_v3 }
 0x320   :  { %4558 = vmax.xlane.f32.xlu0 %v9724_v60  ;;  %1411 = vadd.xlane.f32.xlu1 %v9726_v43  ;;  %v2009_v18 = vmul.f32 1.442695, %v1987_v0 }
 0x321   :  { %v1958_v53 = vpop.xlane.xlu0 %1957  ;;  %v1964_v46 = vpop.xlane.xlu1 %1963 }
 0x322   :  { %v1985_v51 = vsub.f32 %v9467_v52, %v1958_v53  ;;  %v1369_v52 = vsub.f32 %v9433_v9, %v9708_v28  ;;  %v1988_v3 = vsub.f32 %v9469_v15, %v1964_v46  ;;  %v9756_v28 = vpop.eup %8434 }
 0x324   :  { %1413 = vadd.xlane.f32.xlu0 %v9730_v35  ;;  %2033 = vadd.xlane.f32.xlu1 %v9733_v29  ;;  %v2005_v39 = vmul.f32 1.442695, %v1985_v51  ;;  %v1393_v24 = vmul.f32 1.442695, %v1369_v52  ;;  %v2011_v4 = vmul.f32 1.442695, %v1988_v3 }
 0x325   :  { %v1348_v32 = vpop.xlane.xlu0 %1347  ;;  %v1960_v30 = vpop.xlane.xlu1 %1959 }
 0x326   :  { %8444 = vpow2.f32 %v2005_v39  ;;  %v1370_v13 = vsub.f32 %v9479_v61, %v1348_v32  ;;  %v9761_v61 = vpop.eup %8436  ;;  %v1986_v25 = vsub.f32 %v9475_v58, %v1960_v30 }
 0x327   :  { %8446 = vpow2.f32 %v1399_v10  ;;  %v9766_v53 = vpop.eup %8438 }
 0x328   :  { %1409 = vadd.xlane.f32.xlu0 %v9739_v11  ;;  %2029 = vadd.xlane.f32.xlu1 %v9742_v8  ;;  %8448 = vpow2.f32 %v2009_v18  ;;  %v1395_v1 = vmul.f32 1.442695, %v1370_v13  ;;  %v9769_v46 = vpop.eup %8440  ;;  %v2007_v48 = vmul.f32 1.442695, %v1986_v25 }
 0x329   :  { %v1358_v45 = vpop.xlane.xlu0 %1357  ;;  %v1360_v40 = vpop.xlane.xlu1 %1359  ;;  %8450 = vpow2.f32 %v1393_v24 }
 0x32a   :  { %8452 = vpow2.f32 %v1395_v1  ;;  %v1376_v33 = vsub.f32 %v9485_v2, %v1360_v40  ;;  %v1375_v59 = vsub.f32 %v9483_v7, %v1358_v45  ;;  %v9774_v58 = vpop.eup %8442 }
 0x32b   :  { %8454 = vpow2.f32 %v2011_v4 }
 0x32c   :  { %1421 = vadd.xlane.f32.xlu0 %v9748_v5  ;;  %1423 = vadd.xlane.f32.xlu1 %v9751_v38  ;;  %v1407_v0 = vmul.f32 1.442695, %v1376_v33  ;;  %v1405_v52 = vmul.f32 1.442695, %v1375_v59 }
 0x32d   :  { %v1970_v9 = vpop.xlane.xlu0 %1969  ;;  %v9759_v55 = vpop.xlane.xlu1 %1971 }
 0x32e   :  { %v1991_v22 = vsub.f32 %v9490_v20, %v1970_v9  ;;  %v1992_v25 = vsub.f32 %v9492_v21, %v9759_v55 }
 0x330   :  { %1417 = vadd.xlane.f32.xlu0 %v9756_v28  ;;  %1419 = vadd.xlane.f32.xlu1 %v9761_v61  ;;  %v2017_v51 = vmul.f32 1.442695, %v1991_v22  ;;  %v2019_v59 = vmul.f32 1.442695, %v1992_v25 }
 0x331   :  { %v1354_v15 = vpop.xlane.xlu0 %1353  ;;  %v1356_v20 = vpop.xlane.xlu1 %1355 }
 0x332   :  { %8456 = vpow2.f32 %v2017_v51  ;;  %v1374_v39 = vsub.f32 %v9498_v41, %v1356_v20  ;;  %v1373_v10 = vsub.f32 %v9496_v36, %v1354_v15 }
 0x333   :  { %v9777_v30 = vpop.eup %8444  ;;  %8458 = vpow2.f32 %v2007_v48 }
 0x334   :  { %2035 = vadd.xlane.f32.xlu0 %v9766_v53  ;;  %2031 = vadd.xlane.f32.xlu1 %v9769_v46  ;;  %v9782_v7 = vpop.eup %8446  ;;  %8460 = vpow2.f32 %v1407_v0  ;;  %v1403_v45 = vmul.f32 1.442695, %v1374_v39  ;;  %v1401_v24 = vmul.f32 1.442695, %v1373_v10 }
 0x335   :  { %v1966_v32 = vpop.xlane.xlu0 %1965  ;;  %v1968_v2 = vpop.xlane.xlu1 %1967  ;;  %8462 = vpow2.f32 %v1405_v52 }
 0x336   :  { %v1990_v13 = vsub.f32 %v9504_v37, %v1968_v2  ;;  %v9785_v41 = vpop.eup %8448  ;;  %v1989_v3 = vsub.f32 %v9502_v26, %v1966_v32  ;;  %8464 = vpow2.f32 %v1403_v45 }
 0x337   :  { %v9790_v36 = vpop.eup %8450  ;;  %8466 = vpow2.f32 %v1401_v24 }
 0x338   :  { %1429 = vadd.xlane.f32.xlu0 %v9774_v58  ;;  %2037 = vadd.xlane.f32.xlu1 %v9777_v30  ;;  %v2015_v1 = vmul.f32 1.442695, %v1990_v13  ;;  %v9793_v37 = vpop.eup %8452  ;;  %v2013_v15 = vmul.f32 1.442695, %v1989_v3 }
 0x339   :  { %v1978_v18 = vpop.xlane.xlu0 %1977  ;;  %v1980_v40 = vpop.xlane.xlu1 %1979 }
 0x33a   :  { %v1995_v22 = vsub.f32 %v9508_v42, %v1978_v18  ;;  %v9799_v33 = vpop.eup %8454  ;;  %8468 = vpow2.f32 %v2015_v1  ;;  %v1996_v21 = vsub.f32 %v9510_v50, %v1980_v40 }
 0x33b   :  { %8470 = vpow2.f32 %v2013_v15 }
 0x33c   :  { %2041 = vadd.xlane.f32.xlu0 %v9785_v41  ;;  %1431 = vadd.xlane.f32.xlu1 %v9782_v7  ;;  %v2025_v51 = vmul.f32 1.442695, %v1995_v22  ;;  %v2027_v52 = vmul.f32 1.442695, %v1996_v21  ;;  %v11739_v21 = vld [vmem:[#allocation17_spill] sm:$0xff] }
 0x33d   :  { %v1974_v9 = vpop.xlane.xlu0 %1973  ;;  %v1976_v4 = vpop.xlane.xlu1 %1975 }
 0x33e   :  { %v1993_v20 = vsub.f32 %v9514_v23, %v1974_v9  ;;  %8472 = vpow2.f32 %v2025_v51  ;;  %v1994_v10 = vsub.f32 %v9516_v12, %v1976_v4 }
 0x33f   :  { %v9802_v48 = vpop.eup %8456  ;;  %8474 = vpow2.f32 %v2019_v59 }
 0x340   :  { %1425 = vadd.xlane.f32.xlu0 %v9790_v36  ;;  %1427 = vadd.xlane.f32.xlu1 %v9793_v37  ;;  %v9807_v32 = vpop.eup %8458  ;;  %v2021_v0 = vmul.f32 1.442695, %v1993_v20  ;;  %v2023_v24 = vmul.f32 1.442695, %v1994_v10 }
 0x341   :  { %v2622_v26 = vpop.xlane.xlu0 %2621  ;;  %v2624_v42 = vpop.xlane.xlu1 %2623 }
 0x342   :  { %v2651_v39 = vsub.f32 %v9520_v57, %v2622_v26  ;;  %v9810_v23 = vpop.eup %8460  ;;  %8476 = vpow2.f32 %v2021_v0  ;;  %v2652_v3 = vsub.f32 %v9522_v14, %v2624_v42 }
 0x343   :  { %v9815_v50 = vpop.eup %8462  ;;  %8478 = vpow2.f32 %v2027_v52 }
 0x344   :  { %2049 = vadd.xlane.f32.xlu1 %v9802_v48  ;;  %2043 = vadd.xlane.f32.xlu0 %v9799_v33  ;;  %v2669_v45 = vmul.f32 1.442695, %v2651_v39  ;;  %v9818_v57 = vpop.eup %8464  ;;  %v2671_v25 = vmul.f32 1.442695, %v2652_v3 }
 0x345   :  { %v2618_v55 = vpop.xlane.xlu0 %2617  ;;  %v2620_v2 = vpop.xlane.xlu1 %2619 }
 0x346   :  { %v2649_v13 = vsub.f32 %v9526_v27, %v2618_v55  ;;  %v9823_v12 = vpop.eup %8466  ;;  %8480 = vpow2.f32 %v2669_v45  ;;  %v2650_v15 = vsub.f32 %v9528_v63, %v2620_v2  ;;  %v11740_v2 = vld [vmem:[#allocation22_spill] sm:$0xff] }
 0x347   :  { %v9826_v27 = vpop.eup %8468  ;;  %8482 = vpow2.f32 %v2023_v24 }
 0x348   :  { %2039 = vadd.xlane.f32.xlu0 %v9807_v32  ;;  %1439 = vadd.xlane.f32.xlu1 %v9810_v23  ;;  %v2665_v1 = vmul.f32 1.442695, %v2649_v13  ;;  %v9831_v14 = vpop.eup %8470  ;;  %v2667_v59 = vmul.f32 1.442695, %v2650_v15 }
 0x349   :  { %v2630_v18 = vpop.xlane.xlu0 %2629  ;;  %v2632_v40 = vpop.xlane.xlu1 %2631 }
 0x34a   :  { %v2655_v22 = vsub.f32 %v9532_v44, %v2630_v18  ;;  %8484 = vpow2.f32 %v2665_v1  ;;  %v2656_v55 = vsub.f32 %v11739_v21, %v2632_v40  ;;  %v11741_v40 = vld [vmem:[#allocation18_spill] sm:$0xff] }
 0x34b   :  { %v9834_v44 = vpop.eup %8472  ;;  %8486 = vpow2.f32 %v2671_v25 }
 0x34c   :  { %1437 = vadd.xlane.f32.xlu0 %v9815_v50  ;;  %1435 = vadd.xlane.f32.xlu1 %v9818_v57  ;;  %v2677_v51 = vmul.f32 1.442695, %v2655_v22  ;;  %v9839_v63 = vpop.eup %8474  ;;  %v2679_v18 = vmul.f32 1.442695, %v2656_v55  ;;  %v11743_v22 = vld [vmem:[#allocation19_spill] sm:$0xff] }
 0x34d   :  { %v2626_v9 = vpop.xlane.xlu0 %2625  ;;  %v2628_v4 = vpop.xlane.xlu1 %2627 }
 0x34e   :  { %v2653_v20 = vsub.f32 %v9538_v49, %v2626_v9  ;;  %8488 = vpow2.f32 %v2677_v51  ;;  %v2654_v24 = vsub.f32 %v11741_v40, %v2628_v4 }
 0x34f   :  { %v9842_v49 = vpop.eup %8476  ;;  %8490 = vpow2.f32 %v2667_v59  ;;  %v11744_v59 = vld [vmem:[#allocation23_spill] sm:$0xff] }
 0x350   :  { %1433 = vadd.xlane.f32.xlu0 %v9823_v12  ;;  %2047 = vadd.xlane.f32.xlu1 %v9826_v27  ;;  %v2673_v39 = vmul.f32 1.442695, %v2653_v20  ;;  %v9848_v13 = vpop.eup %8478  ;;  %v2675_v20 = vmul.f32 1.442695, %v2654_v24  ;;  %v11746_v24 = vld [vmem:[#allocation20_spill] sm:$0xff] }
 0x351   :  { %v2638_v26 = vpop.xlane.xlu0 %2637  ;;  %v2640_v42 = vpop.xlane.xlu1 %2639 }
 0x352   :  { %8492 = vpow2.f32 %v2673_v39  ;;  %v2659_v25 = vsub.f32 %v11743_v22, %v2638_v26 }
 0x353   :  { %v9853_v1 = vpop.eup %8480  ;;  %8494 = vpow2.f32 %v2679_v18 }
 0x354   :  { %2045 = vadd.xlane.f32.xlu0 %v9831_v14  ;;  %2057 = vadd.xlane.f32.xlu1 %v9834_v44  ;;  %11742 = vst [vmem:[#allocation17_spill] sm:$0xff] %v9853_v1  ;;  %v9860_v51 = vpop.eup %8482 }
 0x355   :  { %v2634_v0 = vpop.xlane.xlu0 %2633  ;;  %v2636_v10 = vpop.xlane.xlu1 %2635 }
 0x356   :  { %v2657_v52 = vsub.f32 %v11740_v2, %v2634_v0  ;;  %v2658_v4 = vsub.f32 %v11744_v59, %v2636_v10  ;;  %v2685_v0 = vmul.f32 1.442695, %v2659_v25 }
 0x357   :  { %v9865_v55 = vpop.eup %8484 }
 0x358   :  { %2051 = vadd.xlane.f32.xlu0 %v9839_v63  ;;  %2053 = vadd.xlane.f32.xlu1 %v9842_v49  ;;  %v2681_v3 = vmul.f32 1.442695, %v2657_v52  ;;  %v9871_v26 = vpop.eup %8486  ;;  %v2683_v2 = vmul.f32 1.442695, %v2658_v4 }
 0x359   :  { %v9846_v45 = vpop.xlane.xlu0 %2645  ;;  %v9851_v9 = vpop.xlane.xlu1 %2647 }
 0x35a   :  { %8496 = vpow2.f32 %v2681_v3  ;;  %v2660_v3 = vsub.f32 %v11746_v24, %v2640_v42 }
 0x35b   :  { %8498 = vpow2.f32 %v2675_v20  ;;  %v9875_v18 = vpop.eup %8488  ;;  %v8048_v20 = vpop.f32.mrf.mxu0 }
 0x35c   :  { %2701 = vadd.xlane.f32.xlu1 %v9853_v1  ;;  %2059 = vadd.xlane.f32.xlu0 %v9848_v13  ;;  %11745 = vst [vmem:[#allocation22_spill] sm:$0xff] %v9875_v18  ;;  %8500 = vpow2.f32 %v2685_v0  ;;  %v9881_v40 = vpop.eup %8490  ;;  %v2687_v0 = vmul.f32 1.442695, %v2660_v3 }
 0x35d   :  { %v9858_v15 = vpop.xlane.xlu0 %2641  ;;  %v9863_v21 = vpop.xlane.xlu1 %2643  ;;  %8502 = vpow2.f32 %v2683_v2  ;;  %v4355_v2 = vld [vmem:[#allocation6 + $0x2a0] sm:$0xff] }
 0x35e   :  { %v4509_v42 = vpop.f32.mrf.mxu0  ;;  %8504 = vpow2.f32 %v2687_v0  ;;  %v4356_v0 = vld [vmem:[#allocation6 + $0x2a8] sm:$0xff] }
 0x35f   :  { %v9886_v25 = vpop.eup %8492  ;;  %v9902_v60 = vadd.f32 %v4509_v42, %v4355_v2  ;;  %v4357_v42 = vld [vmem:[#allocation6 + $0x2b0] sm:$0xff] }
 0x360   :  { %2697 = vadd.xlane.f32.xlu1 %v9865_v55  ;;  %2055 = vadd.xlane.f32.xlu0 %v9860_v51  ;;  %11747 = vst [vmem:[#allocation18_spill] sm:$0xff] %v9886_v25  ;;  %v9892_v4 = vpop.eup %8494  ;;  %v8049_v3 = vpop.f32.mrf.mxu0 }
 0x361   :  { %v9869_v39 = vpop.xlane.xlu0 %3289  ;;  %v9873_v52 = vpop.xlane.xlu1 %3291  ;;  %11748 = vst [vmem:[#allocation19_spill] sm:$0xff] %v9892_v4  ;;  %11750 = vst [vmem:[#allocation20_spill] sm:$0xff] %v9902_v60 }
 0x362   :  { %v4512_v2 = vpop.f32.mrf.mxu0 }
 0x364   :  { %2709 = vadd.xlane.f32.xlu1 %v9875_v18  ;;  %2703 = vadd.xlane.f32.xlu0 %v9871_v26 }
 0x365   :  { %v9879_v10 = vpop.xlane.xlu0 %3285  ;;  %v9884_v22 = vpop.xlane.xlu1 %3287 }
 0x367   :  { %v9896_v16 = vpop.eup %8496 }
 0x368   :  { %2705 = vadd.xlane.f32.xlu1 %v9886_v25  ;;  %2699 = vadd.xlane.f32.xlu0 %v9881_v40  ;;  %11749 = vst [vmem:[#allocation23_spill] sm:$0xff] %v9896_v16  ;;  %v9906_v47 = vpop.eup %8498 }
 0x369   :  { %v9890_v59 = vpop.xlane.xlu0 %3297  ;;  %v9894_v19 = vpop.xlane.xlu1 %3299  ;;  %11751 = vst [vmem:[#allocation71_spill] sm:$0xff] %v9906_v47 }
 0x36a   :  { %v9912_v56 = vpop.eup %8500 }
 0x36b   :  { %11753 = vst [vmem:[#allocation73_spill] sm:$0xff] %v9912_v56  ;;  %v9916_v31 = vpop.eup %8502 }
 0x36c   :  { %2713 = vadd.xlane.f32.xlu1 %v9896_v16  ;;  %2711 = vadd.xlane.f32.xlu0 %v9892_v4  ;;  %11755 = vst [vmem:[#allocation75_spill] sm:$0xff] %v9916_v31  ;;  %v9924_v16 = vadd.f32 %v4512_v2, %v4356_v0  ;;  %v9934_v4 = vpop.eup %8504 }
 0x36d   :  { %v9900_v24 = vpop.xlane.xlu0 %3293  ;;  %v9904_v54 = vpop.xlane.xlu1 %3295  ;;  %11762 = vst [vmem:[#allocation82_spill] sm:$0xff] %v9934_v4 }
 0x36e   :  { %11758 = vst [vmem:[#allocation78_spill] sm:$0xff] %v9924_v16 }
 0x370   :  { %4564 = vmax.xlane.f32.xlu1 %v9902_v60  ;;  %2707 = vadd.xlane.f32.xlu0 %v9906_v47  ;;  %v9922_v60 = vadd.f32 %v8048_v20, %v4357_v42 }
 0x371   :  { %v9910_v17 = vpop.xlane.xlu0 %3305  ;;  %v9914_v62 = vpop.xlane.xlu1 %3307 }
 0x372   :  { %11752 = vst [vmem:[#allocation72_spill] sm:$0xff] %v9910_v17  ;;  %11754 = vst [vmem:[#allocation74_spill] sm:$0xff] %v9914_v62 }
 0x373   :  { %11757 = vst [vmem:[#allocation77_spill] sm:$0xff] %v9922_v60 }
 0x374   :  { %2717 = vadd.xlane.f32.xlu1 %v9912_v56  ;;  %2715 = vadd.xlane.f32.xlu0 %v9916_v31  ;;  %v4358_v56 = vld [vmem:[#allocation6 + $0x2b8] sm:$0xff] }
 0x375   :  { %v9920_v34 = vpop.xlane.xlu0 %3301  ;;  %v9926_v17 = vpop.xlane.xlu1 %3303  ;;  %v9939_v20 = vadd.f32 %v8049_v3, %v4358_v56 }
 0x376   :  { %11756 = vst [vmem:[#allocation76_spill] sm:$0xff] %v9920_v34  ;;  %11759 = vst [vmem:[#allocation79_spill] sm:$0xff] %v9926_v17 }
 0x377   :  { %11764 = vst [vmem:[#allocation84_spill] sm:$0xff] %v9939_v20 }
 0x378   :  { %4568 = vmax.xlane.f32.xlu1 %v9922_v60  ;;  %4566 = vmax.xlane.f32.xlu0 %v9924_v16 }
 0x379   :  { %v9930_v62 = vpop.xlane.xlu0 %3941  ;;  %v9932_v18 = vpop.xlane.xlu1 %3313 }
 0x37a   :  { %11760 = vst [vmem:[#allocation80_spill] sm:$0xff] %v9930_v62  ;;  %11761 = vst [vmem:[#allocation81_spill] sm:$0xff] %v9932_v18  ;;  %v8335_v62 = vld [vmem:[#allocation4 + $0x20] ss:$8 sps:$4 sm:$0xff]  }
 0x37c   :  { %2719 = vadd.xlane.f32.xlu0 %v9934_v4 }
 0x37d   :  { %v9937_v34 = vpop.xlane.xlu0 %3937  ;;  %v9941_v42 = vpop.xlane.xlu1 %3309 }
 0x37e   :  { %11763 = vst [vmem:[#allocation83_spill] sm:$0xff] %v9937_v34  ;;  %11765 = vst [vmem:[#allocation85_spill] sm:$0xff] %v9941_v42 }
 0x380   :  { %4570 = vmax.xlane.f32.xlu0 %v9939_v20 }
 0x381   :  { %v9944_v2 = vpop.xlane.xlu0 %3943  ;;  %v9946_v0 = vpop.xlane.xlu1 %3315 }
 0x382   :  { %11766 = vst [vmem:[#allocation86_spill] sm:$0xff] %v9944_v2  ;;  %11767 = vst [vmem:[#allocation87_spill] sm:$0xff] %v9946_v0  ;;  %v8336_v0 = vld [vmem:[#allocation4 + $0x10] ss:$8 sps:$4 sm:$0xff]  }
 0x385   :  { %v9948_v60 = vpop.xlane.xlu0 %3939  ;;  %v9950_v16 = vpop.xlane.xlu1 %3311 }
 0x386   :  { %11768 = vst [vmem:[#allocation88_spill] sm:$0xff] %v9948_v60  ;;  %11769 = vst [vmem:[#allocation89_spill] sm:$0xff] %v9950_v16 }
 0x389   :  { %v9952_v18 = vpop.xlane.xlu0 %3945  ;;  %2813 = vrot.lane.b32.xlu1 %v8335_v62, %s8980_s15  ;;  %v9955_v34 = vpop.xlane.xlu1 %3949 }
 0x38a   :  { %11770 = vst [vmem:[#allocation90_spill] sm:$0xff] %v9952_v18  ;;  %11771 = vst [vmem:[#allocation91_spill] sm:$0xff] %v9955_v34  ;;  %v11778_v18 = vld [vmem:[#allocation28_spill] sm:$0xff] }
 0x38b   :  { %v2661_v62 = vsub.f32 %v11778_v18, %v9858_v15 }
 0x38d   :  { %v9957_v56 = vpop.xlane.xlu0 %3951  ;;  %v9959_v3 = vpop.xlane.xlu1 %3957 }
 0x38e   :  { %11772 = vst [vmem:[#allocation92_spill] sm:$0xff] %v9957_v56  ;;  %11773 = vst [vmem:[#allocation93_spill] sm:$0xff] %v9959_v3  ;;  %v2689_v56 = vmul.f32 1.442695, %v2661_v62  ;;  %v11788_v62 = vld [vmem:[#allocation26_spill] sm:$0xff] }
 0x390   :  { %8506 = vpow2.f32 %v2689_v56 }
 0x391   :  { %v9961_v20 = vpop.xlane.xlu0 %3947  ;;  %v9963_v2 = vpop.xlane.xlu1 %3953 }
 0x392   :  { %11774 = vst [vmem:[#allocation94_spill] sm:$0xff] %v9961_v20  ;;  %11775 = vst [vmem:[#allocation95_spill] sm:$0xff] %v9963_v2  ;;  %v11782_v20 = vld [vmem:[#allocation25_spill] sm:$0xff] }
 0x393   :  { %v2663_v2 = vsub.f32 %v11782_v20, %v9846_v45  ;;  %v8052_v45 = vpop.f32.mrf.mxu0 }
 0x395   :  { %v9965_v42 = vpop.xlane.xlu0 %3959  ;;  %v9967_v60 = vpop.xlane.xlu1 %3965  ;;  %v2693_v4 = vmul.f32 1.442695, %v2663_v2  ;;  %v4359_v2 = vld [vmem:[#allocation6 + $0x2c0] sm:$0xff] }
 0x396   :  { %11776 = vst [vmem:[#allocation96_spill] sm:$0xff] %v9965_v42  ;;  %11777 = vst [vmem:[#allocation97_spill] sm:$0xff] %v9967_v60  ;;  %2811 = vrot.lane.b32.xlu0 %v8336_v0, %s8980_s15  ;;  %v11784_v60 = vld [vmem:[#allocation29_spill] sm:$0xff] }
 0x397   :  { %v2662_v42 = vsub.f32 %v11784_v60, %v9863_v21  ;;  %8508 = vpow2.f32 %v2693_v4  ;;  %v4525_v21 = vpop.f32.mrf.mxu0 }
 0x398   :  { %v9999_v4 = vadd.f32 %v4525_v21, %v4359_v2 }
 0x399   :  { %v9972_v16 = vpop.xlane.xlu0 %3955  ;;  %v9974_v34 = vpop.xlane.xlu1 %3961  ;;  %v2691_v18 = vmul.f32 1.442695, %v2662_v42 }
 0x39a   :  { %11779 = vst [vmem:[#allocation28_spill] sm:$0xff] %v9972_v16  ;;  %11780 = vst [vmem:[#allocation98_spill] sm:$0xff] %v9974_v34 }
 0x39b   :  { %8510 = vpow2.f32 %v2691_v18  ;;  %11791 = vst [vmem:[#allocation103_spill] sm:$0xff] %v9999_v4 }
 0x39d   :  { %v9976_v3 = vpop.xlane.xlu0 %3967  ;;  %v9980_v17 = vpop.xlane.xlu1 %4560 }
 0x39e   :  { %11781 = vst [vmem:[#allocation99_spill] sm:$0xff] %v9976_v3  ;;  %11783 = vst [vmem:[#allocation25_spill] sm:$0xff] %v9980_v17  ;;  %v2664_v3 = vsub.f32 %v11788_v62, %v9851_v9  ;;  %v9994_v60 = vpop.eup %8506  ;;  %v8053_v9 = vpop.f32.mrf.mxu0 }
 0x39f   :  { %11790 = vst [vmem:[#allocation102_spill] sm:$0xff] %v9994_v60 }
 0x3a0   :  { %v2695_v56 = vmul.f32 1.442695, %v2664_v3 }
 0x3a1   :  { %v9984_v0 = vpop.xlane.xlu0 %3963  ;;  %v9986_v15 = vpop.xlane.xlu1 %4556 }
 0x3a2   :  { %11785 = vst [vmem:[#allocation29_spill] sm:$0xff] %v9984_v0  ;;  %11786 = vst [vmem:[#allocation100_spill] sm:$0xff] %v9986_v15  ;;  %8512 = vpow2.f32 %v2695_v56  ;;  %v4528_v56 = vpop.f32.mrf.mxu0  ;;  %v4360_v15 = vld [vmem:[#allocation6 + $0x2c8] sm:$0xff] }
 0x3a4   :  { %v10004_v62 = vpop.eup %8508 }
 0x3a5   :  { %v9988_v16 = vpop.xlane.xlu0 %4562  ;;  %v1416_v34 = vpop.xlane.xlu1 %1415  ;;  %11792 = vst [vmem:[#allocation104_spill] sm:$0xff] %v10004_v62 }
 0x3a6   :  { %11787 = vst [vmem:[#allocation101_spill] sm:$0xff] %v9988_v16 }
 0x3a8   :  { %v10006_v16 = vpop.eup %8510 }
 0x3a9   :  { %v9992_v20 = vpop.xlane.xlu0 %4558  ;;  %v1412_v17 = vpop.xlane.xlu1 %1411  ;;  %11793 = vst [vmem:[#allocation105_spill] sm:$0xff] %v10006_v16 }
 0x3aa   :  { %11789 = vst [vmem:[#allocation26_spill] sm:$0xff] %v9992_v20  ;;  %v4361_v20 = vld [vmem:[#allocation6 + $0x2d0] sm:$0xff] }
 0x3ad   :  { %v1414_v0 = vpop.xlane.xlu0 %1413  ;;  %2721 = vadd.xlane.f32.xlu1 %v9994_v60  ;;  %v9997_v42 = vpop.xlane.xlu1 %2033 }
 0x3ae   :  { %8514 = vrcp.f32 %v1414_v0  ;;  %v10012_v0 = vadd.f32 %v4528_v56, %v4360_v15 }
 0x3af   :  { %8516 = vrcp.f32 %v1412_v17 }
 0x3b0   :  { %8518 = vrcp.f32 %v1416_v34  ;;  %v10010_v34 = vadd.f32 %v8052_v45, %v4361_v20  ;;  %11795 = vst [vmem:[#allocation107_spill] sm:$0xff] %v10012_v0 }
 0x3b1   :  { %v1410_v18 = vpop.xlane.xlu0 %1409  ;;  %4572 = vmax.xlane.f32.xlu1 %v9999_v4  ;;  %v10002_v3 = vpop.xlane.xlu1 %2029 }
 0x3b2   :  { %8520 = vrcp.f32 %v1410_v18  ;;  %11794 = vst [vmem:[#allocation106_spill] sm:$0xff] %v10010_v34  ;;  %v10016_v18 = vpop.eup %8512 }
 0x3b3   :  { %11796 = vst [vmem:[#allocation108_spill] sm:$0xff] %v10016_v18 }
 0x3b5   :  { %v1422_v60 = vpop.xlane.xlu0 %1421  ;;  %2725 = vadd.xlane.f32.xlu1 %v10004_v62  ;;  %2723 = vadd.xlane.f32.xlu0 %v10006_v16  ;;  %v1424_v17 = vpop.xlane.xlu1 %1423  ;;  %v4362_v62 = vld [vmem:[#allocation6 + $0x2d8] sm:$0xff] }
 0x3b6   :  { %8522 = vrcp.f32 %v1422_v60  ;;  %v10021_v60 = vadd.f32 %v8053_v9, %v4362_v62  ;;  %v8337_v62 = vld [vmem:[#allocation4] ss:$8 sps:$4 sm:$0xff]  }
 0x3b7   :  { %8524 = vrcp.f32 %v1424_v17 }
 0x3b9   :  { %v1418_v21 = vpop.xlane.xlu0 %1417  ;;  %4576 = vmax.xlane.f32.xlu1 %v10010_v34  ;;  %4574 = vmax.xlane.f32.xlu0 %v10012_v0  ;;  %v1420_v2 = vpop.xlane.xlu1 %1419 }
 0x3ba   :  { %8526 = vrcp.f32 %v1418_v21 }
 0x3bb   :  { %8528 = vrcp.f32 %v1420_v2  ;;  %v8515_v4 = vpop.eup %8514 }
 0x3bc   :  { %v8517_v16 = vpop.eup %8516  ;;  %v1459_v56 = vmul.f32 %v8515_v4, %v9730_v35  ;;  %v11797_v35 = vld [vmem:[#allocation16_spill] sm:$0xff] }
 0x3bd   :  { %v10018_v31 = vpop.xlane.xlu0 %2035  ;;  %2727 = vadd.xlane.f32.xlu0 %v10016_v18  ;;  %v8519_v15 = vpop.eup %8518  ;;  %v1458_v21 = vmul.f32 %v8517_v16, %v9726_v43  ;;  %v11798_v16 = vld [vmem:[#allocation36_spill] sm:$0xff] }
 0x3be   :  { %v2032_v45 = vpop.xlane.xlu1 %2031  ;;  %v1460_v2 = vmul.f32 %v8519_v15, %v9717_v6 }
 0x3bf   :  { %v8521_v20 = vpop.eup %8520 }
 0x3c0   :  { %v1457_v17 = vmul.f32 %v8521_v20, %v9739_v11  ;;  %v1474_v18 = vpack.c.bf16 %v1460_v2, %v1459_v56 }
 0x3c1   :  { %v1430_v0 = vpop.xlane.xlu0 %1429  ;;  %4578 = vmax.xlane.f32.xlu0 %v10021_v60 }
 0x3c2   :  { %v10028_v34 = vpop.xlane.xlu1 %2037  ;;  %v1473_v25 = vpack.c.bf16 %v1458_v21, %v1457_v17  ;;  %v11799_v17 = vld [vmem:[#allocation33_spill] sm:$0xff] }
 0x3c3   :  { %v8523_v1 = vpop.eup %8522 }
 0x3c4   :  { %7814 = vmatprep.mubr.bf16.mxu1 %v1473_v25  ;;  %v8525_v47 = vpop.eup %8524  ;;  %v1463_v15 = vmul.f32 %v8523_v1, %v9748_v5  ;;  %v11800_v5 = vld [vmem:[#allocation14_spill] sm:$0xff]  ;;  %v11801_v1 = vld [vmem:[#allocation27_spill] sm:$0xff] }
 0x3c5   :  { %v10030_v9 = vpop.xlane.xlu0 %2041  ;;  %7815 = vmatmul.mubr.bf16.vlgmr.msra.gmra.mxu1 %v1474_v18  ;;  %v1464_v20 = vmul.f32 %v8525_v47, %v9751_v38 }
 0x3c6   :  { %7851 = vmatpush3.bf16.msra.mxu1 %v11797_v35  ;;  %v1432_v11 = vpop.xlane.xlu1 %1431 }
 0x3c7   :  { %v8527_v4 = vpop.eup %8526  ;;  %7852 = vmatprep.subr.bf16.mxu1 %v11798_v16  ;;  %8530 = vrcp.f32 %v1432_v11  ;;  %v1476_v2 = vpack.c.bf16 %v1464_v20, %v1463_v15  ;;  %v8338_v11 = vld [vmem:[#allocation4 + $0x70] ss:$8 sps:$4 sm:$0xff]   ;;  %v11803_v20 = vld [vmem:[#allocation24_spill] sm:$0xff] }
 0x3c8   :  { %v8529_v43 = vpop.eup %8528  ;;  %v1461_v6 = vmul.f32 %v8527_v4, %v9756_v28  ;;  %8532 = vrcp.f32 %v1430_v0 }
 0x3c9   :  { %v1426_v25 = vpop.xlane.xlu0 %1425  ;;  %v1462_v56 = vmul.f32 %v8529_v43, %v9761_v61 }
 0x3ca   :  { %8534 = vrcp.f32 %v1426_v25  ;;  %7853 = vmatpush3.bf16.msra.mxu1 %v11798_v16  ;;  %v1428_v18 = vpop.xlane.xlu1 %1427  ;;  %2809 = vrot.lane.b32.xlu1 %v8337_v62, %s8980_s15  ;;  %v11802_v16 = vld [vmem:[#allocation34_spill] sm:$0xff] }
 0x3cb   :  { %8536 = vrcp.f32 %v1428_v18  ;;  %7854 = vmatprep.subr.bf16.mxu1 %v11799_v17  ;;  %v1475_v21 = vpack.c.bf16 %v1462_v56, %v1461_v6  ;;  %v3317_v43 = vsub.f32 %v11802_v16, %v9879_v10 }
 0x3cc   :  { %8538 = vrcp.f32 %v10002_v3 }
 0x3cd   :  { %7818 = vmatprep.mubr.bf16.mxu1 %v1475_v21  ;;  %v10041_v28 = vpop.xlane.xlu0 %2043  ;;  %8540 = vrcp.f32 %v2032_v45  ;;  %v3333_v45 = vmul.f32 1.442695, %v3317_v43 }
 0x3ce   :  { %7819 = vmatmul.mubr.bf16.gmra.mxu1 %v1476_v2  ;;  %v10043_v47 = vpop.xlane.xlu1 %2049  ;;  %v11804_v2 = vld [vmem:[#allocation12_spill] sm:$0xff] }
 0x3cf   :  { %7855 = vmatpush3.bf16.msra.mxu1 %v11799_v17 }
 0x3d0   :  { %7856 = vmatprep.subr.bf16.mxu1 %v11800_v5 }
 0x3d1   :  { %v2040_v38 = vpop.xlane.xlu0 %2039 }
 0x3d2   :  { %v1440_v61 = vpop.xlane.xlu1 %1439 }
 0x3d3   :  { %7857 = vmatpush3.bf16.msra.mxu1 %v11800_v5 }
 0x3d4   :  { %7858 = vmatprep.subr.bf16.mxu1 %v11801_v1  ;;  %v8531_v0 = vpop.eup %8530 }
 0x3d5   :  { %v1438_v35 = vpop.xlane.xlu0 %1437  ;;  %v8533_v4 = vpop.eup %8532  ;;  %v1468_v25 = vmul.f32 %v8531_v0, %v9782_v7 }
 0x3d6   :  { %v1436_v62 = vpop.xlane.xlu1 %1435  ;;  %8542 = vrcp.f32 %v1438_v35  ;;  %v1467_v17 = vmul.f32 %v8533_v4, %v9774_v58  ;;  %v11807_v58 = vld [vmem:[#allocation21_spill] sm:$0xff] }
 0x3d7   :  { %v8535_v6 = vpop.eup %8534  ;;  %7859 = vmatpush3.bf16.msra.mxu1 %v11801_v1  ;;  %3491 = vrot.lane.b32.xlu0 %v8338_v11, %s8978_s2  ;;  %8544 = vrcp.f32 %v1436_v62  ;;  %v11805_v1 = vld [vmem:[#allocation31_spill] sm:$0xff]  ;;  %v11808_v62 = vld [vmem:[#allocation52_spill] sm:$0xff] }
 0x3d8   :  { %v8537_v15 = vpop.eup %8536  ;;  %7860 = vmatprep.subr.bf16.mxu1 %v11803_v20  ;;  %v1465_v3 = vmul.f32 %v8535_v6, %v9790_v36  ;;  %8546 = vrcp.f32 %v1440_v61  ;;  %v1478_v5 = vpack.c.bf16 %v1468_v25, %v1467_v17  ;;  %v3319_v36 = vsub.f32 %v11805_v1, %v9869_v39  ;;  %v11806_v61 = vld [vmem:[#allocation35_spill] sm:$0xff] }
 0x3d9   :  { %v1434_v56 = vpop.xlane.xlu0 %1433  ;;  %v1466_v10 = vmul.f32 %v8537_v15, %v9793_v37  ;;  %v3318_v37 = vsub.f32 %v11806_v61, %v9884_v22  ;;  %v8539_v11 = vpop.eup %8538  ;;  %v11809_v15 = vld [vmem:[#allocation32_spill] sm:$0xff] }
 0x3da   :  { %8548 = vrcp.f32 %v1434_v56  ;;  %v2048_v18 = vpop.xlane.xlu1 %2047  ;;  %v3337_v35 = vmul.f32 1.442695, %v3319_v36  ;;  %v8541_v43 = vpop.eup %8540 }
 0x3db   :  { %7861 = vmatpush3.bf16.msra.mxu1 %v11803_v20  ;;  %v1477_v21 = vpack.c.bf16 %v1466_v10, %v1465_v3  ;;  %8550 = vpow2.f32 %v3333_v45  ;;  %v3335_v4 = vmul.f32 1.442695, %v3318_v37  ;;  %v2078_v10 = vmul.f32 %v8541_v43, %v9769_v46  ;;  %v8056_v45 = vpop.f32.mrf.mxu0 }
 0x3dc   :  { %7862 = vmatprep.subr.bf16.mxu1 %v11804_v2  ;;  %8552 = vrcp.f32 %v10018_v31 }
 0x3dd   :  { %7822 = vmatprep.mubr.bf16.mxu1 %v1477_v21  ;;  %v2046_v7 = vpop.xlane.xlu0 %2045  ;;  %8554 = vrcp.f32 %v9997_v42  ;;  %v4541_v46 = vpop.f32.mrf.mxu0 }
 0x3de   :  { %7823 = vmatmul.mubr.bf16.gmra.mxu1 %v1478_v5  ;;  %v10065_v0 = vpop.xlane.xlu1 %2057  ;;  %8556 = vrcp.f32 %v2040_v38  ;;  %v3320_v38 = vsub.f32 %v11809_v15, %v9873_v52  ;;  %v4365_v15 = vld [vmem:[#allocation6 + $0x2f0] sm:$0xff] }
 0x3df   :  { %7863 = vmatpush3.bf16.msra.mxu1 %v11804_v2  ;;  %8558 = vrcp.f32 %v10028_v34  ;;  %v8057_v43 = vpop.f32.mrf.mxu0 }
 0x3e0   :  { %7864 = vmatprep.subr.bf16.mxu1 %v11807_v58  ;;  %8560 = vpow2.f32 %v3337_v35  ;;  %v3339_v21 = vmul.f32 1.442695, %v3320_v38 }
 0x3e1   :  { %v2052_v39 = vpop.xlane.xlu0 %2051  ;;  %8562 = vpow2.f32 %v3335_v4 }
 0x3e2   :  { %v2054_v16 = vpop.xlane.xlu1 %2053  ;;  %8564 = vrcp.f32 %v10041_v28  ;;  %v2077_v28 = vmul.f32 %v8539_v11, %v9742_v8 }
 0x3e3   :  { %7865 = vmatpush3.bf16.msra.mxu1 %v11807_v58  ;;  %v8543_v22 = vpop.eup %8542  ;;  %8566 = vrcp.f32 %v2046_v7  ;;  %v4363_v7 = vld [vmem:[#allocation6 + $0x2e0] sm:$0xff] }
 0x3e4   :  { %7902 = vmatprep.subr.bf16.mxu1 %v11808_v62  ;;  %v8545_v31 = vpop.eup %8544  ;;  %v1471_v34 = vmul.f32 %v8543_v22, %v9815_v50  ;;  %8568 = vrcp.f32 %v10030_v9  ;;  %v10096_v37 = vadd.f32 %v4541_v46, %v4363_v7 }
 0x3e5   :  { %v10074_v6 = vpop.xlane.xlu0 %2059  ;;  %v8547_v42 = vpop.eup %8546  ;;  %v1470_v56 = vmul.f32 %v8545_v31, %v9818_v57  ;;  %8570 = vrcp.f32 %v2048_v18  ;;  %v2093_v57 = vpack.c.bf16 %v2078_v10, %v2077_v28  ;;  %v11812_v10 = vld [vmem:[#allocation41_spill] sm:$0xff] }
 0x3e6   :  { %v10078_v20 = vpop.xlane.xlu1 %2701  ;;  %v1472_v52 = vmul.f32 %v8547_v42, %v9810_v23  ;;  %8572 = vpow2.f32 %v3339_v21  ;;  %11810 = vst [vmem:[#allocation16_spill] sm:$0xff] %v10096_v37 }
 0x3e7   :  { %v8549_v3 = vpop.eup %8548  ;;  %8574 = vrcp.f32 %v2052_v39 }
 0x3e8   :  { %v1469_v25 = vmul.f32 %v8549_v3, %v9823_v12  ;;  %v10088_v50 = vpop.eup %8550  ;;  %v1480_v1 = vpack.c.bf16 %v1472_v52, %v1471_v34  ;;  %v4544_v3 = vpop.f32.mrf.mxu0  ;;  %v4364_v34 = vld [vmem:[#allocation6 + $0x2e8] sm:$0xff] }
 0x3e9   :  { %v2056_v17 = vpop.xlane.xlu0 %2055  ;;  %v8553_v12 = vpop.eup %8552 }
 0x3ea   :  { %v2698_v2 = vpop.xlane.xlu1 %2697  ;;  %v1479_v5 = vpack.c.bf16 %v1470_v56, %v1469_v25  ;;  %v8555_v36 = vpop.eup %8554  ;;  %v2080_v8 = vmul.f32 %v8553_v12, %v9766_v53  ;;  %8576 = vrcp.f32 %v2056_v17  ;;  %v10118_v56 = vadd.f32 %v8056_v45, %v4365_v15  ;;  %v4366_v12 = vld [vmem:[#allocation6 + $0x2f8] sm:$0xff] }
 0x3eb   :  { %v8557_v9 = vpop.eup %8556  ;;  %8578 = vrcp.f32 %v10043_v47  ;;  %v2079_v35 = vmul.f32 %v8555_v36, %v9733_v29  ;;  %v11815_v36 = vld [vmem:[#allocation30_spill] sm:$0xff] }
 0x3ec   :  { %7826 = vmatprep.mubr.bf16.mxu1 %v1479_v5  ;;  %v8559_v18 = vpop.eup %8558  ;;  %v2082_v11 = vmul.f32 %v8557_v9, %v9807_v32  ;;  %8580 = vrcp.f32 %v2054_v16  ;;  %11811 = vst [vmem:[#allocation36_spill] sm:$0xff] %v10118_v56  ;;  %v10146_v9 = vadd.f32 %v8057_v43, %v4366_v12 }
 0x3ed   :  { %v10090_v61 = vpop.xlane.xlu0 %2703  ;;  %7827 = vmatmul.mubr.bf16.gmra.mxu1 %v1480_v1  ;;  %v10101_v4 = vpop.eup %8560  ;;  %v2094_v39 = vpack.c.bf16 %v2080_v8, %v2079_v35  ;;  %v2081_v31 = vmul.f32 %v8559_v18, %v9777_v30  ;;  %8582 = vrcp.f32 %v10074_v6 }
 0x3ee   :  { %v10092_v23 = vpop.xlane.xlu1 %2709  ;;  %3365 = vadd.xlane.f32.xlu1 %v10088_v50  ;;  %7866 = vmatprep.mubr.bf16.mxu1 %v2093_v57  ;;  %v10106_v53 = vpop.eup %8562  ;;  %11816 = vst [vmem:[#allocation14_spill] sm:$0xff] %v10146_v9 }
 0x3ef   :  { %v8565_v42 = vpop.eup %8564  ;;  %v2095_v29 = vpack.c.bf16 %v2082_v11, %v2081_v31  ;;  %v11817_v11 = vld [vmem:[#allocation13_spill] sm:$0xff] }
 0x3f0   :  { %v8567_v47 = vpop.eup %8566  ;;  %v2084_v30 = vmul.f32 %v8565_v42, %v9799_v33 }
 0x3f1   :  { %v2700_v58 = vpop.xlane.xlu0 %2699  ;;  %v8569_v32 = vpop.eup %8568  ;;  %v2085_v17 = vmul.f32 %v8567_v47, %v9831_v14  ;;  %v11814_v14 = vld [vmem:[#allocation15_spill] sm:$0xff] }
 0x3f2   :  { %v10103_v22 = vpop.xlane.xlu1 %2705  ;;  %4580 = vmax.xlane.f32.xlu1 %v10096_v37  ;;  %v8571_v25 = vpop.eup %8570  ;;  %8584 = vrcp.f32 %v2700_v58  ;;  %v2083_v6 = vmul.f32 %v8569_v32, %v9785_v41  ;;  %v8339_v32 = vld [vmem:[#allocation4 + $0x60] ss:$8 sps:$4 sm:$0xff]  }
 0x3f3   :  { %8586 = vrcp.f32 %v10065_v0  ;;  %v2086_v33 = vmul.f32 %v8571_v25, %v9826_v27  ;;  %v10133_v45 = vpop.eup %8572 }
 0x3f4   :  { %8588 = vrcp.f32 %v2698_v2  ;;  %v2096_v0 = vpack.c.bf16 %v2084_v30, %v2083_v6  ;;  %v8575_v5 = vpop.eup %8574 }
 0x3f5   :  { %v10109_v38 = vpop.xlane.xlu0 %2711  ;;  %7867 = vmatmul.mubr.bf16.vlgmr.msra.gmra.mxu1 %v2094_v39  ;;  %v2097_v28 = vpack.c.bf16 %v2086_v33, %v2085_v17  ;;  %v2088_v46 = vmul.f32 %v8575_v5, %v9839_v63 }
 0x3f6   :  { %7903 = vmatpush3.bf16.msra.mxu1 %v11808_v62  ;;  %v10112_v16 = vpop.xlane.xlu1 %2713  ;;  %3369 = vadd.xlane.f32.xlu1 %v10101_v4  ;;  %v10122_v62 = vadd.f32 %v4544_v3, %v4364_v34 }
 0x3f7   :  { %3367 = vadd.xlane.f32.xlu0 %v10106_v53  ;;  %7870 = vmatprep.mubr.bf16.mxu1 %v2095_v29  ;;  %v8577_v1 = vpop.eup %8576 }
 0x3f8   :  { %7904 = vmatprep.subr.bf16.mxu1 %v11812_v10  ;;  %11813 = vst [vmem:[#allocation33_spill] sm:$0xff] %v10122_v62  ;;  %v8579_v2 = vpop.eup %8578  ;;  %v2090_v7 = vmul.f32 %v8577_v1, %v9860_v51  ;;  %v11821_v1 = vld [vmem:[#allocation38_spill] sm:$0xff] }
 0x3f9   :  { %v10125_v52 = vpop.xlane.xlu0 %2707  ;;  %v8581_v27 = vpop.eup %8580  ;;  %v2087_v18 = vmul.f32 %v8579_v2, %v9802_v48  ;;  %v3324_v2 = vsub.f32 %v11821_v1, %v9894_v19 }
 0x3fa   :  { %7905 = vmatpush3.bf16.msra.mxu1 %v11812_v10  ;;  %v10129_v21 = vpop.xlane.xlu1 %4564  ;;  %4584 = vmax.xlane.f32.xlu1 %v10118_v56  ;;  %v2089_v35 = vmul.f32 %v8581_v27, %v9842_v49  ;;  %v8583_v63 = vpop.eup %8582  ;;  %v5018_v27 = vld [vmem:[#allocation6 + $0x300] sm:$0xff] }
 0x3fb   :  { %4582 = vmax.xlane.f32.xlu0 %v10122_v62  ;;  %7906 = vmatprep.subr.bf16.mxu1 %v11814_v14  ;;  %v2098_v39 = vpack.c.bf16 %v2088_v46, %v2087_v18  ;;  %v2092_v49 = vmul.f32 %v8583_v63, %v9848_v13  ;;  %v8340_v13 = vld [vmem:[#allocation4 + $0x50] ss:$8 sps:$4 sm:$0xff]  }
 0x3fc   :  { %v2099_v31 = vpack.c.bf16 %v2090_v7, %v2089_v35  ;;  %v5020_v7 = vld [vmem:[#allocation6 + $0x310] sm:$0xff] }
 0x3fd   :  { %v10137_v41 = vpop.xlane.xlu0 %2715  ;;  %7871 = vmatmul.mubr.bf16.gmra.mxu1 %v2096_v0 }
 0x3fe   :  { %7907 = vmatpush3.bf16.msra.mxu1 %v11814_v14  ;;  %v10140_v57 = vpop.xlane.xlu1 %2717  ;;  %7874 = vmatprep.mubr.bf16.mxu1 %v2097_v28  ;;  %v8096_v28 = vpop.f32.mrf.mxu0 }
 0x3ff   :  { %3371 = vadd.xlane.f32.xlu0 %v10133_v45  ;;  %7908 = vmatprep.subr.bf16.mxu1 %v11815_v36  ;;  %v8585_v51 = vpop.eup %8584 }
 0x400   :  { %v8587_v42 = vpop.eup %8586  ;;  %v2746_v15 = vmul.f32 %v8585_v51, %v9881_v40  ;;  %v11818_v40 = vld [vmem:[#allocation39_spill] sm:$0xff] }
 0x401   :  { %v10148_v8 = vpop.xlane.xlu0 %4566  ;;  %v8589_v47 = vpop.eup %8588  ;;  %v2091_v3 = vmul.f32 %v8587_v42, %v9834_v44  ;;  %v3321_v17 = vsub.f32 %v11818_v40, %v9900_v24  ;;  %v11819_v44 = vld [vmem:[#allocation37_spill] sm:$0xff] }
 0x402   :  { %7909 = vmatpush3.bf16.msra.mxu1 %v11815_v36  ;;  %v10152_v58 = vpop.xlane.xlu1 %4568  ;;  %v2745_v34 = vmul.f32 %v8589_v47, %v9865_v55  ;;  %v3323_v33 = vsub.f32 %v11819_v44, %v9890_v59  ;;  %v11820_v55 = vld [vmem:[#allocation40_spill] sm:$0xff]  ;;  %v5160_v24 = vpop.f32.mrf.mxu0  ;;  %v3347_v36 = vmul.f32 1.442695, %v3324_v2  ;;  %v11832_v2 = vld [vmem:[#allocation23_spill] sm:$0xff] }
 0x403   :  { %4586 = vmax.xlane.f32.xlu0 %v10146_v9  ;;  %7910 = vmatprep.subr.bf16.mxu1 %v11817_v11  ;;  %v2100_v25 = vpack.c.bf16 %v2092_v49, %v2091_v3  ;;  %v3341_v6 = vmul.f32 1.442695, %v3321_v17  ;;  %v3322_v14 = vsub.f32 %v11820_v55, %v9904_v54  ;;  %v10179_v59 = vadd.f32 %v5160_v24, %v5018_v27 }
 0x404   :  { %v2761_v30 = vpack.c.bf16 %v2746_v15, %v2745_v34  ;;  %v3345_v0 = vmul.f32 1.442695, %v3323_v33  ;;  %v8097_v46 = vpop.f32.mrf.mxu0  ;;  %v11827_v34 = vld [vmem:[#allocation17_spill] sm:$0xff]  ;;  %v11829_v33 = vld [vmem:[#allocation19_spill] sm:$0xff] }
 0x405   :  { %v10157_v43 = vpop.xlane.xlu0 %2719  ;;  %7875 = vmatmul.mubr.bf16.gmra.mxu1 %v2098_v39  ;;  %8590 = vpow2.f32 %v3341_v6  ;;  %v3343_v5 = vmul.f32 1.442695, %v3322_v14  ;;  %11822 = vst [vmem:[#allocation27_spill] sm:$0xff] %v10179_v59  ;;  %v10192_v39 = vadd.f32 %v8096_v28, %v5020_v7  ;;  %v11831_v28 = vld [vmem:[#allocation22_spill] sm:$0xff] }
 0x406   :  { %7911 = vmatpush3.bf16.msra.mxu1 %v11817_v11  ;;  %v2814_v48 = vpop.permute.xlu1 %2813  ;;  %7878 = vmatprep.mubr.bf16.mxu1 %v2099_v31  ;;  %8592 = vpow2.f32 %v3345_v0  ;;  %v5163_v35 = vpop.f32.mrf.mxu0  ;;  %v5019_v11 = vld [vmem:[#allocation6 + $0x308] sm:$0xff]  ;;  %v11830_v0 = vld [vmem:[#allocation75_spill] sm:$0xff] }
 0x407   :  { %7912 = vmatprep.subr.bf16.mxu1 %v2814_v48  ;;  %8594 = vpow2.f32 %v3343_v5  ;;  %11823 = vst [vmem:[#allocation34_spill] sm:$0xff] %v10192_v39 }
 0x408   :  { %8596 = vpow2.f32 %v3347_v36 }
 0x409   :  { %v10162_v29 = vpop.xlane.xlu0 %4570  ;;  %8598 = vrcp.f32 %v10090_v61  ;;  %v10194_v61 = vadd.f32 %v5163_v35, %v5019_v11  ;;  %v11833_v11 = vld [vmem:[#allocation82_spill] sm:$0xff] }
 0x40a   :  { %7913 = vmatpush3.bf16.msra.mxu1 %v2814_v48  ;;  %8600 = vrcp.f32 %v10125_v52 }
 0x40b   :  { %3489 = vrot.lane.b32.xlu1 %v8339_v32, %s8978_s2  ;;  %8602 = vrcp.f32 %v10078_v20  ;;  %11824 = vst [vmem:[#allocation24_spill] sm:$0xff] %v10194_v61  ;;  %v11826_v32 = vld [vmem:[#allocation71_spill] sm:$0xff] }
 0x40c   :  { %8604 = vrcp.f32 %v10103_v22  ;;  %v5021_v22 = vld [vmem:[#allocation6 + $0x318] sm:$0xff] }
 0x40d   :  { %v2812_v10 = vpop.permute.xlu0 %2811  ;;  %7879 = vmatmul.mubr.bf16.gmra.mxu1 %v2100_v25  ;;  %8606 = vrcp.f32 %v10109_v38  ;;  %v10207_v42 = vadd.f32 %v8097_v46, %v5021_v22  ;;  %v11834_v22 = vld [vmem:[#allocation105_spill] sm:$0xff] }
 0x40e   :  { %7914 = vmatprep.subr.bf16.mxu1 %v2812_v10  ;;  %7918 = vmatprep.mubr.bf16.mxu1 %v2761_v30  ;;  %8608 = vrcp.f32 %v10137_v41  ;;  %v11828_v30 = vld [vmem:[#allocation18_spill] sm:$0xff] }
 0x40f   :  { %7915 = vmatpush3.bf16.msra.mxu1 %v2812_v10  ;;  %8610 = vrcp.f32 %v10092_v23  ;;  %11825 = vst [vmem:[#allocation12_spill] sm:$0xff] %v10207_v42 }
 0x410   :  { %8612 = vrcp.f32 %v10112_v16 }
 0x411   :  { %8614 = vrcp.f32 %v10157_v43  ;;  %v8341_v43 = vld [vmem:[#allocation4 + $0x40] ss:$8 sps:$4 sm:$0xff]  }
 0x412   :  { %v10176_v12 = vpop.eup %8590 }
 0x413   :  { %v10183_v54 = vpop.eup %8592 }
 0x414   :  { %v10186_v18 = vpop.eup %8594 }
 0x415   :  { %v10202_v31 = vpop.eup %8596 }
 0x416   :  { %v8599_v51 = vpop.eup %8598 }
 0x417   :  { %v8601_v38 = vpop.eup %8600  ;;  %v2748_v23 = vmul.f32 %v8599_v51, %v9871_v26 }
 0x418   :  { %v8603_v41 = vpop.eup %8602  ;;  %v2750_v3 = vmul.f32 %v8601_v38, %v11826_v32  ;;  %v11835_v38 = vld [vmem:[#allocation73_spill] sm:$0xff]  ;;  %v11837_v32 = vld [vmem:[#allocation76_spill] sm:$0xff] }
 0x419   :  { %3487 = vrot.lane.b32.xlu0 %v8340_v13, %s8978_s2  ;;  %v8605_v49 = vpop.eup %8604  ;;  %v2747_v25 = vmul.f32 %v8603_v41, %v11827_v34  ;;  %v8342_v41 = vld [vmem:[#allocation4 + $0x30] ss:$8 sps:$4 sm:$0xff]  }
 0x41a   :  { %v2749_v10 = vmul.f32 %v8605_v49, %v11828_v30  ;;  %v8607_v40 = vpop.eup %8606  ;;  %v11836_v49 = vld [vmem:[#allocation102_spill] sm:$0xff] }
 0x41b   :  { %v2762_v13 = vpack.c.bf16 %v2748_v23, %v2747_v25  ;;  %v8609_v6 = vpop.eup %8608  ;;  %v2752_v55 = vmul.f32 %v8607_v40, %v11829_v33 }
 0x41c   :  { %v2763_v26 = vpack.c.bf16 %v2750_v3, %v2749_v10  ;;  %v8611_v44 = vpop.eup %8610  ;;  %v2754_v5 = vmul.f32 %v8609_v6, %v11830_v0  ;;  %v11838_v3 = vld [vmem:[#allocation44_spill] sm:$0xff] }
 0x41d   :  { %v2751_v1 = vmul.f32 %v8611_v44, %v11831_v28  ;;  %v3325_v34 = vsub.f32 %v11838_v3, %v11837_v32  ;;  %v11839_v10 = vld [vmem:[#allocation108_spill] sm:$0xff]  ;;  %v5025_v3 = vld [vmem:[#allocation6 + $0x338] sm:$0xff] }
 0x41e   :  { %v11841_v44 = vld [vmem:[#allocation72_spill] sm:$0xff] }
 0x41f   :  { %v2764_v27 = vpack.c.bf16 %v2752_v55, %v2751_v1  ;;  %v3349_v40 = vmul.f32 1.442695, %v3325_v34  ;;  %v11843_v55 = vld [vmem:[#allocation79_spill] sm:$0xff]  ;;  %v8100_v1 = vpop.f32.mrf.mxu0 }
 0x42f   :  { %3373 = vadd.xlane.f32.xlu1 %v10176_v12 }
 0x433   :  { %5223 = vmax.xlane.f32.xlu1 %v10179_v59  ;;  %v11902_v59 = vld [vmem:[#allocation58_spill] sm:$0xff] }
 0x436   :  { %v2722_v19 = vpop.xlane.xlu1 %2721 }
 0x437   :  { %3377 = vadd.xlane.f32.xlu1 %v10183_v54 }
 0x438   :  { %3375 = vadd.xlane.f32.xlu0 %v10186_v18 }
 0x43a   :  { %v10196_v63 = vpop.xlane.xlu1 %4572 }
 0x43b   :  { %5227 = vmax.xlane.f32.xlu1 %v10192_v39 }
 0x43c   :  { %5225 = vmax.xlane.f32.xlu0 %v10194_v61  ;;  %v5685_v61 = vld [vmem:[#allocation6 + $0x380] sm:$0xff] }
 0x43e   :  { %v2724_v20 = vpop.xlane.xlu0 %2723  ;;  %v2726_v52 = vpop.xlane.xlu1 %2725 }
 0x43f   :  { %8616 = vrcp.f32 %v2724_v20 }
 0x440   :  { %3379 = vadd.xlane.f32.xlu0 %v10202_v31  ;;  %8618 = vrcp.f32 %v10140_v57  ;;  %v8613_v57 = vpop.eup %8612 }
 0x441   :  { %8620 = vrcp.f32 %v2722_v19  ;;  %v2753_v24 = vmul.f32 %v8613_v57, %v11832_v2  ;;  %v8615_v36 = vpop.eup %8614  ;;  %v11842_v57 = vld [vmem:[#allocation42_spill] sm:$0xff] }
 0x442   :  { %v10209_v48 = vpop.xlane.xlu0 %4574  ;;  %v10211_v47 = vpop.xlane.xlu1 %4576  ;;  %v2756_v20 = vmul.f32 %v8615_v36, %v11833_v11  ;;  %v3327_v33 = vsub.f32 %v11842_v57, %v11841_v44  ;;  %v11845_v2 = vld [vmem:[#allocation74_spill] sm:$0xff] }
 0x443   :  { %v2765_v46 = vpack.c.bf16 %v2754_v5, %v2753_v24  ;;  %v11846_v24 = vld [vmem:[#allocation43_spill] sm:$0xff] }
 0x444   :  { %5229 = vmax.xlane.f32.xlu0 %v10207_v42  ;;  %v3353_v5 = vmul.f32 1.442695, %v3327_v33  ;;  %v11890_v42 = vld [vmem:[#allocation57_spill] sm:$0xff] }
 0x446   :  { %v2728_v16 = vpop.xlane.xlu0 %2727  ;;  %v2810_v15 = vpop.permute.xlu1 %2809 }
 0x447   :  { %7916 = vmatprep.subr.bf16.mxu1 %v2810_v15  ;;  %8622 = vrcp.f32 %v2728_v16 }
 0x448   :  { %7917 = vmatpush3.bf16.msra.mxu1 %v2810_v15  ;;  %8624 = vrcp.f32 %v2726_v52 }
 0x449   :  { %8626 = vpow2.f32 %v3349_v40 }
 0x44a   :  { %v10220_v17 = vpop.xlane.xlu0 %4578  ;;  %8628 = vpow2.f32 %v3353_v5 }
 0x44b   :  { %7919 = vmatmul.mubr.bf16.vlgmr.msra.gmra.mxu1 %v2762_v13 }
 0x44c   :  { %3485 = vrot.lane.b32.xlu1 %v8341_v43, %s8978_s2  ;;  %7922 = vmatprep.mubr.bf16.mxu1 %v2763_v26  ;;  %v8617_v7 = vpop.eup %8616  ;;  %v11840_v43 = vld [vmem:[#allocation104_spill] sm:$0xff] }
 0x44d   :  { %v8619_v19 = vpop.eup %8618  ;;  %v2758_v51 = vmul.f32 %v8617_v7, %v11834_v22  ;;  %v5022_v7 = vld [vmem:[#allocation6 + $0x320] sm:$0xff]  ;;  %v5024_v22 = vld [vmem:[#allocation6 + $0x330] sm:$0xff] }
 0x44e   :  { %v3492_v14 = vpop.permute.xlu0 %3491  ;;  %v8621_v35 = vpop.eup %8620  ;;  %v2755_v52 = vmul.f32 %v8619_v19, %v11835_v38 }
 0x44f   :  { %7954 = vmatprep.subr.bf16.mxu1 %v3492_v14  ;;  %v2757_v23 = vmul.f32 %v8621_v35, %v11836_v49  ;;  %v10254_v49 = vadd.f32 %v8100_v1, %v5024_v22 }
 0x450   :  { %7955 = vmatpush3.bf16.msra.mxu1 %v3492_v14  ;;  %v2766_v16 = vpack.c.bf16 %v2756_v20, %v2755_v52  ;;  %v11844_v14 = vld [vmem:[#allocation45_spill] sm:$0xff] }
 0x451   :  { %v2767_v25 = vpack.c.bf16 %v2758_v51, %v2757_v23  ;;  %v3326_v0 = vsub.f32 %v11844_v14, %v11843_v55  ;;  %11848 = vst [vmem:[#allocation35_spill] sm:$0xff] %v10254_v49  ;;  %v8343_v14 = vld [vmem:[#allocation4 + $0x20] ss:$8 sps:$4 sm:$0xff]  }
 0x453   :  { %7923 = vmatmul.mubr.bf16.gmra.mxu1 %v2764_v27  ;;  %v3351_v28 = vmul.f32 1.442695, %v3326_v0  ;;  %v3328_v27 = vsub.f32 %v11846_v24, %v11845_v2 }
 0x454   :  { %7926 = vmatprep.mubr.bf16.mxu1 %v2765_v46  ;;  %v8623_v15 = vpop.eup %8622  ;;  %v5176_v46 = vpop.f32.mrf.mxu0 }
 0x455   :  { %v8625_v30 = vpop.eup %8624  ;;  %v2760_v13 = vmul.f32 %v8623_v15, %v11839_v10  ;;  %8630 = vpow2.f32 %v3351_v28  ;;  %v3355_v19 = vmul.f32 1.442695, %v3328_v27  ;;  %v10245_v35 = vadd.f32 %v5176_v46, %v5022_v7 }
 0x456   :  { %v2759_v26 = vmul.f32 %v8625_v30, %v11840_v43  ;;  %v10242_v36 = vpop.eup %8626  ;;  %v8101_v11 = vpop.f32.mrf.mxu0 }
 0x457   :  { %11847 = vst [vmem:[#allocation31_spill] sm:$0xff] %v10245_v35  ;;  %8632 = vpow2.f32 %v3355_v19  ;;  %v10248_v20 = vpop.eup %8628 }
 0x458   :  { %v2768_v6 = vpack.c.bf16 %v2760_v13, %v2759_v26  ;;  %v5179_v52 = vpop.f32.mrf.mxu0 }
 0x45a   :  { %3483 = vrot.lane.b32.xlu0 %v8342_v41, %s8978_s2  ;;  %v5023_v41 = vld [vmem:[#allocation6 + $0x328] sm:$0xff] }
 0x45b   :  { %7927 = vmatmul.mubr.bf16.gmra.mxu1 %v2766_v16  ;;  %v10256_v23 = vadd.f32 %v5179_v52, %v5023_v41 }
 0x45c   :  { %7930 = vmatprep.mubr.bf16.mxu1 %v2767_v25  ;;  %v10267_v25 = vadd.f32 %v8101_v11, %v5025_v3 }
 0x45d   :  { %11849 = vst [vmem:[#allocation21_spill] sm:$0xff] %v10256_v23 }
 0x45e   :  { %11851 = vst [vmem:[#allocation32_spill] sm:$0xff] %v10267_v25 }
 0x462   :  { %v10250_v38 = vpop.eup %8630 }
 0x463   :  { %7931 = vmatmul.mubr.bf16.gmra.mxu1 %v2768_v6 }
 0x464   :  { %v10264_v32 = vpop.eup %8632 }
 0x470   :  { %3381 = vadd.xlane.f32.xlu1 %v10242_v36 }
 0x474   :  { %5231 = vmax.xlane.f32.xlu1 %v10245_v35 }
 0x477   :  { %v3366_v51 = vpop.xlane.xlu1 %3365 }
 0x478   :  { %3385 = vadd.xlane.f32.xlu1 %v10248_v20  ;;  %8634 = vrcp.f32 %v3366_v51 }
 0x479   :  { %3383 = vadd.xlane.f32.xlu0 %v10250_v38 }
 0x47b   :  { %v10258_v16 = vpop.xlane.xlu1 %4580 }
 0x47c   :  { %11850 = vst [vmem:[#allocation52_spill] sm:$0xff] %v10258_v16  ;;  %5235 = vmax.xlane.f32.xlu1 %v10254_v49  ;;  %v11882_v49 = vld [vmem:[#allocation59_spill] sm:$0xff] }
 0x47d   :  { %5233 = vmax.xlane.f32.xlu0 %v10256_v23  ;;  %v11881_v23 = vld [vmem:[#allocation94_spill] sm:$0xff] }
 0x47e   :  { %v3974_v35 = vsub.f32 %v11882_v49, %v11881_v23  ;;  %v11887_v23 = vld [vmem:[#allocation91_spill] sm:$0xff] }
 0x47f   :  { %v10262_v15 = vpop.xlane.xlu1 %3369 }
 0x480   :  { %v3368_v34 = vpop.xlane.xlu0 %3367 }
 0x481   :  { %8636 = vrcp.f32 %v3368_v34  ;;  %3387 = vadd.xlane.f32.xlu0 %v10264_v32  ;;  %v11856_v34 = vld [vmem:[#allocation48_spill] sm:$0xff] }
 0x483   :  { %v10269_v30 = vpop.xlane.xlu1 %4584 }
 0x484   :  { %11852 = vst [vmem:[#allocation41_spill] sm:$0xff] %v10269_v30  ;;  %v10271_v10 = vpop.xlane.xlu0 %4582 }
 0x485   :  { %11853 = vst [vmem:[#allocation15_spill] sm:$0xff] %v10271_v10  ;;  %5237 = vmax.xlane.f32.xlu0 %v10267_v25  ;;  %v7816_v13 = vpop.f32.mrf.mxu1  ;;  %v8635_v0 = vpop.eup %8634 }
 0x486   :  { %v7231_v40 = vpack.c.bf16 %v7816_v13, %v7816_v13  ;;  %v3413_v27 = vmul.f32 %v8635_v0, %v10088_v50  ;;  %v8344_v50 = vld [vmem:[#allocation4 + $0x10] ss:$8 sps:$4 sm:$0xff]  }
 0x487   :  { %v1563_v43 = vpop.f32.mrf.mxu1  ;;  %v3490_v26 = vpop.permute.xlu1 %3489 }
 0x488   :  { %1693 = vst.msk [vmem:[#allocation5 + $0x10] sm:$0xf] %vm1690_vm1, %v7231_v40  ;;  %v10275_v6 = vpop.xlane.xlu0 %3371  ;;  %v7229_v44 = vpack.c.bf16 %v1563_v43, %v1563_v43  ;;  %7956 = vmatprep.subr.bf16.mxu1 %v3490_v26 }
 0x489   :  { %v7817_v57 = vpop.f32.mrf.mxu1  ;;  %7957 = vmatpush3.bf16.msra.mxu1 %v3490_v26 }
 0x48a   :  { %1691 = vst.msk [vmem:[#allocation5] sm:$0xf] %vm1690_vm1, %v7229_v44  ;;  %v7232_v33 = vpack.c.bf16 %v7817_v57, %v7817_v57 }
 0x48b   :  { %v1566_v55 = vpop.f32.mrf.mxu1 }
 0x48c   :  { %1694 = vst.msk [vmem:[#allocation5 + $0x18] sm:$0xf] %vm1690_vm1, %v7232_v33  ;;  %v10279_v5 = vpop.xlane.xlu0 %4586  ;;  %v7230_v28 = vpack.c.bf16 %v1566_v55, %v1566_v55  ;;  %v11857_v55 = vld [vmem:[#allocation81_spill] sm:$0xff] }
 0x48d   :  { %11854 = vst [vmem:[#allocation30_spill] sm:$0xff] %v10279_v5  ;;  %3481 = vrot.lane.b32.xlu1 %v8343_v14, %s8978_s2  ;;  %v11858_v14 = vld [vmem:[#allocation46_spill] sm:$0xff] }
 0x48e   :  { %v8637_v1 = vpop.eup %8636  ;;  %1692 = vst.msk [vmem:[#allocation5 + $0x8] sm:$0xf] %vm1690_vm1, %v7230_v28  ;;  %v7820_v2 = vpop.f32.mrf.mxu1  ;;  %v3331_v0 = vsub.f32 %v11858_v14, %v11857_v55  ;;  %v11864_v55 = vld [vmem:[#allocation83_spill] sm:$0xff]  ;;  %v11865_v14 = vld [vmem:[#allocation49_spill] sm:$0xff] }
 0x48f   :  { %v7235_v24 = vpack.c.bf16 %v7820_v2, %v7820_v2  ;;  %v3414_v46 = vmul.f32 %v8637_v1, %v10106_v53  ;;  %v11855_v53 = vld [vmem:[#allocation85_spill] sm:$0xff] }
 0x490   :  { %v3488_v7 = vpop.permute.xlu0 %3487  ;;  %v1579_v19 = vpop.f32.mrf.mxu1  ;;  %v3329_v13 = vsub.f32 %v11856_v34, %v11855_v53  ;;  %v11859_v1 = vld [vmem:[#allocation89_spill] sm:$0xff] }
 0x491   :  { %1697 = vst.msk [vmem:[#allocation5 + $0x30] sm:$0xf] %vm1690_vm1, %v7235_v24  ;;  %v7233_v11 = vpack.c.bf16 %v1579_v19, %v1579_v19  ;;  %7958 = vmatprep.subr.bf16.mxu1 %v3488_v7  ;;  %v3429_v22 = vpack.c.bf16 %v3414_v46, %v3413_v27  ;;  %v11860_v2 = vld [vmem:[#allocation53_spill] sm:$0xff] }
 0x492   :  { %v7821_v51 = vpop.f32.mrf.mxu1  ;;  %7959 = vmatpush3.bf16.msra.mxu1 %v3488_v7  ;;  %v3357_v43 = vmul.f32 1.442695, %v3329_v13  ;;  %v3330_v24 = vsub.f32 %v11860_v2, %v11859_v1  ;;  %v3361_v7 = vmul.f32 1.442695, %v3331_v0  ;;  %v5026_v13 = vld [vmem:[#allocation6 + $0x340] sm:$0xff]  ;;  %v3969_v0 = vsub.f32 %v11865_v14, %v11864_v55  ;;  %v11873_v55 = vld [vmem:[#allocation47_spill] sm:$0xff] }
 0x493   :  { %1695 = vst.msk [vmem:[#allocation5 + $0x20] sm:$0xf] %vm1690_vm1, %v7233_v11  ;;  %v7236_v52 = vpack.c.bf16 %v7821_v51, %v7821_v51  ;;  %7970 = vmatprep.mubr.bf16.mxu1 %v3429_v22  ;;  %v8104_v11 = vpop.f32.mrf.mxu0  ;;  %v11861_v22 = vld [vmem:[#allocation87_spill] sm:$0xff]  ;;  %v11862_v51 = vld [vmem:[#allocation50_spill] sm:$0xff] }
 0x494   :  { %v1582_v41 = vpop.f32.mrf.mxu1  ;;  %8638 = vpow2.f32 %v3357_v43  ;;  %v3359_v19 = vmul.f32 1.442695, %v3330_v24  ;;  %v5028_v24 = vld [vmem:[#allocation6 + $0x350] sm:$0xff] }
 0x495   :  { %1698 = vst.msk [vmem:[#allocation5 + $0x38] sm:$0xf] %vm1690_vm1, %v7236_v52  ;;  %v7234_v3 = vpack.c.bf16 %v1582_v41, %v1582_v41  ;;  %8640 = vpow2.f32 %v3361_v7  ;;  %v3332_v52 = vsub.f32 %v11862_v51, %v11861_v22  ;;  %v5192_v34 = vpop.f32.mrf.mxu0  ;;  %v11867_v7 = vld [vmem:[#allocation54_spill] sm:$0xff] }
 0x496   :  { %8642 = vpow2.f32 %v3359_v19 }
 0x497   :  { %1696 = vst.msk [vmem:[#allocation5 + $0x28] sm:$0xf] %vm1690_vm1, %v7234_v3  ;;  %v8105_v1 = vpop.f32.mrf.mxu0 }
 0x49b   :  { %3479 = vrot.lane.b32.xlu0 %v8344_v50, %s8978_s2 }
 0x49e   :  { %v7824_v40 = vpop.f32.mrf.mxu1 }
 0x49f   :  { %v7239_v26 = vpack.c.bf16 %v7824_v40, %v7824_v40  ;;  %v3363_v40 = vmul.f32 1.442695, %v3332_v52  ;;  %v5195_v52 = vpop.f32.mrf.mxu0 }
 0x4a0   :  { %v1595_v44 = vpop.f32.mrf.mxu1 }
 0x4a1   :  { %1701 = vst.msk [vmem:[#allocation5 + $0x50] sm:$0xf] %vm1690_vm1, %v7239_v26  ;;  %v7237_v57 = vpack.c.bf16 %v1595_v44, %v1595_v44  ;;  %v10302_v53 = vpop.eup %8638  ;;  %8644 = vpow2.f32 %v3363_v40 }
 0x4a2   :  { %v7825_v33 = vpop.f32.mrf.mxu1  ;;  %v10314_v2 = vpop.eup %8640 }
 0x4a3   :  { %1699 = vst.msk [vmem:[#allocation5 + $0x40] sm:$0xf] %vm1690_vm1, %v7237_v57  ;;  %v7240_v28 = vpack.c.bf16 %v7825_v33, %v7825_v33  ;;  %v10307_v57 = vadd.f32 %v5192_v34, %v5026_v13  ;;  %v10320_v51 = vpop.eup %8642 }
 0x4a4   :  { %v1598_v27 = vpop.f32.mrf.mxu1 }
 0x4a5   :  { %1702 = vst.msk [vmem:[#allocation5 + $0x58] sm:$0xf] %vm1690_vm1, %v7240_v28  ;;  %v7238_v46 = vpack.c.bf16 %v1598_v27, %v1598_v27  ;;  %11863 = vst [vmem:[#allocation13_spill] sm:$0xff] %v10307_v57  ;;  %v3985_v27 = vmul.f32 1.442695, %v3969_v0 }
 0x4a7   :  { %1700 = vst.msk [vmem:[#allocation5 + $0x48] sm:$0xf] %vm1690_vm1, %v7238_v46  ;;  %v11866_v46 = vld [vmem:[#allocation88_spill] sm:$0xff]  ;;  %8646 = vpow2.f32 %v3985_v27 }
 0x4a8   :  { %v3970_v19 = vsub.f32 %v11867_v7, %v11866_v46 }
 0x4aa   :  { %v3987_v34 = vmul.f32 1.442695, %v3970_v19 }
 0x4ac   :  { %8648 = vpow2.f32 %v3987_v34  ;;  %v5030_v34 = vld [vmem:[#allocation6 + $0x360] sm:$0xff] }
 0x4ad   :  { %v7828_v41 = vpop.f32.mrf.mxu1 }
 0x4ae   :  { %v7243_v3 = vpack.c.bf16 %v7828_v41, %v7828_v41  ;;  %v5027_v41 = vld [vmem:[#allocation6 + $0x348] sm:$0xff] }
 0x4af   :  { %v1611_v50 = vpop.f32.mrf.mxu1 }
 0x4b0   :  { %1705 = vst.msk [vmem:[#allocation5 + $0x70] sm:$0xf] %vm1690_vm1, %v7243_v3  ;;  %v7241_v43 = vpack.c.bf16 %v1611_v50, %v1611_v50  ;;  %v10324_v3 = vadd.f32 %v8104_v11, %v5028_v24  ;;  %v10326_v50 = vadd.f32 %v5195_v52, %v5027_v41 }
 0x4b1   :  { %3389 = vadd.xlane.f32.xlu1 %v10302_v53  ;;  %v7829_v26 = vpop.f32.mrf.mxu1 }
 0x4b2   :  { %1703 = vst.msk [vmem:[#allocation5 + $0x60] sm:$0xf] %vm1690_vm1, %v7241_v43  ;;  %v7244_v44 = vpack.c.bf16 %v7829_v26, %v7829_v26  ;;  %11868 = vst [vmem:[#allocation39_spill] sm:$0xff] %v10324_v3  ;;  %v10334_v43 = vpop.eup %8644  ;;  %v5029_v26 = vld [vmem:[#allocation6 + $0x358] sm:$0xff] }
 0x4b3   :  { %v1614_v33 = vpop.f32.mrf.mxu1  ;;  %11869 = vst [vmem:[#allocation37_spill] sm:$0xff] %v10326_v50  ;;  %v10339_v11 = vadd.f32 %v8105_v1, %v5029_v26  ;;  %v8345_v1 = vld [vmem:[#allocation4] ss:$8 sps:$4 sm:$0xff]  }
 0x4b4   :  { %1706 = vst.msk [vmem:[#allocation5 + $0x78] sm:$0xf] %vm1690_vm1, %v7244_v44  ;;  %v7242_v28 = vpack.c.bf16 %v1614_v33, %v1614_v33  ;;  %v11872_v33 = vld [vmem:[#allocation80_spill] sm:$0xff]  ;;  %v10348_v7 = vpop.eup %8646 }
 0x4b5   :  { %5239 = vmax.xlane.f32.xlu1 %v10307_v57  ;;  %11871 = vst [vmem:[#allocation38_spill] sm:$0xff] %v10339_v11  ;;  %v3971_v14 = vsub.f32 %v11873_v55, %v11872_v33  ;;  %v5031_v57 = vld [vmem:[#allocation6 + $0x368] sm:$0xff] }
 0x4b6   :  { %1704 = vst.msk [vmem:[#allocation5 + $0x68] sm:$0xf] %vm1690_vm1, %v7242_v28  ;;  %v8108_v28 = vpop.f32.mrf.mxu0 }
 0x4b7   :  { %v3989_v27 = vmul.f32 1.442695, %v3971_v14  ;;  %v11878_v14 = vld [vmem:[#allocation90_spill] sm:$0xff] }
 0x4b8   :  { %v10318_v22 = vpop.xlane.xlu1 %3373  ;;  %v5208_v19 = vpop.f32.mrf.mxu0 }
 0x4b9   :  { %3393 = vadd.xlane.f32.xlu1 %v10314_v2  ;;  %8650 = vpow2.f32 %v3989_v27  ;;  %v10353_v41 = vpop.eup %8648  ;;  %v10359_v55 = vadd.f32 %v5208_v19, %v5030_v34  ;;  %v3995_v19 = vmul.f32 1.442695, %v3974_v35 }
 0x4ba   :  { %3391 = vadd.xlane.f32.xlu0 %v10320_v51  ;;  %v8109_v26 = vpop.f32.mrf.mxu0 }
 0x4bb   :  { %11877 = vst [vmem:[#allocation19_spill] sm:$0xff] %v10359_v55 }
 0x4bc   :  { %v10328_v13 = vpop.xlane.xlu1 %5223 }
 0x4bd   :  { %11870 = vst [vmem:[#allocation40_spill] sm:$0xff] %v10328_v13  ;;  %5243 = vmax.xlane.f32.xlu1 %v10324_v3  ;;  %v5211_v3 = vpop.f32.mrf.mxu0 }
 0x4be   :  { %5241 = vmax.xlane.f32.xlu0 %v10326_v50  ;;  %v10364_v27 = vadd.f32 %v5211_v3, %v5031_v57  ;;  %v5033_v57 = vld [vmem:[#allocation6 + $0x378] sm:$0xff] }
 0x4bf   :  { %v10377_v3 = vadd.f32 %v8109_v26, %v5033_v57  ;;  %v11894_v57 = vld [vmem:[#allocation61_spill] sm:$0xff] }
 0x4c0   :  { %v10332_v40 = vpop.xlane.xlu1 %3377  ;;  %11880 = vst [vmem:[#allocation75_spill] sm:$0xff] %v10364_v27 }
 0x4c1   :  { %v10336_v44 = vpop.xlane.xlu0 %3375  ;;  %11886 = vst [vmem:[#allocation23_spill] sm:$0xff] %v10377_v3 }
 0x4c2   :  { %3395 = vadd.xlane.f32.xlu0 %v10334_v43 }
 0x4c4   :  { %v10343_v0 = vpop.xlane.xlu1 %5227 }
 0x4c5   :  { %11874 = vst [vmem:[#allocation71_spill] sm:$0xff] %v10343_v0  ;;  %v10345_v24 = vpop.xlane.xlu0 %5225  ;;  %v11901_v0 = vld [vmem:[#allocation93_spill] sm:$0xff] }
 0x4c6   :  { %11875 = vst [vmem:[#allocation17_spill] sm:$0xff] %v10345_v24  ;;  %5245 = vmax.xlane.f32.xlu0 %v10339_v11  ;;  %v11879_v11 = vld [vmem:[#allocation56_spill] sm:$0xff] }
 0x4c7   :  { %v3973_v50 = vsub.f32 %v11879_v11, %v11878_v14  ;;  %v5032_v11 = vld [vmem:[#allocation6 + $0x370] sm:$0xff] }
 0x4c8   :  { %v3486_v46 = vpop.permute.xlu1 %3485  ;;  %v10372_v34 = vadd.f32 %v8108_v28, %v5032_v11  ;;  %v11884_v14 = vld [vmem:[#allocation86_spill] sm:$0xff] }
 0x4c9   :  { %v10350_v52 = vpop.xlane.xlu0 %3379  ;;  %7960 = vmatprep.subr.bf16.mxu1 %v3486_v46  ;;  %v3993_v25 = vmul.f32 1.442695, %v3973_v50  ;;  %v8148_v50 = vpop.f32.mrf.mxu0 }
 0x4ca   :  { %4017 = vadd.xlane.f32.xlu0 %v10348_v7  ;;  %7961 = vmatpush3.bf16.msra.mxu1 %v3486_v46  ;;  %11883 = vst [vmem:[#allocation22_spill] sm:$0xff] %v10372_v34 }
 0x4cb   :  { %8652 = vpow2.f32 %v3993_v25  ;;  %v11888_v25 = vld [vmem:[#allocation55_spill] sm:$0xff] }
 0x4cc   :  { %8654 = vpow2.f32 %v3995_v19  ;;  %v3975_v35 = vsub.f32 %v11888_v25, %v11887_v23 }
 0x4cd   :  { %v10355_v33 = vpop.xlane.xlu0 %5229 }
 0x4ce   :  { %11876 = vst [vmem:[#allocation18_spill] sm:$0xff] %v10355_v33  ;;  %4019 = vadd.xlane.f32.xlu0 %v10353_v41  ;;  %3477 = vrot.lane.b32.xlu1 %v8345_v1, %s8978_s2  ;;  %v10369_v1 = vpop.eup %8650  ;;  %v3997_v11 = vmul.f32 1.442695, %v3975_v35  ;;  %v11891_v33 = vld [vmem:[#allocation28_spill] sm:$0xff] }
 0x4d1   :  { %v3484_v46 = vpop.permute.xlu0 %3483 }
 0x4d2   :  { %5247 = vmax.xlane.f32.xlu0 %v10359_v55  ;;  %7962 = vmatprep.subr.bf16.mxu1 %v3484_v46  ;;  %v11885_v55 = vld [vmem:[#allocation51_spill] sm:$0xff] }
 0x4d3   :  { %7963 = vmatpush3.bf16.msra.mxu1 %v3484_v46  ;;  %v3972_v46 = vsub.f32 %v11885_v55, %v11884_v14  ;;  %v11892_v55 = vld [vmem:[#allocation63_spill] sm:$0xff] }
 0x4d4   :  { %v3978_v19 = vsub.f32 %v11892_v55, %v11891_v33  ;;  %v11896_v33 = vld [vmem:[#allocation60_spill] sm:$0xff] }
 0x4d5   :  { %v3991_v49 = vmul.f32 1.442695, %v3972_v46  ;;  %v11893_v46 = vld [vmem:[#allocation96_spill] sm:$0xff] }
 0x4d6   :  { %5249 = vmax.xlane.f32.xlu0 %v10364_v27  ;;  %v11889_v27 = vld [vmem:[#allocation92_spill] sm:$0xff]  ;;  %v3980_v23 = vsub.f32 %v11894_v57, %v11893_v46  ;;  %v4003_v25 = vmul.f32 1.442695, %v3978_v19  ;;  %v5686_v46 = vld [vmem:[#allocation6 + $0x388] sm:$0xff] }
 0x4d7   :  { %v3976_v28 = vsub.f32 %v11890_v42, %v11889_v27  ;;  %8656 = vpow2.f32 %v3991_v49  ;;  %v11895_v27 = vld [vmem:[#allocation95_spill] sm:$0xff] }
 0x4d8   :  { %v10386_v14 = vpop.eup %8652  ;;  %8658 = vpow2.f32 %v3997_v11  ;;  %v3977_v49 = vsub.f32 %v11896_v33, %v11895_v27  ;;  %v4007_v55 = vmul.f32 1.442695, %v3980_v23  ;;  %v11899_v11 = vld [vmem:[#allocation67_spill] sm:$0xff]  ;;  %v11904_v23 = vld [vmem:[#allocation64_spill] sm:$0xff] }
 0x4d9   :  { %v3999_v26 = vmul.f32 1.442695, %v3976_v28  ;;  %v11898_v28 = vld [vmem:[#allocation29_spill] sm:$0xff] }
 0x4da   :  { %4021 = vadd.xlane.f32.xlu0 %v10369_v1  ;;  %v3982_v24 = vsub.f32 %v11899_v11, %v11898_v28  ;;  %v4001_v19 = vmul.f32 1.442695, %v3977_v49  ;;  %v11906_v49 = vld [vmem:[#allocation99_spill] sm:$0xff]  ;;  %v11907_v28 = vld [vmem:[#allocation65_spill] sm:$0xff] }
 0x4db   :  { %8660 = vpow2.f32 %v3999_v26  ;;  %v3979_v26 = vsub.f32 %v11902_v59, %v11901_v0  ;;  %v3984_v11 = vsub.f32 %v11907_v28, %v11906_v49 }
 0x4dc   :  { %8662 = vpow2.f32 %v4003_v25  ;;  %v4011_v13 = vmul.f32 1.442695, %v3982_v24 }
 0x4dd   :  { %8664 = vpow2.f32 %v4007_v55 }
 0x4de   :  { %5251 = vmax.xlane.f32.xlu0 %v10372_v34  ;;  %v5827_v34 = vpop.f32.mrf.mxu0  ;;  %8666 = vpow2.f32 %v4001_v19  ;;  %v5687_v19 = vld [vmem:[#allocation6 + $0x390] sm:$0xff] }
 0x4df   :  { %v10396_v35 = vadd.f32 %v5827_v34, %v5685_v61  ;;  %v5688_v61 = vld [vmem:[#allocation6 + $0x398] sm:$0xff]  ;;  %v11903_v34 = vld [vmem:[#allocation98_spill] sm:$0xff]  ;;  %8668 = vpow2.f32 %v4011_v13  ;;  %v11908_v13 = vld [vmem:[#allocation97_spill] sm:$0xff]  ;;  %v10431_v49 = vadd.f32 %v8148_v50, %v5687_v19 }
 0x4e0   :  { %v8149_v42 = vpop.f32.mrf.mxu0  ;;  %v3981_v25 = vsub.f32 %v11904_v23, %v11903_v34  ;;  %v11909_v34 = vld [vmem:[#allocation62_spill] sm:$0xff] }
 0x4e1   :  { %11897 = vst [vmem:[#allocation82_spill] sm:$0xff] %v10396_v35  ;;  %v10411_v33 = vadd.f32 %v8149_v42, %v5688_v61  ;;  %v3983_v23 = vsub.f32 %v11909_v34, %v11908_v13  ;;  %11910 = vst [vmem:[#allocation102_spill] sm:$0xff] %v10431_v49  ;;  %v11915_v50 = vld [vmem:[#allocation70_spill] sm:$0xff] }
 0x4e2   :  { %5253 = vmax.xlane.f32.xlu0 %v10377_v3  ;;  %v10391_v3 = vpop.eup %8654  ;;  %v5830_v39 = vpop.f32.mrf.mxu0  ;;  %v4009_v24 = vmul.f32 1.442695, %v3981_v25  ;;  %v11911_v25 = vld [vmem:[#allocation100_spill] sm:$0xff] }
 0x4e3   :  { %v10401_v57 = vadd.f32 %v5830_v39, %v5686_v46  ;;  %11905 = vst [vmem:[#allocation73_spill] sm:$0xff] %v10411_v33  ;;  %v4005_v39 = vmul.f32 1.442695, %v3979_v26  ;;  %v4015_v46 = vmul.f32 1.442695, %v3984_v11 }
 0x4e4   :  { %v10405_v27 = vpop.eup %8656  ;;  %v10417_v0 = vpop.f32.mrf.mxu0 }
 0x4e5   :  { %11900 = vst [vmem:[#allocation105_spill] sm:$0xff] %v10401_v57  ;;  %v10415_v59 = vpop.eup %8658  ;;  %8670 = vpow2.f32 %v4005_v39  ;;  %v11912_v39 = vld [vmem:[#allocation68_spill] sm:$0xff] }
 0x4e6   :  { %4025 = vadd.xlane.f32.xlu0 %v10386_v14  ;;  %v5843_v26 = vpop.f32.mrf.mxu0  ;;  %8672 = vpow2.f32 %v4009_v24  ;;  %v4588_v28 = vsub.f32 %v11912_v39, %v11911_v25  ;;  %v11914_v24 = vld [vmem:[#allocation26_spill] sm:$0xff]  ;;  %v5690_v25 = vld [vmem:[#allocation6 + $0x3a8] sm:$0xff] }
 0x4e7   :  { %8674 = vpow2.f32 %v4015_v46  ;;  %v4589_v19 = vsub.f32 %v11915_v50, %v11914_v24 }
 0x4e8   :  { %v10421_v55 = vpop.eup %8660  ;;  %v4604_v13 = vmul.f32 1.442695, %v4588_v28  ;;  %v11918_v28 = vld [vmem:[#allocation66_spill] sm:$0xff] }
 0x4e9   :  { %v10423_v42 = vpop.eup %8662  ;;  %v4606_v24 = vmul.f32 1.442695, %v4589_v19  ;;  %v5692_v19 = vld [vmem:[#allocation6 + $0x3b8] sm:$0xff] }
 0x4ea   :  { %4027 = vadd.xlane.f32.xlu0 %v10391_v3  ;;  %v10435_v11 = vpop.eup %8664 }
 0x4eb   :  { %v10441_v9 = vpop.eup %8666 }
 0x4ec   :  { %v10445_v46 = vpop.eup %8668 }
 0x4ee   :  { %5890 = vmax.xlane.f32.xlu0 %v10396_v35  ;;  %v4013_v35 = vmul.f32 1.442695, %v3983_v23 }
 0x4f0   :  { %8676 = vpow2.f32 %v4013_v35 }
 0x4f1   :  { %8678 = vpow2.f32 %v4604_v13  ;;  %v5689_v13 = vld [vmem:[#allocation6 + $0x3a0] sm:$0xff] }
 0x4f2   :  { %5892 = vmax.xlane.f32.xlu0 %v10401_v57  ;;  %4023 = vadd.xlane.f32.xlu1 %v10405_v27  ;;  %v10457_v50 = vpop.eup %8670  ;;  %8680 = vpow2.f32 %v4606_v24 }
 0x4f3   :  { %v10465_v56 = vpop.eup %8672 }
 0x4f6   :  { %4029 = vadd.xlane.f32.xlu0 %v10415_v59  ;;  %5896 = vmax.xlane.f32.xlu1 %v10411_v33  ;;  %v8153_v33 = vpop.f32.mrf.mxu0 }
 0x4f8   :  { %v5846_v34 = vpop.f32.mrf.mxu0 }
 0x4f9   :  { %v10425_v61 = vpop.xlane.xlu1 %3381  ;;  %v10453_v23 = vadd.f32 %v5846_v34, %v5690_v25  ;;  %v11921_v34 = vld [vmem:[#allocation101_spill] sm:$0xff] }
 0x4fa   :  { %4031 = vadd.xlane.f32.xlu0 %v10421_v55  ;;  %4035 = vadd.xlane.f32.xlu1 %v10423_v42  ;;  %v11922_v25 = vld [vmem:[#allocation69_spill] sm:$0xff] }
 0x4fb   :  { %11916 = vst [vmem:[#allocation44_spill] sm:$0xff] %v10453_v23  ;;  %v4591_v30 = vsub.f32 %v11922_v25, %v11921_v34 }
 0x4fd   :  { %v10437_v57 = vpop.xlane.xlu1 %5231 }
 0x4fe   :  { %11913 = vst [vmem:[#allocation76_spill] sm:$0xff] %v10437_v57  ;;  %5894 = vmax.xlane.f32.xlu0 %v10431_v49  ;;  %4039 = vadd.xlane.f32.xlu1 %v10435_v11  ;;  %v11917_v49 = vld [vmem:[#allocation25_spill] sm:$0xff] }
 0x4ff   :  { %v4590_v57 = vsub.f32 %v11918_v28, %v11917_v49  ;;  %v10469_v49 = vpop.eup %8674 }
 0x500   :  { %v10483_v34 = vpop.eup %8676 }
 0x501   :  { %v10447_v39 = vpop.xlane.xlu1 %3385  ;;  %v4608_v35 = vmul.f32 1.442695, %v4590_v57  ;;  %v4610_v57 = vmul.f32 1.442695, %v4591_v30  ;;  %v10485_v25 = vpop.eup %8678 }
 0x502   :  { %v10449_v5 = vpop.xlane.xlu0 %3383  ;;  %4033 = vadd.xlane.f32.xlu0 %v10441_v9  ;;  %4043 = vadd.xlane.f32.xlu1 %v10445_v46 }
 0x503   :  { %8682 = vpow2.f32 %v4608_v35 }
 0x504   :  { %8684 = vpow2.f32 %v4610_v57 }
 0x505   :  { %v10459_v62 = vpop.xlane.xlu1 %5235  ;;  %8686 = vrcp.f32 %v10275_v6 }
 0x506   :  { %11919 = vst [vmem:[#allocation108_spill] sm:$0xff] %v10459_v62  ;;  %v10461_v10 = vpop.xlane.xlu0 %5233  ;;  %4037 = vadd.xlane.f32.xlu0 %v10457_v50  ;;  %5900 = vmax.xlane.f32.xlu1 %v10453_v23  ;;  %v10475_v23 = vadd.f32 %v5843_v26, %v5689_v13  ;;  %v5691_v62 = vld [vmem:[#allocation6 + $0x3b0] sm:$0xff]  ;;  %8688 = vrcp.f32 %v10336_v44  ;;  %v8156_v44 = vpop.f32.mrf.mxu0 }
 0x507   :  { %11920 = vst [vmem:[#allocation104_spill] sm:$0xff] %v10461_v10  ;;  %v10477_v10 = vadd.f32 %v8153_v33, %v5692_v19  ;;  %v10490_v30 = vadd.f32 %v10417_v0, %v5691_v62  ;;  %v10492_v33 = vpop.eup %8680  ;;  %v8346_v13 = vld [vmem:[#allocation4 + $0x74] ss:$8 sps:$4 sm:$0xff]   ;;  %v8348_v62 = vld [vmem:[#allocation4 + $0x64] ss:$8 sps:$4 sm:$0xff]   ;;  %8690 = vrcp.f32 %v10262_v15 }
 0x508   :  { %11923 = vst [vmem:[#allocation72_spill] sm:$0xff] %v10475_v23  ;;  %v8347_v0 = vld [vmem:[#allocation4 + $0x54] ss:$8 sps:$4 sm:$0xff]   ;;  %8692 = vrcp.f32 %v10318_v22 }
 0x509   :  { %v3482_v28 = vpop.permute.xlu1 %3481  ;;  %11924 = vst [vmem:[#allocation42_spill] sm:$0xff] %v10477_v10  ;;  %11925 = vst [vmem:[#allocation79_spill] sm:$0xff] %v10490_v30 }
 0x50a   :  { %v10471_v37 = vpop.xlane.xlu0 %3387  ;;  %4041 = vadd.xlane.f32.xlu0 %v10465_v56  ;;  %4047 = vadd.xlane.f32.xlu1 %v10469_v49 }
 0x50b   :  { %7964 = vmatprep.subr.bf16.mxu1 %v3482_v28 }
 0x50c   :  { %7965 = vmatpush3.bf16.msra.mxu1 %v3482_v28  ;;  %v11927_v28 = vld [vmem:[#allocation78_spill] sm:$0xff] }
 0x50d   :  { %v4593_v57 = vsub.f32 %v11927_v28, %v10148_v8 }
 0x50e   :  { %v10479_v24 = vpop.xlane.xlu0 %5237  ;;  %5898 = vmax.xlane.f32.xlu0 %v10475_v23  ;;  %5904 = vmax.xlane.f32.xlu1 %v10477_v10  ;;  %v8349_v23 = vld [vmem:[#allocation4 + $0x74] ss:$8 sps:$4 sm:$0xff]  }
 0x510   :  { %v10496_v26 = vpop.eup %8682 }
 0x511   :  { %v10499_v35 = vpop.eup %8684 }
 0x512   :  { %v3480_v16 = vpop.permute.xlu0 %3479  ;;  %4045 = vadd.xlane.f32.xlu0 %v10483_v34  ;;  %4636 = vadd.xlane.f32.xlu1 %v10485_v25  ;;  %v8687_v22 = vpop.eup %8686 }
 0x513   :  { %7966 = vmatprep.subr.bf16.mxu1 %v3480_v16 }
 0x514   :  { %7967 = vmatpush3.bf16.msra.mxu1 %v3480_v16  ;;  %v11926_v16 = vld [vmem:[#allocation20_spill] sm:$0xff] }
 0x515   :  { %v4592_v19 = vsub.f32 %v11926_v16, %v10129_v21  ;;  %v11928_v21 = vld [vmem:[#allocation77_spill] sm:$0xff] }
 0x516   :  { %5902 = vmax.xlane.f32.xlu0 %v10490_v30  ;;  %4638 = vadd.xlane.f32.xlu1 %v10492_v33  ;;  %v4614_v30 = vmul.f32 1.442695, %v4593_v57 }
 0x51a   :  { %4640 = vadd.xlane.f32.xlu1 %v10496_v26 }
 0x51e   :  { %4642 = vadd.xlane.f32.xlu1 %v10499_v35 }
 0x52c   :  { %4762 = vrot.lane.b32.xlu0 %v8346_v13, %s8979_s14  ;;  %v4612_v13 = vmul.f32 1.442695, %v4592_v19  ;;  %v8689_v19 = vpop.eup %8688 }
 0x52d   :  { %v8691_v28 = vpop.eup %8690 }
 0x52e   :  { %8694 = vpow2.f32 %v4612_v13  ;;  %v5859_v13 = vpop.f32.mrf.mxu0 }
 0x52f   :  { %4760 = vrot.lane.b32.xlu1 %v8348_v62, %s8979_s14  ;;  %8696 = vpow2.f32 %v4614_v30 }
 0x530   :  { %4758 = vrot.lane.b32.xlu0 %v8347_v0, %s8979_s14  ;;  %v4594_v0 = vsub.f32 %v11928_v21, %v10152_v58  ;;  %8698 = vrcp.f32 %v10350_v52  ;;  %v8693_v58 = vpop.eup %8692  ;;  %v11929_v52 = vld [vmem:[#allocation84_spill] sm:$0xff]  ;;  %v3415_v21 = vmul.f32 %v8691_v28, %v10101_v4 }
 0x531   :  { %8700 = vrcp.f32 %v10449_v5  ;;  %v4595_v57 = vsub.f32 %v11929_v52, %v10162_v29  ;;  %v3416_v5 = vmul.f32 %v8687_v22, %v10133_v45 }
 0x532   :  { %8702 = vrcp.f32 %v10332_v40  ;;  %v4616_v15 = vmul.f32 1.442695, %v4594_v0 }
 0x533   :  { %8704 = vrcp.f32 %v10425_v61  ;;  %v3418_v61 = vmul.f32 %v8689_v19, %v10186_v18  ;;  %v4618_v45 = vmul.f32 1.442695, %v4595_v57  ;;  %v5693_v18 = vld [vmem:[#allocation6 + $0x3c0] sm:$0xff]  ;;  %v10537_v19 = vpop.f32.mrf.mxu0  ;;  %v5695_v57 = vld [vmem:[#allocation6 + $0x3d0] sm:$0xff] }
 0x534   :  { %8706 = vpow2.f32 %v4616_v15  ;;  %v3417_v15 = vmul.f32 %v8693_v58, %v10176_v12 }
 0x535   :  { %8708 = vrcp.f32 %v10471_v37  ;;  %v3430_v37 = vpack.c.bf16 %v3416_v5, %v3415_v21  ;;  %v5862_v5 = vpop.f32.mrf.mxu0 }
 0x536   :  { %v3431_v4 = vpack.c.bf16 %v3418_v61, %v3417_v15  ;;  %v8351_v15 = vld [vmem:[#allocation4 + $0x54] ss:$8 sps:$4 sm:$0xff]  }
 0x53a   :  { %v3390_v10 = vpop.xlane.xlu1 %3389 }
 0x53b   :  { %v10533_v29 = vpop.eup %8694 }
 0x53c   :  { %v10535_v22 = vpop.eup %8696 }
 0x53e   :  { %v10513_v62 = vpop.xlane.xlu1 %5239 }
 0x542   :  { %v3394_v8 = vpop.xlane.xlu1 %3393 }
 0x543   :  { %v3392_v6 = vpop.xlane.xlu0 %3391 }
 0x544   :  { %8710 = vrcp.f32 %v3392_v6  ;;  %v8699_v6 = vpop.eup %8698 }
 0x545   :  { %8712 = vrcp.f32 %v10447_v39  ;;  %v8350_v39 = vld [vmem:[#allocation4 + $0x64] ss:$8 sps:$4 sm:$0xff]   ;;  %v8701_v12 = vpop.eup %8700  ;;  %v3420_v61 = vmul.f32 %v8699_v6, %v10202_v31 }
 0x546   :  { %v10521_v16 = vpop.xlane.xlu1 %5243  ;;  %8714 = vrcp.f32 %v3390_v10  ;;  %v8703_v58 = vpop.eup %8702  ;;  %v10542_v10 = vadd.f32 %v5859_v13, %v5693_v18 }
 0x547   :  { %v10523_v30 = vpop.xlane.xlu0 %5241  ;;  %8716 = vpow2.f32 %v4618_v45  ;;  %v8705_v52 = vpop.eup %8704  ;;  %v3419_v13 = vmul.f32 %v8703_v58, %v10183_v54  ;;  %v10549_v45 = vadd.f32 %v8156_v44, %v5695_v57  ;;  %v8352_v54 = vld [vmem:[#allocation4 + $0x44] ss:$8 sps:$4 sm:$0xff]  }
 0x548   :  { %v10554_v31 = vpop.eup %8706 }
 0x549   :  { %11930 = vst [vmem:[#allocation45_spill] sm:$0xff] %v10549_v45  ;;  %v3432_v18 = vpack.c.bf16 %v3420_v61, %v3419_v13  ;;  %v5696_v61 = vld [vmem:[#allocation6 + $0x3d8] sm:$0xff]  ;;  %v8354_v13 = vld [vmem:[#allocation4 + $0x24] ss:$8 sps:$4 sm:$0xff]  }
 0x54a   :  { %v3478_v40 = vpop.permute.xlu1 %3477 }
 0x54b   :  { %v3396_v0 = vpop.xlane.xlu0 %3395  ;;  %7968 = vmatprep.subr.bf16.mxu1 %v3478_v40 }
 0x54c   :  { %7969 = vmatpush3.bf16.msra.mxu1 %v3478_v40  ;;  %v5694_v40 = vld [vmem:[#allocation6 + $0x3c8] sm:$0xff]  ;;  %8718 = vrcp.f32 %v3396_v0  ;;  %v3421_v0 = vmul.f32 %v8705_v52, %v10242_v36  ;;  %v8353_v52 = vld [vmem:[#allocation4 + $0x34] ss:$8 sps:$4 sm:$0xff]  }
 0x54d   :  { %8006 = vmatprep.subr.bf16.mxu1 %v8349_v23  ;;  %8720 = vrcp.f32 %v3394_v8 }
 0x54f   :  { %v10539_v28 = vpop.xlane.xlu0 %5245  ;;  %4644 = vadd.xlane.f32.xlu0 %v10533_v29  ;;  %7971 = vmatmul.mubr.bf16.vlgmr.msra.gmra.mxu1 %v3430_v37  ;;  %v10551_v37 = vadd.f32 %v5862_v5, %v5694_v40 }
 0x550   :  { %7974 = vmatprep.mubr.bf16.mxu1 %v3431_v4  ;;  %8007 = vmatpush3.bf16.msra.mxu1 %v8349_v23  ;;  %v3422_v23 = vmul.f32 %v8701_v12, %v10250_v38  ;;  %v8709_v4 = vpop.eup %8708 }
 0x551   :  { %8008 = vmatprep.subr.bf16.mxu1 %v8350_v39  ;;  %11931 = vst [vmem:[#allocation74_spill] sm:$0xff] %v10551_v37  ;;  %v8711_v8 = vpop.eup %8710  ;;  %v3424_v36 = vmul.f32 %v8709_v4, %v10264_v32  ;;  %v8355_v4 = vld [vmem:[#allocation4 + $0x14] ss:$8 sps:$4 sm:$0xff]  }
 0x552   :  { %v3433_v38 = vpack.c.bf16 %v3422_v23, %v3421_v0  ;;  %v8713_v44 = vpop.eup %8712  ;;  %v3426_v58 = vmul.f32 %v8711_v8, %v10320_v51  ;;  %v10571_v0 = vadd.f32 %v10537_v19, %v5696_v61 }
 0x553   :  { %v4018_v21 = vpop.xlane.xlu0 %4017  ;;  %5906 = vmax.xlane.f32.xlu0 %v10542_v10  ;;  %4646 = vadd.xlane.f32.xlu1 %v10535_v22  ;;  %v3423_v57 = vmul.f32 %v8713_v44, %v10248_v20 }
 0x554   :  { %8009 = vmatpush3.bf16.msra.mxu1 %v8350_v39  ;;  %8722 = vrcp.f32 %v4018_v21  ;;  %v8715_v39 = vpop.eup %8714 }
 0x555   :  { %8010 = vmatprep.subr.bf16.mxu1 %v8351_v15  ;;  %v3425_v5 = vmul.f32 %v8715_v39, %v10302_v53  ;;  %v10565_v40 = vpop.eup %8716  ;;  %v3434_v21 = vpack.c.bf16 %v3424_v36, %v3423_v57  ;;  %v11932_v57 = vld [vmem:[#allocation103_spill] sm:$0xff] }
 0x557   :  { %v4020_v6 = vpop.xlane.xlu0 %4019  ;;  %5908 = vmax.xlane.f32.xlu0 %v10551_v37  ;;  %5910 = vmax.xlane.f32.xlu1 %v10549_v45  ;;  %v3435_v32 = vpack.c.bf16 %v3426_v58, %v3425_v5  ;;  %v11999_v45 = vld [vmem:[#allocation35_spill] sm:$0xff]  ;;  %v12001_v37 = vld [vmem:[#allocation104_spill] sm:$0xff] }
 0x558   :  { %8724 = vrcp.f32 %v4020_v6  ;;  %7975 = vmatmul.mubr.bf16.gmra.mxu1 %v3432_v18 }
 0x559   :  { %7978 = vmatprep.mubr.bf16.mxu1 %v3433_v38  ;;  %8011 = vmatpush3.bf16.msra.mxu1 %v8351_v15  ;;  %v8719_v15 = vpop.eup %8718 }
 0x55a   :  { %8012 = vmatprep.subr.bf16.mxu1 %v8352_v54  ;;  %v8721_v51 = vpop.eup %8720  ;;  %v3428_v20 = vmul.f32 %v8719_v15, %v10334_v43  ;;  %v8357_v43 = vld [vmem:[#allocation4 + $0x4] ss:$8 sps:$4 sm:$0xff]  }
 0x55b   :  { %v10559_v12 = vpop.xlane.xlu0 %5247  ;;  %4648 = vadd.xlane.f32.xlu0 %v10554_v31  ;;  %v3427_v6 = vmul.f32 %v8721_v51, %v10314_v2 }
 0x55d   :  { %8013 = vmatpush3.bf16.msra.mxu1 %v8352_v54  ;;  %v3436_v8 = vpack.c.bf16 %v3428_v20, %v3427_v6  ;;  %v8356_v54 = vld [vmem:[#allocation4 + $0x44] ss:$8 sps:$4 sm:$0xff]  }
 0x55e   :  { %8014 = vmatprep.subr.bf16.mxu1 %v8353_v52 }
 0x55f   :  { %v10567_v23 = vpop.xlane.xlu0 %5249  ;;  %4650 = vadd.xlane.f32.xlu0 %v10565_v40 }
 0x560   :  { %7979 = vmatmul.mubr.bf16.gmra.mxu1 %v3434_v21  ;;  %v11933_v21 = vld [vmem:[#allocation106_spill] sm:$0xff] }
 0x561   :  { %7982 = vmatprep.mubr.bf16.mxu1 %v3435_v32  ;;  %8015 = vmatpush3.bf16.msra.mxu1 %v8353_v52  ;;  %v8723_v53 = vpop.eup %8722  ;;  %v4598_v15 = vsub.f32 %v11933_v21, %v10211_v47  ;;  %v4599_v47 = vsub.f32 %v10021_v60, %v10220_v17 }
 0x562   :  { %8016 = vmatprep.subr.bf16.mxu1 %v8354_v13  ;;  %v4065_v19 = vmul.f32 %v8723_v53, %v10348_v7  ;;  %v4596_v7 = vsub.f32 %v11932_v57, %v10196_v63  ;;  %v11934_v53 = vld [vmem:[#allocation107_spill] sm:$0xff] }
 0x563   :  { %v4022_v18 = vpop.xlane.xlu0 %4021  ;;  %5912 = vmax.xlane.f32.xlu0 %v10571_v0  ;;  %v4624_v51 = vmul.f32 1.442695, %v4598_v15 }
 0x564   :  { %v4620_v61 = vmul.f32 1.442695, %v4596_v7 }
 0x565   :  { %v8725_v38 = vpop.eup %8724  ;;  %8017 = vmatpush3.bf16.msra.mxu1 %v8354_v13 }
 0x566   :  { %8018 = vmatprep.subr.bf16.mxu1 %v8355_v4  ;;  %v4066_v44 = vmul.f32 %v8725_v38, %v10353_v41  ;;  %v8358_v41 = vld [vmem:[#allocation4 + $0x34] ss:$8 sps:$4 sm:$0xff]  }
 0x567   :  { %v10578_v39 = vpop.xlane.xlu0 %5251 }
 0x568   :  { %7983 = vmatmul.mubr.bf16.gmra.mxu1 %v3436_v8  ;;  %4756 = vrot.lane.b32.xlu1 %v8356_v54, %s8979_s14  ;;  %v4081_v36 = vpack.c.bf16 %v4066_v44, %v4065_v19 }
 0x569   :  { %8019 = vmatpush3.bf16.msra.mxu1 %v8355_v4  ;;  %v4597_v4 = vsub.f32 %v11934_v53, %v10209_v48 }
 0x56a   :  { %8020 = vmatprep.subr.bf16.mxu1 %v8357_v43  ;;  %8022 = vmatprep.mubr.bf16.mxu1 %v4081_v36 }
 0x56b   :  { %v10581_v2 = vpop.xlane.xlu0 %5253 }
 0x56d   :  { %8021 = vmatpush3.bf16.msra.mxu1 %v8357_v43  ;;  %v4626_v43 = vmul.f32 1.442695, %v4599_v47 }
 0x56f   :  { %v4026_v58 = vpop.xlane.xlu0 %4025 }
 0x573   :  { %v4028_v52 = vpop.xlane.xlu0 %4027 }
 0x574   :  { %8726 = vrcp.f32 %v4028_v52 }
 0x575   :  { %8728 = vrcp.f32 %v4022_v18  ;;  %v4622_v18 = vmul.f32 1.442695, %v4597_v4  ;;  %v10614_v4 = vpop.f32.mrf.mxu1 }
 0x576   :  { %8730 = vrcp.f32 %v4026_v58  ;;  %11935 = vst [vmem:[#allocation43_spill] sm:$0xff] %v10614_v4  ;;  %v11977_v4 = vld [vmem:[#allocation34_spill] sm:$0xff] }
 0x577   :  { %v10585_v5 = vpop.xlane.xlu0 %5890 }
 0x579   :  { %4754 = vrot.lane.b32.xlu0 %v8358_v41, %s8979_s14 }
 0x57b   :  { %v10590_v32 = vpop.xlane.xlu0 %5892  ;;  %v4024_v13 = vpop.xlane.xlu1 %4023 }
 0x57c   :  { %8732 = vrcp.f32 %v4024_v13 }
 0x57d   :  { %8734 = vpow2.f32 %v4620_v61 }
 0x57e   :  { %8736 = vpow2.f32 %v4624_v51 }
 0x57f   :  { %v4030_v20 = vpop.xlane.xlu0 %4029  ;;  %v10592_v63 = vpop.xlane.xlu1 %5896 }
 0x580   :  { %8738 = vrcp.f32 %v4030_v20 }
 0x581   :  { %v8727_v8 = vpop.eup %8726 }
 0x582   :  { %v8729_v44 = vpop.eup %8728  ;;  %v4070_v48 = vmul.f32 %v8727_v8, %v10391_v3 }
 0x583   :  { %v4032_v6 = vpop.xlane.xlu0 %4031  ;;  %v4036_v38 = vpop.xlane.xlu1 %4035  ;;  %v4067_v57 = vmul.f32 %v8729_v44, %v10369_v1 }
 0x584   :  { %8740 = vrcp.f32 %v4032_v6  ;;  %v8731_v36 = vpop.eup %8730  ;;  %v10625_v44 = vpop.f32.mrf.mxu1 }
 0x585   :  { %8742 = vpow2.f32 %v4622_v18  ;;  %v4069_v41 = vmul.f32 %v8731_v36, %v10386_v14  ;;  %11936 = vst [vmem:[#allocation85_spill] sm:$0xff] %v10625_v44 }
 0x586   :  { %8744 = vrcp.f32 %v4036_v38 }
 0x587   :  { %v10598_v54 = vpop.xlane.xlu0 %5894  ;;  %v4040_v19 = vpop.xlane.xlu1 %4039  ;;  %8746 = vpow2.f32 %v4626_v43  ;;  %v4083_v21 = vpack.c.bf16 %v4070_v48, %v4069_v41 }
 0x589   :  { %v8733_v58 = vpop.eup %8732 }
 0x58a   :  { %v10601_v52 = vpop.eup %8734  ;;  %v4068_v7 = vmul.f32 %v8733_v58, %v10405_v27 }
 0x58b   :  { %v4034_v60 = vpop.xlane.xlu0 %4033  ;;  %v4044_v17 = vpop.xlane.xlu1 %4043 }
 0x58c   :  { %4652 = vadd.xlane.f32.xlu1 %v10601_v52  ;;  %8748 = vrcp.f32 %v4034_v60  ;;  %v4082_v61 = vpack.c.bf16 %v4068_v7, %v4067_v57  ;;  %v10607_v15 = vpop.eup %8736  ;;  %v10630_v7 = vpop.f32.mrf.mxu1 }
 0x58d   :  { %8750 = vrcp.f32 %v4040_v19  ;;  %v8739_v1 = vpop.eup %8738  ;;  %11937 = vst [vmem:[#allocation48_spill] sm:$0xff] %v10630_v7 }
 0x58e   :  { %8023 = vmatmul.mubr.bf16.vlgmr.msra.gmra.mxu1 %v4082_v61  ;;  %v4071_v14 = vmul.f32 %v8739_v1, %v10415_v59  ;;  %v10636_v1 = vpop.f32.mrf.mxu1 }
 0x58f   :  { %v4038_v3 = vpop.xlane.xlu0 %4037  ;;  %v10609_v13 = vpop.xlane.xlu1 %5900  ;;  %8026 = vmatprep.mubr.bf16.mxu1 %v4083_v21  ;;  %11938 = vst [vmem:[#allocation81_spill] sm:$0xff] %v10636_v1 }
 0x590   :  { %8752 = vrcp.f32 %v4038_v3  ;;  %4656 = vadd.xlane.f32.xlu1 %v10607_v15 }
 0x591   :  { %v8741_v27 = vpop.eup %8740  ;;  %8754 = vrcp.f32 %v4044_v17 }
 0x592   :  { %v4072_v53 = vmul.f32 %v8741_v27, %v10421_v55  ;;  %v10616_v38 = vpop.eup %8742 }
 0x593   :  { %v4042_v51 = vpop.xlane.xlu0 %4041  ;;  %v4048_v20 = vpop.xlane.xlu1 %4047 }
 0x594   :  { %8756 = vrcp.f32 %v4042_v51  ;;  %v4084_v6 = vpack.c.bf16 %v4072_v53, %v4071_v14  ;;  %v8745_v8 = vpop.eup %8744  ;;  %v10643_v14 = vpop.f32.mrf.mxu1 }
 0x595   :  { %v10623_v19 = vpop.eup %8746  ;;  %v4074_v48 = vmul.f32 %v8745_v8, %v10423_v42  ;;  %8758 = vrcp.f32 %v4048_v20  ;;  %11939 = vst [vmem:[#allocation46_spill] sm:$0xff] %v10643_v14 }
 0x596   :  { %8027 = vmatmul.mubr.bf16.gmra.mxu1 %v4084_v6 }
 0x597   :  { %v10618_v47 = vpop.xlane.xlu0 %5898  ;;  %v10620_v18 = vpop.xlane.xlu1 %5904 }
 0x598   :  { %4654 = vadd.xlane.f32.xlu0 %v10616_v38 }
 0x599   :  { %v8749_v59 = vpop.eup %8748 }
 0x59a   :  { %v8751_v55 = vpop.eup %8750  ;;  %v4073_v58 = vmul.f32 %v8749_v59, %v10441_v9  ;;  %v8359_v9 = vld [vmem:[#allocation4 + $0x24] ss:$8 sps:$4 sm:$0xff]   ;;  %v10647_v59 = vpop.f32.mrf.mxu1 }
 0x59b   :  { %v4046_v43 = vpop.xlane.xlu0 %4045  ;;  %v4637_v36 = vpop.xlane.xlu1 %4636  ;;  %v4076_v41 = vmul.f32 %v8751_v55, %v10435_v11  ;;  %11940 = vst [vmem:[#allocation89_spill] sm:$0xff] %v10647_v59  ;;  %v11973_v59 = vld [vmem:[#allocation40_spill] sm:$0xff] }
 0x59c   :  { %4658 = vadd.xlane.f32.xlu0 %v10623_v19  ;;  %v4085_v60 = vpack.c.bf16 %v4074_v48, %v4073_v58  ;;  %8760 = vrcp.f32 %v4046_v43  ;;  %v10651_v48 = vpop.f32.mrf.mxu1 }
 0x59d   :  { %v8753_v57 = vpop.eup %8752  ;;  %8762 = vrcp.f32 %v4637_v36  ;;  %11941 = vst [vmem:[#allocation53_spill] sm:$0xff] %v10651_v48 }
 0x59e   :  { %v4075_v17 = vmul.f32 %v8753_v57, %v10457_v50  ;;  %8030 = vmatprep.mubr.bf16.mxu1 %v4085_v60  ;;  %v8755_v3 = vpop.eup %8754 }
 0x59f   :  { %v10634_v61 = vpop.xlane.xlu0 %5902  ;;  %v4639_v21 = vpop.xlane.xlu1 %4638  ;;  %v4078_v50 = vmul.f32 %v8755_v3, %v10445_v46 }
 0x5a0   :  { %8764 = vrcp.f32 %v4639_v21  ;;  %v4086_v42 = vpack.c.bf16 %v4076_v41, %v4075_v17  ;;  %v11942_v21 = vld [vmem:[#allocation52_spill] sm:$0xff] }
 0x5a1   :  { %4752 = vrot.lane.b32.xlu1 %v8359_v9, %s8979_s14  ;;  %v8757_v27 = vpop.eup %8756  ;;  %v11943_v9 = vld [vmem:[#allocation16_spill] sm:$0xff] }
 0x5a2   :  { %8031 = vmatmul.mubr.bf16.gmra.mxu1 %v4086_v42  ;;  %v4077_v11 = vmul.f32 %v8757_v27, %v10465_v56  ;;  %v8759_v8 = vpop.eup %8758  ;;  %v4600_v3 = vsub.f32 %v11943_v9, %v11942_v21  ;;  %v8360_v42 = vld [vmem:[#allocation4 + $0x14] ss:$8 sps:$4 sm:$0xff]   ;;  %v5697_v9 = vld [vmem:[#allocation6 + $0x3e0] sm:$0xff] }
 0x5a3   :  { %v4763_v51 = vpop.permute.xlu0 %4762  ;;  %v10639_v20 = vpop.xlane.xlu1 %4640  ;;  %v4080_v56 = vmul.f32 %v8759_v8, %v10469_v49  ;;  %v11950_v8 = vld [vmem:[#allocation33_spill] sm:$0xff] }
 0x5a4   :  { %8058 = vmatprep.subr.bf16.mxu1 %v4763_v51  ;;  %v4087_v53 = vpack.c.bf16 %v4078_v50, %v4077_v11  ;;  %v4628_v49 = vmul.f32 1.442695, %v4600_v3  ;;  %v11946_v11 = vld [vmem:[#allocation41_spill] sm:$0xff] }
 0x5a5   :  { %8059 = vmatpush3.bf16.msra.mxu1 %v4763_v51 }
 0x5a6   :  { %8034 = vmatprep.mubr.bf16.mxu1 %v4087_v53  ;;  %8766 = vpow2.f32 %v4628_v49  ;;  %v11949_v53 = vld [vmem:[#allocation15_spill] sm:$0xff] }
 0x5a7   :  { %v10645_v6 = vpop.xlane.xlu1 %4642  ;;  %v4759_v57 = vpop.permute.xlu0 %4758 }
 0x5a9   :  { %v8761_v55 = vpop.eup %8760 }
 0x5aa   :  { %v8763_v36 = vpop.eup %8762  ;;  %v4079_v58 = vmul.f32 %v8761_v55, %v10483_v34  ;;  %v10657_v34 = vpop.f32.mrf.mxu1  ;;  %v4601_v55 = vsub.f32 %v11950_v8, %v11949_v53 }
 0x5ab   :  { %v4761_v43 = vpop.permute.xlu1 %4760  ;;  %v4684_v17 = vmul.f32 %v8763_v36, %v10485_v25  ;;  %11944 = vst [vmem:[#allocation87_spill] sm:$0xff] %v10657_v34  ;;  %v11947_v25 = vld [vmem:[#allocation36_spill] sm:$0xff] }
 0x5ac   :  { %8060 = vmatprep.subr.bf16.mxu1 %v4761_v43  ;;  %v4088_v60 = vpack.c.bf16 %v4080_v56, %v4079_v58  ;;  %v10660_v51 = vpop.f32.mrf.mxu1  ;;  %v4602_v50 = vsub.f32 %v11947_v25, %v11946_v11  ;;  %v4630_v58 = vmul.f32 1.442695, %v4601_v55  ;;  %v8160_v56 = vpop.f32.mrf.mxu0  ;;  %v5699_v25 = vld [vmem:[#allocation6 + $0x3f0] sm:$0xff] }
 0x5ad   :  { %v8765_v46 = vpop.eup %8764  ;;  %8061 = vmatpush3.bf16.msra.mxu1 %v4761_v43  ;;  %11945 = vst [vmem:[#allocation50_spill] sm:$0xff] %v10660_v51  ;;  %v10689_v8 = vadd.f32 %v8160_v56, %v5699_v25 }
 0x5ae   :  { %8062 = vmatprep.subr.bf16.mxu1 %v4759_v57  ;;  %v4685_v41 = vmul.f32 %v8765_v46, %v10492_v33  ;;  %8035 = vmatmul.mubr.bf16.gmra.mxu1 %v4088_v60  ;;  %v10664_v33 = vpop.f32.mrf.mxu1  ;;  %v4632_v43 = vmul.f32 1.442695, %v4602_v50  ;;  %v11954_v60 = vld [vmem:[#allocation14_spill] sm:$0xff]  ;;  %v5875_v21 = vpop.f32.mrf.mxu0 }
 0x5af   :  { %11948 = vst [vmem:[#allocation83_spill] sm:$0xff] %v10664_v33  ;;  %11959 = vst [vmem:[#allocation56_spill] sm:$0xff] %v10689_v8 }
 0x5b0   :  { %v4700_v27 = vpack.c.bf16 %v4685_v41, %v4684_v17  ;;  %v10668_v36 = vpop.f32.mrf.mxu1  ;;  %8768 = vpow2.f32 %v4632_v43  ;;  %v8161_v50 = vpop.f32.mrf.mxu0 }
 0x5b1   :  { %8063 = vmatpush3.bf16.msra.mxu1 %v4759_v57  ;;  %11951 = vst [vmem:[#allocation49_spill] sm:$0xff] %v10668_v36  ;;  %8770 = vpow2.f32 %v4630_v58  ;;  %v11953_v57 = vld [vmem:[#allocation30_spill] sm:$0xff]  ;;  %v5698_v58 = vld [vmem:[#allocation6 + $0x3e8] sm:$0xff] }
 0x5b2   :  { %4750 = vrot.lane.b32.xlu0 %v8360_v42, %s8979_s14  ;;  %8074 = vmatprep.mubr.bf16.mxu1 %v4700_v27  ;;  %v10670_v46 = vpop.f32.mrf.mxu1  ;;  %v4603_v17 = vsub.f32 %v11954_v60, %v11953_v57  ;;  %v10679_v42 = vadd.f32 %v5875_v21, %v5697_v9  ;;  %v5878_v43 = vpop.f32.mrf.mxu0  ;;  %v5700_v9 = vld [vmem:[#allocation6 + $0x3f8] sm:$0xff]  ;;  %v8361_v36 = vld [vmem:[#allocation4 + $0x4] ss:$8 sps:$4 sm:$0xff]  }
 0x5b3   :  { %11952 = vst [vmem:[#allocation88_spill] sm:$0xff] %v10670_v46  ;;  %v10674_v41 = vpop.eup %8766  ;;  %v10697_v60 = vadd.f32 %v5878_v43, %v5698_v58  ;;  %v10709_v25 = vadd.f32 %v8161_v50, %v5700_v9 }
 0x5b4   :  { %v10676_v3 = vpop.f32.mrf.mxu1  ;;  %11956 = vst [vmem:[#allocation80_spill] sm:$0xff] %v10679_v42  ;;  %v4634_v27 = vmul.f32 1.442695, %v4603_v17 }
 0x5b5   :  { %11955 = vst [vmem:[#allocation54_spill] sm:$0xff] %v10676_v3  ;;  %11961 = vst [vmem:[#allocation59_spill] sm:$0xff] %v10697_v60 }
 0x5b6   :  { %v10681_v49 = vpop.f32.mrf.mxu1  ;;  %8772 = vpow2.f32 %v4634_v27  ;;  %11964 = vst [vmem:[#allocation91_spill] sm:$0xff] %v10709_v25 }
 0x5b7   :  { %11957 = vst [vmem:[#allocation47_spill] sm:$0xff] %v10681_v49 }
 0x5b8   :  { %v10686_v53 = vpop.f32.mrf.mxu1 }
 0x5b9   :  { %11958 = vst [vmem:[#allocation90_spill] sm:$0xff] %v10686_v53 }
 0x5ba   :  { %v10693_v57 = vpop.f32.mrf.mxu1 }
 0x5bb   :  { %11960 = vst [vmem:[#allocation94_spill] sm:$0xff] %v10693_v57 }
 0x5bc   :  { %v10699_v17 = vpop.f32.mrf.mxu1 }
 0x5bd   :  { %v10684_v11 = vpop.eup %8768  ;;  %11962 = vst [vmem:[#allocation86_spill] sm:$0xff] %v10699_v17 }
 0x5be   :  { %v10691_v55 = vpop.eup %8770  ;;  %v10702_v21 = vpop.f32.mrf.mxu1 }
 0x5bf   :  { %11963 = vst [vmem:[#allocation51_spill] sm:$0xff] %v10702_v21 }
 0x5c0   :  { %v10711_v53 = vpop.f32.mrf.mxu1 }
 0x5c1   :  { %11965 = vst [vmem:[#allocation55_spill] sm:$0xff] %v10711_v53  ;;  %v11974_v53 = vld [vmem:[#allocation27_spill] sm:$0xff] }
 0x5c2   :  { %v10718_v58 = vpop.f32.mrf.mxu1 }
 0x5c3   :  { %v10704_v56 = vpop.eup %8772  ;;  %11966 = vst [vmem:[#allocation92_spill] sm:$0xff] %v10718_v58  ;;  %v11980_v58 = vld [vmem:[#allocation17_spill] sm:$0xff] }
 0x5c4   :  { %v10725_v51 = vpop.f32.mrf.mxu1 }
 0x5c5   :  { %4660 = vadd.xlane.f32.xlu1 %v10674_v41  ;;  %11969 = vst [vmem:[#allocation63_spill] sm:$0xff] %v10725_v51  ;;  %v8362_v51 = vld [vmem:[#allocation4 + $0x74] ss:$8 sps:$4 sm:$0xff]  }
 0x5c6   :  { %v10729_v46 = vpop.f32.mrf.mxu1 }
 0x5c7   :  { %11970 = vst [vmem:[#allocation96_spill] sm:$0xff] %v10729_v46  ;;  %v11976_v46 = vld [vmem:[#allocation71_spill] sm:$0xff] }
 0x5c8   :  { %v10733_v48 = vpop.f32.mrf.mxu1  ;;  %v5257_v21 = vsub.f32 %v11977_v4, %v11976_v46 }
 0x5c9   :  { %5914 = vmax.xlane.f32.xlu1 %v10679_v42  ;;  %11971 = vst [vmem:[#allocation61_spill] sm:$0xff] %v10733_v48 }
 0x5ca   :  { %v10737_v34 = vpop.f32.mrf.mxu1  ;;  %v5275_v44 = vmul.f32 1.442695, %v5257_v21 }
 0x5cb   :  { %11972 = vst [vmem:[#allocation95_spill] sm:$0xff] %v10737_v34 }
 0x5cc   :  { %v10741_v7 = vpop.f32.mrf.mxu1 }
 0x5cd   :  { %4664 = vadd.xlane.f32.xlu1 %v10684_v11  ;;  %11975 = vst [vmem:[#allocation60_spill] sm:$0xff] %v10741_v7  ;;  %v11983_v7 = vld [vmem:[#allocation18_spill] sm:$0xff] }
 0x5ce   :  { %v10746_v48 = vpop.f32.mrf.mxu1 }
 0x5cf   :  { %11978 = vst [vmem:[#allocation29_spill] sm:$0xff] %v10746_v48 }
 0x5d0   :  { %v10748_v34 = vpop.f32.mrf.mxu1 }
 0x5d1   :  { %4662 = vadd.xlane.f32.xlu0 %v10691_v55  ;;  %5918 = vmax.xlane.f32.xlu1 %v10689_v8  ;;  %11979 = vst [vmem:[#allocation67_spill] sm:$0xff] %v10748_v34  ;;  %v11984_v8 = vld [vmem:[#allocation12_spill] sm:$0xff] }
 0x5d2   :  { %v10752_v1 = vpop.f32.mrf.mxu1 }
 0x5d3   :  { %11982 = vst [vmem:[#allocation93_spill] sm:$0xff] %v10752_v1 }
 0x5d5   :  { %5916 = vmax.xlane.f32.xlu0 %v10697_v60 }
 0x5d8   :  { %v10706_v27 = vpop.xlane.xlu0 %4644 }
 0x5d9   :  { %4666 = vadd.xlane.f32.xlu0 %v10704_v56 }
 0x5dc   :  { %v10713_v3 = vpop.xlane.xlu0 %5906  ;;  %v10715_v43 = vpop.xlane.xlu1 %4646 }
 0x5dd   :  { %5920 = vmax.xlane.f32.xlu0 %v10709_v25 }
 0x5e0   :  { %v10720_v57 = vpop.xlane.xlu0 %5908  ;;  %v10722_v49 = vpop.xlane.xlu1 %5910 }
 0x5e1   :  { %11967 = vst [vmem:[#allocation57_spill] sm:$0xff] %v10720_v57  ;;  %11968 = vst [vmem:[#allocation28_spill] sm:$0xff] %v10722_v49 }
 0x5e2   :  { %4748 = vrot.lane.b32.xlu1 %v8361_v36, %s8979_s14  ;;  %v5255_v36 = vsub.f32 %v11974_v53, %v11973_v59  ;;  %v11981_v59 = vld [vmem:[#allocation24_spill] sm:$0xff] }
 0x5e3   :  { %v5256_v53 = vsub.f32 %v11981_v59, %v11980_v58 }
 0x5e4   :  { %v10727_v50 = vpop.xlane.xlu0 %4648  ;;  %v4757_v9 = vpop.permute.xlu1 %4756 }
 0x5e5   :  { %8064 = vmatprep.subr.bf16.mxu1 %v4757_v9 }
 0x5e6   :  { %8065 = vmatpush3.bf16.msra.mxu1 %v4757_v9  ;;  %v5271_v9 = vmul.f32 1.442695, %v5255_v36  ;;  %v10756_v36 = vpop.f32.mrf.mxu1 }
 0x5e7   :  { %11985 = vst [vmem:[#allocation58_spill] sm:$0xff] %v10756_v36 }
 0x5e8   :  { %v10731_v33 = vpop.xlane.xlu0 %4650  ;;  %8774 = vpow2.f32 %v5271_v9  ;;  %v10761_v21 = vpop.f32.mrf.mxu1 }
 0x5e9   :  { %8776 = vpow2.f32 %v5275_v44  ;;  %11986 = vst [vmem:[#allocation98_spill] sm:$0xff] %v10761_v21 }
 0x5ea   :  { %v10766_v44 = vpop.f32.mrf.mxu1 }
 0x5eb   :  { %11987 = vst [vmem:[#allocation64_spill] sm:$0xff] %v10766_v44  ;;  %v8363_v44 = vld [vmem:[#allocation4 + $0x64] ss:$8 sps:$4 sm:$0xff]  }
 0x5ec   :  { %v10735_v14 = vpop.xlane.xlu0 %5912  ;;  %v10768_v58 = vpop.f32.mrf.mxu1 }
 0x5ed   :  { %11988 = vst [vmem:[#allocation99_spill] sm:$0xff] %v10768_v58 }
 0x5f0   :  { %v4755_v17 = vpop.permute.xlu0 %4754 }
 0x5f1   :  { %8066 = vmatprep.subr.bf16.mxu1 %v4755_v17 }
 0x5f2   :  { %8067 = vmatpush3.bf16.msra.mxu1 %v4755_v17  ;;  %v5273_v17 = vmul.f32 1.442695, %v5256_v53 }
 0x5f3   :  { %5429 = vrot.lane.b32.xlu0 %v8362_v51, %s8980_s15  ;;  %v5258_v51 = vsub.f32 %v11984_v8, %v11983_v7 }
 0x5f4   :  { %8778 = vpow2.f32 %v5273_v17 }
 0x5f5   :  { %v5277_v4 = vmul.f32 1.442695, %v5258_v51  ;;  %v10758_v46 = vpop.eup %8774 }
 0x5f6   :  { %v10763_v9 = vpop.eup %8776 }
 0x5f7   :  { %8780 = vpow2.f32 %v5277_v4 }
 0x601   :  { %v10770_v7 = vpop.eup %8778 }
 0x604   :  { %v10775_v59 = vpop.eup %8780 }
 0x606   :  { %5303 = vadd.xlane.f32.xlu1 %v10758_v46 }
 0x60a   :  { %5307 = vadd.xlane.f32.xlu1 %v10763_v9 }
 0x60f   :  { %v10772_v8 = vpop.f32.mrf.mxu1 }
 0x610   :  { %11989 = vst [vmem:[#allocation65_spill] sm:$0xff] %v10772_v8  ;;  %v11995_v8 = vld [vmem:[#allocation76_spill] sm:$0xff] }
 0x611   :  { %v10777_v53 = vpop.f32.mrf.mxu1 }
 0x612   :  { %5305 = vadd.xlane.f32.xlu0 %v10770_v7  ;;  %11990 = vst [vmem:[#allocation97_spill] sm:$0xff] %v10777_v53  ;;  %v11996_v53 = vld [vmem:[#allocation31_spill] sm:$0xff] }
 0x613   :  { %v10782_v51 = vpop.f32.mrf.mxu1 }
 0x614   :  { %11991 = vst [vmem:[#allocation62_spill] sm:$0xff] %v10782_v51  ;;  %v5259_v51 = vsub.f32 %v11996_v53, %v11995_v8  ;;  %v12002_v8 = vld [vmem:[#allocation21_spill] sm:$0xff] }
 0x615   :  { %v10779_v17 = vpop.xlane.xlu1 %4652  ;;  %v10787_v36 = vpop.f32.mrf.mxu1  ;;  %v5260_v53 = vsub.f32 %v12002_v8, %v12001_v37 }
 0x616   :  { %5309 = vadd.xlane.f32.xlu0 %v10775_v59  ;;  %11992 = vst [vmem:[#allocation100_spill] sm:$0xff] %v10787_v36  ;;  %v5279_v36 = vmul.f32 1.442695, %v5259_v51 }
 0x617   :  { %v5281_v57 = vmul.f32 1.442695, %v5260_v53 }
 0x618   :  { %v10789_v21 = vpop.f32.mrf.mxu1  ;;  %8782 = vpow2.f32 %v5279_v36 }
 0x619   :  { %v10784_v4 = vpop.xlane.xlu1 %4656  ;;  %11993 = vst [vmem:[#allocation68_spill] sm:$0xff] %v10789_v21 }
 0x61a   :  { %v10791_v1 = vpop.f32.mrf.mxu1 }
 0x61b   :  { %5427 = vrot.lane.b32.xlu1 %v8363_v44, %s8980_s15  ;;  %11994 = vst [vmem:[#allocation26_spill] sm:$0xff] %v10791_v1  ;;  %v8364_v44 = vld [vmem:[#allocation4 + $0x54] ss:$8 sps:$4 sm:$0xff]  }
 0x61c   :  { %v10797_v42 = vpop.f32.mrf.mxu1 }
 0x61d   :  { %v4753_v58 = vpop.permute.xlu1 %4752  ;;  %11997 = vst [vmem:[#allocation70_spill] sm:$0xff] %v10797_v42 }
 0x61e   :  { %8068 = vmatprep.subr.bf16.mxu1 %v4753_v58  ;;  %v10802_v49 = vpop.f32.mrf.mxu1 }
 0x61f   :  { %8069 = vmatpush3.bf16.msra.mxu1 %v4753_v58  ;;  %v11998_v58 = vld [vmem:[#allocation108_spill] sm:$0xff] }
 0x620   :  { %v5261_v21 = vsub.f32 %v11999_v45, %v11998_v58  ;;  %v10804_v60 = vpop.f32.mrf.mxu1 }
 0x621   :  { %v4655_v34 = vpop.xlane.xlu0 %4654  ;;  %12000 = vst [vmem:[#allocation25_spill] sm:$0xff] %v10804_v60 }
 0x622   :  { %v5283_v1 = vmul.f32 1.442695, %v5261_v21  ;;  %v10808_v42 = vpop.f32.mrf.mxu1 }
 0x623   :  { %12003 = vst [vmem:[#allocation66_spill] sm:$0xff] %v10808_v42 }
 0x624   :  { %8784 = vpow2.f32 %v5283_v1  ;;  %v10812_v51 = vpop.f32.mrf.mxu1 }
 0x625   :  { %v10793_v48 = vpop.xlane.xlu0 %4658  ;;  %12005 = vst [vmem:[#allocation101_spill] sm:$0xff] %v10812_v51  ;;  %8786 = vpow2.f32 %v5281_v57  ;;  %v10816_v36 = vpop.eup %8782 }
 0x626   :  { %v10814_v58 = vpop.f32.mrf.mxu1 }
 0x627   :  { %12006 = vst [vmem:[#allocation69_spill] sm:$0xff] %v10814_v58 }
 0x628   :  { %v10819_v21 = vpop.f32.mrf.mxu1 }
 0x629   :  { %v4751_v25 = vpop.permute.xlu0 %4750  ;;  %12007 = vst [vmem:[#allocation20_spill] sm:$0xff] %v10819_v21 }
 0x62a   :  { %8070 = vmatprep.subr.bf16.mxu1 %v4751_v25  ;;  %v10824_v1 = vpop.f32.mrf.mxu1 }
 0x62b   :  { %8071 = vmatpush3.bf16.msra.mxu1 %v4751_v25  ;;  %v12004_v25 = vld [vmem:[#allocation32_spill] sm:$0xff]  ;;  %12008 = vst [vmem:[#allocation78_spill] sm:$0xff] %v10824_v1 }
 0x62c   :  { %5425 = vrot.lane.b32.xlu0 %v8364_v44, %s8980_s15  ;;  %v5262_v44 = vsub.f32 %v12004_v25, %v10479_v24  ;;  %v10826_v24 = vpop.f32.mrf.mxu1 }
 0x62d   :  { %12009 = vst [vmem:[#allocation77_spill] sm:$0xff] %v10826_v24 }
 0x62e   :  { %v5285_v45 = vmul.f32 1.442695, %v5262_v44  ;;  %v10832_v57 = vpop.f32.mrf.mxu1 }
 0x62f   :  { %12010 = vst [vmem:[#allocation84_spill] sm:$0xff] %v10832_v57  ;;  %v8365_v57 = vld [vmem:[#allocation4 + $0x44] ss:$8 sps:$4 sm:$0xff]  }
 0x630   :  { %8788 = vpow2.f32 %v5285_v45 }
 0x631   :  { %v10821_v37 = vpop.eup %8784  ;;  %8790 = vrcp.f32 %v10645_v6 }
 0x632   :  { %v10828_v8 = vpop.eup %8786  ;;  %8792 = vrcp.f32 %v10715_v43 }
 0x633   :  { %8794 = vrcp.f32 %v10639_v20 }
 0x634   :  { %8796 = vrcp.f32 %v10706_v27 }
 0x635   :  { %8798 = vrcp.f32 %v10731_v33 }
 0x636   :  { %8800 = vrcp.f32 %v4655_v34 }
 0x637   :  { %8802 = vrcp.f32 %v10727_v50 }
 0x638   :  { %8804 = vrcp.f32 %v10779_v17 }
 0x639   :  { %8806 = vrcp.f32 %v10793_v48 }
 0x63d   :  { %v10834_v53 = vpop.eup %8788 }
 0x63f   :  { %5311 = vadd.xlane.f32.xlu1 %v10816_v36 }
 0x643   :  { %5315 = vadd.xlane.f32.xlu1 %v10821_v37 }
 0x64b   :  { %5313 = vadd.xlane.f32.xlu0 %v10828_v8 }
 0x64e   :  { %v4661_v25 = vpop.xlane.xlu1 %4660  ;;  %v8024_v44 = vpop.f32.mrf.mxu1 }
 0x64f   :  { %5317 = vadd.xlane.f32.xlu0 %v10834_v53  ;;  %v7295_v45 = vpack.c.bf16 %v8024_v44, %v8024_v44 }
 0x650   :  { %v4171_v24 = vpop.f32.mrf.mxu1 }
 0x651   :  { %4300 = vst.msk [vmem:[#allocation5 + $0x14] sm:$0xf] %vm1690_vm1, %v7295_v45  ;;  %v7293_v21 = vpack.c.bf16 %v4171_v24, %v4171_v24 }
 0x652   :  { %v10841_v6 = vpop.xlane.xlu1 %5914  ;;  %v8025_v1 = vpop.f32.mrf.mxu1 }
 0x653   :  { %4298 = vst.msk [vmem:[#allocation5 + $0x4] sm:$0xf] %vm1690_vm1, %v7293_v21  ;;  %v7296_v43 = vpack.c.bf16 %v8025_v1, %v8025_v1  ;;  %v8791_v1 = vpop.eup %8790 }
 0x654   :  { %5423 = vrot.lane.b32.xlu1 %v8365_v57, %s8980_s15  ;;  %v4174_v20 = vpop.f32.mrf.mxu1  ;;  %v8793_v34 = vpop.eup %8792  ;;  %v4687_v17 = vmul.f32 %v8791_v1, %v10499_v35 }
 0x655   :  { %4301 = vst.msk [vmem:[#allocation5 + $0x1c] sm:$0xf] %vm1690_vm1, %v7296_v43  ;;  %v7294_v27 = vpack.c.bf16 %v4174_v20, %v4174_v20  ;;  %v8795_v20 = vpop.eup %8794  ;;  %v4689_v58 = vmul.f32 %v8793_v34, %v10535_v22 }
 0x656   :  { %v4665_v44 = vpop.xlane.xlu1 %4664  ;;  %v8028_v24 = vpop.f32.mrf.mxu1  ;;  %v4686_v42 = vmul.f32 %v8795_v20, %v10496_v26  ;;  %v8366_v26 = vld [vmem:[#allocation4 + $0x34] ss:$8 sps:$4 sm:$0xff]  }
 0x657   :  { %4299 = vst.msk [vmem:[#allocation5 + $0xc] sm:$0xf] %vm1690_vm1, %v7294_v27  ;;  %v7299_v45 = vpack.c.bf16 %v8028_v24, %v8028_v24  ;;  %v8797_v60 = vpop.eup %8796 }
 0x658   :  { %v4187_v21 = vpop.f32.mrf.mxu1  ;;  %v4688_v35 = vmul.f32 %v8797_v60, %v10533_v29  ;;  %v4701_v48 = vpack.c.bf16 %v4687_v17, %v4686_v42  ;;  %v8799_v1 = vpop.eup %8798  ;;  %v12012_v60 = vld [vmem:[#allocation39_spill] sm:$0xff] }
 0x659   :  { %4304 = vst.msk [vmem:[#allocation5 + $0x34] sm:$0xf] %vm1690_vm1, %v7299_v45  ;;  %v7297_v57 = vpack.c.bf16 %v4187_v21, %v4187_v21  ;;  %v8801_v22 = vpop.eup %8800  ;;  %v4691_v42 = vmul.f32 %v8799_v1, %v10565_v40 }
 0x65a   :  { %v4663_v33 = vpop.xlane.xlu0 %4662  ;;  %v10851_v51 = vpop.xlane.xlu1 %5918 }
 0x65b   :  { %v8029_v43 = vpop.f32.mrf.mxu1  ;;  %4302 = vst.msk [vmem:[#allocation5 + $0x24] sm:$0xf] %vm1690_vm1, %v7297_v57  ;;  %8808 = vrcp.f32 %v4663_v33  ;;  %v12011_v57 = vld [vmem:[#allocation13_spill] sm:$0xff] }
 0x65c   :  { %v7300_v50 = vpack.c.bf16 %v8029_v43, %v8029_v43  ;;  %8810 = vrcp.f32 %v10784_v4  ;;  %v5263_v33 = vsub.f32 %v12011_v57, %v10513_v62  ;;  %v8803_v4 = vpop.eup %8802 }
 0x65d   :  { %v4190_v27 = vpop.f32.mrf.mxu1  ;;  %8812 = vrcp.f32 %v4661_v25  ;;  %v8805_v25 = vpop.eup %8804 }
 0x65e   :  { %4305 = vst.msk [vmem:[#allocation5 + $0x3c] sm:$0xf] %vm1690_vm1, %v7300_v50  ;;  %v7298_v24 = vpack.c.bf16 %v4190_v27, %v4190_v27  ;;  %v10857_v45 = vpop.xlane.xlu0 %5916  ;;  %v4749_v21 = vpop.permute.xlu1 %4748  ;;  %v4702_v27 = vpack.c.bf16 %v4689_v58, %v4688_v35  ;;  %v5287_v62 = vmul.f32 1.442695, %v5263_v33  ;;  %v5265_v58 = vsub.f32 %v12012_v60, %v10521_v16 }
 0x65f   :  { %8072 = vmatprep.subr.bf16.mxu1 %v4749_v21  ;;  %v8807_v33 = vpop.eup %8806 }
 0x660   :  { %4303 = vst.msk [vmem:[#allocation5 + $0x2c] sm:$0xf] %vm1690_vm1, %v7298_v24  ;;  %8073 = vmatpush3.bf16.msra.mxu1 %v4749_v21  ;;  %v4693_v21 = vmul.f32 %v8801_v22, %v10616_v38  ;;  %v5291_v16 = vmul.f32 1.442695, %v5265_v58  ;;  %v12014_v58 = vld [vmem:[#allocation38_spill] sm:$0xff] }
 0x662   :  { %v4667_v43 = vpop.xlane.xlu0 %4666  ;;  %v8032_v50 = vpop.f32.mrf.mxu1 }
 0x663   :  { %v7303_v34 = vpack.c.bf16 %v8032_v50, %v8032_v50  ;;  %8075 = vmatmul.mubr.bf16.vlgmr.msra.gmra.mxu1 %v4701_v48  ;;  %8814 = vrcp.f32 %v4667_v43  ;;  %v4690_v48 = vmul.f32 %v8803_v4, %v10554_v31  ;;  %v4692_v43 = vmul.f32 %v8805_v25, %v10601_v52 }
 0x664   :  { %v4203_v20 = vpop.f32.mrf.mxu1  ;;  %8078 = vmatprep.mubr.bf16.mxu1 %v4702_v27  ;;  %8816 = vrcp.f32 %v4665_v44  ;;  %v4695_v52 = vmul.f32 %v8807_v33, %v10623_v19  ;;  %v12013_v44 = vld [vmem:[#allocation37_spill] sm:$0xff] }
 0x665   :  { %4308 = vst.msk [vmem:[#allocation5 + $0x54] sm:$0xf] %vm1690_vm1, %v7303_v34  ;;  %v7301_v29 = vpack.c.bf16 %v4203_v20, %v4203_v20  ;;  %5421 = vrot.lane.b32.xlu0 %v8366_v26, %s8980_s15  ;;  %v4703_v1 = vpack.c.bf16 %v4691_v42, %v4690_v48  ;;  %8818 = vpow2.f32 %v5287_v62  ;;  %v4704_v27 = vpack.c.bf16 %v4693_v21, %v4692_v43 }
 0x666   :  { %v10871_v17 = vpop.xlane.xlu0 %5920  ;;  %v8033_v24 = vpop.f32.mrf.mxu1  ;;  %v5264_v22 = vsub.f32 %v12013_v44, %v10523_v30  ;;  %8820 = vpow2.f32 %v5291_v16  ;;  %v8368_v44 = vld [vmem:[#allocation4 + $0x14] ss:$8 sps:$4 sm:$0xff]  }
 0x667   :  { %4306 = vst.msk [vmem:[#allocation5 + $0x44] sm:$0xf] %vm1690_vm1, %v7301_v29  ;;  %v7304_v35 = vpack.c.bf16 %v8033_v24, %v8033_v24  ;;  %v5266_v24 = vsub.f32 %v12014_v58, %v10539_v28 }
 0x668   :  { %v4206_v57 = vpop.f32.mrf.mxu1  ;;  %v8809_v34 = vpop.eup %8808  ;;  %v5289_v60 = vmul.f32 1.442695, %v5264_v22 }
 0x669   :  { %4309 = vst.msk [vmem:[#allocation5 + $0x5c] sm:$0xf] %vm1690_vm1, %v7304_v35  ;;  %v7302_v40 = vpack.c.bf16 %v4206_v57, %v4206_v57  ;;  %v8811_v38 = vpop.eup %8810  ;;  %v4697_v26 = vmul.f32 %v8809_v34, %v10691_v55  ;;  %v5293_v48 = vmul.f32 1.442695, %v5266_v24 }
 0x66a   :  { %v5430_v50 = vpop.permute.xlu0 %5429  ;;  %v8813_v31 = vpop.eup %8812  ;;  %v4694_v4 = vmul.f32 %v8811_v38, %v10607_v15  ;;  %8822 = vpow2.f32 %v5289_v60  ;;  %v12015_v38 = vld [vmem:[#allocation19_spill] sm:$0xff] }
 0x66b   :  { %4307 = vst.msk [vmem:[#allocation5 + $0x4c] sm:$0xf] %vm1690_vm1, %v7302_v40  ;;  %8110 = vmatprep.subr.bf16.mxu1 %v5430_v50  ;;  %8079 = vmatmul.mubr.bf16.gmra.mxu1 %v4703_v1  ;;  %v4696_v25 = vmul.f32 %v8813_v31, %v10674_v41  ;;  %8824 = vpow2.f32 %v5293_v48  ;;  %v5267_v31 = vsub.f32 %v12015_v38, %v10559_v12 }
 0x66c   :  { %8111 = vmatpush3.bf16.msra.mxu1 %v5430_v50  ;;  %8082 = vmatprep.mubr.bf16.mxu1 %v4704_v27  ;;  %v4705_v42 = vpack.c.bf16 %v4695_v52, %v4694_v4 }
 0x66d   :  { %v4706_v19 = vpack.c.bf16 %v4697_v26, %v4696_v25  ;;  %v5295_v22 = vmul.f32 1.442695, %v5267_v31  ;;  %v12016_v26 = vld [vmem:[#allocation22_spill] sm:$0xff] }
 0x66e   :  { %v8036_v20 = vpop.f32.mrf.mxu1  ;;  %v5269_v4 = vsub.f32 %v12016_v26, %v10578_v39  ;;  %v12018_v39 = vld [vmem:[#allocation23_spill] sm:$0xff] }
 0x66f   :  { %v7307_v29 = vpack.c.bf16 %v8036_v20, %v8036_v20 }
 0x670   :  { %v8815_v62 = vpop.eup %8814  ;;  %v4219_v21 = vpop.f32.mrf.mxu1  ;;  %v5299_v25 = vmul.f32 1.442695, %v5269_v4 }
 0x671   :  { %4312 = vst.msk [vmem:[#allocation5 + $0x74] sm:$0xf] %vm1690_vm1, %v7307_v29  ;;  %v7305_v30 = vpack.c.bf16 %v4219_v21, %v4219_v21  ;;  %v8817_v35 = vpop.eup %8816  ;;  %v4699_v41 = vmul.f32 %v8815_v62, %v10704_v56  ;;  %v12017_v62 = vld [vmem:[#allocation75_spill] sm:$0xff] }
 0x672   :  { %v8037_v55 = vpop.f32.mrf.mxu1  ;;  %v10890_v43 = vpop.eup %8818  ;;  %v4698_v40 = vmul.f32 %v8817_v35, %v10684_v11  ;;  %v8367_v11 = vld [vmem:[#allocation4 + $0x24] ss:$8 sps:$4 sm:$0xff]   ;;  %v5268_v12 = vsub.f32 %v12017_v62, %v10567_v23 }
 0x673   :  { %8083 = vmatmul.mubr.bf16.gmra.mxu1 %v4705_v42  ;;  %4310 = vst.msk [vmem:[#allocation5 + $0x64] sm:$0xf] %vm1690_vm1, %v7305_v30  ;;  %v7308_v15 = vpack.c.bf16 %v8037_v55, %v8037_v55  ;;  %v10896_v33 = vpop.eup %8820 }
 0x674   :  { %8086 = vmatprep.mubr.bf16.mxu1 %v4706_v19  ;;  %v4222_v57 = vpop.f32.mrf.mxu1  ;;  %v4707_v1 = vpack.c.bf16 %v4699_v41, %v4698_v40  ;;  %v5297_v21 = vmul.f32 1.442695, %v5268_v12  ;;  %v5270_v19 = vsub.f32 %v12018_v39, %v10581_v2  ;;  %v8369_v2 = vld [vmem:[#allocation4 + $0x4] ss:$8 sps:$4 sm:$0xff]   ;;  %v8374_v39 = vld [vmem:[#allocation4 + $0x54] ss:$8 sps:$4 sm:$0xff]  }
 0x675   :  { %4313 = vst.msk [vmem:[#allocation5 + $0x7c] sm:$0xf] %vm1690_vm1, %v7308_v15  ;;  %v7306_v28 = vpack.c.bf16 %v4222_v57, %v4222_v57  ;;  %v12019_v57 = vld [vmem:[#allocation82_spill] sm:$0xff]  ;;  %v8372_v12 = vld [vmem:[#allocation4 + $0x44] ss:$8 sps:$4 sm:$0xff]  }
 0x676   :  { %v5301_v35 = vmul.f32 1.442695, %v5270_v19 }
 0x677   :  { %4311 = vst.msk [vmem:[#allocation5 + $0x6c] sm:$0xf] %vm1690_vm1, %v7306_v28  ;;  %v10899_v56 = vpop.eup %8822  ;;  %v5922_v28 = vsub.f32 %v12019_v57, %v10585_v5  ;;  %v12022_v5 = vld [vmem:[#allocation73_spill] sm:$0xff] }
 0x678   :  { %5319 = vadd.xlane.f32.xlu1 %v10890_v43  ;;  %v10902_v16 = vpop.eup %8824  ;;  %v5925_v4 = vsub.f32 %v12022_v5, %v10592_v63  ;;  %v8371_v63 = vld [vmem:[#allocation4 + $0x64] ss:$8 sps:$4 sm:$0xff]  }
 0x67b   :  { %8087 = vmatmul.mubr.bf16.gmra.mxu1 %v4707_v1  ;;  %v8370_v1 = vld [vmem:[#allocation4 + $0x74] ss:$8 sps:$4 sm:$0xff]  }
 0x67c   :  { %5323 = vadd.xlane.f32.xlu1 %v10896_v33 }
 0x684   :  { %5321 = vadd.xlane.f32.xlu0 %v10899_v56 }
 0x688   :  { %5325 = vadd.xlane.f32.xlu0 %v10902_v16 }
 0x68d   :  { %5419 = vrot.lane.b32.xlu1 %v8367_v11, %s8980_s15  ;;  %v5938_v11 = vmul.f32 1.442695, %v5922_v28 }
 0x68f   :  { %v5304_v50 = vpop.xlane.xlu1 %5303 }
 0x690   :  { %8826 = vrcp.f32 %v5304_v50  ;;  %v12020_v50 = vld [vmem:[#allocation102_spill] sm:$0xff] }
 0x693   :  { %v10906_v27 = vpop.xlane.xlu1 %5307 }
 0x697   :  { %v5428_v34 = vpop.permute.xlu1 %5427 }
 0x698   :  { %8112 = vmatprep.subr.bf16.mxu1 %v5428_v34 }
 0x699   :  { %8113 = vmatpush3.bf16.msra.mxu1 %v5428_v34  ;;  %v5924_v34 = vsub.f32 %v12020_v50, %v10598_v54 }
 0x69b   :  { %v5306_v52 = vpop.xlane.xlu0 %5305  ;;  %v5942_v31 = vmul.f32 1.442695, %v5924_v34  ;;  %v12026_v34 = vld [vmem:[#allocation42_spill] sm:$0xff] }
 0x69c   :  { %8828 = vrcp.f32 %v5306_v52 }
 0x69d   :  { %8830 = vpow2.f32 %v5295_v22  ;;  %v8827_v42 = vpop.eup %8826 }
 0x69e   :  { %5417 = vrot.lane.b32.xlu0 %v8368_v44, %s8980_s15  ;;  %8832 = vpow2.f32 %v5299_v25  ;;  %v5351_v58 = vmul.f32 %v8827_v42, %v10758_v46  ;;  %v12021_v44 = vld [vmem:[#allocation105_spill] sm:$0xff]  ;;  %v5944_v25 = vmul.f32 1.442695, %v5925_v4 }
 0x69f   :  { %v10913_v20 = vpop.xlane.xlu0 %5309  ;;  %8834 = vpow2.f32 %v5297_v21  ;;  %v5923_v22 = vsub.f32 %v12021_v44, %v10590_v32 }
 0x6a0   :  { %8836 = vpow2.f32 %v5301_v35 }
 0x6a1   :  { %8838 = vpow2.f32 %v5938_v11  ;;  %v5940_v26 = vmul.f32 1.442695, %v5923_v22  ;;  %v12025_v11 = vld [vmem:[#allocation79_spill] sm:$0xff] }
 0x6a2   :  { %8840 = vpow2.f32 %v5942_v31  ;;  %v5928_v50 = vsub.f32 %v12025_v11, %v10634_v61  ;;  %v5929_v31 = vsub.f32 %v12026_v34, %v10620_v18 }
 0x6a3   :  { %v5426_v29 = vpop.permute.xlu0 %5425  ;;  %8842 = vpow2.f32 %v5940_v26  ;;  %v8375_v26 = vld [vmem:[#allocation4 + $0x24] ss:$8 sps:$4 sm:$0xff]  }
 0x6a4   :  { %8114 = vmatprep.subr.bf16.mxu1 %v5426_v29  ;;  %8844 = vpow2.f32 %v5944_v25  ;;  %v5952_v44 = vmul.f32 1.442695, %v5929_v31  ;;  %v12027_v31 = vld [vmem:[#allocation57_spill] sm:$0xff] }
 0x6a5   :  { %8115 = vmatpush3.bf16.msra.mxu1 %v5426_v29 }
 0x6a9   :  { %v8829_v60 = vpop.eup %8828 }
 0x6aa   :  { %v5352_v24 = vmul.f32 %v8829_v60, %v10770_v7  ;;  %v10921_v55 = vpop.eup %8830 }
 0x6ab   :  { %v10924_v23 = vpop.eup %8832 }
 0x6ac   :  { %v5367_v30 = vpack.c.bf16 %v5352_v24, %v5351_v58  ;;  %v10927_v46 = vpop.eup %8834  ;;  %v8373_v58 = vld [vmem:[#allocation4 + $0x34] ss:$8 sps:$4 sm:$0xff]  }
 0x6ad   :  { %v10930_v7 = vpop.eup %8836 }
 0x6ae   :  { %8126 = vmatprep.mubr.bf16.mxu1 %v5367_v30  ;;  %v10947_v29 = vpop.eup %8838  ;;  %v12023_v30 = vld [vmem:[#allocation72_spill] sm:$0xff] }
 0x6af   :  { %v10950_v54 = vpop.eup %8840  ;;  %v5926_v35 = vsub.f32 %v12023_v30, %v10618_v47  ;;  %v8377_v30 = vld [vmem:[#allocation4 + $0x14] ss:$8 sps:$4 sm:$0xff]  }
 0x6b0   :  { %v10953_v42 = vpop.eup %8842 }
 0x6b1   :  { %5327 = vadd.xlane.f32.xlu1 %v10921_v55  ;;  %v10956_v32 = vpop.eup %8844  ;;  %v5946_v28 = vmul.f32 1.442695, %v5926_v35 }
 0x6b3   :  { %8846 = vpow2.f32 %v5946_v28 }
 0x6b5   :  { %5331 = vadd.xlane.f32.xlu1 %v10924_v23 }
 0x6bd   :  { %5329 = vadd.xlane.f32.xlu0 %v10927_v46 }
 0x6c0   :  { %v10971_v47 = vpop.eup %8846 }
 0x6c1   :  { %5333 = vadd.xlane.f32.xlu0 %v10930_v7 }
 0x6c6   :  { %5415 = vrot.lane.b32.xlu1 %v8369_v2, %s8980_s15 }
 0x6c8   :  { %v10934_v15 = vpop.xlane.xlu1 %5311 }
 0x6cc   :  { %v10936_v41 = vpop.xlane.xlu1 %5315 }
 0x6d0   :  { %v5424_v48 = vpop.permute.xlu1 %5423 }
 0x6d1   :  { %8116 = vmatprep.subr.bf16.mxu1 %v5424_v48 }
 0x6d2   :  { %8117 = vmatpush3.bf16.msra.mxu1 %v5424_v48  ;;  %v12024_v48 = vld [vmem:[#allocation44_spill] sm:$0xff] }
 0x6d3   :  { %v5927_v57 = vsub.f32 %v12024_v48, %v10609_v13 }
 0x6d4   :  { %v5314_v40 = vpop.xlane.xlu0 %5313 }
 0x6d7   :  { %6096 = vrot.lane.b32.xlu0 %v8370_v1, %s8978_s2  ;;  %v5948_v1 = vmul.f32 1.442695, %v5927_v57  ;;  %v5930_v57 = vsub.f32 %v10542_v10, %v10713_v3 }
 0x6d8   :  { %v5318_v38 = vpop.xlane.xlu0 %5317 }
 0x6d9   :  { %8848 = vpow2.f32 %v5948_v1 }
 0x6dc   :  { %v5422_v52 = vpop.permute.xlu0 %5421 }
 0x6dd   :  { %8118 = vmatprep.subr.bf16.mxu1 %v5422_v52 }
 0x6de   :  { %8119 = vmatpush3.bf16.msra.mxu1 %v5422_v52  ;;  %v5950_v52 = vmul.f32 1.442695, %v5928_v50 }
 0x6e0   :  { %8850 = vpow2.f32 %v5950_v52  ;;  %v12028_v52 = vld [vmem:[#allocation74_spill] sm:$0xff] }
 0x6e1   :  { %8852 = vpow2.f32 %v5952_v44  ;;  %v5931_v10 = vsub.f32 %v12028_v52, %v12027_v31  ;;  %v12037_v52 = vld [vmem:[#allocation85_spill] sm:$0xff] }
 0x6e2   :  { %8854 = vrcp.f32 %v10913_v20 }
 0x6e3   :  { %8856 = vrcp.f32 %v5314_v40 }
 0x6e4   :  { %8858 = vrcp.f32 %v10906_v27  ;;  %v8376_v27 = vld [vmem:[#allocation4 + $0x4] ss:$8 sps:$4 sm:$0xff]  }
 0x6e5   :  { %8860 = vrcp.f32 %v10934_v15 }
 0x6e6   :  { %v10974_v22 = vpop.eup %8848  ;;  %8862 = vrcp.f32 %v5318_v38 }
 0x6ea   :  { %5970 = vadd.xlane.f32.xlu1 %v10947_v29 }
 0x6ed   :  { %v10978_v13 = vpop.eup %8850 }
 0x6ee   :  { %5974 = vadd.xlane.f32.xlu1 %v10950_v54  ;;  %v10983_v18 = vpop.eup %8852 }
 0x6ef   :  { %v8855_v20 = vpop.eup %8854 }
 0x6f0   :  { %v8857_v5 = vpop.eup %8856  ;;  %v5354_v25 = vmul.f32 %v8855_v20, %v10775_v59 }
 0x6f1   :  { %v8859_v4 = vpop.eup %8858 }
 0x6f2   :  { %v8861_v15 = vpop.eup %8860 }
 0x6f6   :  { %5972 = vadd.xlane.f32.xlu0 %v10953_v42 }
 0x6fa   :  { %5976 = vadd.xlane.f32.xlu0 %v10956_v32 }
 0x6ff   :  { %6094 = vrot.lane.b32.xlu1 %v8371_v63, %s8978_s2  ;;  %v5356_v63 = vmul.f32 %v8857_v5, %v10828_v8  ;;  %v12031_v5 = vld [vmem:[#allocation45_spill] sm:$0xff] }
 0x701   :  { %v5320_v62 = vpop.xlane.xlu1 %5319 }
 0x703   :  { %6090 = vrot.lane.b32.xlu1 %v8372_v12, %s8978_s2  ;;  %v5353_v12 = vmul.f32 %v8859_v4, %v10763_v9 }
 0x705   :  { %v5324_v60 = vpop.xlane.xlu1 %5323 }
 0x707   :  { %6088 = vrot.lane.b32.xlu1 %v8373_v58, %s8978_s2  ;;  %v8863_v58 = vpop.eup %8862 }
 0x708   :  { %v5358_v8 = vmul.f32 %v8863_v58, %v10834_v53 }
 0x709   :  { %v5420_v24 = vpop.permute.xlu1 %5419 }
 0x70a   :  { %8120 = vmatprep.subr.bf16.mxu1 %v5420_v24 }
 0x70b   :  { %8121 = vmatpush3.bf16.msra.mxu1 %v5420_v24 }
 0x70d   :  { %v5322_v21 = vpop.xlane.xlu0 %5321 }
 0x70e   :  { %8864 = vrcp.f32 %v5322_v21 }
 0x70f   :  { %8866 = vrcp.f32 %v10936_v41  ;;  %v5355_v41 = vmul.f32 %v8861_v15, %v10816_v36 }
 0x710   :  { %6092 = vrot.lane.b32.xlu0 %v8374_v39, %s8978_s2  ;;  %8868 = vrcp.f32 %v5320_v62  ;;  %v5368_v62 = vpack.c.bf16 %v5354_v25, %v5353_v12  ;;  %v12033_v12 = vld [vmem:[#allocation80_spill] sm:$0xff] }
 0x711   :  { %v5326_v19 = vpop.xlane.xlu0 %5325  ;;  %v5369_v21 = vpack.c.bf16 %v5356_v63, %v5355_v41  ;;  %v5934_v41 = vsub.f32 %v12033_v12, %v10841_v6 }
 0x712   :  { %8870 = vrcp.f32 %v5326_v19 }
 0x713   :  { %8872 = vrcp.f32 %v5324_v60  ;;  %v5962_v58 = vmul.f32 1.442695, %v5934_v41 }
 0x715   :  { %v5418_v2 = vpop.permute.xlu0 %5417 }
 0x716   :  { %8122 = vmatprep.subr.bf16.mxu1 %v5418_v2 }
 0x717   :  { %8123 = vmatpush3.bf16.msra.mxu1 %v5418_v2 }
 0x71b   :  { %v8865_v39 = vpop.eup %8864 }
 0x71c   :  { %v8867_v59 = vpop.eup %8866  ;;  %v5360_v60 = vmul.f32 %v8865_v39, %v10899_v56 }
 0x71d   :  { %v8869_v19 = vpop.eup %8868  ;;  %v5357_v36 = vmul.f32 %v8867_v59, %v10821_v37  ;;  %v5954_v37 = vmul.f32 1.442695, %v5930_v57 }
 0x71e   :  { %v5359_v35 = vmul.f32 %v8869_v19, %v10890_v43  ;;  %v5933_v43 = vsub.f32 %v10571_v0, %v10735_v14  ;;  %v5956_v14 = vmul.f32 1.442695, %v5931_v10  ;;  %v7245_v10 = vpack.c.bf16 %v12037_v52, %v12037_v52 }
 0x71f   :  { %v5370_v2 = vpack.c.bf16 %v5358_v8, %v5357_v36  ;;  %v8871_v48 = vpop.eup %8870 }
 0x720   :  { %v5371_v1 = vpack.c.bf16 %v5360_v60, %v5359_v35  ;;  %v8873_v53 = vpop.eup %8872  ;;  %v5362_v56 = vmul.f32 %v8871_v48, %v10902_v16  ;;  %v12029_v16 = vld [vmem:[#allocation59_spill] sm:$0xff] }
 0x721   :  { %v5361_v50 = vmul.f32 %v8873_v53, %v10896_v33  ;;  %v5935_v20 = vsub.f32 %v12029_v16, %v10857_v45  ;;  %v12030_v33 = vld [vmem:[#allocation28_spill] sm:$0xff]  ;;  %v12038_v16 = vld [vmem:[#allocation51_spill] sm:$0xff] }
 0x722   :  { %v5932_v4 = vsub.f32 %v12031_v5, %v12030_v33 }
 0x723   :  { %v5372_v3 = vpack.c.bf16 %v5362_v56, %v5361_v50 }
 0x724   :  { %v5958_v45 = vmul.f32 1.442695, %v5932_v4 }
 0x72b   :  { %5978 = vadd.xlane.f32.xlu1 %v10971_v47 }
 0x72f   :  { %5980 = vadd.xlane.f32.xlu0 %v10974_v22 }
 0x733   :  { %5982 = vadd.xlane.f32.xlu0 %v10978_v13 }
 0x737   :  { %5984 = vadd.xlane.f32.xlu0 %v10983_v18 }
 0x73a   :  { %v5328_v61 = vpop.xlane.xlu1 %5327 }
 0x73b   :  { %8874 = vrcp.f32 %v5328_v61 }
 0x73c   :  { %6086 = vrot.lane.b32.xlu1 %v8375_v26, %s8978_s2  ;;  %v5960_v26 = vmul.f32 1.442695, %v5933_v43 }
 0x73e   :  { %v5332_v40 = vpop.xlane.xlu1 %5331 }
 0x740   :  { %6082 = vrot.lane.b32.xlu1 %v8376_v27, %s8978_s2 }
 0x742   :  { %v5416_v38 = vpop.permute.xlu1 %5415 }
 0x743   :  { %8124 = vmatprep.subr.bf16.mxu1 %v5416_v38 }
 0x744   :  { %8125 = vmatpush3.bf16.msra.mxu1 %v5416_v38 }
 0x746   :  { %v5330_v24 = vpop.xlane.xlu0 %5329 }
 0x747   :  { %8876 = vrcp.f32 %v5330_v24  ;;  %8127 = vmatmul.mubr.bf16.vlgmr.msra.gmra.mxu1 %v5368_v62 }
 0x748   :  { %8130 = vmatprep.mubr.bf16.mxu1 %v5369_v21  ;;  %8878 = vrcp.f32 %v5332_v40  ;;  %v8875_v11 = vpop.eup %8874 }
 0x749   :  { %v5363_v44 = vmul.f32 %v8875_v11, %v10921_v55  ;;  %v5964_v55 = vmul.f32 1.442695, %v5935_v20  ;;  %v7261_v20 = vpack.c.bf16 %v12038_v16, %v12038_v16 }
 0x74a   :  { %v5334_v9 = vpop.xlane.xlu0 %5333 }
 0x74b   :  { %8880 = vrcp.f32 %v5334_v9 }
 0x74c   :  { %8882 = vpow2.f32 %v5954_v37 }
 0x74d   :  { %6084 = vrot.lane.b32.xlu0 %v8377_v30, %s8978_s2  ;;  %8884 = vpow2.f32 %v5960_v26  ;;  %v11043_v30 = vpop.f32.mrf.mxu1 }
 0x74e   :  { %v6097_v28 = vpop.permute.xlu0 %6096  ;;  %8886 = vpow2.f32 %v5956_v14 }
 0x74f   :  { %8162 = vmatprep.subr.bf16.mxu1 %v6097_v28  ;;  %8131 = vmatmul.mubr.bf16.gmra.mxu1 %v5370_v2  ;;  %8888 = vpow2.f32 %v5964_v55  ;;  %v4806_v35 = vpop.f32.mrf.mxu1  ;;  %v12035_v2 = vld [vmem:[#allocation81_spill] sm:$0xff] }
 0x750   :  { %8163 = vmatpush3.bf16.msra.mxu1 %v6097_v28  ;;  %8134 = vmatprep.mubr.bf16.mxu1 %v5371_v1  ;;  %8890 = vpow2.f32 %v5958_v45  ;;  %v7246_v48 = vpack.c.bf16 %v12035_v2, %v12035_v2  ;;  %v7309_v1 = vpack.c.bf16 %v4806_v35, %v4806_v35 }
 0x751   :  { %v11048_v28 = vpop.f32.mrf.mxu1 }
 0x753   :  { %v4809_v56 = vpop.f32.mrf.mxu1 }
 0x754   :  { %v8877_v34 = vpop.eup %8876  ;;  %v7310_v11 = vpack.c.bf16 %v4809_v56, %v4809_v56 }
 0x755   :  { %v5364_v61 = vmul.f32 %v8877_v34, %v10927_v46  ;;  %v8879_v40 = vpop.eup %8878  ;;  %v12032_v46 = vld [vmem:[#allocation91_spill] sm:$0xff]  ;;  %v12036_v34 = vld [vmem:[#allocation92_spill] sm:$0xff] }
 0x756   :  { %v5937_v25 = vsub.f32 %v12032_v46, %v10871_v17  ;;  %v5365_v38 = vmul.f32 %v8879_v40, %v10924_v23  ;;  %v7262_v31 = vpack.c.bf16 %v12036_v34, %v12036_v34 }
 0x757   :  { %8135 = vmatmul.mubr.bf16.gmra.mxu1 %v5372_v3  ;;  %v5373_v27 = vpack.c.bf16 %v5364_v61, %v5363_v44 }
 0x758   :  { %v8881_v0 = vpop.eup %8880  ;;  %v5968_v62 = vmul.f32 1.442695, %v5937_v25 }
 0x759   :  { %8138 = vmatprep.mubr.bf16.mxu1 %v5373_v27  ;;  %v5366_v15 = vmul.f32 %v8881_v0, %v10930_v7  ;;  %v12034_v7 = vld [vmem:[#allocation56_spill] sm:$0xff]  ;;  %v11020_v21 = vpop.eup %8882 }
 0x75a   :  { %v5936_v24 = vsub.f32 %v12034_v7, %v10851_v51  ;;  %8892 = vpow2.f32 %v5968_v62  ;;  %v11023_v23 = vpop.eup %8884 }
 0x75b   :  { %v5374_v63 = vpack.c.bf16 %v5366_v15, %v5365_v38  ;;  %8894 = vpow2.f32 %v5962_v58  ;;  %v11026_v6 = vpop.eup %8886 }
 0x75c   :  { %v5966_v17 = vmul.f32 1.442695, %v5936_v24  ;;  %v11028_v39 = vpop.eup %8888 }
 0x75d   :  { %v11032_v51 = vpop.eup %8890 }
 0x75e   :  { %8896 = vpow2.f32 %v5966_v17 }
 0x75f   :  { %8139 = vmatmul.mubr.bf16.gmra.mxu1 %v5374_v63 }
 0x764   :  { %5986 = vadd.xlane.f32.xlu1 %v11020_v21 }
 0x767   :  { %v11034_v59 = vpop.eup %8892 }
 0x768   :  { %5992 = vadd.xlane.f32.xlu1 %v11023_v23  ;;  %v11038_v19 = vpop.eup %8894 }
 0x76b   :  { %v11041_v9 = vpop.eup %8896 }
 0x76c   :  { %5988 = vadd.xlane.f32.xlu0 %v11026_v6  ;;  %5996 = vadd.xlane.f32.xlu1 %v11028_v39 }
 0x770   :  { %5990 = vadd.xlane.f32.xlu0 %v11032_v51  ;;  %6000 = vadd.xlane.f32.xlu1 %v11034_v59 }
 0x773   :  { %v5971_v8 = vpop.xlane.xlu1 %5970 }
 0x774   :  { %5994 = vadd.xlane.f32.xlu0 %v11038_v19  ;;  %8898 = vrcp.f32 %v5971_v8 }
 0x777   :  { %v5975_v60 = vpop.xlane.xlu1 %5974 }
 0x778   :  { %5998 = vadd.xlane.f32.xlu0 %v11041_v9 }
 0x77b   :  { %v6095_v36 = vpop.permute.xlu1 %6094 }
 0x77c   :  { %8164 = vmatprep.subr.bf16.mxu1 %v6095_v36 }
 0x77d   :  { %8165 = vmatpush3.bf16.msra.mxu1 %v6095_v36 }
 0x77f   :  { %v5973_v57 = vpop.xlane.xlu0 %5972  ;;  %v6091_v37 = vpop.permute.xlu1 %6090 }
 0x780   :  { %8900 = vrcp.f32 %v5973_v57 }
 0x781   :  { %2312 = vrot.lane.b32.xlu1 %v7246_v48, %s8978_s2  ;;  %v8899_v50 = vpop.eup %8898 }
 0x782   :  { %v6018_v61 = vmul.f32 %v8899_v50, %v10947_v29 }
 0x783   :  { %v5977_v53 = vpop.xlane.xlu0 %5976  ;;  %v6089_v44 = vpop.permute.xlu1 %6088 }
 0x784   :  { %8902 = vrcp.f32 %v5977_v53 }
 0x785   :  { %4917 = vrot.lane.b32.xlu1 %v7309_v1, %s8978_s2  ;;  %8904 = vrcp.f32 %v5975_v60 }
 0x787   :  { %v6093_v43 = vpop.permute.xlu0 %6092 }
 0x788   :  { %8166 = vmatprep.subr.bf16.mxu1 %v6093_v43 }
 0x789   :  { %8167 = vmatpush3.bf16.msra.mxu1 %v6093_v43  ;;  %4919 = vrot.lane.b32.xlu1 %v7310_v11, %s8978_s2 }
 0x78a   :  { %8168 = vmatprep.subr.bf16.mxu1 %v6091_v37 }
 0x78d   :  { %v8901_v3 = vpop.eup %8900  ;;  %8169 = vmatpush3.bf16.msra.mxu1 %v6091_v37  ;;  %2980 = vrot.lane.b32.xlu1 %v7262_v31, %s8980_s15 }
 0x78e   :  { %2310 = vrot.lane.b32.xlu0 %v7245_v10, %s8978_s2  ;;  %8170 = vmatprep.subr.bf16.mxu1 %v6089_v44  ;;  %v6019_v26 = vmul.f32 %v8901_v3, %v10953_v42 }
 0x790   :  { %v6034_v40 = vpack.c.bf16 %v6019_v26, %v6018_v61 }
 0x791   :  { %8171 = vmatpush3.bf16.msra.mxu1 %v6089_v44  ;;  %v8903_v33 = vpop.eup %8902 }
 0x792   :  { %2978 = vrot.lane.b32.xlu0 %v7261_v20, %s8980_s15  ;;  %8178 = vmatprep.mubr.bf16.mxu1 %v6034_v40  ;;  %v8905_v4 = vpop.eup %8904  ;;  %v6021_v25 = vmul.f32 %v8903_v33, %v10956_v32  ;;  %v11070_v32 = vpop.f32.mrf.mxu1 }
 0x793   :  { %v6020_v45 = vmul.f32 %v8905_v4, %v10950_v54 }
 0x795   :  { %v6035_v12 = vpack.c.bf16 %v6021_v25, %v6020_v45  ;;  %v12039_v25 = vld [vmem:[#allocation97_spill] sm:$0xff] }
 0x7b4   :  { %v5979_v27 = vpop.xlane.xlu1 %5978 }
 0x7b8   :  { %v5981_v0 = vpop.xlane.xlu0 %5980  ;;  %v6087_v14 = vpop.permute.xlu1 %6086 }
 0x7b9   :  { %8906 = vrcp.f32 %v5981_v0  ;;  %8172 = vmatprep.subr.bf16.mxu1 %v6087_v14 }
 0x7ba   :  { %8908 = vrcp.f32 %v5979_v27  ;;  %8173 = vmatpush3.bf16.msra.mxu1 %v6087_v14 }
 0x7bc   :  { %v5983_v29 = vpop.xlane.xlu0 %5982  ;;  %v6083_v55 = vpop.permute.xlu1 %6082 }
 0x7bd   :  { %8910 = vrcp.f32 %v5983_v29 }
 0x7c0   :  { %v5985_v42 = vpop.xlane.xlu0 %5984 }
 0x7c1   :  { %8912 = vrcp.f32 %v5985_v42 }
 0x7c4   :  { %v6085_v5 = vpop.permute.xlu0 %6084 }
 0x7c5   :  { %8174 = vmatprep.subr.bf16.mxu1 %v6085_v5 }
 0x7c6   :  { %v8907_v15 = vpop.eup %8906  ;;  %8175 = vmatpush3.bf16.msra.mxu1 %v6085_v5 }
 0x7c7   :  { %v8909_v46 = vpop.eup %8908  ;;  %8176 = vmatprep.subr.bf16.mxu1 %v6083_v55  ;;  %v6023_v38 = vmul.f32 %v8907_v15, %v10974_v22  ;;  %v11072_v22 = vpop.f32.mrf.mxu1 }
 0x7c8   :  { %v6022_v63 = vmul.f32 %v8909_v46, %v10971_v47 }
 0x7c9   :  { %v11074_v54 = vpop.f32.mrf.mxu1 }
 0x7ca   :  { %8177 = vmatpush3.bf16.msra.mxu1 %v6083_v55  ;;  %v6036_v41 = vpack.c.bf16 %v6023_v38, %v6022_v63  ;;  %v8911_v62 = vpop.eup %8910  ;;  %v7277_v38 = vpack.c.bf16 %v12039_v25, %v12039_v25  ;;  %v12041_v25 = vld [vmem:[#allocation43_spill] sm:$0xff] }
 0x7cb   :  { %v6024_v24 = vmul.f32 %v8911_v62, %v10978_v13  ;;  %v11076_v8 = vpop.f32.mrf.mxu1 }
 0x7cd   :  { %8179 = vmatmul.mubr.bf16.vlgmr.msra.gmra.mxu1 %v6035_v12  ;;  %v11078_v47 = vpop.f32.mrf.mxu1 }
 0x7ce   :  { %v8913_v58 = vpop.eup %8912  ;;  %8182 = vmatprep.mubr.bf16.mxu1 %v6036_v41 }
 0x7cf   :  { %v6025_v7 = vmul.f32 %v8913_v58, %v10983_v18  ;;  %v11080_v60 = vpop.f32.mrf.mxu1  ;;  %v12040_v58 = vld [vmem:[#allocation100_spill] sm:$0xff] }
 0x7d1   :  { %v6037_v17 = vpack.c.bf16 %v6025_v7, %v6024_v24  ;;  %v11082_v35 = vpop.f32.mrf.mxu1 }
 0x7d3   :  { %v11084_v2 = vpop.f32.mrf.mxu1 }
 0x7d5   :  { %8183 = vmatmul.mubr.bf16.gmra.mxu1 %v6037_v17  ;;  %v11086_v57 = vpop.f32.mrf.mxu1 }
 0x7d7   :  { %v11088_v56 = vpop.f32.mrf.mxu1 }
 0x7d9   :  { %v11091_v43 = vpop.f32.mrf.mxu1 }
 0x7db   :  { %v11094_v10 = vpop.f32.mrf.mxu1 }
 0x7ed   :  { %v5987_v36 = vpop.xlane.xlu1 %5986 }
 0x7ee   :  { %8914 = vrcp.f32 %v5987_v36 }
 0x7f1   :  { %v5993_v18 = vpop.xlane.xlu1 %5992 }
 0x7f5   :  { %v5989_v13 = vpop.xlane.xlu0 %5988  ;;  %v5997_v48 = vpop.xlane.xlu1 %5996 }
 0x7f6   :  { %8916 = vrcp.f32 %v5989_v13 }
 0x7f7   :  { %8918 = vrcp.f32 %v5993_v18  ;;  %v8379_v18 = vld [vmem:[%s11564_s5 + $0x38] sm:$0xff]  }
 0x7f9   :  { %v5991_v1 = vpop.xlane.xlu0 %5990  ;;  %v6001_v53 = vpop.xlane.xlu1 %6000 }
 0x7fa   :  { %8920 = vrcp.f32 %v5991_v1  ;;  %v8381_v1 = vld [vmem:[%s11564_s5 + $0x30] sm:$0xff]  }
 0x7fb   :  { %8922 = vrcp.f32 %v5997_v48  ;;  %v8915_v50 = vpop.eup %8914  ;;  %v8380_v48 = vld [vmem:[%s11564_s5 + $0x70] sm:$0xff]  }
 0x7fc   :  { %v6026_v3 = vmul.f32 %v8915_v50, %v11020_v21 }
 0x7fd   :  { %v5995_v11 = vpop.xlane.xlu0 %5994  ;;  %v2313_v37 = vpop.permute.xlu1 %2312 }
 0x7fe   :  { %8924 = vrcp.f32 %v5995_v11  ;;  %2360 = vst.msk [vmem:[#allocation5 + $0x8] sm:$0xf] %vm2358_vm2, %v2313_v37  ;;  %v8382_v11 = vld [vmem:[%s11564_s5 + $0x68] sm:$0xff]  }
 0x7ff   :  { %8926 = vrcp.f32 %v6001_v53  ;;  %v8383_v37 = vld [vmem:[%s11564_s5 + $0x28] sm:$0xff]  }
 0x801   :  { %v5999_v34 = vpop.xlane.xlu0 %5998  ;;  %v4918_v31 = vpop.permute.xlu1 %4917 }
 0x802   :  { %8928 = vrcp.f32 %v5999_v34  ;;  %4965 = vst.msk [vmem:[#allocation5 + $0x4] sm:$0xf] %vm2358_vm2, %v4918_v31  ;;  %v8384_v31 = vld [vmem:[%s11564_s5 + $0x60] sm:$0xff]  }
 0x803   :  { %v8917_v52 = vpop.eup %8916 }
 0x804   :  { %v6027_v44 = vmul.f32 %v8917_v52, %v11026_v6  ;;  %v8919_v61 = vpop.eup %8918  ;;  %v8385_v52 = vld [vmem:[%s11564_s5 + $0x20] sm:$0xff]  }
 0x805   :  { %v2311_v26 = vpop.permute.xlu0 %2310  ;;  %v4920_v16 = vpop.permute.xlu1 %4919  ;;  %v6029_v14 = vmul.f32 %v8919_v61, %v11023_v23  ;;  %v8386_v61 = vld [vmem:[%s11564_s5 + $0x58] sm:$0xff]  }
 0x806   :  { %2359 = vst.msk [vmem:[#allocation5] sm:$0xf] %vm2358_vm2, %v2311_v26  ;;  %4966 = vst.msk [vmem:[#allocation5 + $0xc] sm:$0xf] %vm2358_vm2, %v4920_v16  ;;  %v6038_v20 = vpack.c.bf16 %v6027_v44, %v6026_v3 }
 0x807   :  { %v8921_v40 = vpop.eup %8920  ;;  %v11100_v27 = vpop.f32.mrf.mxu1 }
 0x808   :  { %8186 = vmatprep.mubr.bf16.mxu1 %v6038_v20  ;;  %v6028_v0 = vmul.f32 %v8921_v40, %v11032_v51  ;;  %v8923_v21 = vpop.eup %8922  ;;  %v8387_v20 = vld [vmem:[%s11564_s5 + $0x18] sm:$0xff]   ;;  %v8388_v40 = vld [vmem:[%s11564_s5 + $0x50] sm:$0xff]  }
 0x809   :  { %v2979_v29 = vpop.permute.xlu0 %2978  ;;  %v5473_v6 = vpop.f32.mrf.mxu1  ;;  %v6031_v23 = vmul.f32 %v8923_v21, %v11028_v39  ;;  %v7278_v39 = vpack.c.bf16 %v12040_v58, %v12040_v58  ;;  %v8389_v21 = vld [vmem:[%s11564_s5 + $0x10] sm:$0xff]   ;;  %v7312_v58 = vpack.c.bf16 %v11048_v28, %v11048_v28 }
 0x80a   :  { %3027 = vst.msk [vmem:[#allocation5] sm:$0xf] %vm3026_vm3, %v2979_v29  ;;  %v7325_v42 = vpack.c.bf16 %v5473_v6, %v5473_v6  ;;  %v2981_v33 = vpop.permute.xlu1 %2980  ;;  %v6039_v5 = vpack.c.bf16 %v6029_v14, %v6028_v0  ;;  %v8390_v29 = vld [vmem:[%s11564_s5 + $0x48] sm:$0xff]  }
 0x80b   :  { %v8925_v4 = vpop.eup %8924  ;;  %3028 = vst.msk [vmem:[#allocation5 + $0x8] sm:$0xf] %vm3026_vm3, %v2981_v33  ;;  %v11106_v15 = vpop.f32.mrf.mxu1  ;;  %v8391_v33 = vld [vmem:[%s11564_s5 + $0x8] sm:$0xff]  }
 0x80c   :  { %8187 = vmatmul.mubr.bf16.gmra.mxu1 %v6039_v5  ;;  %5584 = vrot.lane.b32.xlu0 %v7325_v42, %s8980_s15  ;;  %v6030_v51 = vmul.f32 %v8925_v4, %v11038_v19  ;;  %v8927_v55 = vpop.eup %8926  ;;  %v8392_v5 = vld [vmem:[%s11564_s5 + $0x40] sm:$0xff]   ;;  %v7328_v28 = vpack.c.bf16 %v11106_v15, %v11106_v15  ;;  %v12048_v15 = vld [vmem:[#allocation87_spill] sm:$0xff] }
 0x80d   :  { %v5476_v46 = vpop.f32.mrf.mxu1  ;;  %v6033_v62 = vmul.f32 %v8927_v55, %v11034_v59  ;;  %v8378_v59 = vld [vmem:[%s11564_s5 + $0x78] sm:$0xff]   ;;  %v8393_v55 = vld [vmem:[%s11564_s5] sm:$0xff]  }
 0x80e   :  { %v7326_v45 = vpack.c.bf16 %v5476_v46, %v5476_v46  ;;  %v6040_v63 = vpack.c.bf16 %v6031_v23, %v6030_v51  ;;  %7678 = vmatprep.subr.bf16.mxu0 %v8378_v59 }
 0x80f   :  { %v8929_v12 = vpop.eup %8928  ;;  %v11120_v7 = vpop.f32.mrf.mxu1  ;;  %7679 = vmatpush3.bf16.msra.mxu0 %v8379_v18  ;;  %v12045_v18 = vld [vmem:[#allocation65_spill] sm:$0xff] }
 0x810   :  { %8190 = vmatprep.mubr.bf16.mxu1 %v6040_v63  ;;  %3646 = vrot.lane.b32.xlu0 %v7277_v38, %s8979_s14  ;;  %v6032_v41 = vmul.f32 %v8929_v12, %v11041_v9  ;;  %v7247_v38 = vpack.c.bf16 %v12041_v25, %v12041_v25  ;;  %v12042_v63 = vld [vmem:[#allocation48_spill] sm:$0xff] }
 0x811   :  { %5586 = vrot.lane.b32.xlu1 %v7326_v45, %s8980_s15  ;;  %v11122_v24 = vpop.f32.mrf.mxu1  ;;  %7680 = vmatprep.subr.bf16.mxu0 %v8380_v48  ;;  %v7248_v12 = vpack.c.bf16 %v12042_v63, %v12042_v63  ;;  %v7279_v48 = vpack.c.bf16 %v12045_v18, %v12045_v18  ;;  %v7316_v63 = vpack.c.bf16 %v11074_v54, %v11074_v54 }
 0x812   :  { %v6041_v19 = vpack.c.bf16 %v6033_v62, %v6032_v41  ;;  %v7311_v41 = vpack.c.bf16 %v11043_v30, %v11043_v30  ;;  %v12043_v62 = vld [vmem:[#allocation86_spill] sm:$0xff]  ;;  %v7327_v30 = vpack.c.bf16 %v11100_v27, %v11100_v27  ;;  %v12047_v27 = vld [vmem:[#allocation89_spill] sm:$0xff] }
 0x813   :  { %v11124_v17 = vpop.f32.mrf.mxu1  ;;  %7681 = vmatpush3.bf16.msra.mxu0 %v8381_v1  ;;  %v12046_v1 = vld [vmem:[#allocation62_spill] sm:$0xff] }
 0x814   :  { %8191 = vmatmul.mubr.bf16.gmra.mxu1 %v6041_v19  ;;  %7682 = vmatprep.subr.bf16.mxu0 %v8382_v11  ;;  %v7263_v19 = vpack.c.bf16 %v12043_v62, %v12043_v62  ;;  %v7280_v11 = vpack.c.bf16 %v12046_v1, %v12046_v1  ;;  %v12056_v62 = vld [vmem:[#allocation68_spill] sm:$0xff]  ;;  %v7332_v54 = vpack.c.bf16 %v11124_v17, %v11124_v17  ;;  %v12060_v1 = vld [vmem:[#allocation29_spill] sm:$0xff] }
 0x815   :  { %3648 = vrot.lane.b32.xlu1 %v7278_v39, %s8979_s14  ;;  %v11126_v36 = vpop.f32.mrf.mxu1  ;;  %v12044_v39 = vld [vmem:[#allocation55_spill] sm:$0xff]  ;;  %v12059_v17 = vld [vmem:[#allocation88_spill] sm:$0xff] }
 0x816   :  { %v7264_v59 = vpack.c.bf16 %v12044_v39, %v12044_v39 }
 0x817   :  { %v11128_v9 = vpop.f32.mrf.mxu1  ;;  %7683 = vmatpush3.bf16.msra.mxu0 %v8383_v37 }
 0x818   :  { %7684 = vmatprep.subr.bf16.mxu0 %v8384_v31 }
 0x819   :  { %v11136_v13 = vpop.f32.mrf.mxu1 }
 0x81b   :  { %v11144_v53 = vpop.f32.mrf.mxu1  ;;  %7685 = vmatpush3.bf16.msra.mxu0 %v8385_v52  ;;  %v7250_v52 = vpack.c.bf16 %v12048_v15, %v12048_v15 }
 0x81c   :  { %7686 = vmatprep.subr.bf16.mxu0 %v8386_v61  ;;  %v12049_v61 = vld [vmem:[#allocation96_spill] sm:$0xff] }
 0x81d   :  { %v11152_v50 = vpop.f32.mrf.mxu1 }
 0x81f   :  { %v11160_v3 = vpop.f32.mrf.mxu1  ;;  %7687 = vmatpush3.bf16.msra.mxu0 %v8387_v20  ;;  %v7314_v20 = vpack.c.bf16 %v11076_v8, %v11076_v8  ;;  %v7330_v8 = vpack.c.bf16 %v11126_v36, %v11126_v36  ;;  %v12053_v36 = vld [vmem:[#allocation53_spill] sm:$0xff] }
 0x820   :  { %7688 = vmatprep.subr.bf16.mxu0 %v8388_v40  ;;  %v7252_v25 = vpack.c.bf16 %v12053_v36, %v12053_v36 }
 0x821   :  { %v11166_v26 = vpop.f32.mrf.mxu1 }
 0x823   :  { %v11176_v0 = vpop.f32.mrf.mxu1  ;;  %7689 = vmatpush3.bf16.msra.mxu0 %v8389_v21 }
 0x824   :  { %7690 = vmatprep.subr.bf16.mxu0 %v8390_v29 }
 0x825   :  { %v11185_v6 = vpop.f32.mrf.mxu1 }
 0x827   :  { %7691 = vmatpush3.bf16.msra.mxu0 %v8391_v33 }
 0x828   :  { %7692 = vmatprep.subr.bf16.mxu0 %v8392_v5 }
 0x82b   :  { %7693 = vmatpush3.bf16.msra.mxu0 %v8393_v55 }
 0x87e   :  { %v5585_v34 = vpop.permute.xlu0 %5584 }
 0x87f   :  { %5632 = vst.msk [vmem:[#allocation5 + $0x4] sm:$0xf] %vm3026_vm3, %v5585_v34  ;;  %v7249_v34 = vpack.c.bf16 %v12047_v27, %v12047_v27 }
 0x882   :  { %v3647_v44 = vpop.permute.xlu0 %3646 }
 0x883   :  { %3695 = vst.msk [vmem:[#allocation5] sm:$0xf] %vm3694_vm4, %v3647_v44  ;;  %v5587_v16 = vpop.permute.xlu1 %5586  ;;  %v7313_v44 = vpack.c.bf16 %v11072_v22, %v11072_v22  ;;  %v7329_v22 = vpack.c.bf16 %v11122_v24, %v11122_v24 }
 0x884   :  { %5633 = vst.msk [vmem:[#allocation5 + $0xc] sm:$0xf] %vm3026_vm3, %v5587_v16  ;;  %v7265_v16 = vpack.c.bf16 %v12049_v61, %v12049_v61 }
 0x887   :  { %v3649_v14 = vpop.permute.xlu1 %3648 }
 0x888   :  { %3696 = vst.msk [vmem:[#allocation5 + $0x8] sm:$0xf] %vm3694_vm4, %v3649_v14  ;;  %v12050_v14 = vld [vmem:[#allocation95_spill] sm:$0xff] }
 0x889   :  { %v7266_v21 = vpack.c.bf16 %v12050_v14, %v12050_v14  ;;  %v12064_v14 = vld [vmem:[#allocation50_spill] sm:$0xff] }
 0x88d   :  { %v8180_v42 = vpop.f32.mrf.mxu1 }
 0x88e   :  { %v7343_v37 = vpack.c.bf16 %v8180_v42, %v8180_v42  ;;  %v12051_v42 = vld [vmem:[#allocation26_spill] sm:$0xff] }
 0x88f   :  { %v6140_v4 = vpop.f32.mrf.mxu1  ;;  %v7281_v33 = vpack.c.bf16 %v12051_v42, %v12051_v42  ;;  %v7319_v42 = vpack.c.bf16 %v11078_v47, %v11078_v47  ;;  %v7335_v47 = vpack.c.bf16 %v11128_v9, %v11128_v9 }
 0x890   :  { %v7341_v51 = vpack.c.bf16 %v6140_v4, %v6140_v4  ;;  %v7282_v4 = vpack.c.bf16 %v10802_v49, %v10802_v49  ;;  %v7315_v49 = vpack.c.bf16 %v11070_v32, %v11070_v32  ;;  %v7331_v32 = vpack.c.bf16 %v11120_v7, %v11120_v7  ;;  %v12058_v7 = vld [vmem:[#allocation83_spill] sm:$0xff] }
 0x891   :  { %v8181_v23 = vpop.f32.mrf.mxu1 }
 0x892   :  { %6251 = vrot.lane.b32.xlu0 %v7341_v51, %s8979_s14  ;;  %v7344_v31 = vpack.c.bf16 %v8181_v23, %v8181_v23  ;;  %v12052_v23 = vld [vmem:[#allocation46_spill] sm:$0xff] }
 0x893   :  { %v6143_v46 = vpop.f32.mrf.mxu1  ;;  %v7251_v55 = vpack.c.bf16 %v12052_v23, %v12052_v23 }
 0x894   :  { %v7342_v45 = vpack.c.bf16 %v6143_v46, %v6143_v46 }
 0x895   :  { %v8184_v40 = vpop.f32.mrf.mxu1 }
 0x896   :  { %2314 = vrot.lane.b32.xlu0 %v7247_v38, %s8978_s2  ;;  %6253 = vrot.lane.b32.xlu1 %v7342_v45, %s8979_s14  ;;  %v12054_v38 = vld [vmem:[#allocation63_spill] sm:$0xff] }
 0x897   :  { %v6156_v29 = vpop.f32.mrf.mxu1  ;;  %v7267_v45 = vpack.c.bf16 %v12054_v38, %v12054_v38 }
 0x898   :  { %v7345_v24 = vpack.c.bf16 %v6156_v29, %v6156_v29 }
 0x899   :  { %v8185_v5 = vpop.f32.mrf.mxu1 }
 0x89a   :  { %4921 = vrot.lane.b32.xlu0 %v7311_v41, %s8978_s2  ;;  %2316 = vrot.lane.b32.xlu1 %v7248_v12, %s8978_s2  ;;  %v12055_v12 = vld [vmem:[#allocation61_spill] sm:$0xff]  ;;  %v7348_v18 = vpack.c.bf16 %v8185_v5, %v8185_v5  ;;  %v7320_v5 = vpack.c.bf16 %v11082_v35, %v11082_v35  ;;  %v7336_v35 = vpack.c.bf16 %v11144_v53, %v11144_v53  ;;  %v12070_v53 = vld [vmem:[#allocation47_spill] sm:$0xff] }
 0x89b   :  { %v6159_v51 = vpop.f32.mrf.mxu1  ;;  %v7268_v41 = vpack.c.bf16 %v12055_v12, %v12055_v12  ;;  %v7257_v38 = vpack.c.bf16 %v12070_v53, %v12070_v53 }
 0x89c   :  { %v7346_v46 = vpack.c.bf16 %v6159_v51, %v6159_v51  ;;  %v12068_v51 = vld [vmem:[#allocation25_spill] sm:$0xff] }
 0x89d   :  { %v7287_v23 = vpack.c.bf16 %v12068_v51, %v12068_v51 }
 0x89e   :  { %2982 = vrot.lane.b32.xlu0 %v7263_v19, %s8980_s15  ;;  %4923 = vrot.lane.b32.xlu1 %v7312_v58, %s8978_s2  ;;  %v7283_v19 = vpack.c.bf16 %v12056_v62, %v12056_v62  ;;  %v12057_v58 = vld [vmem:[#allocation70_spill] sm:$0xff]  ;;  %v7321_v62 = vpack.c.bf16 %v11088_v56, %v11088_v56 }
 0x89f   :  { %v7284_v39 = vpack.c.bf16 %v12057_v58, %v12057_v58  ;;  %v8394_v58 = vld [vmem:[#allocation5] ss:$8 sps:$4 sm:$0xff]  }
 0x8a2   :  { %5588 = vrot.lane.b32.xlu0 %v7327_v30, %s8980_s15  ;;  %2984 = vrot.lane.b32.xlu1 %v7264_v59, %s8980_s15  ;;  %v7347_v59 = vpack.c.bf16 %v8184_v40, %v8184_v40  ;;  %v7253_v30 = vpack.c.bf16 %v12058_v7, %v12058_v7 }
 0x8a6   :  { %3650 = vrot.lane.b32.xlu0 %v7279_v48, %s8979_s14  ;;  %5590 = vrot.lane.b32.xlu1 %v7328_v28, %s8980_s15  ;;  %v7254_v48 = vpack.c.bf16 %v12059_v17, %v12059_v17  ;;  %v7317_v28 = vpack.c.bf16 %v11080_v60, %v11080_v60  ;;  %v7333_v60 = vpack.c.bf16 %v11136_v13, %v11136_v13 }
 0x8aa   :  { %6255 = vrot.lane.b32.xlu0 %v7343_v37, %s8979_s14  ;;  %3652 = vrot.lane.b32.xlu1 %v7280_v11, %s8979_s14  ;;  %v7269_v11 = vpack.c.bf16 %v12060_v1, %v12060_v1  ;;  %v7318_v37 = vpack.c.bf16 %v11084_v2, %v11084_v2  ;;  %v7334_v2 = vpack.c.bf16 %v11152_v50, %v11152_v50  ;;  %v12065_v50 = vld [vmem:[#allocation49_spill] sm:$0xff] }
 0x8ab   :  { %v7256_v29 = vpack.c.bf16 %v12065_v50, %v12065_v50  ;;  %v7337_v1 = vpack.c.bf16 %v11166_v26, %v11166_v26 }
 0x8ae   :  { %2318 = vrot.lane.b32.xlu0 %v7249_v34, %s8978_s2  ;;  %6257 = vrot.lane.b32.xlu1 %v7344_v31, %s8979_s14  ;;  %v12061_v34 = vld [vmem:[#allocation93_spill] sm:$0xff] }
 0x8af   :  { %v7270_v31 = vpack.c.bf16 %v12061_v34, %v12061_v34 }
 0x8b2   :  { %4925 = vrot.lane.b32.xlu0 %v7313_v44, %s8978_s2  ;;  %2320 = vrot.lane.b32.xlu1 %v7250_v52, %s8978_s2  ;;  %v12062_v52 = vld [vmem:[#allocation66_spill] sm:$0xff] }
 0x8b3   :  { %v7285_v44 = vpack.c.bf16 %v12062_v52, %v12062_v52  ;;  %v12075_v52 = vld [vmem:[#allocation84_spill] sm:$0xff] }
 0x8b6   :  { %2986 = vrot.lane.b32.xlu0 %v7265_v16, %s8980_s15  ;;  %4927 = vrot.lane.b32.xlu1 %v7314_v20, %s8978_s2  ;;  %v12063_v16 = vld [vmem:[#allocation69_spill] sm:$0xff] }
 0x8b7   :  { %v7286_v20 = vpack.c.bf16 %v12063_v16, %v12063_v16 }
 0x8ba   :  { %5592 = vrot.lane.b32.xlu0 %v7329_v22, %s8980_s15  ;;  %2988 = vrot.lane.b32.xlu1 %v7266_v21, %s8980_s15  ;;  %v7255_v21 = vpack.c.bf16 %v12064_v14, %v12064_v14 }
 0x8be   :  { %3654 = vrot.lane.b32.xlu0 %v7281_v33, %s8979_s14  ;;  %5594 = vrot.lane.b32.xlu1 %v7330_v8, %s8980_s15  ;;  %v12066_v33 = vld [vmem:[#allocation60_spill] sm:$0xff] }
 0x8bf   :  { %v7271_v8 = vpack.c.bf16 %v12066_v33, %v12066_v33 }
 0x8c2   :  { %3656 = vrot.lane.b32.xlu1 %v7282_v4, %s8979_s14  ;;  %6259 = vrot.lane.b32.xlu0 %v7345_v24, %s8979_s14  ;;  %v12067_v4 = vld [vmem:[#allocation67_spill] sm:$0xff] }
 0x8c3   :  { %v7272_v24 = vpack.c.bf16 %v12067_v4, %v12067_v4  ;;  %v12078_v4 = vld [vmem:[#allocation58_spill] sm:$0xff] }
 0x8c6   :  { %2322 = vrot.lane.b32.xlu0 %v7251_v55, %s8978_s2  ;;  %6261 = vrot.lane.b32.xlu1 %v7346_v46, %s8979_s14  ;;  %v12069_v46 = vld [vmem:[#allocation101_spill] sm:$0xff] }
 0x8c7   :  { %v7288_v9 = vpack.c.bf16 %v12069_v46, %v12069_v46 }
 0x8ca   :  { %4929 = vrot.lane.b32.xlu0 %v7315_v49, %s8978_s2  ;;  %2324 = vrot.lane.b32.xlu1 %v7252_v25, %s8978_s2 }
 0x8cc   :  { %v8188_v27 = vpop.f32.mrf.mxu1 }
 0x8cd   :  { %v7351_v36 = vpack.c.bf16 %v8188_v27, %v8188_v27  ;;  %v12074_v27 = vld [vmem:[#allocation78_spill] sm:$0xff] }
 0x8ce   :  { %2990 = vrot.lane.b32.xlu0 %v7267_v45, %s8980_s15  ;;  %4931 = vrot.lane.b32.xlu1 %v7316_v63, %s8978_s2  ;;  %v6172_v15 = vpop.f32.mrf.mxu1  ;;  %v7289_v34 = vpack.c.bf16 %v12074_v27, %v12074_v27 }
 0x8cf   :  { %v7349_v13 = vpack.c.bf16 %v6172_v15, %v6172_v15 }
 0x8d0   :  { %v8189_v61 = vpop.f32.mrf.mxu1 }
 0x8d1   :  { %v7352_v45 = vpack.c.bf16 %v8189_v61, %v8189_v61 }
 0x8d2   :  { %5596 = vrot.lane.b32.xlu0 %v7331_v32, %s8980_s15  ;;  %2992 = vrot.lane.b32.xlu1 %v7268_v41, %s8980_s15  ;;  %v6175_v40 = vpop.f32.mrf.mxu1  ;;  %v12071_v41 = vld [vmem:[#allocation94_spill] sm:$0xff] }
 0x8d3   :  { %v7350_v22 = vpack.c.bf16 %v6175_v40, %v6175_v40  ;;  %v7258_v32 = vpack.c.bf16 %v12071_v41, %v12071_v41 }
 0x8d4   :  { %v11378_v17 = vpop.f32.mrf.mxu1 }
 0x8d6   :  { %3658 = vrot.lane.b32.xlu0 %v7283_v19, %s8979_s14  ;;  %5598 = vrot.lane.b32.xlu1 %v7332_v54, %s8980_s15 }
 0x8da   :  { %6263 = vrot.lane.b32.xlu0 %v7347_v59, %s8979_s14  ;;  %3660 = vrot.lane.b32.xlu1 %v7284_v39, %s8979_s14  ;;  %v12072_v59 = vld [vmem:[#allocation98_spill] sm:$0xff] }
 0x8db   :  { %v7273_v7 = vpack.c.bf16 %v12072_v59, %v12072_v59 }
 0x8de   :  { %2326 = vrot.lane.b32.xlu0 %v7253_v30, %s8978_s2  ;;  %6265 = vrot.lane.b32.xlu1 %v7348_v18, %s8979_s14  ;;  %v7322_v30 = vpack.c.bf16 %v11094_v10, %v11094_v10 }
 0x8e2   :  { %4933 = vrot.lane.b32.xlu0 %v7317_v28, %s8978_s2  ;;  %2328 = vrot.lane.b32.xlu1 %v7254_v48, %s8978_s2  ;;  %v12073_v48 = vld [vmem:[#allocation99_spill] sm:$0xff] }
 0x8e3   :  { %v7274_v28 = vpack.c.bf16 %v12073_v48, %v12073_v48 }
 0x8e6   :  { %2994 = vrot.lane.b32.xlu0 %v7269_v11, %s8980_s15  ;;  %4935 = vrot.lane.b32.xlu1 %v7318_v37, %s8978_s2  ;;  %v6188_v37 = vpop.f32.mrf.mxu1 }
 0x8e8   :  { %v11396_v26 = vpop.f32.mrf.mxu1 }
 0x8ea   :  { %5600 = vrot.lane.b32.xlu0 %v7333_v60, %s8980_s15  ;;  %2996 = vrot.lane.b32.xlu1 %v7270_v31, %s8980_s15  ;;  %v7338_v31 = vpack.c.bf16 %v11185_v6, %v11185_v6  ;;  %v12076_v6 = vld [vmem:[#allocation54_spill] sm:$0xff] }
 0x8ee   :  { %3662 = vrot.lane.b32.xlu0 %v7285_v44, %s8979_s14  ;;  %5602 = vrot.lane.b32.xlu1 %v7334_v2, %s8980_s15  ;;  %v7290_v44 = vpack.c.bf16 %v12075_v52, %v12075_v52  ;;  %v7353_v2 = vpack.c.bf16 %v6188_v37, %v6188_v37 }
 0x8f2   :  { %3664 = vrot.lane.b32.xlu1 %v7286_v20, %s8979_s14  ;;  %6267 = vrot.lane.b32.xlu0 %v7349_v13, %s8979_s14  ;;  %v6191_v20 = vpop.f32.mrf.mxu1  ;;  %v7259_v13 = vpack.c.bf16 %v12076_v6, %v12076_v6 }
 0x8f3   :  { %v7354_v40 = vpack.c.bf16 %v6191_v20, %v6191_v20 }
 0x8f6   :  { %2330 = vrot.lane.b32.xlu0 %v7255_v21, %s8978_s2  ;;  %6269 = vrot.lane.b32.xlu1 %v7350_v22, %s8979_s14  ;;  %v12077_v22 = vld [vmem:[#allocation90_spill] sm:$0xff] }
 0x8f7   :  { %v7260_v50 = vpack.c.bf16 %v12077_v22, %v12077_v22 }
 0x8fa   :  { %4937 = vrot.lane.b32.xlu0 %v7319_v42, %s8978_s2  ;;  %2332 = vrot.lane.b32.xlu1 %v7256_v29, %s8978_s2  ;;  %v7323_v29 = vpack.c.bf16 %v11086_v57, %v11086_v57 }
 0x8fe   :  { %2998 = vrot.lane.b32.xlu0 %v7271_v8, %s8980_s15  ;;  %4939 = vrot.lane.b32.xlu1 %v7320_v5, %s8978_s2 }
 0x902   :  { %5604 = vrot.lane.b32.xlu0 %v7335_v47, %s8980_s15  ;;  %3000 = vrot.lane.b32.xlu1 %v7272_v24, %s8980_s15  ;;  %v7275_v24 = vpack.c.bf16 %v12078_v4, %v12078_v4  ;;  %v7324_v47 = vpack.c.bf16 %v11091_v43, %v11091_v43  ;;  %v12080_v43 = vld [vmem:[#allocation20_spill] sm:$0xff] }
 0x904   :  { %v6252_v55 = vpop.permute.xlu0 %6251 }
 0x905   :  { %6299 = vst.msk [vmem:[#allocation5 + $0x4] sm:$0xf] %vm3694_vm4, %v6252_v55  ;;  %v7339_v55 = vpack.c.bf16 %v11160_v3, %v11160_v3  ;;  %v12081_v3 = vld [vmem:[#allocation77_spill] sm:$0xff] }
 0x906   :  { %3666 = vrot.lane.b32.xlu0 %v7287_v23, %s8979_s14  ;;  %5606 = vrot.lane.b32.xlu1 %v7336_v35, %s8980_s15  ;;  %v12079_v23 = vld [vmem:[#allocation64_spill] sm:$0xff] }
 0x907   :  { %v7276_v35 = vpack.c.bf16 %v12079_v23, %v12079_v23 }
 0x908   :  { %v2315_v25 = vpop.permute.xlu0 %2314  ;;  %v6254_v49 = vpop.permute.xlu1 %6253 }
 0x909   :  { %2361 = vst.msk [vmem:[#allocation5 + $0x10] sm:$0xf] %vm2358_vm2, %v2315_v25  ;;  %v7340_v25 = vpack.c.bf16 %v11176_v0, %v11176_v0  ;;  %v7356_v0 = vpack.c.bf16 %v11396_v26, %v11396_v26 }
 0x90a   :  { %6300 = vst.msk [vmem:[#allocation5 + $0xc] sm:$0xf] %vm3694_vm4, %v6254_v49  ;;  %6271 = vrot.lane.b32.xlu0 %v7351_v36, %s8979_s14  ;;  %3668 = vrot.lane.b32.xlu1 %v7288_v9, %s8979_s14  ;;  %v7291_v36 = vpack.c.bf16 %v12080_v43, %v12080_v43 }
 0x90c   :  { %v4922_v63 = vpop.permute.xlu0 %4921  ;;  %v2317_v12 = vpop.permute.xlu1 %2316 }
 0x90d   :  { %4967 = vst.msk [vmem:[#allocation5 + $0x14] sm:$0xf] %vm2358_vm2, %v4922_v63  ;;  %2362 = vst.msk [vmem:[#allocation5 + $0x18] sm:$0xf] %vm2358_vm2, %v2317_v12 }
 0x90e   :  { %2334 = vrot.lane.b32.xlu0 %v7257_v38, %s8978_s2  ;;  %6273 = vrot.lane.b32.xlu1 %v7352_v45, %s8979_s14  ;;  %v7292_v38 = vpack.c.bf16 %v12081_v3, %v12081_v3  ;;  %v7355_v45 = vpack.c.bf16 %v11378_v17, %v11378_v17 }
 0x910   :  { %v2983_v19 = vpop.permute.xlu0 %2982  ;;  %v4924_v54 = vpop.permute.xlu1 %4923 }
 0x911   :  { %v8396_v39 = vld [vmem:[#allocation5 + $0x4] ss:$8 sps:$4 sm:$0xff]   ;;  %3029 = vst.msk [vmem:[#allocation5 + $0x10] sm:$0xf] %vm3026_vm3, %v2983_v19 }
 0x912   :  { %4968 = vst.msk [vmem:[#allocation5 + $0x1c] sm:$0xf] %vm2358_vm2, %v4924_v54  ;;  %4941 = vrot.lane.b32.xlu0 %v7321_v62, %s8978_s2  ;;  %2336 = vrot.lane.b32.xlu1 %v7258_v32, %s8978_s2 }
 0x913   :  { %6578 = vmatprep.mubr.bf16.mxu0 %v8396_v39 }
 0x914   :  { %v5589_v56 = vpop.permute.xlu0 %5588  ;;  %6579 = vmatmul.mubr.bf16.vlgmr.msra.gmra.mxu0 %v8394_v58  ;;  %v2985_v18 = vpop.permute.xlu1 %2984 }
 0x915   :  { %5634 = vst.msk [vmem:[#allocation5 + $0x14] sm:$0xf] %vm3026_vm3, %v5589_v56  ;;  %3030 = vst.msk [vmem:[#allocation5 + $0x18] sm:$0xf] %vm3026_vm3, %v2985_v18 }
 0x916   :  { %3002 = vrot.lane.b32.xlu0 %v7273_v7, %s8980_s15  ;;  %4943 = vrot.lane.b32.xlu1 %v7322_v30, %s8978_s2 }
 0x918   :  { %v3651_v10 = vpop.permute.xlu0 %3650  ;;  %v5591_v11 = vpop.permute.xlu1 %5590 }
 0x919   :  { %3697 = vst.msk [vmem:[#allocation5 + $0x10] sm:$0xf] %vm3694_vm4, %v3651_v10 }
 0x91a   :  { %5635 = vst.msk [vmem:[#allocation5 + $0x1c] sm:$0xf] %vm3026_vm3, %v5591_v11  ;;  %5608 = vrot.lane.b32.xlu0 %v7337_v1, %s8980_s15  ;;  %3004 = vrot.lane.b32.xlu1 %v7274_v28, %s8980_s15 }
 0x91c   :  { %v6256_v60 = vpop.permute.xlu0 %6255  ;;  %v3653_v15 = vpop.permute.xlu1 %3652 }
 0x91d   :  { %6301 = vst.msk [vmem:[#allocation5 + $0x14] sm:$0xf] %vm3694_vm4, %v6256_v60  ;;  %3698 = vst.msk [vmem:[#allocation5 + $0x18] sm:$0xf] %vm3694_vm4, %v3653_v15 }
 0x91e   :  { %3670 = vrot.lane.b32.xlu0 %v7289_v34, %s8979_s14  ;;  %5610 = vrot.lane.b32.xlu1 %v7338_v31, %s8980_s15 }
 0x920   :  { %v2319_v61 = vpop.permute.xlu0 %2318  ;;  %v6258_v16 = vpop.permute.xlu1 %6257 }
 0x921   :  { %2363 = vst.msk [vmem:[#allocation5 + $0x20] sm:$0xf] %vm2358_vm2, %v2319_v61 }
 0x922   :  { %6302 = vst.msk [vmem:[#allocation5 + $0x1c] sm:$0xf] %vm3694_vm4, %v6258_v16  ;;  %3672 = vrot.lane.b32.xlu1 %v7290_v44, %s8979_s14  ;;  %6275 = vrot.lane.b32.xlu0 %v7353_v2, %s8979_s14 }
 0x924   :  { %v4926_v14 = vpop.permute.xlu0 %4925  ;;  %v2321_v21 = vpop.permute.xlu1 %2320  ;;  %v8397_v8 = vld [vmem:[#allocation5 + $0x10] ss:$8 sps:$4 sm:$0xff]  }
 0x925   :  { %4969 = vst.msk [vmem:[#allocation5 + $0x24] sm:$0xf] %vm2358_vm2, %v4926_v14  ;;  %2364 = vst.msk [vmem:[#allocation5 + $0x28] sm:$0xf] %vm2358_vm2, %v2321_v21 }
 0x926   :  { %2338 = vrot.lane.b32.xlu0 %v7259_v13, %s8978_s2  ;;  %6277 = vrot.lane.b32.xlu1 %v7354_v40, %s8979_s14 }
 0x928   :  { %v2987_v42 = vpop.permute.xlu0 %2986  ;;  %v4928_v33 = vpop.permute.xlu1 %4927 }
 0x929   :  { %v8399_v5 = vld [vmem:[#allocation5 + $0x14] ss:$8 sps:$4 sm:$0xff]   ;;  %3031 = vst.msk [vmem:[#allocation5 + $0x20] sm:$0xf] %vm3026_vm3, %v2987_v42 }
 0x92a   :  { %4970 = vst.msk [vmem:[#allocation5 + $0x2c] sm:$0xf] %vm2358_vm2, %v4928_v33  ;;  %4945 = vrot.lane.b32.xlu0 %v7323_v29, %s8978_s2  ;;  %2340 = vrot.lane.b32.xlu1 %v7260_v50, %s8978_s2 }
 0x92b   :  { %6586 = vmatprep.mubr.bf16.mxu0 %v8399_v5 }
 0x92c   :  { %v5593_v57 = vpop.permute.xlu0 %5592  ;;  %6587 = vmatmul.mubr.bf16.gmra.mxu0 %v8397_v8  ;;  %v2989_v51 = vpop.permute.xlu1 %2988 }
 0x92d   :  { %5636 = vst.msk [vmem:[#allocation5 + $0x24] sm:$0xf] %vm3026_vm3, %v5593_v57  ;;  %3032 = vst.msk [vmem:[#allocation5 + $0x28] sm:$0xf] %vm3026_vm3, %v2989_v51 }
 0x92e   :  { %3006 = vrot.lane.b32.xlu0 %v7275_v24, %s8980_s15  ;;  %4947 = vrot.lane.b32.xlu1 %v7324_v47, %s8978_s2 }
 0x930   :  { %v3655_v46 = vpop.permute.xlu0 %3654  ;;  %v5595_v9 = vpop.permute.xlu1 %5594 }
 0x931   :  { %3699 = vst.msk [vmem:[#allocation5 + $0x20] sm:$0xf] %vm3694_vm4, %v3655_v46 }
 0x932   :  { %5637 = vst.msk [vmem:[#allocation5 + $0x2c] sm:$0xf] %vm3026_vm3, %v5595_v9  ;;  %5612 = vrot.lane.b32.xlu0 %v7339_v55, %s8980_s15  ;;  %3008 = vrot.lane.b32.xlu1 %v7276_v35, %s8980_s15 }
 0x934   :  { %v6260_v49 = vpop.permute.xlu0 %6259  ;;  %v3657_v53 = vpop.permute.xlu1 %3656 }
 0x935   :  { %6303 = vst.msk [vmem:[#allocation5 + $0x24] sm:$0xf] %vm3694_vm4, %v6260_v49  ;;  %3700 = vst.msk [vmem:[#allocation5 + $0x28] sm:$0xf] %vm3694_vm4, %v3657_v53 }
 0x936   :  { %3674 = vrot.lane.b32.xlu0 %v7291_v36, %s8979_s14  ;;  %5614 = vrot.lane.b32.xlu1 %v7340_v25, %s8980_s15 }
 0x938   :  { %v2323_v63 = vpop.permute.xlu0 %2322  ;;  %v6262_v12 = vpop.permute.xlu1 %6261 }
 0x939   :  { %2365 = vst.msk [vmem:[#allocation5 + $0x30] sm:$0xf] %vm2358_vm2, %v2323_v63 }
 0x93a   :  { %6304 = vst.msk [vmem:[#allocation5 + $0x2c] sm:$0xf] %vm3694_vm4, %v6262_v12  ;;  %6279 = vrot.lane.b32.xlu0 %v7355_v45, %s8979_s14  ;;  %3676 = vrot.lane.b32.xlu1 %v7292_v38, %s8979_s14 }
 0x93c   :  { %v4930_v41 = vpop.permute.xlu0 %4929  ;;  %v2325_v32 = vpop.permute.xlu1 %2324  ;;  %v8400_v54 = vld [vmem:[#allocation5 + $0x20] ss:$8 sps:$4 sm:$0xff]  }
 0x93d   :  { %4971 = vst.msk [vmem:[#allocation5 + $0x34] sm:$0xf] %vm2358_vm2, %v4930_v41  ;;  %2366 = vst.msk [vmem:[#allocation5 + $0x38] sm:$0xf] %vm2358_vm2, %v2325_v32 }
 0x93e   :  { %6281 = vrot.lane.b32.xlu1 %v7356_v0, %s8979_s14 }
 0x940   :  { %v2991_v62 = vpop.permute.xlu0 %2990  ;;  %v4932_v19 = vpop.permute.xlu1 %4931 }
 0x941   :  { %v8402_v58 = vld [vmem:[#allocation5 + $0x24] ss:$8 sps:$4 sm:$0xff]   ;;  %3033 = vst.msk [vmem:[#allocation5 + $0x30] sm:$0xf] %vm3026_vm3, %v2991_v62 }
 0x942   :  { %4972 = vst.msk [vmem:[#allocation5 + $0x3c] sm:$0xf] %vm2358_vm2, %v4932_v19  ;;  %6594 = vmatprep.mubr.bf16.mxu0 %v8402_v58 }
 0x943   :  { %6595 = vmatmul.mubr.bf16.gmra.mxu0 %v8400_v54 }
 0x944   :  { %v5597_v39 = vpop.permute.xlu0 %5596  ;;  %v2993_v59 = vpop.permute.xlu1 %2992 }
 0x945   :  { %5638 = vst.msk [vmem:[#allocation5 + $0x34] sm:$0xf] %vm3026_vm3, %v5597_v39  ;;  %3034 = vst.msk [vmem:[#allocation5 + $0x38] sm:$0xf] %vm3026_vm3, %v2993_v59 }
 0x948   :  { %v3659_v7 = vpop.permute.xlu0 %3658  ;;  %v5599_v30 = vpop.permute.xlu1 %5598 }
 0x949   :  { %3701 = vst.msk [vmem:[#allocation5 + $0x30] sm:$0xf] %vm3694_vm4, %v3659_v7  ;;  %v11519_v7 = vld [vmem:[%s11565_s6] ss:$0 sm:$0xff]  ;;  %s8981_s6 = smov [#allocation9]  }
 0x94a   :  { %5639 = vst.msk [vmem:[#allocation5 + $0x3c] sm:$0xf] %vm3026_vm3, %v5599_v30  ;;  %s6664_s14 = sshll.u32 %s8981_s6, 4  ;;  %s6665_s14 = int_to_ptr.vmem [resolvable:$true] %s6664_s14 }
 0x94b   :  { %s8950_s15 = scalar_lea.vmem %s6665_s14, 2048  ;;  %p8955_p6 = scmp.lt.s32.totalorder %s6665_s14, %s6665_s14 }
 0x94c   :  { %v6264_v56 = vpop.permute.xlu0 %6263  ;;  %v3661_v18 = vpop.permute.xlu1 %3660  ;;  %p8951_p5 = scmp.ne.s32.totalorder %s6665_s14, %s8950_s15  ;;  %p8956_p7 = scmp.lt.s32.totalorder %s8950_s15, %s8950_s15 }
 0x94d   :  { %6305 = vst.msk [vmem:[#allocation5 + $0x34] sm:$0xf] %vm3694_vm4, %v6264_v56  ;;  %3702 = vst.msk [vmem:[#allocation5 + $0x38] sm:$0xf] %vm3694_vm4, %v3661_v18 }
 0x94e   :  { %p8957_p8 = por %p8956_p7, %p8955_p6 }
 0x950   :  { %v2327_v17 = vpop.permute.xlu0 %2326  ;;  %v6266_v48 = vpop.permute.xlu1 %6265  ;;  %p8958_p9 = pnand %p8957_p8, %p8951_p5 }
 0x951   :  { %2367 = vst.msk [vmem:[#allocation5 + $0x40] sm:$0xf] %vm2358_vm2, %v2327_v17 }
 0x952   :  { %6306 = vst.msk [vmem:[#allocation5 + $0x3c] sm:$0xf] %vm3694_vm4, %v6266_v48 }
 0x954   :  { %v4934_v28 = vpop.permute.xlu0 %4933  ;;  %v2329_v1 = vpop.permute.xlu1 %2328  ;;  %v8403_v37 = vld [vmem:[#allocation5 + $0x30] ss:$8 sps:$4 sm:$0xff]  }
 0x955   :  { %4973 = vst.msk [vmem:[#allocation5 + $0x44] sm:$0xf] %vm2358_vm2, %v4934_v28  ;;  %2368 = vst.msk [vmem:[#allocation5 + $0x48] sm:$0xf] %vm2358_vm2, %v2329_v1 }
 0x958   :  { %v2995_v10 = vpop.permute.xlu0 %2994  ;;  %v4936_v11 = vpop.permute.xlu1 %4935 }
 0x959   :  { %v8405_v27 = vld [vmem:[#allocation5 + $0x34] ss:$8 sps:$4 sm:$0xff]   ;;  %3035 = vst.msk [vmem:[#allocation5 + $0x40] sm:$0xf] %vm3026_vm3, %v2995_v10 }
 0x95a   :  { %4974 = vst.msk [vmem:[#allocation5 + $0x4c] sm:$0xf] %vm2358_vm2, %v4936_v11  ;;  %6602 = vmatprep.mubr.bf16.mxu0 %v8405_v27 }
 0x95b   :  { %6603 = vmatmul.mubr.bf16.gmra.mxu0 %v8403_v37 }
 0x95c   :  { %v5601_v34 = vpop.permute.xlu0 %5600  ;;  %v2997_v31 = vpop.permute.xlu1 %2996 }
 0x95d   :  { %5640 = vst.msk [vmem:[#allocation5 + $0x44] sm:$0xf] %vm3026_vm3, %v5601_v34  ;;  %3036 = vst.msk [vmem:[#allocation5 + $0x48] sm:$0xf] %vm3026_vm3, %v2997_v31 }
 0x960   :  { %v3663_v60 = vpop.permute.xlu0 %3662  ;;  %v5603_v15 = vpop.permute.xlu1 %5602 }
 0x961   :  { %3703 = vst.msk [vmem:[#allocation5 + $0x40] sm:$0xf] %vm3694_vm4, %v3663_v60 }
 0x962   :  { %5641 = vst.msk [vmem:[#allocation5 + $0x4c] sm:$0xf] %vm3026_vm3, %v5603_v15 }
 0x964   :  { %v6268_v26 = vpop.permute.xlu0 %6267  ;;  %v3665_v52 = vpop.permute.xlu1 %3664 }
 0x965   :  { %6307 = vst.msk [vmem:[#allocation5 + $0x44] sm:$0xf] %vm3694_vm4, %v6268_v26  ;;  %3704 = vst.msk [vmem:[#allocation5 + $0x48] sm:$0xf] %vm3694_vm4, %v3665_v52 }
 0x968   :  { %v2331_v44 = vpop.permute.xlu0 %2330  ;;  %v6270_v2 = vpop.permute.xlu1 %6269 }
 0x969   :  { %2369 = vst.msk [vmem:[#allocation5 + $0x50] sm:$0xf] %vm2358_vm2, %v2331_v44 }
 0x96a   :  { %6308 = vst.msk [vmem:[#allocation5 + $0x4c] sm:$0xf] %vm3694_vm4, %v6270_v2 }
 0x96c   :  { %v4938_v61 = vpop.permute.xlu0 %4937  ;;  %v2333_v16 = vpop.permute.xlu1 %2332  ;;  %v8406_v13 = vld [vmem:[#allocation5 + $0x40] ss:$8 sps:$4 sm:$0xff]  }
 0x96d   :  { %4975 = vst.msk [vmem:[#allocation5 + $0x54] sm:$0xf] %vm2358_vm2, %v4938_v61  ;;  %2370 = vst.msk [vmem:[#allocation5 + $0x58] sm:$0xf] %vm2358_vm2, %v2333_v16 }
 0x970   :  { %v2999_v20 = vpop.permute.xlu0 %2998  ;;  %v4940_v6 = vpop.permute.xlu1 %4939 }
 0x971   :  { %v8408_v40 = vld [vmem:[#allocation5 + $0x44] ss:$8 sps:$4 sm:$0xff]   ;;  %3037 = vst.msk [vmem:[#allocation5 + $0x50] sm:$0xf] %vm3026_vm3, %v2999_v20 }
 0x972   :  { %4976 = vst.msk [vmem:[#allocation5 + $0x5c] sm:$0xf] %vm2358_vm2, %v4940_v6  ;;  %6610 = vmatprep.mubr.bf16.mxu0 %v8408_v40 }
 0x973   :  { %6611 = vmatmul.mubr.bf16.gmra.mxu0 %v8406_v13 }
 0x974   :  { %v5605_v14 = vpop.permute.xlu0 %5604  ;;  %v3001_v21 = vpop.permute.xlu1 %3000 }
 0x975   :  { %5642 = vst.msk [vmem:[#allocation5 + $0x54] sm:$0xf] %vm3026_vm3, %v5605_v14  ;;  %3038 = vst.msk [vmem:[#allocation5 + $0x58] sm:$0xf] %vm3026_vm3, %v3001_v21 }
 0x978   :  { %v3667_v22 = vpop.permute.xlu0 %3666  ;;  %v5607_v50 = vpop.permute.xlu1 %5606 }
 0x979   :  { %3705 = vst.msk [vmem:[#allocation5 + $0x50] sm:$0xf] %vm3694_vm4, %v3667_v22 }
 0x97a   :  { %5643 = vst.msk [vmem:[#allocation5 + $0x5c] sm:$0xf] %vm3026_vm3, %v5607_v50 }
 0x97c   :  { %v6272_v29 = vpop.permute.xlu0 %6271  ;;  %v3669_v42 = vpop.permute.xlu1 %3668 }
 0x97d   :  { %6309 = vst.msk [vmem:[#allocation5 + $0x54] sm:$0xf] %vm3694_vm4, %v6272_v29  ;;  %3706 = vst.msk [vmem:[#allocation5 + $0x58] sm:$0xf] %vm3694_vm4, %v3669_v42 }
 0x980   :  { %v2335_v33 = vpop.permute.xlu0 %2334  ;;  %v6274_v8 = vpop.permute.xlu1 %6273 }
 0x981   :  { %2371 = vst.msk [vmem:[#allocation5 + $0x60] sm:$0xf] %vm2358_vm2, %v2335_v33 }
 0x982   :  { %6310 = vst.msk [vmem:[#allocation5 + $0x5c] sm:$0xf] %vm3694_vm4, %v6274_v8 }
 0x984   :  { %v4942_v5 = vpop.permute.xlu0 %4941  ;;  %v2337_v4 = vpop.permute.xlu1 %2336  ;;  %v8409_v57 = vld [vmem:[#allocation5 + $0x50] ss:$8 sps:$4 sm:$0xff]  }
 0x985   :  { %4977 = vst.msk [vmem:[#allocation5 + $0x64] sm:$0xf] %vm2358_vm2, %v4942_v5  ;;  %2372 = vst.msk [vmem:[#allocation5 + $0x68] sm:$0xf] %vm2358_vm2, %v2337_v4 }
 0x988   :  { %v3003_v24 = vpop.permute.xlu0 %3002  ;;  %v4944_v47 = vpop.permute.xlu1 %4943 }
 0x989   :  { %v8411_v51 = vld [vmem:[#allocation5 + $0x54] ss:$8 sps:$4 sm:$0xff]   ;;  %3039 = vst.msk [vmem:[#allocation5 + $0x60] sm:$0xf] %vm3026_vm3, %v3003_v24 }
 0x98a   :  { %4978 = vst.msk [vmem:[#allocation5 + $0x6c] sm:$0xf] %vm2358_vm2, %v4944_v47  ;;  %6618 = vmatprep.mubr.bf16.mxu0 %v8411_v51 }
 0x98b   :  { %6619 = vmatmul.mubr.bf16.gmra.mxu0 %v8409_v57 }
 0x98c   :  { %v5609_v23 = vpop.permute.xlu0 %5608  ;;  %v3005_v35 = vpop.permute.xlu1 %3004 }
 0x98d   :  { %5644 = vst.msk [vmem:[#allocation5 + $0x64] sm:$0xf] %vm3026_vm3, %v5609_v23  ;;  %3040 = vst.msk [vmem:[#allocation5 + $0x68] sm:$0xf] %vm3026_vm3, %v3005_v35 }
 0x990   :  { %v3671_v55 = vpop.permute.xlu0 %3670  ;;  %v5611_v46 = vpop.permute.xlu1 %5610 }
 0x991   :  { %3707 = vst.msk [vmem:[#allocation5 + $0x60] sm:$0xf] %vm3694_vm4, %v3671_v55 }
 0x992   :  { %5645 = vst.msk [vmem:[#allocation5 + $0x6c] sm:$0xf] %vm3026_vm3, %v5611_v46 }
 0x994   :  { %v6276_v9 = vpop.permute.xlu0 %6275  ;;  %v3673_v43 = vpop.permute.xlu1 %3672 }
 0x995   :  { %6311 = vst.msk [vmem:[#allocation5 + $0x64] sm:$0xf] %vm3694_vm4, %v6276_v9  ;;  %3708 = vst.msk [vmem:[#allocation5 + $0x68] sm:$0xf] %vm3694_vm4, %v3673_v43 }
 0x998   :  { %v2339_v36 = vpop.permute.xlu0 %2338  ;;  %v6278_v25 = vpop.permute.xlu1 %6277 }
 0x999   :  { %2373 = vst.msk [vmem:[#allocation5 + $0x70] sm:$0xf] %vm2358_vm2, %v2339_v36 }
 0x99a   :  { %6312 = vst.msk [vmem:[#allocation5 + $0x6c] sm:$0xf] %vm3694_vm4, %v6278_v25 }
 0x99c   :  { %v4946_v49 = vpop.permute.xlu0 %4945  ;;  %v2341_v53 = vpop.permute.xlu1 %2340  ;;  %v8412_v45 = vld [vmem:[#allocation5 + $0x60] ss:$8 sps:$4 sm:$0xff]  }
 0x99d   :  { %4979 = vst.msk [vmem:[#allocation5 + $0x74] sm:$0xf] %vm2358_vm2, %v4946_v49  ;;  %2374 = vst.msk [vmem:[#allocation5 + $0x78] sm:$0xf] %vm2358_vm2, %v2341_v53 }
 0x9a0   :  { %v3007_v3 = vpop.permute.xlu0 %3006  ;;  %v4948_v38 = vpop.permute.xlu1 %4947 }
 0x9a1   :  { %v8414_v63 = vld [vmem:[#allocation5 + $0x64] ss:$8 sps:$4 sm:$0xff]   ;;  %3041 = vst.msk [vmem:[#allocation5 + $0x70] sm:$0xf] %vm3026_vm3, %v3007_v3 }
 0x9a2   :  { %4980 = vst.msk [vmem:[#allocation5 + $0x7c] sm:$0xf] %vm2358_vm2, %v4948_v38  ;;  %6626 = vmatprep.mubr.bf16.mxu0 %v8414_v63 }
 0x9a3   :  { %6627 = vmatmul.mubr.bf16.gmra.mxu0 %v8412_v45 }
 0x9a4   :  { %v5613_v12 = vpop.permute.xlu0 %5612  ;;  %v3009_v0 = vpop.permute.xlu1 %3008 }
 0x9a5   :  { %5646 = vst.msk [vmem:[#allocation5 + $0x74] sm:$0xf] %vm3026_vm3, %v5613_v12  ;;  %3042 = vst.msk [vmem:[#allocation5 + $0x78] sm:$0xf] %vm3026_vm3, %v3009_v0 }
 0x9a8   :  { %v3675_v41 = vpop.permute.xlu0 %3674  ;;  %v5615_v32 = vpop.permute.xlu1 %5614 }
 0x9a9   :  { %3709 = vst.msk [vmem:[#allocation5 + $0x70] sm:$0xf] %vm3694_vm4, %v3675_v41 }
 0x9aa   :  { %5647 = vst.msk [vmem:[#allocation5 + $0x7c] sm:$0xf] %vm3026_vm3, %v5615_v32 }
 0x9ac   :  { %v6280_v62 = vpop.permute.xlu0 %6279  ;;  %v3677_v19 = vpop.permute.xlu1 %3676 }
 0x9ad   :  { %6313 = vst.msk [vmem:[#allocation5 + $0x74] sm:$0xf] %vm3694_vm4, %v6280_v62  ;;  %3710 = vst.msk [vmem:[#allocation5 + $0x78] sm:$0xf] %vm3694_vm4, %v3677_v19 }
 0x9b0   :  { %v6282_v54 = vpop.permute.xlu1 %6281 }
 0x9b1   :  { %6314 = vst.msk [vmem:[#allocation5 + $0x7c] sm:$0xf] %vm3694_vm4, %v6282_v54 }
 0x9b4   :  { %v8415_v58 = vld [vmem:[#allocation5 + $0x70] ss:$8 sps:$4 sm:$0xff]  }
 0x9b8   :  { %v8417_v39 = vld [vmem:[#allocation5 + $0x74] ss:$8 sps:$4 sm:$0xff]  }
 0x9b9   :  { %6634 = vmatprep.mubr.bf16.mxu0 %v8417_v39 }
 0x9ba   :  { %6635 = vmatmul.mubr.bf16.gmra.mxu0 %v8415_v58 }
 0x9d4   :  { %v7694_v59 = vpop.f32.mrf.mxu0 }
 0x9d6   :  { %v7695_v30 = vpop.f32.mrf.mxu0 }
 0x9d7   :  { %v7696_v56 = vadd.f32 %v7695_v30, %v7694_v59 }
 0x9d8   :  { %v7697_v18 = vpop.f32.mrf.mxu0 }
 0x9d9   :  { %v6581_v17 = vadd.f32 %v7696_v56, %v11519_v7 }
 0x9da   :  { %v7698_v48 = vpop.f32.mrf.mxu0 }
 0x9db   :  { %6643 = vst.msk [vmem:[#allocation9] sm:$0xff] %vm124_vm0, %v6581_v17  ;;  %v7699_v28 = vadd.f32 %v7698_v48, %v7697_v18 }
 0x9dd   :  { %v6584_v1 = vadd.f32 %v7699_v28, %v11519_v7 }
 0x9df   :  { %6644 = vst.msk [vmem:[#allocation9 + $0x8] sm:$0xff] %vm124_vm0, %v6584_v1 }
 0x9ec   :  { %v7700_v10 = vpop.f32.mrf.mxu0 }
 0x9ee   :  { %v7701_v11 = vpop.f32.mrf.mxu0 }
 0x9ef   :  { %v7702_v37 = vadd.f32 %v7701_v11, %v7700_v10 }
 0x9f0   :  { %v7703_v27 = vpop.f32.mrf.mxu0 }
 0x9f1   :  { %v6589_v34 = vadd.f32 %v7702_v37, %v11519_v7 }
 0x9f2   :  { %v7704_v31 = vpop.f32.mrf.mxu0 }
 0x9f3   :  { %6645 = vst.msk [vmem:[#allocation9 + $0x10] sm:$0xff] %vm124_vm0, %v6589_v34  ;;  %v7705_v60 = vadd.f32 %v7704_v31, %v7703_v27 }
 0x9f5   :  { %v6592_v15 = vadd.f32 %v7705_v60, %v11519_v7 }
 0x9f7   :  { %6646 = vst.msk [vmem:[#allocation9 + $0x18] sm:$0xff] %vm124_vm0, %v6592_v15 }
 0xa03   :  { %v7706_v26 = vpop.f32.mrf.mxu0 }
 0xa05   :  { %v7707_v52 = vpop.f32.mrf.mxu0 }
 0xa06   :  { %v7708_v44 = vadd.f32 %v7707_v52, %v7706_v26 }
 0xa07   :  { %v7709_v2 = vpop.f32.mrf.mxu0 }
 0xa08   :  { %v6597_v61 = vadd.f32 %v7708_v44, %v11519_v7 }
 0xa09   :  { %v7710_v16 = vpop.f32.mrf.mxu0 }
 0xa0a   :  { %6647 = vst.msk [vmem:[#allocation9 + $0x20] sm:$0xff] %vm124_vm0, %v6597_v61  ;;  %v7711_v20 = vadd.f32 %v7710_v16, %v7709_v2 }
 0xa0c   :  { %v6600_v6 = vadd.f32 %v7711_v20, %v11519_v7 }
 0xa0e   :  { %6648 = vst.msk [vmem:[#allocation9 + $0x28] sm:$0xff] %vm124_vm0, %v6600_v6 }
 0xa1b   :  { %v7712_v13 = vpop.f32.mrf.mxu0 }
 0xa1d   :  { %v7713_v40 = vpop.f32.mrf.mxu0 }
 0xa1e   :  { %v7714_v14 = vadd.f32 %v7713_v40, %v7712_v13 }
 0xa1f   :  { %v7715_v21 = vpop.f32.mrf.mxu0 }
 0xa20   :  { %v6605_v22 = vadd.f32 %v7714_v14, %v11519_v7 }
 0xa21   :  { %v7716_v50 = vpop.f32.mrf.mxu0 }
 0xa22   :  { %6649 = vst.msk [vmem:[#allocation9 + $0x30] sm:$0xff] %vm124_vm0, %v6605_v22  ;;  %v7717_v29 = vadd.f32 %v7716_v50, %v7715_v21 }
 0xa24   :  { %v6608_v42 = vadd.f32 %v7717_v29, %v11519_v7 }
 0xa26   :  { %6650 = vst.msk [vmem:[#allocation9 + $0x38] sm:$0xff] %vm124_vm0, %v6608_v42 }
 0xa33   :  { %v7718_v33 = vpop.f32.mrf.mxu0 }
 0xa35   :  { %v7719_v8 = vpop.f32.mrf.mxu0 }
 0xa36   :  { %v7720_v5 = vadd.f32 %v7719_v8, %v7718_v33 }
 0xa37   :  { %v7721_v4 = vpop.f32.mrf.mxu0 }
 0xa38   :  { %v6613_v24 = vadd.f32 %v7720_v5, %v11519_v7 }
 0xa39   :  { %v7722_v47 = vpop.f32.mrf.mxu0 }
 0xa3a   :  { %6651 = vst.msk [vmem:[#allocation9 + $0x40] sm:$0xff] %vm124_vm0, %v6613_v24  ;;  %v7723_v57 = vadd.f32 %v7722_v47, %v7721_v4 }
 0xa3c   :  { %v6616_v51 = vadd.f32 %v7723_v57, %v11519_v7 }
 0xa3e   :  { %6652 = vst.msk [vmem:[#allocation9 + $0x48] sm:$0xff] %vm124_vm0, %v6616_v51 }
 0xa4b   :  { %v7724_v23 = vpop.f32.mrf.mxu0 }
 0xa4d   :  { %v7725_v35 = vpop.f32.mrf.mxu0 }
 0xa4e   :  { %v7726_v55 = vadd.f32 %v7725_v35, %v7724_v23 }
 0xa4f   :  { %v7727_v46 = vpop.f32.mrf.mxu0 }
 0xa50   :  { %v6621_v9 = vadd.f32 %v7726_v55, %v11519_v7 }
 0xa51   :  { %v7728_v43 = vpop.f32.mrf.mxu0 }
 0xa52   :  { %6653 = vst.msk [vmem:[#allocation9 + $0x50] sm:$0xff] %vm124_vm0, %v6621_v9  ;;  %v7729_v36 = vadd.f32 %v7728_v43, %v7727_v46 }
 0xa54   :  { %v6624_v25 = vadd.f32 %v7729_v36, %v11519_v7 }
 0xa56   :  { %6654 = vst.msk [vmem:[#allocation9 + $0x58] sm:$0xff] %vm124_vm0, %v6624_v25 }
 0xa63   :  { %v7730_v49 = vpop.f32.mrf.mxu0 }
 0xa65   :  { %v7731_v53 = vpop.f32.mrf.mxu0 }
 0xa66   :  { %v7732_v3 = vadd.f32 %v7731_v53, %v7730_v49 }
 0xa67   :  { %v7733_v38 = vpop.f32.mrf.mxu0 }
 0xa68   :  { %v6629_v45 = vadd.f32 %v7732_v3, %v11519_v7 }
 0xa69   :  { %v7734_v63 = vpop.f32.mrf.mxu0 }
 0xa6a   :  { %6655 = vst.msk [vmem:[#allocation9 + $0x60] sm:$0xff] %vm124_vm0, %v6629_v45  ;;  %v7735_v12 = vadd.f32 %v7734_v63, %v7733_v38 }
 0xa6c   :  { %v6632_v0 = vadd.f32 %v7735_v12, %v11519_v7 }
 0xa6e   :  { %6656 = vst.msk [vmem:[#allocation9 + $0x68] sm:$0xff] %vm124_vm0, %v6632_v0 }
 0xa7a   :  { %v7736_v41 = vpop.f32.mrf.mxu0 }
 0xa7c   :  { %v7737_v32 = vpop.f32.mrf.mxu0 }
 0xa7d   :  { %v7738_v62 = vadd.f32 %v7737_v32, %v7736_v41 }
 0xa7e   :  { %v7739_v19 = vpop.f32.mrf.mxu0 }
 0xa7f   :  { %v6637_v54 = vadd.f32 %v7738_v62, %v11519_v7 }
 0xa80   :  { %v7740_v58 = vpop.f32.mrf.mxu0 }
 0xa81   :  { %6657 = vst.msk [vmem:[#allocation9 + $0x70] sm:$0xff] %vm124_vm0, %v6637_v54  ;;  %v7741_v39 = vadd.f32 %v7740_v58, %v7739_v19 }
 0xa83   :  { %v6640_v59 = vadd.f32 %v7741_v39, %v11519_v7 }
 0xa85   :  { %6658 = vst.msk [vmem:[#allocation9 + $0x78] sm:$0xff] %vm124_vm0, %v6640_v59 }
 0xa86   :  { %8961 = shalt.err (!%p8958_p9)
}
 0xa87   :  { %6670 = dma.vmem_to_hbm [thread:$0]  %s6665_s14, 2048, %s11566_s7, [#allocation8], %s8975_s27, %s8975_s27, %s8976_s28  }
 0xa88   :  { %8972 = dma.done.wait [#allocation8], 2048  }
 0xa89   :  { %8973 = vsyncadd [#allocation8], 4294965248 }
 0xa8a   :  { %6674 = vsyncpa [#allocation7], 1 }
 0xa8b   :  { %6675 = vsyncpa [#allocation8], 1 }

</bundles_post_ra>
